<compile_context>
chip_gen: v7x
topology: tpu7x:2x2x1
jax: 0.10.0
libtpu: 0.0.40
codegen_flags: <defaults>
</compile_context>

<pallas_src>
import functools

import jax
import jax.numpy as jnp
import numpy as np
from jax import lax
from jax.experimental import pallas as pl
from jax.experimental.pallas import tpu as pltpu

EPS = 1e-5                      # nn.BatchNorm2d default eps
LANE = 128                      # TPU lane width: kernel-internal channel dim
MATMUL_DTYPE = jnp.bfloat16     # MXU operand dtype (f32 accumulation)


# ---------------------------------------------------------------------------
# Fused kernel
# ---------------------------------------------------------------------------
def _bn_relu(y, gamma, beta):
    """Training-mode BatchNorm over rows (per channel) + ReLU, all in f32."""
    mean = jnp.mean(y, axis=0, keepdims=True)
    var = jnp.mean((y - mean) ** 2, axis=0, keepdims=True)   # biased variance
    yhat = (y - mean) * lax.rsqrt(var + EPS)
    return jnp.maximum(yhat * gamma + beta, 0.0)


def fused_bottleneck_kernel(x_ref, w1_ref, g1_ref, b1_ref,
                            w2_ref, g2_ref, b2_ref,
                            w3_ref, g3_ref, b3_ref,
                            o_ref, z1p_ref, *, n, h, w):
    cp = x_ref.shape[1]          # lane-padded channel width (128)
    m = n * h * w

    x = x_ref[...]                                            # (M, Cp) f32

    # ---- conv1 (1x1) + bn1 + relu   (bf16 MXU matmul, f32 accumulation)
    y1 = jnp.dot(x.astype(MATMUL_DTYPE), w1_ref[...],
                 preferred_element_type=jnp.float32)
    z1 = _bn_relu(y1, g1_ref[...], b1_ref[...])

    # ---- conv2 (3x3, stride=1, padding=1) + bn2 + relu
    # Spatially padded copy of z1 lives only in VMEM scratch (never HBM).
    z1p_ref[...] = jnp.zeros_like(z1p_ref)
    z1p_ref[:, 1:h + 1, 1:w + 1, :] = z1.reshape(n, h, w, cp)
    zp = z1p_ref[...]
    acc = jnp.zeros((m, cp), jnp.float32)
    for kh in range(3):                                       # static unroll
        for kw in range(3):
            patch = zp[:, kh:kh + h, kw:kw + w, :].reshape(m, cp)
            acc = acc + jnp.dot(patch.astype(MATMUL_DTYPE),
                                w2_ref[kh * 3 + kw],
                                preferred_element_type=jnp.float32)
    z2 = _bn_relu(acc, g2_ref[...], b2_ref[...])

    # ---- conv3 (1x1) + bn3 + relu, then += shortcut (identity), relu
    y3 = jnp.dot(z2.astype(MATMUL_DTYPE), w3_ref[...],
                 preferred_element_type=jnp.float32)
    z3 = _bn_relu(y3, g3_ref[...], b3_ref[...])
    o_ref[...] = jnp.maximum(z3 + x, 0.0)                     # lane-dense store


# ---------------------------------------------------------------------------
# Wrapper: layout plumbing (NCHW <-> lane-dense (M, 128)), single pallas_call
# ---------------------------------------------------------------------------
def _pad_cols(a, cols):
    return jnp.pad(a, ((0, 0), (0, cols - a.shape[1])))


def deconv_bottleneck(x_nchw, params):
    """DeconvBottleneck forward (stride=1, upsample=None); NCHW f32 in/out."""
    x = jnp.transpose(x_nchw, (0, 2, 3, 1)).astype(jnp.float32)   # NHWC
    n, h, w, cin = x.shape
    c1 = params["w1"].shape[1]
    cexp = params["w3"].shape[1]
    assert cin == cexp, "upsample=None requires in_channels == out_channels*expansion"
    assert max(cin, c1, cexp) <= LANE
    m = n * h * w
    cp = LANE

    # Lane-dense kernel-internal layout: zero-pad every channel dim to 128.
    # Padded channels stay exactly zero through conv/bn/relu/add and are
    # sliced off again below.  Weights are cast to bf16 (MXU operands); the
    # activation / shortcut input stays f32 (exact residual add).
    x2d = _pad_cols(x.reshape(m, cin), cp)
    w1 = jnp.pad(params["w1"], ((0, cp - cin), (0, cp - c1))).astype(MATMUL_DTYPE)
    w2 = jnp.pad(params["w2"],
                 ((0, 0), (0, 0), (0, cp - c1), (0, cp - c1))
                 ).reshape(9, cp, cp).astype(MATMUL_DTYPE)
    w3 = jnp.pad(params["w3"], ((0, cp - c1), (0, cp - cexp))).astype(MATMUL_DTYPE)
    g1, b1 = _pad_cols(params["g1"], cp), _pad_cols(params["b1"], cp)
    g2, b2 = _pad_cols(params["g2"], cp), _pad_cols(params["b2"], cp)
    g3, b3 = _pad_cols(params["g3"], cp), _pad_cols(params["b3"], cp)

    flops = 2 * m * cp * cp * (1 + 9 + 1)
    bytes_accessed = ((x2d.size + m * cp + 6 * cp) * 4
                      + (w1.size + w2.size + w3.size) * 2)

    vmem = pl.BlockSpec(memory_space=pltpu.MemorySpace.VMEM)
    out = pl.pallas_call(
        functools.partial(fused_bottleneck_kernel, n=n, h=h, w=w),
        out_shape=jax.ShapeDtypeStruct((m, cp), jnp.float32),
        in_specs=[vmem] * 10,
        out_specs=vmem,
        scratch_shapes=[pltpu.VMEM((n, h + 2, w + 2, cp), jnp.float32)],
        compiler_params=pltpu.CompilerParams(vmem_limit_bytes=32 * 1024 * 1024),
        cost_estimate=pl.CostEstimate(flops=flops, transcendentals=3 * cp,
                                      bytes_accessed=bytes_accessed),
    )(x2d, w1, g1, b1, w2, g2, b2, w3, g3, b3)

    y = out[:, :cexp].reshape(n, h, w, cexp)
    return jnp.transpose(y, (0, 3, 1, 2))                     # back to NCHW


# ---------------------------------------------------------------------------
# Pure-JAX reference.  Same math as the PyTorch module (training-mode BN,
# relu(bn3)+shortcut then relu); matmul operands use the same precision the
# kernel was configured with (f32 accumulation, f32 BN / residual epilogue).
# ---------------------------------------------------------------------------
def reference_forward(x_nchw, params, matmul_dtype=jnp.float32):
    x = jnp.transpose(x_nchw, (0, 2, 3, 1)).astype(jnp.float32)
    cast = lambda t: t.astype(matmul_dtype)

    def bn_relu(y, g, b):
        mean = jnp.mean(y, axis=(0, 1, 2), keepdims=True)
        var = jnp.mean((y - mean) ** 2, axis=(0, 1, 2), keepdims=True)
        return jnp.maximum((y - mean) * lax.rsqrt(var + EPS) * g + b, 0.0)

    y = bn_relu(jnp.einsum("nhwc,cd->nhwd", cast(x), cast(params["w1"]),
                           preferred_element_type=jnp.float32),
                params["g1"], params["b1"])
    y = lax.conv_general_dilated(cast(y), cast(params["w2"]), (1, 1),
                                 ((1, 1), (1, 1)),
                                 dimension_numbers=("NHWC", "HWIO", "NHWC"),
                                 preferred_element_type=jnp.float32)
    y = bn_relu(y, params["g2"], params["b2"])
    y = bn_relu(jnp.einsum("nhwc,cd->nhwd", cast(y), cast(params["w3"]),
                           preferred_element_type=jnp.float32),
                params["g3"], params["b3"])
    y = jnp.maximum(y + x, 0.0)
    return jnp.transpose(y, (0, 3, 1, 2))


# ---------------------------------------------------------------------------
if __name__ == "__main__":
    n, h, w = 2, 16, 16
    out_channels, expansion = 4, 2
    in_channels = out_channels * expansion      # identity shortcut shape-matches
    c_exp = out_channels * expansion

    ks = jax.random.split(jax.random.PRNGKey(0), 10)
    params = {
        "w1": 0.2 * jax.random.normal(ks[0], (in_channels, out_channels), jnp.float32),
        "g1": 1.0 + 0.1 * jax.random.normal(ks[1], (1, out_channels), jnp.float32),
        "b1": 0.1 * jax.random.normal(ks[2], (1, out_channels), jnp.float32),
        "w2": 0.2 * jax.random.normal(ks[3], (3, 3, out_channels, out_channels), jnp.float32),
        "g2": 1.0 + 0.1 * jax.random.normal(ks[4], (1, out_channels), jnp.float32),
        "b2": 0.1 * jax.random.normal(ks[5], (1, out_channels), jnp.float32),
        "w3": 0.2 * jax.random.normal(ks[6], (out_channels, c_exp), jnp.float32),
        "g3": 1.0 + 0.1 * jax.random.normal(ks[7], (1, c_exp), jnp.float32),
        "b3": 0.1 * jax.random.normal(ks[8], (1, c_exp), jnp.float32),
    }
    x = jax.random.normal(ks[9], (n, in_channels, h, w), jnp.float32)

    fwd = jax.jit(deconv_bottleneck)
    out = jax.block_until_ready(fwd(x, params))
    ref = jax.block_until_ready(
        reference_forward(x, params, matmul_dtype=MATMUL_DTYPE))

    assert out.shape == (n, c_exp, h, w), out.shape
    # Tolerance accounts for bf16 MXU operands (perf-review trade-off): tiny
    # f32 accumulation-order differences can flip individual bf16 roundings
    # between kernel and reference, propagating to ~1e-2-level deltas on O(1)
    # outputs.  A wrong implementation would be off by O(0.1-1).
    np.testing.assert_allclose(np.asarray(out), np.asarray(ref),
                               rtol=2e-2, atol=2e-2)
    print("KERNEL_OK")
</pallas_src>

<mosaic_0001>
module attributes {stable_mosaic.version = 11 : i64} {
  func.func @fused_bottleneck_kernel(%arg0: memref<512x128xf32, #tpu.memory_space<vmem>>, %arg1: memref<128x128xbf16, #tpu.memory_space<vmem>>, %arg2: memref<1x128xf32, #tpu.memory_space<vmem>>, %arg3: memref<1x128xf32, #tpu.memory_space<vmem>>, %arg4: memref<9x128x128xbf16, #tpu.memory_space<vmem>>, %arg5: memref<1x128xf32, #tpu.memory_space<vmem>>, %arg6: memref<1x128xf32, #tpu.memory_space<vmem>>, %arg7: memref<128x128xbf16, #tpu.memory_space<vmem>>, %arg8: memref<1x128xf32, #tpu.memory_space<vmem>>, %arg9: memref<1x128xf32, #tpu.memory_space<vmem>>, %arg10: memref<512x128xf32, #tpu.memory_space<vmem>>, %arg11: memref<2x18x18x128xf32, #tpu.memory_space<vmem>>) attributes {dimension_semantics = [], scalar_prefetch = 0 : i64, scratch_operands = 1 : i64, tpu.core_type = #tpu.core_type<tc>} {
    %c0 = arith.constant 0 : index
    %c0_0 = arith.constant 0 : index
    %0 = vector.load %arg0[%c0, %c0_0] : memref<512x128xf32, #tpu.memory_space<vmem>>, vector<512x128xf32>
    %1 = arith.truncf %0 : vector<512x128xf32> to vector<512x128xbf16>
    %c0_1 = arith.constant 0 : index
    %c0_2 = arith.constant 0 : index
    %2 = vector.load %arg1[%c0_1, %c0_2] : memref<128x128xbf16, #tpu.memory_space<vmem>>, vector<128x128xbf16>
    %cst = arith.constant dense<0.000000e+00> : vector<512x128xf32>
    %3 = tpu.matmul %1, %2, %cst {dimension_numbers = #tpu.dot_dimension_numbers<[1], [0], [0], [1], [0, 0, 1, 1], [], []>} : vector<512x128xbf16>, vector<128x128xbf16>, vector<512x128xf32> -> vector<512x128xf32>
    %c0_3 = arith.constant 0 : index
    %c0_4 = arith.constant 0 : index
    %4 = vector.load %arg2[%c0_3, %c0_4] : memref<1x128xf32, #tpu.memory_space<vmem>>, vector<1x128xf32>
    %c0_5 = arith.constant 0 : index
    %c0_6 = arith.constant 0 : index
    %5 = vector.load %arg3[%c0_5, %c0_6] : memref<1x128xf32, #tpu.memory_space<vmem>>, vector<1x128xf32>
    %cst_7 = arith.constant dense<0.000000e+00> : vector<128xf32>
    %6 = vector.multi_reduction <add>, %3, %cst_7 [0] : vector<512x128xf32> to vector<128xf32>
    %7 = vector.shape_cast %6 : vector<128xf32> to vector<1x128xf32>
    %cst_8 = arith.constant 5.120000e+02 : f32
    %8 = vector.broadcast %cst_8 : f32 to vector<1x128xf32>
    %9 = arith.divf %7, %8 : vector<1x128xf32>
    %10 = vector.broadcast %9 : vector<1x128xf32> to vector<512x128xf32>
    %11 = arith.subf %3, %10 : vector<512x128xf32>
    %12 = arith.mulf %11, %11 : vector<512x128xf32>
    %cst_9 = arith.constant dense<0.000000e+00> : vector<128xf32>
    %13 = vector.multi_reduction <add>, %12, %cst_9 [0] : vector<512x128xf32> to vector<128xf32>
    %14 = vector.shape_cast %13 : vector<128xf32> to vector<1x128xf32>
    %cst_10 = arith.constant 5.120000e+02 : f32
    %15 = vector.broadcast %cst_10 : f32 to vector<1x128xf32>
    %16 = arith.divf %14, %15 : vector<1x128xf32>
    %17 = vector.broadcast %9 : vector<1x128xf32> to vector<512x128xf32>
    %18 = arith.subf %3, %17 : vector<512x128xf32>
    %cst_11 = arith.constant 9.99999974E-6 : f32
    %19 = vector.broadcast %cst_11 : f32 to vector<1x128xf32>
    %20 = arith.addf %16, %19 : vector<1x128xf32>
    %21 = math.rsqrt %20 : vector<1x128xf32>
    %22 = vector.broadcast %21 : vector<1x128xf32> to vector<512x128xf32>
    %23 = arith.mulf %18, %22 : vector<512x128xf32>
    %24 = vector.broadcast %4 : vector<1x128xf32> to vector<512x128xf32>
    %25 = arith.mulf %23, %24 : vector<512x128xf32>
    %26 = vector.broadcast %5 : vector<1x128xf32> to vector<512x128xf32>
    %27 = arith.addf %25, %26 : vector<512x128xf32>
    %cst_12 = arith.constant 0.000000e+00 : f32
    %28 = vector.broadcast %cst_12 : f32 to vector<512x128xf32>
    %29 = arith.maximumf %27, %28 : vector<512x128xf32>
    %cst_13 = arith.constant 0.000000e+00 : f32
    %30 = vector.broadcast %cst_13 : f32 to vector<2x18x18x128xf32>
    %c0_14 = arith.constant 0 : index
    %c0_15 = arith.constant 0 : index
    %c0_16 = arith.constant 0 : index
    %c0_17 = arith.constant 0 : index
    %31 = vector.load %arg11[%c0_14, %c0_15, %c0_16, %c0_17] : memref<2x18x18x128xf32, #tpu.memory_space<vmem>>, vector<2x18x18x128xf32>
    tpu.vector_store %arg11[%c0_14, %c0_15, %c0_16, %c0_17], %30 {strides = array<i32>} : memref<2x18x18x128xf32, #tpu.memory_space<vmem>>, vector<2x18x18x128xf32>,
    %32 = vector.shape_cast %29 : vector<512x128xf32> to vector<2x16x16x128xf32>
    %c0_18 = arith.constant 0 : index
    %c1 = arith.constant 1 : index
    %c1_19 = arith.constant 1 : index
    %c0_20 = arith.constant 0 : index
    %33 = vector.load %arg11[%c0_18, %c1, %c1_19, %c0_20] : memref<2x18x18x128xf32, #tpu.memory_space<vmem>>, vector<2x16x16x128xf32>
    tpu.vector_store %arg11[%c0_18, %c1, %c1_19, %c0_20], %32 {strides = array<i32>} : memref<2x18x18x128xf32, #tpu.memory_space<vmem>>, vector<2x16x16x128xf32>,
    %c0_21 = arith.constant 0 : index
    %c0_22 = arith.constant 0 : index
    %c0_23 = arith.constant 0 : index
    %c0_24 = arith.constant 0 : index
    %34 = vector.load %arg11[%c0_21, %c0_22, %c0_23, %c0_24] : memref<2x18x18x128xf32, #tpu.memory_space<vmem>>, vector<2x18x18x128xf32>
    %cst_25 = arith.constant 0.000000e+00 : f32
    %35 = vector.broadcast %cst_25 : f32 to vector<512x128xf32>
    %36 = vector.extract_strided_slice %34 {offsets = [0, 0, 0, 0], sizes = [2, 16, 16, 128], strides = [1, 1, 1, 1]} : vector<2x18x18x128xf32> to vector<2x16x16x128xf32>
    %37 = vector.shape_cast %36 : vector<2x16x16x128xf32> to vector<512x128xf32>
    %38 = arith.truncf %37 : vector<512x128xf32> to vector<512x128xbf16>
    %c0_26 = arith.constant 0 : index
    %c0_27 = arith.constant 0 : index
    %c0_28 = arith.constant 0 : index
    %39 = vector.load %arg4[%c0_26, %c0_27, %c0_28] : memref<9x128x128xbf16, #tpu.memory_space<vmem>>, vector<1x128x128xbf16>
    %40 = vector.shape_cast %39 : vector<1x128x128xbf16> to vector<128x128xbf16>
    %cst_29 = arith.constant dense<0.000000e+00> : vector<512x128xf32>
    %41 = tpu.matmul %38, %40, %cst_29 {dimension_numbers = #tpu.dot_dimension_numbers<[1], [0], [0], [1], [0, 0, 1, 1], [], []>} : vector<512x128xbf16>, vector<128x128xbf16>, vector<512x128xf32> -> vector<512x128xf32>
    %42 = arith.addf %35, %41 : vector<512x128xf32>
    %43 = vector.extract_strided_slice %34 {offsets = [0, 0, 1, 0], sizes = [2, 16, 16, 128], strides = [1, 1, 1, 1]} : vector<2x18x18x128xf32> to vector<2x16x16x128xf32>
    %44 = vector.shape_cast %43 : vector<2x16x16x128xf32> to vector<512x128xf32>
    %45 = arith.truncf %44 : vector<512x128xf32> to vector<512x128xbf16>
    %c1_30 = arith.constant 1 : index
    %c0_31 = arith.constant 0 : index
    %c0_32 = arith.constant 0 : index
    %46 = vector.load %arg4[%c1_30, %c0_31, %c0_32] : memref<9x128x128xbf16, #tpu.memory_space<vmem>>, vector<1x128x128xbf16>
    %47 = vector.shape_cast %46 : vector<1x128x128xbf16> to vector<128x128xbf16>
    %cst_33 = arith.constant dense<0.000000e+00> : vector<512x128xf32>
    %48 = tpu.matmul %45, %47, %cst_33 {dimension_numbers = #tpu.dot_dimension_numbers<[1], [0], [0], [1], [0, 0, 1, 1], [], []>} : vector<512x128xbf16>, vector<128x128xbf16>, vector<512x128xf32> -> vector<512x128xf32>
    %49 = arith.addf %42, %48 : vector<512x128xf32>
    %50 = vector.extract_strided_slice %34 {offsets = [0, 0, 2, 0], sizes = [2, 16, 16, 128], strides = [1, 1, 1, 1]} : vector<2x18x18x128xf32> to vector<2x16x16x128xf32>
    %51 = vector.shape_cast %50 : vector<2x16x16x128xf32> to vector<512x128xf32>
    %52 = arith.truncf %51 : vector<512x128xf32> to vector<512x128xbf16>
    %c2 = arith.constant 2 : index
    %c0_34 = arith.constant 0 : index
    %c0_35 = arith.constant 0 : index
    %53 = vector.load %arg4[%c2, %c0_34, %c0_35] : memref<9x128x128xbf16, #tpu.memory_space<vmem>>, vector<1x128x128xbf16>
    %54 = vector.shape_cast %53 : vector<1x128x128xbf16> to vector<128x128xbf16>
    %cst_36 = arith.constant dense<0.000000e+00> : vector<512x128xf32>
    %55 = tpu.matmul %52, %54, %cst_36 {dimension_numbers = #tpu.dot_dimension_numbers<[1], [0], [0], [1], [0, 0, 1, 1], [], []>} : vector<512x128xbf16>, vector<128x128xbf16>, vector<512x128xf32> -> vector<512x128xf32>
    %56 = arith.addf %49, %55 : vector<512x128xf32>
    %57 = vector.extract_strided_slice %34 {offsets = [0, 1, 0, 0], sizes = [2, 16, 16, 128], strides = [1, 1, 1, 1]} : vector<2x18x18x128xf32> to vector<2x16x16x128xf32>
    %58 = vector.shape_cast %57 : vector<2x16x16x128xf32> to vector<512x128xf32>
    %59 = arith.truncf %58 : vector<512x128xf32> to vector<512x128xbf16>
    %c3 = arith.constant 3 : index
    %c0_37 = arith.constant 0 : index
    %c0_38 = arith.constant 0 : index
    %60 = vector.load %arg4[%c3, %c0_37, %c0_38] : memref<9x128x128xbf16, #tpu.memory_space<vmem>>, vector<1x128x128xbf16>
    %61 = vector.shape_cast %60 : vector<1x128x128xbf16> to vector<128x128xbf16>
    %cst_39 = arith.constant dense<0.000000e+00> : vector<512x128xf32>
    %62 = tpu.matmul %59, %61, %cst_39 {dimension_numbers = #tpu.dot_dimension_numbers<[1], [0], [0], [1], [0, 0, 1, 1], [], []>} : vector<512x128xbf16>, vector<128x128xbf16>, vector<512x128xf32> -> vector<512x128xf32>
    %63 = arith.addf %56, %62 : vector<512x128xf32>
    %64 = vector.extract_strided_slice %34 {offsets = [0, 1, 1, 0], sizes = [2, 16, 16, 128], strides = [1, 1, 1, 1]} : vector<2x18x18x128xf32> to vector<2x16x16x128xf32>
    %65 = vector.shape_cast %64 : vector<2x16x16x128xf32> to vector<512x128xf32>
    %66 = arith.truncf %65 : vector<512x128xf32> to vector<512x128xbf16>
    %c4 = arith.constant 4 : index
    %c0_40 = arith.constant 0 : index
    %c0_41 = arith.constant 0 : index
    %67 = vector.load %arg4[%c4, %c0_40, %c0_41] : memref<9x128x128xbf16, #tpu.memory_space<vmem>>, vector<1x128x128xbf16>
    %68 = vector.shape_cast %67 : vector<1x128x128xbf16> to vector<128x128xbf16>
    %cst_42 = arith.constant dense<0.000000e+00> : vector<512x128xf32>
    %69 = tpu.matmul %66, %68, %cst_42 {dimension_numbers = #tpu.dot_dimension_numbers<[1], [0], [0], [1], [0, 0, 1, 1], [], []>} : vector<512x128xbf16>, vector<128x128xbf16>, vector<512x128xf32> -> vector<512x128xf32>
    %70 = arith.addf %63, %69 : vector<512x128xf32>
    %71 = vector.extract_strided_slice %34 {offsets = [0, 1, 2, 0], sizes = [2, 16, 16, 128], strides = [1, 1, 1, 1]} : vector<2x18x18x128xf32> to vector<2x16x16x128xf32>
    %72 = vector.shape_cast %71 : vector<2x16x16x128xf32> to vector<512x128xf32>
    %73 = arith.truncf %72 : vector<512x128xf32> to vector<512x128xbf16>
    %c5 = arith.constant 5 : index
    %c0_43 = arith.constant 0 : index
    %c0_44 = arith.constant 0 : index
    %74 = vector.load %arg4[%c5, %c0_43, %c0_44] : memref<9x128x128xbf16, #tpu.memory_space<vmem>>, vector<1x128x128xbf16>
    %75 = vector.shape_cast %74 : vector<1x128x128xbf16> to vector<128x128xbf16>
    %cst_45 = arith.constant dense<0.000000e+00> : vector<512x128xf32>
    %76 = tpu.matmul %73, %75, %cst_45 {dimension_numbers = #tpu.dot_dimension_numbers<[1], [0], [0], [1], [0, 0, 1, 1], [], []>} : vector<512x128xbf16>, vector<128x128xbf16>, vector<512x128xf32> -> vector<512x128xf32>
    %77 = arith.addf %70, %76 : vector<512x128xf32>
    %78 = vector.extract_strided_slice %34 {offsets = [0, 2, 0, 0], sizes = [2, 16, 16, 128], strides = [1, 1, 1, 1]} : vector<2x18x18x128xf32> to vector<2x16x16x128xf32>
    %79 = vector.shape_cast %78 : vector<2x16x16x128xf32> to vector<512x128xf32>
    %80 = arith.truncf %79 : vector<512x128xf32> to vector<512x128xbf16>
    %c6 = arith.constant 6 : index
    %c0_46 = arith.constant 0 : index
    %c0_47 = arith.constant 0 : index
    %81 = vector.load %arg4[%c6, %c0_46, %c0_47] : memref<9x128x128xbf16, #tpu.memory_space<vmem>>, vector<1x128x128xbf16>
    %82 = vector.shape_cast %81 : vector<1x128x128xbf16> to vector<128x128xbf16>
    %cst_48 = arith.constant dense<0.000000e+00> : vector<512x128xf32>
    %83 = tpu.matmul %80, %82, %cst_48 {dimension_numbers = #tpu.dot_dimension_numbers<[1], [0], [0], [1], [0, 0, 1, 1], [], []>} : vector<512x128xbf16>, vector<128x128xbf16>, vector<512x128xf32> -> vector<512x128xf32>
    %84 = arith.addf %77, %83 : vector<512x128xf32>
    %85 = vector.extract_strided_slice %34 {offsets = [0, 2, 1, 0], sizes = [2, 16, 16, 128], strides = [1, 1, 1, 1]} : vector<2x18x18x128xf32> to vector<2x16x16x128xf32>
    %86 = vector.shape_cast %85 : vector<2x16x16x128xf32> to vector<512x128xf32>
    %87 = arith.truncf %86 : vector<512x128xf32> to vector<512x128xbf16>
    %c7 = arith.constant 7 : index
    %c0_49 = arith.constant 0 : index
    %c0_50 = arith.constant 0 : index
    %88 = vector.load %arg4[%c7, %c0_49, %c0_50] : memref<9x128x128xbf16, #tpu.memory_space<vmem>>, vector<1x128x128xbf16>
    %89 = vector.shape_cast %88 : vector<1x128x128xbf16> to vector<128x128xbf16>
    %cst_51 = arith.constant dense<0.000000e+00> : vector<512x128xf32>
    %90 = tpu.matmul %87, %89, %cst_51 {dimension_numbers = #tpu.dot_dimension_numbers<[1], [0], [0], [1], [0, 0, 1, 1], [], []>} : vector<512x128xbf16>, vector<128x128xbf16>, vector<512x128xf32> -> vector<512x128xf32>
    %91 = arith.addf %84, %90 : vector<512x128xf32>
    %92 = vector.extract_strided_slice %34 {offsets = [0, 2, 2, 0], sizes = [2, 16, 16, 128], strides = [1, 1, 1, 1]} : vector<2x18x18x128xf32> to vector<2x16x16x128xf32>
    %93 = vector.shape_cast %92 : vector<2x16x16x128xf32> to vector<512x128xf32>
    %94 = arith.truncf %93 : vector<512x128xf32> to vector<512x128xbf16>
    %c8 = arith.constant 8 : index
    %c0_52 = arith.constant 0 : index
    %c0_53 = arith.constant 0 : index
    %95 = vector.load %arg4[%c8, %c0_52, %c0_53] : memref<9x128x128xbf16, #tpu.memory_space<vmem>>, vector<1x128x128xbf16>
    %96 = vector.shape_cast %95 : vector<1x128x128xbf16> to vector<128x128xbf16>
    %cst_54 = arith.constant dense<0.000000e+00> : vector<512x128xf32>
    %97 = tpu.matmul %94, %96, %cst_54 {dimension_numbers = #tpu.dot_dimension_numbers<[1], [0], [0], [1], [0, 0, 1, 1], [], []>} : vector<512x128xbf16>, vector<128x128xbf16>, vector<512x128xf32> -> vector<512x128xf32>
    %98 = arith.addf %91, %97 : vector<512x128xf32>
    %c0_55 = arith.constant 0 : index
    %c0_56 = arith.constant 0 : index
    %99 = vector.load %arg5[%c0_55, %c0_56] : memref<1x128xf32, #tpu.memory_space<vmem>>, vector<1x128xf32>
    %c0_57 = arith.constant 0 : index
    %c0_58 = arith.constant 0 : index
    %100 = vector.load %arg6[%c0_57, %c0_58] : memref<1x128xf32, #tpu.memory_space<vmem>>, vector<1x128xf32>
    %cst_59 = arith.constant dense<0.000000e+00> : vector<128xf32>
    %101 = vector.multi_reduction <add>, %98, %cst_59 [0] : vector<512x128xf32> to vector<128xf32>
    %102 = vector.shape_cast %101 : vector<128xf32> to vector<1x128xf32>
    %cst_60 = arith.constant 5.120000e+02 : f32
    %103 = vector.broadcast %cst_60 : f32 to vector<1x128xf32>
    %104 = arith.divf %102, %103 : vector<1x128xf32>
    %105 = vector.broadcast %104 : vector<1x128xf32> to vector<512x128xf32>
    %106 = arith.subf %98, %105 : vector<512x128xf32>
    %107 = arith.mulf %106, %106 : vector<512x128xf32>
    %cst_61 = arith.constant dense<0.000000e+00> : vector<128xf32>
    %108 = vector.multi_reduction <add>, %107, %cst_61 [0] : vector<512x128xf32> to vector<128xf32>
    %109 = vector.shape_cast %108 : vector<128xf32> to vector<1x128xf32>
    %cst_62 = arith.constant 5.120000e+02 : f32
    %110 = vector.broadcast %cst_62 : f32 to vector<1x128xf32>
    %111 = arith.divf %109, %110 : vector<1x128xf32>
    %112 = vector.broadcast %104 : vector<1x128xf32> to vector<512x128xf32>
    %113 = arith.subf %98, %112 : vector<512x128xf32>
    %cst_63 = arith.constant 9.99999974E-6 : f32
    %114 = vector.broadcast %cst_63 : f32 to vector<1x128xf32>
    %115 = arith.addf %111, %114 : vector<1x128xf32>
    %116 = math.rsqrt %115 : vector<1x128xf32>
    %117 = vector.broadcast %116 : vector<1x128xf32> to vector<512x128xf32>
    %118 = arith.mulf %113, %117 : vector<512x128xf32>
    %119 = vector.broadcast %99 : vector<1x128xf32> to vector<512x128xf32>
    %120 = arith.mulf %118, %119 : vector<512x128xf32>
    %121 = vector.broadcast %100 : vector<1x128xf32> to vector<512x128xf32>
    %122 = arith.addf %120, %121 : vector<512x128xf32>
    %cst_64 = arith.constant 0.000000e+00 : f32
    %123 = vector.broadcast %cst_64 : f32 to vector<512x128xf32>
    %124 = arith.maximumf %122, %123 : vector<512x128xf32>
    %125 = arith.truncf %124 : vector<512x128xf32> to vector<512x128xbf16>
    %c0_65 = arith.constant 0 : index
    %c0_66 = arith.constant 0 : index
    %126 = vector.load %arg7[%c0_65, %c0_66] : memref<128x128xbf16, #tpu.memory_space<vmem>>, vector<128x128xbf16>
    %cst_67 = arith.constant dense<0.000000e+00> : vector<512x128xf32>
    %127 = tpu.matmul %125, %126, %cst_67 {dimension_numbers = #tpu.dot_dimension_numbers<[1], [0], [0], [1], [0, 0, 1, 1], [], []>} : vector<512x128xbf16>, vector<128x128xbf16>, vector<512x128xf32> -> vector<512x128xf32>
    %c0_68 = arith.constant 0 : index
    %c0_69 = arith.constant 0 : index
    %128 = vector.load %arg8[%c0_68, %c0_69] : memref<1x128xf32, #tpu.memory_space<vmem>>, vector<1x128xf32>
    %c0_70 = arith.constant 0 : index
    %c0_71 = arith.constant 0 : index
    %129 = vector.load %arg9[%c0_70, %c0_71] : memref<1x128xf32, #tpu.memory_space<vmem>>, vector<1x128xf32>
    %cst_72 = arith.constant dense<0.000000e+00> : vector<128xf32>
    %130 = vector.multi_reduction <add>, %127, %cst_72 [0] : vector<512x128xf32> to vector<128xf32>
    %131 = vector.shape_cast %130 : vector<128xf32> to vector<1x128xf32>
    %cst_73 = arith.constant 5.120000e+02 : f32
    %132 = vector.broadcast %cst_73 : f32 to vector<1x128xf32>
    %133 = arith.divf %131, %132 : vector<1x128xf32>
    %134 = vector.broadcast %133 : vector<1x128xf32> to vector<512x128xf32>
    %135 = arith.subf %127, %134 : vector<512x128xf32>
    %136 = arith.mulf %135, %135 : vector<512x128xf32>
    %cst_74 = arith.constant dense<0.000000e+00> : vector<128xf32>
    %137 = vector.multi_reduction <add>, %136, %cst_74 [0] : vector<512x128xf32> to vector<128xf32>
    %138 = vector.shape_cast %137 : vector<128xf32> to vector<1x128xf32>
    %cst_75 = arith.constant 5.120000e+02 : f32
    %139 = vector.broadcast %cst_75 : f32 to vector<1x128xf32>
    %140 = arith.divf %138, %139 : vector<1x128xf32>
    %141 = vector.broadcast %133 : vector<1x128xf32> to vector<512x128xf32>
    %142 = arith.subf %127, %141 : vector<512x128xf32>
    %cst_76 = arith.constant 9.99999974E-6 : f32
    %143 = vector.broadcast %cst_76 : f32 to vector<1x128xf32>
    %144 = arith.addf %140, %143 : vector<1x128xf32>
    %145 = math.rsqrt %144 : vector<1x128xf32>
    %146 = vector.broadcast %145 : vector<1x128xf32> to vector<512x128xf32>
    %147 = arith.mulf %142, %146 : vector<512x128xf32>
    %148 = vector.broadcast %128 : vector<1x128xf32> to vector<512x128xf32>
    %149 = arith.mulf %147, %148 : vector<512x128xf32>
    %150 = vector.broadcast %129 : vector<1x128xf32> to vector<512x128xf32>
    %151 = arith.addf %149, %150 : vector<512x128xf32>
    %cst_77 = arith.constant 0.000000e+00 : f32
    %152 = vector.broadcast %cst_77 : f32 to vector<512x128xf32>
    %153 = arith.maximumf %151, %152 : vector<512x128xf32>
    %154 = arith.addf %153, %0 : vector<512x128xf32>
    %cst_78 = arith.constant 0.000000e+00 : f32
    %155 = vector.broadcast %cst_78 : f32 to vector<512x128xf32>
    %156 = arith.maximumf %154, %155 : vector<512x128xf32>
    %c0_79 = arith.constant 0 : index
    %c0_80 = arith.constant 0 : index
    %157 = vector.load %arg10[%c0_79, %c0_80] : memref<512x128xf32, #tpu.memory_space<vmem>>, vector<512x128xf32>
    tpu.vector_store %arg10[%c0_79, %c0_80], %156 {strides = array<i32>} : memref<512x128xf32, #tpu.memory_space<vmem>>, vector<512x128xf32>,
    return
  }
}

</mosaic_0001>

<bundles_post_ra>
// kernel: deconv_bottleneck.1
= control target key start
LH: loop header
LB: loop body
LE: loop exit
PB: predicated region body
PF: predicated region fallthrough
CT: control target
= control target key end

     0   :  { %vm1451_vm0 = vcmask 1046528   ;;  %vm2399_vm1 = vcmask 1045504   ;;  %s16257_s1 = inlined_call_operand.vmem [shape: bf16[128,128], index: 1, kind: input, shape index: {}]   ;;  %s16258_s0 = inlined_call_operand.vmem [shape: f32[512,128], index: 0, kind: input, shape index: {}]   ;;  %s16259_s4 = inlined_call_operand.vmem [shape: bf16[9,128,128], index: 4, kind: input, shape index: {}]   ;;  %s16260_s2 = inlined_call_operand.vmem [shape: f32[1,128], index: 2, kind: input, shape index: {}]   ;;  %s16261_s3 = inlined_call_operand.vmem [shape: f32[1,128], index: 3, kind: input, shape index: {}]   ;;  %s16262_s7 = inlined_call_operand.vmem [shape: bf16[128,128], index: 7, kind: input, shape index: {}]   ;;  %s16263_s5 = inlined_call_operand.vmem [shape: f32[1,128], index: 5, kind: input, shape index: {}]   ;;  %s16264_s6 = inlined_call_operand.vmem [shape: f32[1,128], index: 6, kind: input, shape index: {}]   ;;  %s16265_s8 = inlined_call_operand.vmem [shape: f32[1,128], index: 8, kind: input, shape index: {}]   ;;  %s16266_s9 = inlined_call_operand.vmem [shape: f32[1,128], index: 9, kind: input, shape index: {}]   ;;  %s16267_s10 = inlined_call_operand.vmem [shape: f32[512,128], index: 10, kind: output, shape index: {}]  }
   0x1   :  { %v9394_v0 = vld [vmem:[%s16257_s1] sm:$0xff]   ;;  %v9395_v1 = vld [vmem:[%s16257_s1 + $0x8] sm:$0xff]   ;;  %v9396_v2 = vld [vmem:[%s16257_s1 + $0x10] sm:$0xff]  }
   0x2   :  { %7985 = vmatprep.subr.bf16.mxu0 %v9394_v0  ;;  %v9397_v3 = vld [vmem:[%s16257_s1 + $0x18] sm:$0xff]   ;;  %v36_v4 = vld [vmem:[%s16258_s0] sm:$0xff]  ;;  %v37_v5 = vld [vmem:[%s16258_s0 + $0x8] sm:$0xff] }
   0x3   :  { %7986 = vmatpush3.bf16.msra.mxu0 %v9394_v0  ;;  %v100_v6 = vpack.c.bf16 %v37_v5, %v36_v4  ;;  %v9398_v7 = vld [vmem:[%s16257_s1 + $0x20] sm:$0xff]   ;;  %v9399_v8 = vld [vmem:[%s16257_s1 + $0x28] sm:$0xff]   ;;  %v9400_v9 = vld [vmem:[%s16257_s1 + $0x30] sm:$0xff]  }
   0x4   :  { %7987 = vmatprep.subr.bf16.mxu0 %v9395_v1  ;;  %v9401_v10 = vld [vmem:[%s16257_s1 + $0x38] sm:$0xff]   ;;  %v38_v11 = vld [vmem:[%s16258_s0 + $0x10] sm:$0xff]  ;;  %v40_v13 = vld [vmem:[%s16258_s0 + $0x20] sm:$0xff] }
   0x5   :  { %8001 = vmatprep.mubr.bf16.mxu0 %v100_v6  ;;  %v39_v12 = vld [vmem:[%s16258_s0 + $0x18] sm:$0xff]  ;;  %v41_v14 = vld [vmem:[%s16258_s0 + $0x28] sm:$0xff]  ;;  %v42_v17 = vld [vmem:[%s16258_s0 + $0x30] sm:$0xff] }
   0x6   :  { %v101_v15 = vpack.c.bf16 %v39_v12, %v38_v11  ;;  %v102_v16 = vpack.c.bf16 %v41_v14, %v40_v13  ;;  %v43_v18 = vld [vmem:[%s16258_s0 + $0x38] sm:$0xff]  ;;  %v44_v19 = vld [vmem:[%s16258_s0 + $0x40] sm:$0xff]  ;;  %v45_v20 = vld [vmem:[%s16258_s0 + $0x48] sm:$0xff] }
   0x7   :  { %7988 = vmatpush3.bf16.msra.mxu0 %v9395_v1  ;;  %v103_v21 = vpack.c.bf16 %v43_v18, %v42_v17  ;;  %v104_v22 = vpack.c.bf16 %v45_v20, %v44_v19  ;;  %v46_v23 = vld [vmem:[%s16258_s0 + $0x50] sm:$0xff]  ;;  %v47_v24 = vld [vmem:[%s16258_s0 + $0x58] sm:$0xff]  ;;  %v48_v25 = vld [vmem:[%s16258_s0 + $0x60] sm:$0xff]  ;;  %v9567_v18 = vmov 0.0  }
   0x8   :  { %7989 = vmatprep.subr.bf16.mxu0 %v9396_v2  ;;  %v49_v26 = vld [vmem:[%s16258_s0 + $0x68] sm:$0xff]  ;;  %v105_v27 = vpack.c.bf16 %v47_v24, %v46_v23  ;;  %v50_v29 = vld [vmem:[%s16258_s0 + $0x70] sm:$0xff]  ;;  %v51_v30 = vld [vmem:[%s16258_s0 + $0x78] sm:$0xff]  ;;  %1032 = vst [vmem:[#allocation2 + $0x30] sm:$0xff] %v9567_v18 }
   0x9   :  { %v106_v28 = vpack.c.bf16 %v49_v26, %v48_v25  ;;  %v52_v31 = vld [vmem:[%s16258_s0 + $0x80] sm:$0xff]  ;;  %v53_v32 = vld [vmem:[%s16258_s0 + $0x88] sm:$0xff]  ;;  %v107_v33 = vpack.c.bf16 %v51_v30, %v50_v29  ;;  %v54_v35 = vld [vmem:[%s16258_s0 + $0x90] sm:$0xff]  ;;  %1033 = vst [vmem:[#allocation2 + $0x38] sm:$0xff] %v9567_v18 }
   0xa   :  { %v108_v34 = vpack.c.bf16 %v53_v32, %v52_v31  ;;  %v55_v36 = vld [vmem:[%s16258_s0 + $0x98] sm:$0xff]  ;;  %v56_v37 = vld [vmem:[%s16258_s0 + $0xa0] sm:$0xff]  ;;  %v57_v38 = vld [vmem:[%s16258_s0 + $0xa8] sm:$0xff]  ;;  %1026 = vst [vmem:[#allocation2] sm:$0xff] %v9567_v18 }
   0xb   :  { %7990 = vmatpush3.bf16.msra.mxu0 %v9396_v2  ;;  %v109_v39 = vpack.c.bf16 %v55_v36, %v54_v35  ;;  %v110_v40 = vpack.c.bf16 %v57_v38, %v56_v37  ;;  %v58_v41 = vld [vmem:[%s16258_s0 + $0xb0] sm:$0xff]  ;;  %v59_v42 = vld [vmem:[%s16258_s0 + $0xb8] sm:$0xff]  ;;  %v60_v43 = vld [vmem:[%s16258_s0 + $0xc0] sm:$0xff]  ;;  %1028 = vst [vmem:[#allocation2 + $0x10] sm:$0x3] %v9567_v18 }
   0xc   :  { %7991 = vmatprep.subr.bf16.mxu0 %v9397_v3  ;;  %v61_v44 = vld [vmem:[%s16258_s0 + $0xc8] sm:$0xff]  ;;  %v111_v45 = vpack.c.bf16 %v59_v42, %v58_v41  ;;  %v62_v47 = vld [vmem:[%s16258_s0 + $0xd0] sm:$0xff]  ;;  %v63_v48 = vld [vmem:[%s16258_s0 + $0xd8] sm:$0xff]  ;;  %1029 = vst [vmem:[#allocation2 + $0x18] sm:$0xff] %v9567_v18 }
   0xd   :  { %v112_v46 = vpack.c.bf16 %v61_v44, %v60_v43  ;;  %v64_v49 = vld [vmem:[%s16258_s0 + $0xe0] sm:$0xff]  ;;  %v65_v50 = vld [vmem:[%s16258_s0 + $0xe8] sm:$0xff]  ;;  %v113_v51 = vpack.c.bf16 %v63_v48, %v62_v47  ;;  %v66_v53 = vld [vmem:[%s16258_s0 + $0xf0] sm:$0xff]  ;;  %1030 = vst [vmem:[#allocation2 + $0x20] sm:$0xff] %v9567_v18 }
   0xe   :  { %v114_v52 = vpack.c.bf16 %v65_v50, %v64_v49  ;;  %v67_v54 = vld [vmem:[%s16258_s0 + $0xf8] sm:$0xff]  ;;  %v68_v55 = vld [vmem:[%s16258_s0 + $0x100] sm:$0xff]  ;;  %v69_v56 = vld [vmem:[%s16258_s0 + $0x108] sm:$0xff]  ;;  %1031 = vst [vmem:[#allocation2 + $0x28] sm:$0x3] %v9567_v18 }
   0xf   :  { %7992 = vmatpush3.bf16.msra.mxu0 %v9397_v3  ;;  %v115_v57 = vpack.c.bf16 %v67_v54, %v66_v53  ;;  %v116_v58 = vpack.c.bf16 %v69_v56, %v68_v55  ;;  %v70_v59 = vld [vmem:[%s16258_s0 + $0x110] sm:$0xff]  ;;  %v71_v60 = vld [vmem:[%s16258_s0 + $0x118] sm:$0xff]  ;;  %v72_v61 = vld [vmem:[%s16258_s0 + $0x120] sm:$0xff]  ;;  %1034 = vst [vmem:[#allocation2 + $0x40] sm:$0x3] %v9567_v18 }
  0x10   :  { %7993 = vmatprep.subr.bf16.mxu0 %v9398_v7  ;;  %v73_v62 = vld [vmem:[%s16258_s0 + $0x128] sm:$0xff]  ;;  %v117_v63 = vpack.c.bf16 %v71_v60, %v70_v59  ;;  %v74_v1 = vld [vmem:[%s16258_s0 + $0x130] sm:$0xff]  ;;  %v75_v2 = vld [vmem:[%s16258_s0 + $0x138] sm:$0xff]  ;;  %1035 = vst [vmem:[#allocation2 + $0x48] sm:$0xff] %v9567_v18 }
  0x11   :  { %v118_v0 = vpack.c.bf16 %v73_v62, %v72_v61  ;;  %v76_v3 = vld [vmem:[%s16258_s0 + $0x140] sm:$0xff]  ;;  %v77_v4 = vld [vmem:[%s16258_s0 + $0x148] sm:$0xff]  ;;  %v119_v5 = vpack.c.bf16 %v75_v2, %v74_v1  ;;  %v9788_v13 = vld [vmem:[%s16258_s0 + $0x170] sm:$0xff]  ;;  %1036 = vst [vmem:[#allocation2 + $0x50] sm:$0xff] %v9567_v18 }
  0x12   :  { %v120_v6 = vpack.c.bf16 %v77_v4, %v76_v3  ;;  %v9793_v14 = vld [vmem:[%s16258_s0 + $0x178] sm:$0xff]  ;;  %1037 = vst [vmem:[#allocation2 + $0x58] sm:$0x3] %v9567_v18  ;;  %1038 = vst [vmem:[#allocation2 + $0x60] sm:$0xff] %v9567_v18  ;;  %v86_v20 = vld [vmem:[%s16258_s0 + $0x190] sm:$0xff] }
  0x13   :  { %7994 = vmatpush3.bf16.msra.mxu0 %v9398_v7  ;;  %v78_v7 = vld [vmem:[%s16258_s0 + $0x150] sm:$0xff]  ;;  %v123_v17 = vpack.c.bf16 %v9793_v14, %v9788_v13  ;;  %1039 = vst [vmem:[#allocation2 + $0x68] sm:$0xff] %v9567_v18  ;;  %1040 = vst [vmem:[#allocation2 + $0x70] sm:$0x3] %v9567_v18  ;;  %v89_v23 = vld [vmem:[%s16258_s0 + $0x1a8] sm:$0xff] }
  0x14   :  { %7995 = vmatprep.subr.bf16.mxu0 %v9399_v8  ;;  %1041 = vst [vmem:[#allocation2 + $0x78] sm:$0xff] %v9567_v18  ;;  %1042 = vst [vmem:[#allocation2 + $0x80] sm:$0xff] %v9567_v18  ;;  %v90_v26 = vld [vmem:[%s16258_s0 + $0x1b0] sm:$0xff]  ;;  %v93_v29 = vld [vmem:[%s16258_s0 + $0x1c8] sm:$0xff] }
  0x15   :  { %1043 = vst [vmem:[#allocation2 + $0x88] sm:$0x3] %v9567_v18  ;;  %1044 = vst [vmem:[#allocation2 + $0x90] sm:$0xff] %v9567_v18  ;;  %v94_v32 = vld [vmem:[%s16258_s0 + $0x1d0] sm:$0xff]  ;;  %v97_v35 = vld [vmem:[%s16258_s0 + $0x1e8] sm:$0xff] }
  0x16   :  { %1045 = vst [vmem:[#allocation2 + $0x98] sm:$0xff] %v9567_v18  ;;  %1046 = vst [vmem:[#allocation2 + $0xa0] sm:$0x3] %v9567_v18  ;;  %v98_v38 = vld [vmem:[%s16258_s0 + $0x1f0] sm:$0xff] }
  0x17   :  { %7996 = vmatpush3.bf16.msra.mxu0 %v9399_v8  ;;  %v79_v8 = vld [vmem:[%s16258_s0 + $0x158] sm:$0xff]  ;;  %1047 = vst [vmem:[#allocation2 + $0xa8] sm:$0xff] %v9567_v18  ;;  %1048 = vst [vmem:[#allocation2 + $0xb0] sm:$0xff] %v9567_v18 }
  0x18   :  { %7997 = vmatprep.subr.bf16.mxu0 %v9400_v9  ;;  %v121_v11 = vpack.c.bf16 %v79_v8, %v78_v7  ;;  %1049 = vst [vmem:[#allocation2 + $0xb8] sm:$0x3] %v9567_v18  ;;  %1050 = vst [vmem:[#allocation2 + $0xc0] sm:$0xff] %v9567_v18 }
  0x19   :  { %1051 = vst [vmem:[#allocation2 + $0xc8] sm:$0xff] %v9567_v18  ;;  %1052 = vst [vmem:[#allocation2 + $0xd0] sm:$0x3] %v9567_v18 }
  0x1a   :  { %1053 = vst [vmem:[#allocation2 + $0xd8] sm:$0xff] %v9567_v18  ;;  %1054 = vst [vmem:[#allocation2 + $0xe0] sm:$0xff] %v9567_v18 }
  0x1b   :  { %7998 = vmatpush3.bf16.msra.mxu0 %v9400_v9  ;;  %v80_v9 = vld [vmem:[%s16258_s0 + $0x160] sm:$0xff]  ;;  %1055 = vst [vmem:[#allocation2 + $0xe8] sm:$0x3] %v9567_v18  ;;  %1056 = vst [vmem:[#allocation2 + $0xf0] sm:$0xff] %v9567_v18 }
  0x1c   :  { %7999 = vmatprep.subr.bf16.mxu0 %v9401_v10  ;;  %1057 = vst [vmem:[#allocation2 + $0xf8] sm:$0xff] %v9567_v18  ;;  %1058 = vst [vmem:[#allocation2 + $0x100] sm:$0x3] %v9567_v18 }
  0x1d   :  { %1059 = vst [vmem:[#allocation2 + $0x108] sm:$0xff] %v9567_v18  ;;  %1060 = vst [vmem:[#allocation2 + $0x110] sm:$0xff] %v9567_v18 }
  0x1e   :  { %1061 = vst [vmem:[#allocation2 + $0x118] sm:$0x3] %v9567_v18  ;;  %1062 = vst [vmem:[#allocation2 + $0x120] sm:$0xff] %v9567_v18 }
  0x1f   :  { %8000 = vmatpush3.bf16.msra.mxu0 %v9401_v10  ;;  %v81_v10 = vld [vmem:[%s16258_s0 + $0x168] sm:$0xff]  ;;  %1063 = vst [vmem:[#allocation2 + $0x128] sm:$0xff] %v9567_v18  ;;  %1064 = vst [vmem:[#allocation2 + $0x130] sm:$0x3] %v9567_v18 }
  0x20   :  { %v122_v12 = vpack.c.bf16 %v81_v10, %v80_v9  ;;  %1065 = vst [vmem:[#allocation2 + $0x138] sm:$0xff] %v9567_v18  ;;  %1066 = vst [vmem:[#allocation2 + $0x140] sm:$0xff] %v9567_v18 }
  0x21   :  { %1067 = vst [vmem:[#allocation2 + $0x148] sm:$0x3] %v9567_v18  ;;  %1068 = vst [vmem:[#allocation2 + $0x150] sm:$0xff] %v9567_v18 }
  0x22   :  { %8002 = vmatmul.mubr.bf16.vlgmr.msra.gmra.mrb[0].mxu0 %v101_v15  ;;  %v9798_v15 = vld [vmem:[%s16258_s0 + $0x180] sm:$0xff]  ;;  %1069 = vst [vmem:[#allocation2 + $0x158] sm:$0xff] %v9567_v18  ;;  %1070 = vst [vmem:[#allocation2 + $0x160] sm:$0x3] %v9567_v18 }
  0x23   :  { %8005 = vmatprep.mubr.bf16.mxu0 %v102_v16  ;;  %v9803_v16 = vld [vmem:[%s16258_s0 + $0x188] sm:$0xff]  ;;  %1071 = vst [vmem:[#allocation2 + $0x168] sm:$0xff] %v9567_v18  ;;  %1072 = vst [vmem:[#allocation2 + $0x170] sm:$0xff] %v9567_v18 }
  0x24   :  { %1073 = vst [vmem:[#allocation2 + $0x178] sm:$0x3] %v9567_v18  ;;  %1074 = vst [vmem:[#allocation2 + $0x180] sm:$0xff] %v9567_v18  ;;  %v124_v19 = vpack.c.bf16 %v9803_v16, %v9798_v15 }
  0x25   :  { %1075 = vst [vmem:[#allocation2 + $0x188] sm:$0xff] %v9567_v18  ;;  %1076 = vst [vmem:[#allocation2 + $0x190] sm:$0x3] %v9567_v18 }
  0x26   :  { %1079 = vst [vmem:[#allocation2 + $0x1a8] sm:$0x3] %v9567_v18  ;;  %1082 = vst [vmem:[#allocation2 + $0x1c0] sm:$0x3] %v9567_v18 }
  0x27   :  { %1083 = vst [vmem:[#allocation2 + $0x1c8] sm:$0xff] %v9567_v18  ;;  %1084 = vst [vmem:[#allocation2 + $0x1d0] sm:$0xff] %v9567_v18 }
  0x28   :  { %1085 = vst [vmem:[#allocation2 + $0x1d8] sm:$0x3] %v9567_v18  ;;  %1086 = vst [vmem:[#allocation2 + $0x1e0] sm:$0xff] %v9567_v18 }
  0x29   :  { %1087 = vst [vmem:[#allocation2 + $0x1e8] sm:$0xff] %v9567_v18  ;;  %1088 = vst [vmem:[#allocation2 + $0x1f0] sm:$0x3] %v9567_v18 }
  0x2a   :  { %8006 = vmatmul.mubr.bf16.gmra.mrb[4].mxu0 %v103_v21  ;;  %1089 = vst [vmem:[#allocation2 + $0x1f8] sm:$0xff] %v9567_v18  ;;  %1090 = vst [vmem:[#allocation2 + $0x200] sm:$0xff] %v9567_v18  ;;  %v87_v21 = vld [vmem:[%s16258_s0 + $0x198] sm:$0xff] }
  0x2b   :  { %8009 = vmatprep.mubr.bf16.mxu0 %v104_v22  ;;  %1091 = vst [vmem:[#allocation2 + $0x208] sm:$0x3] %v9567_v18  ;;  %1092 = vst [vmem:[#allocation2 + $0x210] sm:$0xff] %v9567_v18  ;;  %v88_v22 = vld [vmem:[%s16258_s0 + $0x1a0] sm:$0xff]  ;;  %v125_v24 = vpack.c.bf16 %v87_v21, %v86_v20 }
  0x2c   :  { %1093 = vst [vmem:[#allocation2 + $0x218] sm:$0xff] %v9567_v18  ;;  %1094 = vst [vmem:[#allocation2 + $0x220] sm:$0x3] %v9567_v18  ;;  %v126_v25 = vpack.c.bf16 %v89_v23, %v88_v22 }
  0x2d   :  { %1095 = vst [vmem:[#allocation2 + $0x228] sm:$0xff] %v9567_v18  ;;  %1096 = vst [vmem:[#allocation2 + $0x230] sm:$0xff] %v9567_v18 }
  0x2e   :  { %1097 = vst [vmem:[#allocation2 + $0x238] sm:$0x3] %v9567_v18  ;;  %1098 = vst [vmem:[#allocation2 + $0x240] sm:$0xff] %v9567_v18 }
  0x2f   :  { %1099 = vst [vmem:[#allocation2 + $0x248] sm:$0xff] %v9567_v18  ;;  %1100 = vst [vmem:[#allocation2 + $0x250] sm:$0x3] %v9567_v18 }
  0x30   :  { %1101 = vst [vmem:[#allocation2 + $0x258] sm:$0xff] %v9567_v18  ;;  %1102 = vst [vmem:[#allocation2 + $0x260] sm:$0xff] %v9567_v18 }
  0x31   :  { %1103 = vst [vmem:[#allocation2 + $0x268] sm:$0x3] %v9567_v18  ;;  %1104 = vst [vmem:[#allocation2 + $0x270] sm:$0xff] %v9567_v18 }
  0x32   :  { %8010 = vmatmul.mubr.bf16.gmra.mrb[8].mxu0 %v105_v27  ;;  %1105 = vst [vmem:[#allocation2 + $0x278] sm:$0xff] %v9567_v18  ;;  %1106 = vst [vmem:[#allocation2 + $0x280] sm:$0x3] %v9567_v18  ;;  %v91_v27 = vld [vmem:[%s16258_s0 + $0x1b8] sm:$0xff] }
  0x33   :  { %8013 = vmatprep.mubr.bf16.mxu0 %v106_v28  ;;  %1107 = vst [vmem:[#allocation2 + $0x288] sm:$0xff] %v9567_v18  ;;  %1108 = vst [vmem:[#allocation2 + $0x290] sm:$0xff] %v9567_v18  ;;  %v92_v28 = vld [vmem:[%s16258_s0 + $0x1c0] sm:$0xff]  ;;  %v127_v30 = vpack.c.bf16 %v91_v27, %v90_v26 }
  0x34   :  { %1109 = vst [vmem:[#allocation2 + $0x298] sm:$0x3] %v9567_v18  ;;  %1110 = vst [vmem:[#allocation2 + $0x2a0] sm:$0xff] %v9567_v18  ;;  %v128_v31 = vpack.c.bf16 %v93_v29, %v92_v28 }
  0x35   :  { %1111 = vst [vmem:[#allocation2 + $0x2a8] sm:$0xff] %v9567_v18  ;;  %1112 = vst [vmem:[#allocation2 + $0x2b0] sm:$0x3] %v9567_v18 }
  0x36   :  { %1113 = vst [vmem:[#allocation2 + $0x2b8] sm:$0xff] %v9567_v18  ;;  %1114 = vst [vmem:[#allocation2 + $0x2c0] sm:$0xff] %v9567_v18 }
  0x37   :  { %1115 = vst [vmem:[#allocation2 + $0x2c8] sm:$0x3] %v9567_v18  ;;  %1116 = vst [vmem:[#allocation2 + $0x2d0] sm:$0xff] %v9567_v18 }
  0x38   :  { %1117 = vst [vmem:[#allocation2 + $0x2d8] sm:$0xff] %v9567_v18  ;;  %1118 = vst [vmem:[#allocation2 + $0x2e0] sm:$0x3] %v9567_v18 }
  0x39   :  { %1119 = vst [vmem:[#allocation2 + $0x2e8] sm:$0xff] %v9567_v18  ;;  %1120 = vst [vmem:[#allocation2 + $0x2f0] sm:$0xff] %v9567_v18 }
  0x3a   :  { %8014 = vmatmul.mubr.bf16.gmra.mrb[12].mxu0 %v107_v33  ;;  %1121 = vst [vmem:[#allocation2 + $0x2f8] sm:$0x3] %v9567_v18  ;;  %1122 = vst [vmem:[#allocation2 + $0x300] sm:$0xff] %v9567_v18  ;;  %v95_v33 = vld [vmem:[%s16258_s0 + $0x1d8] sm:$0xff] }
  0x3b   :  { %8017 = vmatprep.mubr.bf16.mxu0 %v108_v34  ;;  %1123 = vst [vmem:[#allocation2 + $0x308] sm:$0xff] %v9567_v18  ;;  %1124 = vst [vmem:[#allocation2 + $0x310] sm:$0x3] %v9567_v18  ;;  %v96_v34 = vld [vmem:[%s16258_s0 + $0x1e0] sm:$0xff]  ;;  %v129_v36 = vpack.c.bf16 %v95_v33, %v94_v32 }
  0x3c   :  { %1125 = vst [vmem:[#allocation2 + $0x318] sm:$0xff] %v9567_v18  ;;  %1126 = vst [vmem:[#allocation2 + $0x320] sm:$0xff] %v9567_v18  ;;  %v130_v37 = vpack.c.bf16 %v97_v35, %v96_v34 }
  0x3d   :  { %1127 = vst [vmem:[#allocation2 + $0x328] sm:$0x3] %v9567_v18  ;;  %1128 = vst [vmem:[#allocation2 + $0x330] sm:$0xff] %v9567_v18 }
  0x3e   :  { %1129 = vst [vmem:[#allocation2 + $0x338] sm:$0xff] %v9567_v18  ;;  %1130 = vst [vmem:[#allocation2 + $0x340] sm:$0x3] %v9567_v18 }
  0x3f   :  { %1133 = vst [vmem:[#allocation2 + $0x358] sm:$0x3] %v9567_v18 }
  0x42   :  { %8018 = vmatmul.mubr.bf16.gmra.mrb[16].mxu0 %v109_v39  ;;  %v99_v39 = vld [vmem:[%s16258_s0 + $0x1f8] sm:$0xff] }
  0x43   :  { %8021 = vmatprep.mubr.bf16.mxu0 %v110_v40  ;;  %v131_v40 = vpack.c.bf16 %v99_v39, %v98_v38 }
  0x4a   :  { %8022 = vmatmul.mubr.bf16.gmra.mrb[20].mxu0 %v111_v45 }
  0x4b   :  { %8025 = vmatprep.mubr.bf16.mxu0 %v112_v46 }
  0x52   :  { %8026 = vmatmul.mubr.bf16.gmra.mrb[24].mxu0 %v113_v51 }
  0x53   :  { %8029 = vmatprep.mubr.bf16.mxu0 %v114_v52 }
  0x5a   :  { %8030 = vmatmul.mubr.bf16.gmra.mrb[28].mxu0 %v115_v57 }
  0x5b   :  { %8033 = vmatprep.mubr.bf16.mxu0 %v116_v58 }
  0x62   :  { %8034 = vmatmul.mubr.bf16.gmra.mrb[32].mxu0 %v117_v63 }
  0x63   :  { %8037 = vmatprep.mubr.bf16.mxu0 %v118_v0 }
  0x6a   :  { %8038 = vmatmul.mubr.bf16.gmra.mrb[36].mxu0 %v119_v5 }
  0x6b   :  { %8041 = vmatprep.mubr.bf16.mxu0 %v120_v6 }
  0x72   :  { %8042 = vmatmul.mubr.bf16.gmra.mrb[40].mxu0 %v121_v11 }
  0x73   :  { %8045 = vmatprep.mubr.bf16.mxu0 %v122_v12 }
  0x7a   :  { %8046 = vmatmul.mubr.bf16.gmra.mrb[44].mxu0 %v123_v17 }
  0x7b   :  { %8049 = vmatprep.mubr.bf16.mxu0 %v124_v19 }
  0x82   :  { %8050 = vmatmul.mubr.bf16.gmra.mrb[48].mxu0 %v125_v24 }
  0x83   :  { %8053 = vmatprep.mubr.bf16.mxu0 %v126_v25 }
  0x8a   :  { %8054 = vmatmul.mubr.bf16.gmra.mrb[52].mxu0 %v127_v30 }
  0x8b   :  { %8057 = vmatprep.mubr.bf16.mxu0 %v128_v31 }
  0x92   :  { %8058 = vmatmul.mubr.bf16.gmra.mrb[56].mxu0 %v129_v36 }
  0x93   :  { %8061 = vmatprep.mubr.bf16.mxu0 %v130_v37 }
  0x9a   :  { %8062 = vmatmul.mubr.bf16.gmra.mrb[60].mxu0 %v131_v40 }
  0xf5   :  { %v9955_v41 = vpop.f32.mrb[0].mxu0 }
  0xf6   :  { %v9957_v42 = vpop.f32.mrb[1].mxu0 }
  0xf7   :  { %v9959_v43 = vpop.f32.mrb[2].mxu0 }
  0xf8   :  { %v9961_v44 = vpop.f32.mrb[3].mxu0 }
  0xf9   :  { %v487_v45 = vadd.f32 %v9961_v44, %v9957_v42 }
  0xfb   :  { %v488_v46 = vadd.f32 %v9955_v41, %v487_v45 }
  0xfd   :  { %v9966_v47 = vpop.f32.mrb[4].mxu0  ;;  %v489_v48 = vadd.f32 %v9959_v43, %v488_v46 }
  0xfe   :  { %v9969_v49 = vpop.f32.mrb[5].mxu0 }
  0xff   :  { %v490_v50 = vadd.f32 %v489_v48, %v9969_v49  ;;  %v9972_v51 = vpop.f32.mrb[6].mxu0 }
 0x100   :  { %v9974_v52 = vpop.f32.mrb[7].mxu0 }
 0x101   :  { %v491_v53 = vadd.f32 %v490_v50, %v9974_v52 }
 0x103   :  { %v492_v54 = vadd.f32 %v9966_v47, %v491_v53 }
 0x105   :  { %v9978_v55 = vpop.f32.mrb[8].mxu0  ;;  %v493_v56 = vadd.f32 %v9972_v51, %v492_v54 }
 0x106   :  { %v9981_v57 = vpop.f32.mrb[9].mxu0 }
 0x107   :  { %v494_v58 = vadd.f32 %v493_v56, %v9981_v57  ;;  %v9984_v59 = vpop.f32.mrb[10].mxu0 }
 0x108   :  { %v9986_v60 = vpop.f32.mrb[11].mxu0 }
 0x109   :  { %v495_v61 = vadd.f32 %v494_v58, %v9986_v60 }
 0x10b   :  { %v496_v62 = vadd.f32 %v9978_v55, %v495_v61 }
 0x10d   :  { %v9990_v63 = vpop.f32.mrb[12].mxu0  ;;  %v497_v0 = vadd.f32 %v9984_v59, %v496_v62 }
 0x10e   :  { %v9993_v1 = vpop.f32.mrb[13].mxu0 }
 0x10f   :  { %v498_v2 = vadd.f32 %v497_v0, %v9993_v1  ;;  %v9996_v3 = vpop.f32.mrb[14].mxu0 }
 0x110   :  { %v9998_v4 = vpop.f32.mrb[15].mxu0 }
 0x111   :  { %v499_v5 = vadd.f32 %v498_v2, %v9998_v4 }
 0x113   :  { %v500_v6 = vadd.f32 %v9990_v63, %v499_v5 }
 0x115   :  { %v10002_v7 = vpop.f32.mrb[16].mxu0  ;;  %v501_v8 = vadd.f32 %v9996_v3, %v500_v6 }
 0x116   :  { %v10005_v9 = vpop.f32.mrb[17].mxu0 }
 0x117   :  { %v502_v10 = vadd.f32 %v501_v8, %v10005_v9  ;;  %v10008_v11 = vpop.f32.mrb[18].mxu0 }
 0x118   :  { %v10010_v12 = vpop.f32.mrb[19].mxu0 }
 0x119   :  { %v503_v13 = vadd.f32 %v502_v10, %v10010_v12 }
 0x11b   :  { %v504_v14 = vadd.f32 %v10002_v7, %v503_v13 }
 0x11d   :  { %v10014_v15 = vpop.f32.mrb[20].mxu0  ;;  %v505_v16 = vadd.f32 %v10008_v11, %v504_v14 }
 0x11e   :  { %v10017_v17 = vpop.f32.mrb[21].mxu0 }
 0x11f   :  { %v506_v18 = vadd.f32 %v505_v16, %v10017_v17  ;;  %v10020_v19 = vpop.f32.mrb[22].mxu0 }
 0x120   :  { %v10022_v20 = vpop.f32.mrb[23].mxu0 }
 0x121   :  { %v507_v21 = vadd.f32 %v506_v18, %v10022_v20 }
 0x123   :  { %v508_v22 = vadd.f32 %v10014_v15, %v507_v21 }
 0x125   :  { %v10026_v23 = vpop.f32.mrb[24].mxu0  ;;  %v509_v24 = vadd.f32 %v10020_v19, %v508_v22 }
 0x126   :  { %v10029_v25 = vpop.f32.mrb[25].mxu0 }
 0x127   :  { %v510_v26 = vadd.f32 %v509_v24, %v10029_v25  ;;  %v10032_v27 = vpop.f32.mrb[26].mxu0 }
 0x128   :  { %v10034_v28 = vpop.f32.mrb[27].mxu0 }
 0x129   :  { %v511_v29 = vadd.f32 %v510_v26, %v10034_v28 }
 0x12b   :  { %v512_v30 = vadd.f32 %v10026_v23, %v511_v29 }
 0x12d   :  { %v10038_v31 = vpop.f32.mrb[28].mxu0  ;;  %v513_v32 = vadd.f32 %v10032_v27, %v512_v30 }
 0x12e   :  { %v10041_v33 = vpop.f32.mrb[29].mxu0 }
 0x12f   :  { %v514_v34 = vadd.f32 %v513_v32, %v10041_v33  ;;  %v10044_v35 = vpop.f32.mrb[30].mxu0 }
 0x130   :  { %v10046_v36 = vpop.f32.mrb[31].mxu0 }
 0x131   :  { %v515_v37 = vadd.f32 %v514_v34, %v10046_v36 }
 0x133   :  { %v516_v38 = vadd.f32 %v10038_v31, %v515_v37 }
 0x135   :  { %v10050_v39 = vpop.f32.mrb[32].mxu0  ;;  %v517_v40 = vadd.f32 %v10044_v35, %v516_v38 }
 0x136   :  { %v10053_v45 = vpop.f32.mrb[33].mxu0 }
 0x137   :  { %v518_v46 = vadd.f32 %v517_v40, %v10053_v45  ;;  %v10056_v48 = vpop.f32.mrb[34].mxu0 }
 0x138   :  { %v10058_v50 = vpop.f32.mrb[35].mxu0 }
 0x139   :  { %v519_v53 = vadd.f32 %v518_v46, %v10058_v50 }
 0x13b   :  { %v520_v54 = vadd.f32 %v10050_v39, %v519_v53 }
 0x13d   :  { %v10062_v56 = vpop.f32.mrb[36].mxu0  ;;  %v521_v58 = vadd.f32 %v10056_v48, %v520_v54 }
 0x13e   :  { %v10065_v61 = vpop.f32.mrb[37].mxu0 }
 0x13f   :  { %v522_v62 = vadd.f32 %v521_v58, %v10065_v61  ;;  %v10068_v0 = vpop.f32.mrb[38].mxu0 }
 0x140   :  { %v10070_v2 = vpop.f32.mrb[39].mxu0 }
 0x141   :  { %v523_v5 = vadd.f32 %v522_v62, %v10070_v2 }
 0x143   :  { %v524_v6 = vadd.f32 %v10062_v56, %v523_v5 }
 0x145   :  { %v10074_v8 = vpop.f32.mrb[40].mxu0  ;;  %v525_v10 = vadd.f32 %v10068_v0, %v524_v6 }
 0x146   :  { %v10077_v13 = vpop.f32.mrb[41].mxu0 }
 0x147   :  { %v526_v14 = vadd.f32 %v525_v10, %v10077_v13  ;;  %v10080_v16 = vpop.f32.mrb[42].mxu0 }
 0x148   :  { %v10082_v18 = vpop.f32.mrb[43].mxu0 }
 0x149   :  { %v527_v21 = vadd.f32 %v526_v14, %v10082_v18 }
 0x14b   :  { %v528_v22 = vadd.f32 %v10074_v8, %v527_v21 }
 0x14d   :  { %v10086_v24 = vpop.f32.mrb[44].mxu0  ;;  %v529_v26 = vadd.f32 %v10080_v16, %v528_v22 }
 0x14e   :  { %v10089_v29 = vpop.f32.mrb[45].mxu0 }
 0x14f   :  { %v530_v30 = vadd.f32 %v529_v26, %v10089_v29  ;;  %v10092_v32 = vpop.f32.mrb[46].mxu0 }
 0x150   :  { %v10094_v34 = vpop.f32.mrb[47].mxu0 }
 0x151   :  { %v531_v37 = vadd.f32 %v530_v30, %v10094_v34 }
 0x153   :  { %v532_v38 = vadd.f32 %v10086_v24, %v531_v37 }
 0x155   :  { %v10098_v40 = vpop.f32.mrb[48].mxu0  ;;  %v533_v46 = vadd.f32 %v10092_v32, %v532_v38 }
 0x156   :  { %16602 = vst [vmem:[#allocation3_spill] sm:$0xff] %v10098_v40  ;;  %v10101_v53 = vpop.f32.mrb[49].mxu0 }
 0x157   :  { %16603 = vst [vmem:[#allocation4_spill] sm:$0xff] %v10101_v53  ;;  %v534_v54 = vadd.f32 %v533_v46, %v10101_v53  ;;  %v10104_v58 = vpop.f32.mrb[50].mxu0 }
 0x158   :  { %16604 = vst [vmem:[#allocation5_spill] sm:$0xff] %v10104_v58  ;;  %v10106_v62 = vpop.f32.mrb[51].mxu0 }
 0x159   :  { %16605 = vst [vmem:[#allocation6_spill] sm:$0xff] %v10106_v62  ;;  %v535_v5 = vadd.f32 %v534_v54, %v10106_v62 }
 0x15b   :  { %v536_v6 = vadd.f32 %v10098_v40, %v535_v5 }
 0x15d   :  { %v10110_v10 = vpop.f32.mrb[52].mxu0  ;;  %v537_v14 = vadd.f32 %v10104_v58, %v536_v6 }
 0x15e   :  { %16606 = vst [vmem:[#allocation7_spill] sm:$0xff] %v10110_v10  ;;  %v10113_v21 = vpop.f32.mrb[53].mxu0 }
 0x15f   :  { %16607 = vst [vmem:[#allocation8_spill] sm:$0xff] %v10113_v21  ;;  %v538_v22 = vadd.f32 %v537_v14, %v10113_v21  ;;  %v10116_v26 = vpop.f32.mrb[54].mxu0 }
 0x160   :  { %16608 = vst [vmem:[#allocation9_spill] sm:$0xff] %v10116_v26  ;;  %v10118_v30 = vpop.f32.mrb[55].mxu0 }
 0x161   :  { %16609 = vst [vmem:[#allocation10_spill] sm:$0xff] %v10118_v30  ;;  %v539_v37 = vadd.f32 %v538_v22, %v10118_v30 }
 0x163   :  { %v540_v38 = vadd.f32 %v10110_v10, %v539_v37 }
 0x165   :  { %v10122_v46 = vpop.f32.mrb[56].mxu0  ;;  %v541_v54 = vadd.f32 %v10116_v26, %v540_v38 }
 0x166   :  { %16610 = vst [vmem:[#allocation11_spill] sm:$0xff] %v10122_v46  ;;  %v10125_v5 = vpop.f32.mrb[57].mxu0 }
 0x167   :  { %16611 = vst [vmem:[#allocation12_spill] sm:$0xff] %v10125_v5  ;;  %v542_v6 = vadd.f32 %v541_v54, %v10125_v5  ;;  %v10128_v58 = vpop.f32.mrb[58].mxu0 }
 0x168   :  { %16612 = vst [vmem:[#allocation13_spill] sm:$0xff] %v10128_v58  ;;  %v10130_v40 = vpop.f32.mrb[59].mxu0 }
 0x169   :  { %16613 = vst [vmem:[#allocation14_spill] sm:$0xff] %v10130_v40  ;;  %v543_v14 = vadd.f32 %v542_v6, %v10130_v40 }
 0x16b   :  { %v544_v21 = vadd.f32 %v10122_v46, %v543_v14 }
 0x16d   :  { %v10134_v62 = vpop.f32.mrb[60].mxu0  ;;  %v545_v22 = vadd.f32 %v10128_v58, %v544_v21 }
 0x16e   :  { %v10137_v37 = vpop.f32.mrb[61].mxu0 }
 0x16f   :  { %16614 = vst [vmem:[#allocation15_spill] sm:$0xff] %v10137_v37  ;;  %v546_v38 = vadd.f32 %v545_v22, %v10137_v37  ;;  %v10140_v26 = vpop.f32.mrb[62].mxu0 }
 0x170   :  { %v10142_v10 = vpop.f32.mrb[63].mxu0 }
 0x171   :  { %v547_v54 = vadd.f32 %v546_v38, %v10142_v10 }
 0x173   :  { %v548_v5 = vadd.f32 %v10134_v62, %v547_v54  ;;  %v16629_v54 = vld [vmem:[#allocation5_spill] sm:$0xff] }
 0x175   :  { %v549_v6 = vadd.f32 %v10140_v26, %v548_v5  ;;  %v16627_v5 = vld [vmem:[#allocation3_spill] sm:$0xff] }
 0x177   :  { %v550_v40 = vrot.slane %v549_v6, 4 }
 0x179   :  { %v551_v14 = vadd.f32 %v550_v40, %v549_v6  ;;  %v16631_v6 = vld [vmem:[#allocation8_spill] sm:$0xff] }
 0x17b   :  { %v552_v46 = vrot.slane %v551_v14, 2 }
 0x17d   :  { %v553_v30 = vadd.f32 %v552_v46, %v551_v14  ;;  %v16625_v46 = vld [vmem:[#allocation6_spill] sm:$0xff] }
 0x17e   :  { %v16633_v14 = vld [vmem:[#allocation10_spill] sm:$0xff] }
 0x17f   :  { %v554_v53 = vrot.slane %v553_v30, 1 }
 0x181   :  { %v555_v21 = vadd.f32 %v554_v53, %v553_v30  ;;  %v16623_v30 = vld [vmem:[#allocation4_spill] sm:$0xff] }
 0x183   :  { %v10147_v58 = vmul.f32 0.001953125, %v555_v21 }
 0x185   :  { %v10151_v22 = vsub.f32 %v9957_v42, %v10147_v58  ;;  %v10155_v37 = vsub.f32 %v9961_v44, %v10147_v58  ;;  %v10159_v38 = vsub.f32 %v9955_v41, %v10147_v58  ;;  %v10163_v40 = vsub.f32 %v9959_v43, %v10147_v58 }
 0x186   :  { %v10167_v53 = vsub.f32 %v9969_v49, %v10147_v58  ;;  %v10171_v42 = vsub.f32 %v9974_v52, %v10147_v58  ;;  %v10175_v44 = vsub.f32 %v9966_v47, %v10147_v58  ;;  %v10179_v41 = vsub.f32 %v9972_v51, %v10147_v58 }
 0x187   :  { %16615 = vst [vmem:[#allocation16_spill] sm:$0xff] %v10151_v22  ;;  %16616 = vst [vmem:[#allocation17_spill] sm:$0xff] %v10155_v37  ;;  %v10183_v43 = vsub.f32 %v9981_v57, %v10147_v58  ;;  %v10187_v49 = vsub.f32 %v9986_v60, %v10147_v58  ;;  %v10191_v52 = vsub.f32 %v9978_v55, %v10147_v58 }
 0x188   :  { %16617 = vst [vmem:[#allocation18_spill] sm:$0xff] %v10159_v38  ;;  %v10195_v47 = vsub.f32 %v9984_v59, %v10147_v58  ;;  %v10199_v51 = vsub.f32 %v9993_v1, %v10147_v58  ;;  %v10203_v57 = vsub.f32 %v9998_v4, %v10147_v58  ;;  %v10207_v60 = vsub.f32 %v9990_v63, %v10147_v58 }
 0x189   :  { %v10211_v55 = vsub.f32 %v9996_v3, %v10147_v58  ;;  %v10215_v59 = vsub.f32 %v10005_v9, %v10147_v58  ;;  %v10219_v1 = vsub.f32 %v10010_v12, %v10147_v58  ;;  %v10223_v4 = vsub.f32 %v10002_v7, %v10147_v58 }
 0x18a   :  { %v10227_v63 = vsub.f32 %v10008_v11, %v10147_v58  ;;  %v10231_v3 = vsub.f32 %v10017_v17, %v10147_v58  ;;  %v10235_v9 = vsub.f32 %v10022_v20, %v10147_v58  ;;  %v10239_v12 = vsub.f32 %v10014_v15, %v10147_v58 }
 0x18b   :  { %v10243_v7 = vsub.f32 %v10020_v19, %v10147_v58  ;;  %v10247_v11 = vsub.f32 %v10029_v25, %v10147_v58  ;;  %v10251_v17 = vsub.f32 %v10034_v28, %v10147_v58  ;;  %v10255_v20 = vsub.f32 %v10026_v23, %v10147_v58 }
 0x18c   :  { %v10259_v15 = vsub.f32 %v10032_v27, %v10147_v58  ;;  %v10263_v19 = vsub.f32 %v10041_v33, %v10147_v58  ;;  %v10267_v25 = vsub.f32 %v10046_v36, %v10147_v58  ;;  %v10271_v28 = vsub.f32 %v10038_v31, %v10147_v58 }
 0x18d   :  { %v10275_v23 = vsub.f32 %v10044_v35, %v10147_v58  ;;  %v10279_v27 = vsub.f32 %v10053_v45, %v10147_v58  ;;  %v10283_v33 = vsub.f32 %v10058_v50, %v10147_v58  ;;  %v10287_v36 = vsub.f32 %v10050_v39, %v10147_v58 }
 0x18e   :  { %v10291_v31 = vsub.f32 %v10056_v48, %v10147_v58  ;;  %v10295_v35 = vsub.f32 %v10065_v61, %v10147_v58  ;;  %v10299_v45 = vsub.f32 %v10070_v2, %v10147_v58  ;;  %v10303_v50 = vsub.f32 %v10062_v56, %v10147_v58 }
 0x18f   :  { %v10307_v39 = vsub.f32 %v10068_v0, %v10147_v58  ;;  %v10311_v48 = vsub.f32 %v10077_v13, %v10147_v58  ;;  %v10315_v61 = vsub.f32 %v10082_v18, %v10147_v58  ;;  %v10319_v2 = vsub.f32 %v10074_v8, %v10147_v58 }
 0x190   :  { %v10323_v56 = vsub.f32 %v10080_v16, %v10147_v58  ;;  %v10327_v0 = vsub.f32 %v10089_v29, %v10147_v58  ;;  %v10331_v13 = vsub.f32 %v10094_v34, %v10147_v58  ;;  %v10335_v18 = vsub.f32 %v10086_v24, %v10147_v58 }
 0x191   :  { %v10339_v8 = vsub.f32 %v10092_v32, %v10147_v58  ;;  %v10343_v16 = vsub.f32 %v16623_v30, %v10147_v58  ;;  %v10347_v29 = vsub.f32 %v16625_v46, %v10147_v58  ;;  %v10351_v34 = vsub.f32 %v16627_v5, %v10147_v58  ;;  %v16635_v30 = vld [vmem:[#allocation7_spill] sm:$0xff] }
 0x192   :  { %16618 = vst [vmem:[#allocation19_spill] sm:$0xff] %v10323_v56  ;;  %16619 = vst [vmem:[#allocation20_spill] sm:$0xff] %v10327_v0  ;;  %v10355_v24 = vsub.f32 %v16629_v54, %v10147_v58  ;;  %v10359_v32 = vsub.f32 %v16631_v6, %v10147_v58  ;;  %v10363_v21 = vsub.f32 %v16633_v14, %v10147_v58 }
 0x193   :  { %16620 = vst [vmem:[#allocation21_spill] sm:$0xff] %v10331_v13  ;;  %16621 = vst [vmem:[#allocation22_spill] sm:$0xff] %v10335_v18  ;;  %v10367_v46 = vsub.f32 %v16635_v30, %v10147_v58 }
 0x194   :  { %16622 = vst [vmem:[#allocation23_spill] sm:$0xff] %v10339_v8  ;;  %16624 = vst [vmem:[#allocation4_spill] sm:$0xff] %v10343_v16 }
 0x195   :  { %16626 = vst [vmem:[#allocation6_spill] sm:$0xff] %v10347_v29  ;;  %16628 = vst [vmem:[#allocation3_spill] sm:$0xff] %v10351_v34  ;;  %v16637_v29 = vld [vmem:[#allocation9_spill] sm:$0xff]  ;;  %v16639_v34 = vld [vmem:[#allocation12_spill] sm:$0xff] }
 0x196   :  { %16630 = vst [vmem:[#allocation5_spill] sm:$0xff] %v10355_v24  ;;  %16632 = vst [vmem:[#allocation8_spill] sm:$0xff] %v10359_v32  ;;  %v10371_v5 = vsub.f32 %v16637_v29, %v10147_v58  ;;  %v10375_v54 = vsub.f32 %v16639_v34, %v10147_v58  ;;  %v16641_v24 = vld [vmem:[#allocation14_spill] sm:$0xff]  ;;  %v16643_v32 = vld [vmem:[#allocation11_spill] sm:$0xff]  ;;  %v10395_v34 = vsub.f32 %v10142_v10, %v10147_v58 }
 0x197   :  { %16634 = vst [vmem:[#allocation10_spill] sm:$0xff] %v10363_v21  ;;  %16636 = vst [vmem:[#allocation7_spill] sm:$0xff] %v10367_v46  ;;  %v10379_v6 = vsub.f32 %v16641_v24, %v10147_v58  ;;  %v10383_v14 = vsub.f32 %v16643_v32, %v10147_v58  ;;  %v16645_v21 = vld [vmem:[#allocation13_spill] sm:$0xff]  ;;  %v16647_v46 = vld [vmem:[#allocation15_spill] sm:$0xff]  ;;  %v10399_v24 = vsub.f32 %v10134_v62, %v10147_v58 }
 0x198   :  { %16638 = vst [vmem:[#allocation9_spill] sm:$0xff] %v10371_v5  ;;  %16640 = vst [vmem:[#allocation12_spill] sm:$0xff] %v10375_v54  ;;  %v10387_v30 = vsub.f32 %v16645_v21, %v10147_v58  ;;  %v10391_v29 = vsub.f32 %v16647_v46, %v10147_v58  ;;  %v10403_v32 = vsub.f32 %v10140_v26, %v10147_v58 }
 0x199   :  { %16642 = vst [vmem:[#allocation14_spill] sm:$0xff] %v10379_v6  ;;  %16644 = vst [vmem:[#allocation11_spill] sm:$0xff] %v10383_v14  ;;  %v622_v21 = vmul.f32 %v10151_v22, %v10151_v22  ;;  %v624_v46 = vmul.f32 %v10159_v38, %v10159_v38  ;;  %v625_v10 = vmul.f32 %v10163_v40, %v10163_v40 }
 0x19a   :  { %16646 = vst [vmem:[#allocation13_spill] sm:$0xff] %v10387_v30  ;;  %16648 = vst [vmem:[#allocation15_spill] sm:$0xff] %v10391_v29  ;;  %v623_v30 = vmul.f32 %v10155_v37, %v10155_v37  ;;  %v626_v62 = vmul.f32 %v10167_v53, %v10167_v53  ;;  %v627_v58 = vmul.f32 %v10171_v42, %v10171_v42 }
 0x19b   :  { %16649 = vst [vmem:[#allocation24_spill] sm:$0xff] %v10395_v34  ;;  %16650 = vst [vmem:[#allocation25_spill] sm:$0xff] %v10399_v24  ;;  %v628_v22 = vmul.f32 %v10175_v44, %v10175_v44  ;;  %v629_v38 = vmul.f32 %v10179_v41, %v10179_v41 }
 0x19c   :  { %v686_v29 = vadd.f32 %v623_v30, %v622_v21  ;;  %v630_v21 = vmul.f32 %v10183_v43, %v10183_v43 }
 0x19e   :  { %v687_v34 = vadd.f32 %v686_v29, %v624_v46  ;;  %v631_v46 = vmul.f32 %v10187_v49, %v10187_v49 }
 0x1a0   :  { %v688_v24 = vadd.f32 %v687_v34, %v625_v10  ;;  %v632_v10 = vmul.f32 %v10191_v52, %v10191_v52 }
 0x1a2   :  { %v689_v26 = vadd.f32 %v688_v24, %v626_v62  ;;  %v633_v62 = vmul.f32 %v10195_v47, %v10195_v47 }
 0x1a4   :  { %v690_v37 = vadd.f32 %v689_v26, %v627_v58  ;;  %v634_v26 = vmul.f32 %v10199_v51, %v10199_v51 }
 0x1a6   :  { %v691_v30 = vadd.f32 %v690_v37, %v628_v22  ;;  %v635_v22 = vmul.f32 %v10203_v57, %v10203_v57 }
 0x1a8   :  { %v692_v29 = vadd.f32 %v691_v30, %v629_v38  ;;  %v636_v30 = vmul.f32 %v10207_v60, %v10207_v60 }
 0x1aa   :  { %v693_v34 = vadd.f32 %v692_v29, %v630_v21  ;;  %v637_v29 = vmul.f32 %v10211_v55, %v10211_v55 }
 0x1ac   :  { %v694_v24 = vadd.f32 %v693_v34, %v631_v46  ;;  %v9402_v34 = vld [vmem:[%s16259_s4 + $0xc0] sm:$0xff]  }
 0x1ad   :  { %8865 = vmatprep.subr.bf16.mxu1 %v9402_v34 }
 0x1ae   :  { %v695_v58 = vadd.f32 %v694_v24, %v632_v10  ;;  %v638_v10 = vmul.f32 %v10215_v59, %v10215_v59  ;;  %8873 = vmatpush3.bf16.msra.mxu1 %v9402_v34  ;;  %v644_v34 = vmul.f32 %v10239_v12, %v10239_v12 }
 0x1b0   :  { %v696_v37 = vadd.f32 %v695_v58, %v633_v62  ;;  %v639_v62 = vmul.f32 %v10219_v1, %v10219_v1 }
 0x1b2   :  { %v697_v38 = vadd.f32 %v696_v37, %v634_v26  ;;  %v640_v26 = vmul.f32 %v10223_v4, %v10223_v4 }
 0x1b4   :  { %v698_v21 = vadd.f32 %v697_v38, %v635_v22  ;;  %v641_v22 = vmul.f32 %v10227_v63, %v10227_v63 }
 0x1b6   :  { %v699_v46 = vadd.f32 %v698_v21, %v636_v30  ;;  %v642_v30 = vmul.f32 %v10231_v3, %v10231_v3 }
 0x1b8   :  { %v700_v24 = vadd.f32 %v699_v46, %v637_v29  ;;  %v643_v29 = vmul.f32 %v10235_v9, %v10235_v9 }
 0x1ba   :  { %v701_v58 = vadd.f32 %v700_v24, %v638_v10  ;;  %v645_v24 = vmul.f32 %v10243_v7, %v10243_v7 }
 0x1bc   :  { %v702_v37 = vadd.f32 %v701_v58, %v639_v62  ;;  %v646_v58 = vmul.f32 %v10247_v11, %v10247_v11 }
 0x1be   :  { %v703_v38 = vadd.f32 %v702_v37, %v640_v26  ;;  %v647_v37 = vmul.f32 %v10251_v17, %v10251_v17 }
 0x1c0   :  { %v704_v21 = vadd.f32 %v703_v38, %v641_v22  ;;  %v648_v38 = vmul.f32 %v10255_v20, %v10255_v20 }
 0x1c2   :  { %v705_v46 = vadd.f32 %v704_v21, %v642_v30  ;;  %v649_v21 = vmul.f32 %v10259_v15, %v10259_v15 }
 0x1c4   :  { %v706_v10 = vadd.f32 %v705_v46, %v643_v29  ;;  %v650_v46 = vmul.f32 %v10263_v19, %v10263_v19 }
 0x1c6   :  { %v707_v62 = vadd.f32 %v706_v10, %v644_v34  ;;  %v651_v10 = vmul.f32 %v10267_v25, %v10267_v25 }
 0x1c8   :  { %v708_v26 = vadd.f32 %v707_v62, %v645_v24  ;;  %v652_v62 = vmul.f32 %v10271_v28, %v10271_v28 }
 0x1ca   :  { %v709_v22 = vadd.f32 %v708_v26, %v646_v58  ;;  %v653_v26 = vmul.f32 %v10275_v23, %v10275_v23 }
 0x1cc   :  { %v710_v30 = vadd.f32 %v709_v22, %v647_v37  ;;  %v654_v22 = vmul.f32 %v10279_v27, %v10279_v27 }
 0x1ce   :  { %v711_v29 = vadd.f32 %v710_v30, %v648_v38  ;;  %v655_v30 = vmul.f32 %v10283_v33, %v10283_v33 }
 0x1d0   :  { %v712_v34 = vadd.f32 %v711_v29, %v649_v21  ;;  %v656_v29 = vmul.f32 %v10287_v36, %v10287_v36 }
 0x1d2   :  { %v713_v24 = vadd.f32 %v712_v34, %v650_v46  ;;  %v657_v34 = vmul.f32 %v10291_v31, %v10291_v31 }
 0x1d4   :  { %v714_v58 = vadd.f32 %v713_v24, %v651_v10  ;;  %v658_v24 = vmul.f32 %v10295_v35, %v10295_v35 }
 0x1d6   :  { %v715_v37 = vadd.f32 %v714_v58, %v652_v62  ;;  %v9403_v58 = vld [vmem:[%s16259_s4 + $0x40] sm:$0xff]  }
 0x1d7   :  { %8065 = vmatprep.subr.bf16.mxu0 %v9403_v58 }
 0x1d8   :  { %v716_v38 = vadd.f32 %v715_v37, %v653_v26  ;;  %v659_v26 = vmul.f32 %v10299_v45, %v10299_v45  ;;  %8066 = vmatpush3.bf16.msra.mxu0 %v9403_v58  ;;  %v663_v58 = vmul.f32 %v10315_v61, %v10315_v61 }
 0x1da   :  { %v717_v21 = vadd.f32 %v716_v38, %v654_v22  ;;  %v9404_v22 = vld [vmem:[%s16259_s4 + $0xc8] sm:$0xff]   ;;  %v660_v38 = vmul.f32 %v10303_v50, %v10303_v50 }
 0x1db   :  { %8866 = vmatprep.subr.bf16.mxu1 %v9404_v22 }
 0x1dc   :  { %v718_v46 = vadd.f32 %v717_v21, %v655_v30  ;;  %v9405_v21 = vld [vmem:[%s16259_s4 + $0x48] sm:$0xff]   ;;  %8874 = vmatpush3.bf16.msra.mxu1 %v9404_v22  ;;  %v664_v22 = vmul.f32 %v10319_v2, %v10319_v2 }
 0x1dd   :  { %8067 = vmatprep.subr.bf16.mxu0 %v9405_v21 }
 0x1de   :  { %v719_v10 = vadd.f32 %v718_v46, %v656_v29  ;;  %v661_v29 = vmul.f32 %v10307_v39, %v10307_v39  ;;  %8068 = vmatpush3.bf16.msra.mxu0 %v9405_v21  ;;  %v665_v21 = vmul.f32 %v10323_v56, %v10323_v56 }
 0x1e0   :  { %v720_v62 = vadd.f32 %v719_v10, %v657_v34  ;;  %v9406_v34 = vld [vmem:[%s16259_s4 + $0xd0] sm:$0xff]   ;;  %v662_v10 = vmul.f32 %v10311_v48, %v10311_v48 }
 0x1e1   :  { %8867 = vmatprep.subr.bf16.mxu1 %v9406_v34 }
 0x1e2   :  { %v721_v37 = vadd.f32 %v720_v62, %v658_v24  ;;  %v9407_v62 = vld [vmem:[%s16259_s4 + $0x50] sm:$0xff]   ;;  %8875 = vmatpush3.bf16.msra.mxu1 %v9406_v34  ;;  %v666_v34 = vmul.f32 %v10327_v0, %v10327_v0  ;;  %v16656_v0 = vld [vmem:[#allocation8_spill] sm:$0xff] }
 0x1e3   :  { %8069 = vmatprep.subr.bf16.mxu0 %v9407_v62  ;;  %v674_v56 = vmul.f32 %v16656_v0, %v16656_v0 }
 0x1e4   :  { %v722_v30 = vadd.f32 %v721_v37, %v659_v26  ;;  %v9408_v37 = vld [vmem:[%s16259_s4 + $0xd8] sm:$0xff]   ;;  %8070 = vmatpush3.bf16.msra.mxu0 %v9407_v62  ;;  %v667_v62 = vmul.f32 %v10331_v13, %v10331_v13 }
 0x1e5   :  { %8868 = vmatprep.subr.bf16.mxu1 %v9408_v37 }
 0x1e6   :  { %v723_v46 = vadd.f32 %v722_v30, %v660_v38  ;;  %v9409_v30 = vld [vmem:[%s16259_s4 + $0x58] sm:$0xff]   ;;  %8876 = vmatpush3.bf16.msra.mxu1 %v9408_v37  ;;  %v668_v37 = vmul.f32 %v10335_v18, %v10335_v18 }
 0x1e7   :  { %8071 = vmatprep.subr.bf16.mxu0 %v9409_v30 }
 0x1e8   :  { %v724_v24 = vadd.f32 %v723_v46, %v661_v29  ;;  %v9410_v46 = vld [vmem:[%s16259_s4 + $0xe0] sm:$0xff]   ;;  %8072 = vmatpush3.bf16.msra.mxu0 %v9409_v30  ;;  %v669_v30 = vmul.f32 %v10339_v8, %v10339_v8 }
 0x1e9   :  { %8869 = vmatprep.subr.bf16.mxu1 %v9410_v46 }
 0x1ea   :  { %v725_v26 = vadd.f32 %v724_v24, %v662_v10  ;;  %v9411_v24 = vld [vmem:[%s16259_s4 + $0x60] sm:$0xff]   ;;  %8877 = vmatpush3.bf16.msra.mxu1 %v9410_v46  ;;  %v9415_v46 = vld [vmem:[%s16259_s4 + $0x70] sm:$0xff]  }
 0x1eb   :  { %8073 = vmatprep.subr.bf16.mxu0 %v9411_v24 }
 0x1ec   :  { %v726_v38 = vadd.f32 %v725_v26, %v663_v58  ;;  %v9412_v26 = vld [vmem:[%s16259_s4 + $0xe8] sm:$0xff]   ;;  %8074 = vmatpush3.bf16.msra.mxu0 %v9411_v24 }
 0x1ed   :  { %8870 = vmatprep.subr.bf16.mxu1 %v9412_v26 }
 0x1ee   :  { %v727_v29 = vadd.f32 %v726_v38, %v664_v22  ;;  %v9413_v38 = vld [vmem:[%s16259_s4 + $0x68] sm:$0xff]   ;;  %8878 = vmatpush3.bf16.msra.mxu1 %v9412_v26 }
 0x1ef   :  { %8075 = vmatprep.subr.bf16.mxu0 %v9413_v38 }
 0x1f0   :  { %v728_v10 = vadd.f32 %v727_v29, %v665_v21  ;;  %v9414_v29 = vld [vmem:[%s16259_s4 + $0xf0] sm:$0xff]   ;;  %8076 = vmatpush3.bf16.msra.mxu0 %v9413_v38 }
 0x1f1   :  { %8871 = vmatprep.subr.bf16.mxu1 %v9414_v29  ;;  %8077 = vmatprep.subr.bf16.mxu0 %v9415_v46  ;;  %v9488_v38 = vld [vmem:[#allocation2 + $0x30] sm:$0xff] }
 0x1f2   :  { %v729_v58 = vadd.f32 %v728_v10, %v666_v34  ;;  %v9416_v34 = vld [vmem:[%s16259_s4 + $0xf8] sm:$0xff]   ;;  %v670_v10 = vmul.f32 %v10343_v16, %v10343_v16  ;;  %8879 = vmatpush3.bf16.msra.mxu1 %v9414_v29  ;;  %v1201_v16 = vld [vmem:[#allocation2 + $0x10] sm:$0x3] }
 0x1f3   :  { %8872 = vmatprep.subr.bf16.mxu1 %v9416_v34  ;;  %v1455_v13 = vrot.slane %v1201_v16, 1  ;;  %v16657_v16 = vld [vmem:[#allocation10_spill] sm:$0xff] }
 0x1f4   :  { %v730_v22 = vadd.f32 %v729_v58, %v667_v62  ;;  %v9417_v62 = vld [vmem:[%s16259_s4 + $0x78] sm:$0xff]   ;;  %8078 = vmatpush3.bf16.msra.mxu0 %v9415_v46  ;;  %v675_v46 = vmul.f32 %v16657_v16, %v16657_v16 }
 0x1f5   :  { %v16651_v58 = vld [vmem:[#allocation6_spill] sm:$0xff]  ;;  %8079 = vmatprep.subr.bf16.mxu0 %v9417_v62 }
 0x1f6   :  { %v731_v21 = vadd.f32 %v730_v22, %v668_v37  ;;  %v671_v26 = vmul.f32 %v16651_v58, %v16651_v58  ;;  %v10556_v22 = vld [vmem:[%s16259_s4 + $0x100] sm:$0xff]   ;;  %8880 = vmatpush3.bf16.msra.mxu1 %v9416_v34 }
 0x1f7   :  { %16652 = vst [vmem:[#allocation26_spill] sm:$0xff] %v10556_v22  ;;  %8385 = vmatprep.subr.bf16.mxu1 %v10556_v22 }
 0x1f8   :  { %v732_v24 = vadd.f32 %v731_v21, %v669_v30  ;;  %v10558_v30 = vrot.slane %v9488_v38, 1  ;;  %v16654_v21 = vld [vmem:[#allocation3_spill] sm:$0xff]  ;;  %8080 = vmatpush3.bf16.msra.mxu0 %v9417_v62  ;;  %v679_v62 = vmul.f32 %v10379_v6, %v10379_v6 }
 0x1f9   :  { %v672_v8 = vmul.f32 %v16654_v21, %v16654_v21 }
 0x1fa   :  { %v733_v37 = vadd.f32 %v732_v24, %v670_v10  ;;  %16653 = vst [vmem:[#allocation27_spill] sm:$0xff] %v10558_v30  ;;  %v16655_v10 = vld [vmem:[#allocation5_spill] sm:$0xff]  ;;  %v1456_v58 = vsel %vm1451_vm0, %v10558_v30, %v1455_v13  ;;  %v677_v13 = vmul.f32 %v10371_v5, %v10371_v5 }
 0x1fb   :  { %v673_v29 = vmul.f32 %v16655_v10, %v16655_v10  ;;  %v1676_v38 = vpack.c.bf16 %v1456_v58, %v10558_v30  ;;  %v678_v58 = vmul.f32 %v10375_v54, %v10375_v54 }
 0x1fc   :  { %v734_v18 = vadd.f32 %v733_v37, %v671_v26  ;;  %v16658_v37 = vld [vmem:[#allocation7_spill] sm:$0xff] }
 0x1fd   :  { %8081 = vmatprep.mubr.bf16.mxu0 %v1676_v38 }
 0x1fe   :  { %v735_v24 = vadd.f32 %v734_v18, %v672_v8  ;;  %v676_v18 = vmul.f32 %v16658_v37, %v16658_v37 }
 0x200   :  { %v736_v21 = vadd.f32 %v735_v24, %v673_v29  ;;  %v680_v24 = vmul.f32 %v10383_v14, %v10383_v14 }
 0x202   :  { %v737_v26 = vadd.f32 %v736_v21, %v674_v56  ;;  %v16659_v21 = vld [vmem:[#allocation13_spill] sm:$0xff] }
 0x203   :  { %v681_v38 = vmul.f32 %v16659_v21, %v16659_v21 }
 0x204   :  { %v738_v8 = vadd.f32 %v737_v26, %v675_v46  ;;  %v16660_v26 = vld [vmem:[#allocation15_spill] sm:$0xff] }
 0x205   :  { %v682_v22 = vmul.f32 %v16660_v26, %v16660_v26 }
 0x206   :  { %v739_v34 = vadd.f32 %v738_v8, %v676_v18  ;;  %v16661_v8 = vld [vmem:[#allocation24_spill] sm:$0xff] }
 0x207   :  { %v683_v54 = vmul.f32 %v16661_v8, %v16661_v8 }
 0x208   :  { %v740_v30 = vadd.f32 %v739_v34, %v677_v13  ;;  %v16662_v34 = vld [vmem:[#allocation25_spill] sm:$0xff] }
 0x209   :  { %v684_v6 = vmul.f32 %v16662_v34, %v16662_v34 }
 0x20a   :  { %v741_v29 = vadd.f32 %v740_v30, %v678_v58  ;;  %v685_v58 = vmul.f32 %v10403_v32, %v10403_v32 }
 0x20c   :  { %v742_v56 = vadd.f32 %v741_v29, %v679_v62 }
 0x20e   :  { %v743_v46 = vadd.f32 %v742_v56, %v680_v24 }
 0x210   :  { %v744_v18 = vadd.f32 %v743_v46, %v681_v38 }
 0x212   :  { %v745_v13 = vadd.f32 %v744_v18, %v682_v22  ;;  %v16663_v22 = vld [vmem:[#allocation16_spill] sm:$0xff] }
 0x214   :  { %v746_v30 = vadd.f32 %v745_v13, %v683_v54  ;;  %v10597_v54 = vld [vmem:[%s16260_s2] ss:$0 sm:$0xff] }
 0x215   :  { %v10616_v13 = vld [vmem:[%s16261_s3] ss:$0 sm:$0xff] }
 0x216   :  { %v747_v62 = vadd.f32 %v746_v30, %v684_v6  ;;  %16666 = vst [vmem:[#allocation5_spill] sm:$0xff] %v10616_v13 }
 0x218   :  { %v748_v29 = vadd.f32 %v747_v62, %v685_v58 }
 0x21a   :  { %v749_v14 = vrot.slane %v748_v29, 4 }
 0x21c   :  { %v750_v21 = vadd.f32 %v749_v14, %v748_v29 }
 0x21e   :  { %v751_v24 = vrot.slane %v750_v21, 2 }
 0x220   :  { %v752_v56 = vadd.f32 %v751_v24, %v750_v21  ;;  %v16664_v21 = vld [vmem:[#allocation17_spill] sm:$0xff] }
 0x222   :  { %v753_v5 = vrot.slane %v752_v56, 1 }
 0x224   :  { %v754_v26 = vadd.f32 %v753_v5, %v752_v56 }
 0x226   :  { %v755_v38 = vmul.f32 0.001953125, %v754_v26  ;;  %v16665_v26 = vld [vmem:[#allocation18_spill] sm:$0xff] }
 0x228   :  { %v756_v46 = vadd.f32 1e-05, %v755_v38 }
 0x22a   :  { %9482 = vrsqrt.f32 %v756_v46  ;;  %v16667_v46 = vld [vmem:[#allocation19_spill] sm:$0xff] }
 0x234   :  { %v10592_v37 = vpop.eup %9482 }
 0x235   :  { %v819_v6 = vmul.f32 %v10592_v37, %v16661_v8  ;;  %v10603_v14 = vmul.f32 %v10592_v37, %v16663_v22  ;;  %v10607_v5 = vmul.f32 %v10592_v37, %v16664_v21  ;;  %v10611_v18 = vmul.f32 %v10592_v37, %v16665_v26  ;;  %v16669_v22 = vld [vmem:[#allocation21_spill] sm:$0xff]  ;;  %v16670_v21 = vld [vmem:[#allocation22_spill] sm:$0xff]  ;;  %v16671_v26 = vld [vmem:[#allocation23_spill] sm:$0xff] }
 0x236   :  { %v10620_v8 = vmul.f32 %v10592_v37, %v10163_v40  ;;  %v10624_v30 = vmul.f32 %v10592_v37, %v10167_v53  ;;  %v10628_v58 = vmul.f32 %v10592_v37, %v10171_v42  ;;  %v10632_v62 = vmul.f32 %v10592_v37, %v10175_v44 }
 0x237   :  { %v889_v29 = vmul.f32 %v10597_v54, %v819_v6  ;;  %v10637_v24 = vmul.f32 %v10592_v37, %v10179_v41  ;;  %v10641_v40 = vmul.f32 %v10592_v37, %v10183_v43  ;;  %v10645_v53 = vmul.f32 %v10592_v37, %v10187_v49  ;;  %v16668_v6 = vld [vmem:[#allocation20_spill] sm:$0xff] }
 0x238   :  { %v10649_v42 = vmul.f32 %v10592_v37, %v10191_v52  ;;  %v10653_v44 = vmul.f32 %v10592_v37, %v10195_v47  ;;  %v10657_v41 = vmul.f32 %v10592_v37, %v10199_v51  ;;  %v10661_v43 = vmul.f32 %v10592_v37, %v10203_v57 }
 0x239   :  { %v959_v56 = vadd.f32 %v10616_v13, %v889_v29  ;;  %v10666_v49 = vmul.f32 %v10592_v37, %v10207_v60  ;;  %v10670_v52 = vmul.f32 %v10592_v37, %v10211_v55  ;;  %v10674_v47 = vmul.f32 %v10592_v37, %v10215_v59  ;;  %v16672_v29 = vld [vmem:[#allocation4_spill] sm:$0xff]  ;;  %v16680_v13 = vld [vmem:[#allocation7_spill] sm:$0xff] }
 0x23a   :  { %v10678_v51 = vmul.f32 %v10592_v37, %v10219_v1  ;;  %v10682_v57 = vmul.f32 %v10592_v37, %v10223_v4  ;;  %v10686_v60 = vmul.f32 %v10592_v37, %v10227_v63  ;;  %v10690_v55 = vmul.f32 %v10592_v37, %v10231_v3 }
 0x23b   :  { %v1023_v38 = vmax.f32 %v959_v56, 0.0  ;;  %v10694_v59 = vmul.f32 %v10592_v37, %v10235_v9  ;;  %v10698_v1 = vmul.f32 %v10592_v37, %v10239_v12  ;;  %v10702_v4 = vmul.f32 %v10592_v37, %v10243_v7 }
 0x23c   :  { %v10706_v63 = vmul.f32 %v10592_v37, %v10247_v11  ;;  %v10710_v3 = vmul.f32 %v10592_v37, %v10251_v17  ;;  %v10714_v9 = vmul.f32 %v10592_v37, %v10255_v20  ;;  %v10718_v12 = vmul.f32 %v10592_v37, %v10259_v15 }
 0x23d   :  { %1196 = vst [vmem:[#allocation2 + $0x321] sm:$0xff] %v1023_v38  ;;  %v10722_v7 = vmul.f32 %v10592_v37, %v10263_v19  ;;  %v10726_v11 = vmul.f32 %v10592_v37, %v10267_v25  ;;  %v10730_v17 = vmul.f32 %v10592_v37, %v10271_v28  ;;  %v10734_v20 = vmul.f32 %v10592_v37, %v10275_v23  ;;  %v16673_v38 = vld [vmem:[#allocation6_spill] sm:$0xff] }
 0x23e   :  { %v10738_v15 = vmul.f32 %v10592_v37, %v10279_v27  ;;  %v10742_v19 = vmul.f32 %v10592_v37, %v10283_v33  ;;  %v10746_v25 = vmul.f32 %v10592_v37, %v10287_v36  ;;  %v10750_v28 = vmul.f32 %v10592_v37, %v10291_v31 }
 0x23f   :  { %v10754_v23 = vmul.f32 %v10592_v37, %v10295_v35  ;;  %v10758_v27 = vmul.f32 %v10592_v37, %v10299_v45  ;;  %v10762_v33 = vmul.f32 %v10592_v37, %v10303_v50  ;;  %v10766_v36 = vmul.f32 %v10592_v37, %v10307_v39 }
 0x240   :  { %v10770_v31 = vmul.f32 %v10592_v37, %v10311_v48  ;;  %v10774_v35 = vmul.f32 %v10592_v37, %v10315_v61  ;;  %v10778_v45 = vmul.f32 %v10592_v37, %v10319_v2  ;;  %v10782_v50 = vmul.f32 %v10592_v37, %v16667_v46 }
 0x241   :  { %v10786_v39 = vmul.f32 %v10592_v37, %v16668_v6  ;;  %v10790_v48 = vmul.f32 %v10592_v37, %v16669_v22  ;;  %v10794_v61 = vmul.f32 %v10592_v37, %v16670_v21  ;;  %v10798_v2 = vmul.f32 %v10592_v37, %v16671_v26  ;;  %v16675_v6 = vld [vmem:[#allocation3_spill] sm:$0xff] }
 0x242   :  { %v10802_v56 = vmul.f32 %v10592_v37, %v16672_v29  ;;  %v10806_v46 = vmul.f32 %v10592_v37, %v16673_v38  ;;  %v10810_v22 = vmul.f32 %v10592_v37, %v16675_v6  ;;  %v10814_v21 = vmul.f32 %v10592_v37, %v16655_v10 }
 0x243   :  { %v10818_v26 = vmul.f32 %v10592_v37, %v16656_v0  ;;  %v10822_v29 = vmul.f32 %v10592_v37, %v16657_v16  ;;  %v10826_v38 = vmul.f32 %v10592_v37, %v16680_v13 }
 0x244   :  { %16674 = vst [vmem:[#allocation8_spill] sm:$0xff] %v10806_v46  ;;  %16676 = vst [vmem:[#allocation10_spill] sm:$0xff] %v10810_v22  ;;  %v16682_v46 = vld [vmem:[#allocation9_spill] sm:$0xff]  ;;  %v16683_v22 = vld [vmem:[#allocation12_spill] sm:$0xff] }
 0x245   :  { %16677 = vst [vmem:[#allocation24_spill] sm:$0xff] %v10814_v21  ;;  %16678 = vst [vmem:[#allocation25_spill] sm:$0xff] %v10818_v26  ;;  %v10830_v6 = vmul.f32 %v10592_v37, %v16682_v46  ;;  %v10834_v10 = vmul.f32 %v10592_v37, %v16683_v22  ;;  %v16684_v21 = vld [vmem:[#allocation14_spill] sm:$0xff]  ;;  %v16685_v26 = vld [vmem:[#allocation11_spill] sm:$0xff]  ;;  %v10854_v22 = vmul.f32 %v10592_v37, %v16662_v34 }
 0x246   :  { %16679 = vst [vmem:[#allocation16_spill] sm:$0xff] %v10822_v29  ;;  %16681 = vst [vmem:[#allocation17_spill] sm:$0xff] %v10826_v38  ;;  %v10838_v0 = vmul.f32 %v10592_v37, %v16684_v21  ;;  %v10842_v16 = vmul.f32 %v10592_v37, %v16685_v26  ;;  %v16686_v29 = vld [vmem:[#allocation13_spill] sm:$0xff]  ;;  %v16687_v38 = vld [vmem:[#allocation15_spill] sm:$0xff]  ;;  %v10858_v21 = vmul.f32 %v10592_v37, %v10403_v32 }
 0x247   :  { %v10846_v13 = vmul.f32 %v10592_v37, %v16686_v29  ;;  %v10850_v46 = vmul.f32 %v10592_v37, %v16687_v38  ;;  %v10862_v26 = vmul.f32 %v10597_v54, %v10603_v14  ;;  %v10866_v29 = vmul.f32 %v10597_v54, %v10607_v5 }
 0x248   :  { %v10870_v38 = vmul.f32 %v10597_v54, %v10611_v18  ;;  %v10874_v34 = vmul.f32 %v10597_v54, %v10620_v8  ;;  %v10878_v32 = vmul.f32 %v10597_v54, %v10624_v30  ;;  %v10882_v37 = vmul.f32 %v10597_v54, %v10628_v58 }
 0x249   :  { %v10886_v14 = vmul.f32 %v10597_v54, %v10632_v62  ;;  %v10890_v5 = vmul.f32 %v10597_v54, %v10637_v24  ;;  %v10894_v18 = vmul.f32 %v10597_v54, %v10641_v40  ;;  %v10898_v8 = vmul.f32 %v10597_v54, %v10645_v53 }
 0x24a   :  { %v10902_v30 = vmul.f32 %v10597_v54, %v10649_v42  ;;  %v10906_v58 = vmul.f32 %v10597_v54, %v10653_v44  ;;  %v10910_v62 = vmul.f32 %v10597_v54, %v10657_v41  ;;  %v10914_v24 = vmul.f32 %v10597_v54, %v10661_v43 }
 0x24b   :  { %v10918_v40 = vmul.f32 %v10597_v54, %v10666_v49  ;;  %v10922_v53 = vmul.f32 %v10597_v54, %v10670_v52  ;;  %v10926_v42 = vmul.f32 %v10597_v54, %v10674_v47  ;;  %v10930_v44 = vmul.f32 %v10597_v54, %v10678_v51 }
 0x24c   :  { %v10934_v41 = vmul.f32 %v10597_v54, %v10682_v57  ;;  %v10938_v43 = vmul.f32 %v10597_v54, %v10686_v60  ;;  %v10942_v49 = vmul.f32 %v10597_v54, %v10690_v55  ;;  %v10946_v52 = vmul.f32 %v10597_v54, %v10694_v59 }
 0x24d   :  { %v10950_v47 = vmul.f32 %v10597_v54, %v10698_v1  ;;  %v10954_v51 = vmul.f32 %v10597_v54, %v10702_v4  ;;  %v10958_v57 = vmul.f32 %v10597_v54, %v10706_v63  ;;  %v10962_v60 = vmul.f32 %v10597_v54, %v10710_v3 }
 0x24e   :  { %v10966_v55 = vmul.f32 %v10597_v54, %v10714_v9  ;;  %v10970_v59 = vmul.f32 %v10597_v54, %v10718_v12  ;;  %v10974_v1 = vmul.f32 %v10597_v54, %v10722_v7  ;;  %v10978_v4 = vmul.f32 %v10597_v54, %v10726_v11 }
 0x24f   :  { %v10982_v63 = vmul.f32 %v10597_v54, %v10730_v17  ;;  %v10986_v3 = vmul.f32 %v10597_v54, %v10734_v20  ;;  %v10990_v9 = vmul.f32 %v10597_v54, %v10738_v15  ;;  %v10994_v12 = vmul.f32 %v10597_v54, %v10742_v19 }
 0x250   :  { %v10998_v7 = vmul.f32 %v10597_v54, %v10746_v25  ;;  %v11002_v11 = vmul.f32 %v10597_v54, %v10750_v28  ;;  %v11006_v17 = vmul.f32 %v10597_v54, %v10754_v23  ;;  %v11010_v20 = vmul.f32 %v10597_v54, %v10758_v27 }
 0x251   :  { %v11014_v15 = vmul.f32 %v10597_v54, %v10762_v33  ;;  %v11018_v19 = vmul.f32 %v10597_v54, %v10766_v36  ;;  %v11022_v25 = vmul.f32 %v10597_v54, %v10770_v31  ;;  %v11026_v28 = vmul.f32 %v10597_v54, %v10774_v35 }
 0x252   :  { %v11030_v23 = vmul.f32 %v10597_v54, %v10778_v45  ;;  %v11034_v27 = vmul.f32 %v10597_v54, %v10782_v50  ;;  %v11038_v33 = vmul.f32 %v10597_v54, %v10786_v39  ;;  %v11042_v36 = vmul.f32 %v10597_v54, %v10790_v48  ;;  %v16693_v50 = vld [vmem:[#allocation8_spill] sm:$0xff] }
 0x253   :  { %v11046_v31 = vmul.f32 %v10597_v54, %v10794_v61  ;;  %v11050_v35 = vmul.f32 %v10597_v54, %v10798_v2  ;;  %v11054_v45 = vmul.f32 %v10597_v54, %v10802_v56  ;;  %v11058_v39 = vmul.f32 %v10597_v54, %v16693_v50 }
 0x254   :  { %16688 = vst [vmem:[#allocation18_spill] sm:$0xff] %v11038_v33  ;;  %16689 = vst [vmem:[#allocation19_spill] sm:$0xff] %v11042_v36  ;;  %v16694_v33 = vld [vmem:[#allocation10_spill] sm:$0xff]  ;;  %v16695_v36 = vld [vmem:[#allocation24_spill] sm:$0xff] }
 0x255   :  { %16690 = vst [vmem:[#allocation20_spill] sm:$0xff] %v11046_v31  ;;  %16691 = vst [vmem:[#allocation21_spill] sm:$0xff] %v11050_v35  ;;  %v11062_v48 = vmul.f32 %v10597_v54, %v16694_v33  ;;  %v11066_v61 = vmul.f32 %v10597_v54, %v16695_v36  ;;  %v16696_v31 = vld [vmem:[#allocation25_spill] sm:$0xff]  ;;  %v16697_v35 = vld [vmem:[#allocation16_spill] sm:$0xff]  ;;  %v11082_v33 = vmul.f32 %v10597_v54, %v10830_v6 }
 0x256   :  { %16692 = vst [vmem:[#allocation22_spill] sm:$0xff] %v11054_v45  ;;  %v11070_v2 = vmul.f32 %v10597_v54, %v16696_v31  ;;  %v11074_v56 = vmul.f32 %v10597_v54, %v16697_v35  ;;  %v16698_v45 = vld [vmem:[#allocation17_spill] sm:$0xff]  ;;  %v11086_v36 = vmul.f32 %v10597_v54, %v10834_v10  ;;  %v11090_v31 = vmul.f32 %v10597_v54, %v10838_v0 }
 0x257   :  { %v11078_v50 = vmul.f32 %v10597_v54, %v16698_v45  ;;  %v11094_v35 = vmul.f32 %v10597_v54, %v10842_v16  ;;  %v11098_v45 = vmul.f32 %v10597_v54, %v10846_v13  ;;  %v11102_v6 = vmul.f32 %v10597_v54, %v10850_v46 }
 0x258   :  { %16699 = vst [vmem:[#allocation23_spill] sm:$0xff] %v11090_v31  ;;  %v11106_v10 = vmul.f32 %v10597_v54, %v10854_v22  ;;  %v11110_v0 = vmul.f32 %v10597_v54, %v10858_v21  ;;  %v16700_v31 = vld [vmem:[#allocation5_spill] sm:$0xff] }
 0x259   :  { %v11114_v16 = vadd.f32 %v16700_v31, %v10862_v26  ;;  %v11118_v13 = vadd.f32 %v16700_v31, %v10866_v29  ;;  %v11122_v46 = vadd.f32 %v16700_v31, %v10870_v38  ;;  %v11126_v22 = vadd.f32 %v16700_v31, %v10874_v34 }
 0x25a   :  { %v11130_v54 = vadd.f32 %v16700_v31, %v10878_v32  ;;  %v11134_v21 = vadd.f32 %v16700_v31, %v10882_v37  ;;  %v11138_v26 = vadd.f32 %v16700_v31, %v10886_v14  ;;  %v11142_v29 = vadd.f32 %v16700_v31, %v10890_v5 }
 0x25b   :  { %v11146_v38 = vadd.f32 %v16700_v31, %v10894_v18  ;;  %v11150_v34 = vadd.f32 %v16700_v31, %v10898_v8  ;;  %v11154_v32 = vadd.f32 %v16700_v31, %v10902_v30  ;;  %v11158_v37 = vadd.f32 %v16700_v31, %v10906_v58 }
 0x25c   :  { %v11162_v14 = vadd.f32 %v16700_v31, %v10910_v62  ;;  %v11166_v5 = vadd.f32 %v16700_v31, %v10914_v24  ;;  %v11170_v18 = vadd.f32 %v16700_v31, %v10918_v40  ;;  %v11174_v8 = vadd.f32 %v16700_v31, %v10922_v53 }
 0x25d   :  { %v11178_v30 = vadd.f32 %v16700_v31, %v10926_v42  ;;  %v11182_v58 = vadd.f32 %v16700_v31, %v10930_v44  ;;  %v11186_v62 = vadd.f32 %v16700_v31, %v10934_v41  ;;  %v11190_v24 = vadd.f32 %v16700_v31, %v10938_v43 }
 0x25e   :  { %v11194_v40 = vadd.f32 %v16700_v31, %v10942_v49  ;;  %v11198_v53 = vadd.f32 %v16700_v31, %v10946_v52  ;;  %v11202_v42 = vadd.f32 %v16700_v31, %v10950_v47  ;;  %v11206_v44 = vadd.f32 %v16700_v31, %v10954_v51 }
 0x25f   :  { %v11210_v41 = vadd.f32 %v16700_v31, %v10958_v57  ;;  %v11214_v43 = vadd.f32 %v16700_v31, %v10962_v60  ;;  %v11218_v49 = vadd.f32 %v16700_v31, %v10966_v55  ;;  %v11222_v52 = vadd.f32 %v16700_v31, %v10970_v59 }
 0x260   :  { %v11226_v47 = vadd.f32 %v16700_v31, %v10974_v1  ;;  %v11230_v51 = vadd.f32 %v16700_v31, %v10978_v4  ;;  %v11234_v57 = vadd.f32 %v16700_v31, %v10982_v63  ;;  %v11238_v60 = vadd.f32 %v16700_v31, %v10986_v3 }
 0x261   :  { %v11242_v55 = vadd.f32 %v16700_v31, %v10990_v9  ;;  %v11246_v59 = vadd.f32 %v16700_v31, %v10994_v12  ;;  %v11250_v1 = vadd.f32 %v16700_v31, %v10998_v7  ;;  %v11254_v4 = vadd.f32 %v16700_v31, %v11002_v11  ;;  %v11267_v9 = vld [vmem:[%s16259_s4] sm:$0xff]  }
 0x262   :  { %v11258_v63 = vadd.f32 %v16700_v31, %v11006_v17  ;;  %v11262_v3 = vadd.f32 %v16700_v31, %v11010_v20  ;;  %16701 = vst [vmem:[#allocation4_spill] sm:$0xff] %v11267_v9  ;;  %v11271_v12 = vadd.f32 %v16700_v31, %v11014_v15  ;;  %v11275_v7 = vadd.f32 %v16700_v31, %v11018_v19 }
 0x263   :  { %v11279_v11 = vadd.f32 %v16700_v31, %v11022_v25  ;;  %v11283_v17 = vadd.f32 %v16700_v31, %v11026_v28  ;;  %v11287_v20 = vadd.f32 %v16700_v31, %v11030_v23  ;;  %v11291_v15 = vadd.f32 %v16700_v31, %v11034_v27  ;;  %8145 = vmatprep.subr.bf16.mxu0 %v11267_v9  ;;  %v16709_v28 = vld [vmem:[#allocation20_spill] sm:$0xff]  ;;  %v16710_v23 = vld [vmem:[#allocation21_spill] sm:$0xff]  ;;  %v16711_v27 = vld [vmem:[#allocation22_spill] sm:$0xff] }
 0x264   :  { %16702 = vst [vmem:[#allocation6_spill] sm:$0xff] %v11271_v12  ;;  %16703 = vst [vmem:[#allocation3_spill] sm:$0xff] %v11275_v7  ;;  %v16707_v12 = vld [vmem:[#allocation18_spill] sm:$0xff]  ;;  %v16708_v7 = vld [vmem:[#allocation19_spill] sm:$0xff] }
 0x265   :  { %16704 = vst [vmem:[#allocation7_spill] sm:$0xff] %v11283_v17  ;;  %16705 = vst [vmem:[#allocation9_spill] sm:$0xff] %v11287_v20  ;;  %v11295_v19 = vadd.f32 %v16700_v31, %v16707_v12  ;;  %v11299_v25 = vadd.f32 %v16700_v31, %v16708_v7  ;;  %v11304_v17 = vadd.f32 %v16700_v31, %v16709_v28  ;;  %v16712_v9 = vld [vmem:[#allocation23_spill] sm:$0xff] }
 0x266   :  { %16706 = vst [vmem:[#allocation12_spill] sm:$0xff] %v11291_v15  ;;  %v11308_v20 = vadd.f32 %v16700_v31, %v16710_v23  ;;  %v11312_v15 = vadd.f32 %v16700_v31, %v16711_v27  ;;  %v11316_v12 = vadd.f32 %v16700_v31, %v11058_v39  ;;  %v11320_v7 = vadd.f32 %v16700_v31, %v11062_v48 }
 0x267   :  { %v11324_v28 = vadd.f32 %v16700_v31, %v11066_v61  ;;  %v11328_v23 = vadd.f32 %v16700_v31, %v11070_v2  ;;  %v11332_v27 = vadd.f32 %v16700_v31, %v11074_v56  ;;  %v11336_v39 = vadd.f32 %v16700_v31, %v11078_v50 }
 0x268   :  { %v11340_v48 = vadd.f32 %v16700_v31, %v11082_v33  ;;  %v11344_v61 = vadd.f32 %v16700_v31, %v11086_v36  ;;  %v11348_v2 = vadd.f32 %v16700_v31, %v16712_v9  ;;  %v11352_v56 = vadd.f32 %v16700_v31, %v11094_v35 }
 0x269   :  { %v11356_v50 = vadd.f32 %v16700_v31, %v11098_v45  ;;  %v11360_v33 = vadd.f32 %v16700_v31, %v11102_v6  ;;  %v11364_v36 = vadd.f32 %v16700_v31, %v11106_v10  ;;  %v11368_v9 = vadd.f32 %v16700_v31, %v11110_v0 }
 0x26a   :  { %16713 = vst [vmem:[#allocation14_spill] sm:$0xff] %v11348_v2  ;;  %16714 = vst [vmem:[#allocation11_spill] sm:$0xff] %v11352_v56  ;;  %v962_v2 = vmax.f32 %v11114_v16, 0.0  ;;  %v963_v35 = vmax.f32 %v11118_v13, 0.0  ;;  %v964_v56 = vmax.f32 %v11122_v46, 0.0  ;;  %v965_v45 = vmax.f32 %v11126_v22, 0.0 }
 0x26b   :  { %16715 = vst [vmem:[#allocation13_spill] sm:$0xff] %v11356_v50  ;;  %16716 = vst [vmem:[#allocation15_spill] sm:$0xff] %v11360_v33  ;;  %v966_v50 = vmax.f32 %v11130_v54, 0.0  ;;  %v967_v6 = vmax.f32 %v11134_v21, 0.0  ;;  %v968_v33 = vmax.f32 %v11138_v26, 0.0  ;;  %v969_v10 = vmax.f32 %v11142_v29, 0.0 }
 0x26c   :  { %16717 = vst [vmem:[#allocation8_spill] sm:$0xff] %v11364_v36  ;;  %v970_v36 = vmax.f32 %v11146_v38, 0.0  ;;  %v971_v31 = vmax.f32 %v11150_v34, 0.0  ;;  %v972_v0 = vmax.f32 %v11154_v32, 0.0  ;;  %1135 = vst [vmem:[#allocation2 + $0x19] sm:$0xff] %v962_v2  ;;  %v973_v16 = vmax.f32 %v11158_v37, 0.0 }
 0x26d   :  { %1136 = vst [vmem:[#allocation2 + $0x21] sm:$0xff] %v963_v35  ;;  %1137 = vst [vmem:[#allocation2 + $0x31] sm:$0xff] %v964_v56  ;;  %v974_v13 = vmax.f32 %v11162_v14, 0.0  ;;  %v975_v46 = vmax.f32 %v11166_v5, 0.0  ;;  %v976_v22 = vmax.f32 %v11170_v18, 0.0  ;;  %v977_v54 = vmax.f32 %v11174_v8, 0.0 }
 0x26e   :  { %1138 = vst [vmem:[#allocation2 + $0x39] sm:$0xff] %v965_v45  ;;  %1139 = vst [vmem:[#allocation2 + $0x49] sm:$0xff] %v966_v50  ;;  %v978_v21 = vmax.f32 %v11178_v30, 0.0  ;;  %v979_v26 = vmax.f32 %v11182_v58, 0.0  ;;  %v980_v29 = vmax.f32 %v11186_v62, 0.0  ;;  %v981_v38 = vmax.f32 %v11190_v24, 0.0 }
 0x26f   :  { %1140 = vst [vmem:[#allocation2 + $0x51] sm:$0xff] %v967_v6  ;;  %1141 = vst [vmem:[#allocation2 + $0x61] sm:$0xff] %v968_v33  ;;  %v982_v34 = vmax.f32 %v11194_v40, 0.0  ;;  %v983_v32 = vmax.f32 %v11198_v53, 0.0  ;;  %v984_v37 = vmax.f32 %v11202_v42, 0.0  ;;  %v985_v14 = vmax.f32 %v11206_v44, 0.0 }
 0x270   :  { %1142 = vst [vmem:[#allocation2 + $0x69] sm:$0xff] %v969_v10  ;;  %1143 = vst [vmem:[#allocation2 + $0x79] sm:$0xff] %v970_v36  ;;  %v986_v5 = vmax.f32 %v11210_v41, 0.0  ;;  %v987_v18 = vmax.f32 %v11214_v43, 0.0  ;;  %v988_v8 = vmax.f32 %v11218_v49, 0.0  ;;  %v989_v30 = vmax.f32 %v11222_v52, 0.0 }
 0x271   :  { %1144 = vst [vmem:[#allocation2 + $0x81] sm:$0xff] %v971_v31  ;;  %1145 = vst [vmem:[#allocation2 + $0x91] sm:$0xff] %v972_v0  ;;  %v990_v58 = vmax.f32 %v11226_v47, 0.0  ;;  %v991_v62 = vmax.f32 %v11230_v51, 0.0  ;;  %v992_v24 = vmax.f32 %v11234_v57, 0.0  ;;  %v993_v40 = vmax.f32 %v11238_v60, 0.0 }
 0x272   :  { %1146 = vst [vmem:[#allocation2 + $0x99] sm:$0xff] %v973_v16  ;;  %1147 = vst [vmem:[#allocation2 + $0xa9] sm:$0xff] %v974_v13  ;;  %v994_v53 = vmax.f32 %v11242_v55, 0.0  ;;  %v995_v42 = vmax.f32 %v11246_v59, 0.0  ;;  %v996_v44 = vmax.f32 %v11250_v1, 0.0  ;;  %v997_v41 = vmax.f32 %v11254_v4, 0.0 }
 0x273   :  { %1148 = vst [vmem:[#allocation2 + $0xb1] sm:$0xff] %v975_v46  ;;  %1149 = vst [vmem:[#allocation2 + $0xc1] sm:$0xff] %v976_v22  ;;  %v998_v43 = vmax.f32 %v11258_v63, 0.0  ;;  %v999_v49 = vmax.f32 %v11262_v3, 0.0  ;;  %v16718_v52 = vld [vmem:[#allocation6_spill] sm:$0xff]  ;;  %v16719_v51 = vld [vmem:[#allocation3_spill] sm:$0xff] }
 0x274   :  { %1150 = vst [vmem:[#allocation2 + $0xc9] sm:$0xff] %v977_v54  ;;  %1151 = vst [vmem:[#allocation2 + $0xd9] sm:$0xff] %v978_v21  ;;  %v1000_v47 = vmax.f32 %v16718_v52, 0.0  ;;  %v1001_v57 = vmax.f32 %v16719_v51, 0.0  ;;  %v1002_v60 = vmax.f32 %v11279_v11, 0.0  ;;  %v16720_v55 = vld [vmem:[#allocation7_spill] sm:$0xff] }
 0x275   :  { %1152 = vst [vmem:[#allocation2 + $0xe1] sm:$0xff] %v979_v26  ;;  %1153 = vst [vmem:[#allocation2 + $0xf1] sm:$0xff] %v980_v29  ;;  %v1003_v59 = vmax.f32 %v16720_v55, 0.0  ;;  %v16721_v1 = vld [vmem:[#allocation9_spill] sm:$0xff]  ;;  %v16722_v4 = vld [vmem:[#allocation12_spill] sm:$0xff]  ;;  %v1006_v3 = vmax.f32 %v11295_v19, 0.0 }
 0x276   :  { %1154 = vst [vmem:[#allocation2 + $0xf9] sm:$0xff] %v981_v38  ;;  %1155 = vst [vmem:[#allocation2 + $0x109] sm:$0xff] %v982_v34  ;;  %v1004_v2 = vmax.f32 %v16721_v1, 0.0  ;;  %v1005_v63 = vmax.f32 %v16722_v4, 0.0  ;;  %v1007_v56 = vmax.f32 %v11299_v25, 0.0  ;;  %v1008_v50 = vmax.f32 %v11304_v17, 0.0 }
 0x277   :  { %1156 = vst [vmem:[#allocation2 + $0x111] sm:$0xff] %v983_v32  ;;  %1157 = vst [vmem:[#allocation2 + $0x121] sm:$0xff] %v984_v37  ;;  %v1009_v11 = vmax.f32 %v11308_v20, 0.0  ;;  %v1010_v33 = vmax.f32 %v11312_v15, 0.0  ;;  %v1011_v36 = vmax.f32 %v11316_v12, 0.0  ;;  %v1012_v35 = vmax.f32 %v11320_v7, 0.0 }
 0x278   :  { %1158 = vst [vmem:[#allocation2 + $0x129] sm:$0xff] %v985_v14  ;;  %1159 = vst [vmem:[#allocation2 + $0x139] sm:$0xff] %v986_v5  ;;  %v1202_v19 = vld [vmem:[#allocation2 + $0x18] sm:$0xff]  ;;  %v1203_v25 = vld [vmem:[#allocation2 + $0x20] sm:$0xff]  ;;  %v1013_v17 = vmax.f32 %v11324_v28, 0.0  ;;  %v1014_v45 = vmax.f32 %v11328_v23, 0.0 }
 0x279   :  { %1160 = vst [vmem:[#allocation2 + $0x141] sm:$0xff] %v987_v18  ;;  %1161 = vst [vmem:[#allocation2 + $0x151] sm:$0xff] %v988_v8  ;;  %v1015_v6 = vmax.f32 %v11332_v27, 0.0  ;;  %v1016_v20 = vmax.f32 %v11336_v39, 0.0  ;;  %v1204_v15 = vld [vmem:[#allocation2 + $0x28] sm:$0x3] }
 0x27a   :  { %1162 = vst [vmem:[#allocation2 + $0x159] sm:$0xff] %v989_v30  ;;  %1163 = vst [vmem:[#allocation2 + $0x169] sm:$0xff] %v990_v58  ;;  %v1017_v12 = vmax.f32 %v11340_v48, 0.0  ;;  %v1018_v7 = vmax.f32 %v11344_v61, 0.0  ;;  %v16723_v10 = vld [vmem:[#allocation14_spill] sm:$0xff]  ;;  %v16724_v0 = vld [vmem:[#allocation11_spill] sm:$0xff] }
 0x27b   :  { %1164 = vst [vmem:[#allocation2 + $0x171] sm:$0xff] %v991_v62  ;;  %1165 = vst [vmem:[#allocation2 + $0x181] sm:$0xff] %v992_v24  ;;  %v1019_v31 = vmax.f32 %v16723_v10, 0.0  ;;  %v1020_v16 = vmax.f32 %v16724_v0, 0.0  ;;  %v11429_v28 = vld [vmem:[#allocation2 + $0x30] sm:$0xff]  ;;  %v11431_v23 = vld [vmem:[#allocation2 + $0x38] sm:$0xff] }
 0x27c   :  { %1166 = vst [vmem:[#allocation2 + $0x189] sm:$0xff] %v993_v40  ;;  %1167 = vst [vmem:[#allocation2 + $0x1c9] sm:$0xff] %v994_v53  ;;  %v16725_v27 = vld [vmem:[#allocation13_spill] sm:$0xff]  ;;  %v16726_v13 = vld [vmem:[#allocation15_spill] sm:$0xff]  ;;  %v1025_v61 = vmax.f32 %v11368_v9, 0.0  ;;  %v1457_v9 = vrot.slane %v1202_v19, 1 }
 0x27d   :  { %1168 = vst [vmem:[#allocation2 + $0x1d1] sm:$0xff] %v995_v42  ;;  %1169 = vst [vmem:[#allocation2 + $0x1e1] sm:$0xff] %v996_v44  ;;  %v1021_v39 = vmax.f32 %v16725_v27, 0.0  ;;  %v1022_v46 = vmax.f32 %v16726_v13, 0.0  ;;  %v16727_v22 = vld [vmem:[#allocation8_spill] sm:$0xff]  ;;  %v1458_v38 = vrot.slane %v1203_v25, 1 }
 0x27e   :  { %1170 = vst [vmem:[#allocation2 + $0x1e9] sm:$0xff] %v997_v41  ;;  %1171 = vst [vmem:[#allocation2 + $0x1f9] sm:$0xff] %v998_v43  ;;  %v1024_v48 = vmax.f32 %v16727_v22, 0.0  ;;  %v11437_v54 = vld [vmem:[#allocation2 + $0x40] sm:$0x3]  ;;  %v1460_v34 = vrot.slane %v1204_v15, 1 }
 0x27f   :  { %1172 = vst [vmem:[#allocation2 + $0x201] sm:$0xff] %v999_v49  ;;  %1173 = vst [vmem:[#allocation2 + $0x211] sm:$0xff] %v1000_v47  ;;  %v1462_v18 = vrot.slane %v11429_v28, 1  ;;  %v1463_v8 = vrot.slane %v11431_v23, 1  ;;  %v1465_v30 = vrot.slane %v11437_v54, 1  ;;  %v9419_v62 = vld [vmem:[%s16259_s4 + $0x108] sm:$0xff]   ;;  %v1459_v40 = vsel %vm1451_vm0, %v1457_v9, %v1458_v38 }
 0x280   :  { %1174 = vst [vmem:[#allocation2 + $0x219] sm:$0xff] %v1001_v57  ;;  %1175 = vst [vmem:[#allocation2 + $0x229] sm:$0xff] %v1002_v60  ;;  %v11475_v53 = vld [vmem:[%s16259_s4 + $0x110] sm:$0xff]   ;;  %v16734_v42 = vld [vmem:[#allocation26_spill] sm:$0xff]  ;;  %v1461_v44 = vsel %vm1451_vm0, %v1458_v38, %v1460_v34 }
 0x281   :  { %1176 = vst [vmem:[#allocation2 + $0x231] sm:$0xff] %v1003_v59  ;;  %1177 = vst [vmem:[#allocation2 + $0x241] sm:$0xff] %v1004_v2  ;;  %v1464_v41 = vsel %vm1451_vm0, %v1462_v18, %v1463_v8  ;;  %v1466_v43 = vsel %vm1451_vm0, %v1463_v8, %v1465_v30  ;;  %v11483_v52 = vld [vmem:[#allocation2 + $0x48] sm:$0xff]  ;;  %v11485_v47 = vld [vmem:[#allocation2 + $0x50] sm:$0xff]  ;;  %v11496_v59 = vpack.c.bf16 %v1461_v44, %v1459_v40 }
 0x282   :  { %1178 = vst [vmem:[#allocation2 + $0x249] sm:$0xff] %v1005_v63  ;;  %1179 = vst [vmem:[#allocation2 + $0x259] sm:$0xff] %v1006_v3  ;;  %v11487_v51 = vld [vmem:[#allocation2 + $0x58] sm:$0x3]  ;;  %v11492_v57 = vld [vmem:[%s16259_s4 + $0x8] sm:$0xff]   ;;  %v11498_v1 = vpack.c.bf16 %v1466_v43, %v1464_v41  ;;  %v1467_v15 = vrot.slane %v11483_v52, 1 }
 0x283   :  { %1180 = vst [vmem:[#allocation2 + $0x261] sm:$0xff] %v1007_v56  ;;  %1181 = vst [vmem:[#allocation2 + $0x271] sm:$0xff] %v1008_v50  ;;  %v11439_v21 = vld [vmem:[#allocation2 + $0x1c8] sm:$0xff]  ;;  %v11500_v2 = vld [vmem:[#allocation2 + $0x60] sm:$0xff]  ;;  %8082 = vmatmul.mubr.bf16.vlgmr.msra.gmra.mrb[64].mxu0 %v11496_v59 }
 0x284   :  { %1182 = vst [vmem:[#allocation2 + $0x279] sm:$0xff] %v1009_v11  ;;  %1183 = vst [vmem:[#allocation2 + $0x289] sm:$0xff] %v1010_v33  ;;  %v11441_v26 = vld [vmem:[#allocation2 + $0x1d0] sm:$0xff]  ;;  %v11443_v29 = vld [vmem:[#allocation2 + $0x1e0] sm:$0xff]  ;;  %8085 = vmatprep.mubr.bf16.mxu0 %v11498_v1 }
 0x285   :  { %1184 = vst [vmem:[#allocation2 + $0x291] sm:$0xff] %v1011_v36  ;;  %1185 = vst [vmem:[#allocation2 + $0x2a1] sm:$0xff] %v1012_v35  ;;  %v11447_v32 = vpack.c.bf16 %v11441_v26, %v11439_v21  ;;  %v11449_v37 = vld [vmem:[#allocation2 + $0x1e8] sm:$0xff]  ;;  %v11451_v14 = vld [vmem:[#allocation2 + $0x1f8] sm:$0xff] }
 0x286   :  { %1186 = vst [vmem:[#allocation2 + $0x2a9] sm:$0xff] %v1013_v17  ;;  %1187 = vst [vmem:[#allocation2 + $0x2b9] sm:$0xff] %v1014_v45  ;;  %v11453_v5 = vld [vmem:[#allocation2 + $0x200] sm:$0xff]  ;;  %v11460_v58 = vpack.c.bf16 %v11449_v37, %v11443_v29  ;;  %v11502_v4 = vld [vmem:[#allocation2 + $0x68] sm:$0xff] }
 0x287   :  { %1188 = vst [vmem:[#allocation2 + $0x2c1] sm:$0xff] %v1015_v6  ;;  %1189 = vst [vmem:[#allocation2 + $0x2d1] sm:$0xff] %v1016_v20  ;;  %8353 = vmatprep.mubr.bf16.mxu1 %v11447_v32  ;;  %v11468_v24 = vpack.c.bf16 %v11453_v5, %v11451_v14  ;;  %v11504_v63 = vld [vmem:[#allocation2 + $0x70] sm:$0x3]  ;;  %v11512_v36 = vld [vmem:[#allocation2 + $0x218] sm:$0xff]  ;;  %v1473_v0 = vrot.slane %v11502_v4, 1 }
 0x288   :  { %16728 = vst [vmem:[#allocation10_spill] sm:$0xff] %v11437_v54  ;;  %1190 = vst [vmem:[#allocation2 + $0x2d9] sm:$0xff] %v1017_v12  ;;  %8354 = vmatmul.mubr.bf16.vlgmr.msra.gmra.mrb[0].mxu1 %v11460_v58  ;;  %v11510_v33 = vld [vmem:[#allocation2 + $0x210] sm:$0xff]  ;;  %v11519_v45 = vld [vmem:[#allocation2 + $0x228] sm:$0xff]  ;;  %v1468_v12 = vrot.slane %v11485_v47, 1 }
 0x289   :  { %1191 = vst [vmem:[#allocation2 + $0x2e9] sm:$0xff] %v1018_v7  ;;  %1192 = vst [vmem:[#allocation2 + $0x2f1] sm:$0xff] %v1019_v31  ;;  %8386 = vmatpush3.bf16.msra.mxu1 %v16734_v42  ;;  %8357 = vmatprep.mubr.bf16.mxu1 %v11468_v24  ;;  %v11521_v6 = vld [vmem:[#allocation2 + $0x230] sm:$0xff]  ;;  %v1470_v7 = vrot.slane %v11487_v51, 1  ;;  %v11530_v10 = vpack.c.bf16 %v11512_v36, %v11510_v33  ;;  %v1472_v31 = vrot.slane %v11500_v2, 1  ;;  %v9421_v27 = vld [vmem:[%s16259_s4 + $0x118] sm:$0xff]  }
 0x28a   :  { %1193 = vst [vmem:[#allocation2 + $0x301] sm:$0xff] %v1020_v16  ;;  %1194 = vst [vmem:[#allocation2 + $0x309] sm:$0xff] %v1021_v39  ;;  %8387 = vmatprep.subr.bf16.mxu1 %v9419_v62  ;;  %v1475_v16 = vrot.slane %v11504_v63, 1  ;;  %v16742_v39 = vld [vmem:[#allocation4_spill] sm:$0xff]  ;;  %v1469_v22 = vsel %vm1451_vm0, %v1467_v15, %v1468_v12  ;;  %v11549_v9 = vld [vmem:[#allocation2 + $0x80] sm:$0xff] }
 0x28b   :  { %1195 = vst [vmem:[#allocation2 + $0x319] sm:$0xff] %v1022_v46  ;;  %1197 = vst [vmem:[#allocation2 + $0x331] sm:$0xff] %v1024_v48  ;;  %8146 = vmatpush3.bf16.msra.mxu0 %v16742_v39  ;;  %v11543_v46 = vpack.c.bf16 %v11521_v6, %v11519_v45  ;;  %v1471_v48 = vsel %vm1451_vm0, %v1468_v12, %v1470_v7  ;;  %v9431_v38 = vld [vmem:[%s16259_s4 + $0x10] sm:$0xff]   ;;  %v1474_v8 = vsel %vm1451_vm0, %v1472_v31, %v1473_v0  ;;  %v11564_v42 = vld [vmem:[#allocation2 + $0x98] sm:$0xff] }
 0x28c   :  { %1198 = vst [vmem:[#allocation2 + $0x339] sm:$0xff] %v1025_v61  ;;  %16729 = vst [vmem:[#allocation24_spill] sm:$0xff] %v11439_v21  ;;  %v11547_v61 = vld [vmem:[#allocation2 + $0x78] sm:$0xff]  ;;  %8147 = vmatprep.subr.bf16.mxu0 %v11492_v57  ;;  %v1476_v30 = vsel %vm1451_vm0, %v1473_v0, %v1475_v16  ;;  %v11562_v40 = vld [vmem:[#allocation2 + $0x90] sm:$0xff]  ;;  %v11577_v16 = vpack.c.bf16 %v1471_v48, %v1469_v22  ;;  %v1478_v48 = vrot.slane %v11549_v9, 1 }
 0x28d   :  { %16730 = vst [vmem:[#allocation25_spill] sm:$0xff] %v11443_v29  ;;  %16731 = vst [vmem:[#allocation16_spill] sm:$0xff] %v11447_v32  ;;  %8388 = vmatpush3.bf16.msra.mxu1 %v9419_v62  ;;  %v11560_v62 = vld [vmem:[#allocation2 + $0x88] sm:$0x3]  ;;  %v11572_v12 = vld [vmem:[#allocation2 + $0xa0] sm:$0x3] }
 0x28e   :  { %16732 = vst [vmem:[#allocation17_spill] sm:$0xff] %v11460_v58  ;;  %16733 = vst [vmem:[#allocation5_spill] sm:$0xff] %v11468_v24  ;;  %8389 = vmatprep.subr.bf16.mxu1 %v11475_v53  ;;  %v11579_v39 = vld [vmem:[#allocation2 + $0x240] sm:$0xff]  ;;  %v11581_v20 = vld [vmem:[#allocation2 + $0x248] sm:$0xff]  ;;  %v1477_v22 = vrot.slane %v11547_v61, 1  ;;  %v1480_v0 = vrot.slane %v11560_v62, 1  ;;  %8086 = vmatmul.mubr.bf16.gmra.mrb[68].mxu0 %v11577_v16 }
 0x28f   :  { %16735 = vst [vmem:[#allocation18_spill] sm:$0xff] %v11487_v51  ;;  %16736 = vst [vmem:[#allocation19_spill] sm:$0xff] %v11496_v59  ;;  %v9422_v43 = vld [vmem:[%s16259_s4 + $0x120] sm:$0xff]   ;;  %8148 = vmatpush3.bf16.msra.mxu0 %v11492_v57  ;;  %v11589_v15 = vld [vmem:[#allocation2 + $0x258] sm:$0xff]  ;;  %v1482_v57 = vrot.slane %v11562_v40, 1  ;;  %v11616_v19 = vpack.c.bf16 %v11581_v20, %v11579_v39 }
 0x290   :  { %16737 = vst [vmem:[#allocation20_spill] sm:$0xff] %v11498_v1  ;;  %16738 = vst [vmem:[#allocation21_spill] sm:$0xff] %v11502_v4  ;;  %8358 = vmatmul.mubr.bf16.gmra.mrb[4].mxu1 %v11530_v10  ;;  %v11591_v13 = vld [vmem:[#allocation2 + $0x260] sm:$0xff]  ;;  %8149 = vmatprep.subr.bf16.mxu0 %v9431_v38  ;;  %v9432_v35 = vld [vmem:[%s16259_s4 + $0x18] sm:$0xff]   ;;  %v1479_v41 = vsel %vm1451_vm0, %v1477_v22, %v1478_v48  ;;  %v1481_v11 = vsel %vm1451_vm0, %v1478_v48, %v1480_v0 }
 0x291   :  { %16739 = vst [vmem:[#allocation22_spill] sm:$0xff] %v11504_v63  ;;  %16740 = vst [vmem:[#allocation23_spill] sm:$0xff] %v11519_v45  ;;  %8361 = vmatprep.mubr.bf16.mxu1 %v11543_v46  ;;  %8390 = vmatpush3.bf16.msra.mxu1 %v11475_v53  ;;  %v11587_v53 = vpack.c.bf16 %v1476_v30, %v1474_v8  ;;  %v1483_v8 = vrot.slane %v11564_v42, 1  ;;  %v1485_v30 = vrot.slane %v11572_v12, 1  ;;  %v11604_v3 = vld [vmem:[#allocation2 + $0xa8] sm:$0xff]  ;;  %v11606_v56 = vld [vmem:[#allocation2 + $0xb0] sm:$0xff] }
 0x292   :  { %16741 = vst [vmem:[#allocation6_spill] sm:$0xff] %v11530_v10  ;;  %16743 = vst [vmem:[#allocation3_spill] sm:$0xff] %v11543_v46  ;;  %8391 = vmatprep.subr.bf16.mxu1 %v9421_v27  ;;  %v11611_v18 = vld [vmem:[%s16259_s4 + $0x128] sm:$0xff]   ;;  %v11621_v31 = vld [vmem:[#allocation2 + $0xb8] sm:$0x3]  ;;  %v11628_v25 = vpack.c.bf16 %v11591_v13, %v11589_v15  ;;  %v1487_v7 = vrot.slane %v11604_v3, 1 }
 0x293   :  { %16744 = vst [vmem:[#allocation7_spill] sm:$0xff] %v11547_v61  ;;  %16745 = vst [vmem:[#allocation9_spill] sm:$0xff] %v11549_v9  ;;  %8089 = vmatprep.mubr.bf16.mxu0 %v11587_v53  ;;  %v11623_v44 = vld [vmem:[#allocation2 + $0xc0] sm:$0xff]  ;;  %v11632_v49 = vld [vmem:[#allocation2 + $0xc8] sm:$0xff]  ;;  %8150 = vmatpush3.bf16.msra.mxu0 %v9431_v38  ;;  %v1484_v17 = vsel %vm1451_vm0, %v1482_v57, %v1483_v8  ;;  %v1486_v50 = vsel %vm1451_vm0, %v1483_v8, %v1485_v30  ;;  %v1488_v22 = vrot.slane %v11606_v56, 1 }
 0x294   :  { %16746 = vst [vmem:[#allocation12_spill] sm:$0xff] %v11560_v62  ;;  %16747 = vst [vmem:[#allocation14_spill] sm:$0xff] %v11562_v40  ;;  %v11634_v34 = vld [vmem:[#allocation2 + $0xd0] sm:$0x3]  ;;  %v11642_v55 = vld [vmem:[#allocation2 + $0x278] sm:$0xff]  ;;  %8151 = vmatprep.subr.bf16.mxu0 %v9432_v35  ;;  %v1490_v0 = vrot.slane %v11621_v31, 1  ;;  %v11661_v30 = vpack.c.bf16 %v1481_v11, %v1479_v41 }
 0x295   :  { %16748 = vst [vmem:[#allocation11_spill] sm:$0xff] %v11564_v42  ;;  %16749 = vst [vmem:[#allocation13_spill] sm:$0xff] %v11572_v12  ;;  %8392 = vmatpush3.bf16.msra.mxu1 %v9421_v27  ;;  %v11640_v60 = vld [vmem:[#allocation2 + $0x270] sm:$0xff]  ;;  %v11647_v38 = vld [vmem:[#allocation2 + $0x288] sm:$0xff]  ;;  %v1492_v48 = vrot.slane %v11623_v44, 1  ;;  %v1495_v57 = vrot.slane %v11634_v34, 1  ;;  %v1489_v11 = vsel %vm1451_vm0, %v1487_v7, %v1488_v22 }
 0x296   :  { %16750 = vst [vmem:[#allocation15_spill] sm:$0xff] %v11577_v16  ;;  %16751 = vst [vmem:[#allocation8_spill] sm:$0xff] %v11579_v39  ;;  %8393 = vmatprep.subr.bf16.mxu1 %v9422_v43  ;;  %v11649_v27 = vld [vmem:[#allocation2 + $0x290] sm:$0xff]  ;;  %v11665_v46 = vpack.c.bf16 %v11642_v55, %v11640_v60  ;;  %v11669_v24 = vld [vmem:[#allocation2 + $0x2a0] sm:$0xff]  ;;  %8090 = vmatmul.mubr.bf16.gmra.mrb[72].mxu0 %v11661_v30  ;;  %v1491_v62 = vsel %vm1451_vm0, %v1488_v22, %v1490_v0 }
 0x297   :  { %16752 = vst [vmem:[#allocation26_spill] sm:$0xff] %v11587_v53  ;;  %16753 = vst [vmem:[#allocation4_spill] sm:$0xff] %v11589_v15  ;;  %v9424_v8 = vld [vmem:[%s16259_s4 + $0x130] sm:$0xff]   ;;  %v11671_v58 = vld [vmem:[#allocation2 + $0x2a8] sm:$0xff]  ;;  %8152 = vmatpush3.bf16.msra.mxu0 %v9432_v35 }
 0x298   :  { %16754 = vst [vmem:[#allocation28_spill] sm:$0xff] %v11604_v3  ;;  %16755 = vst [vmem:[#allocation29_spill] sm:$0xff] %v11606_v56  ;;  %8362 = vmatmul.mubr.bf16.gmra.mrb[8].mxu1 %v11616_v19  ;;  %v11673_v32 = vld [vmem:[#allocation2 + $0xd8] sm:$0xff]  ;;  %v11684_v10 = vld [vmem:[#allocation2 + $0xe0] sm:$0xff] }
 0x299   :  { %16756 = vst [vmem:[#allocation30_spill] sm:$0xff] %v11616_v19  ;;  %16757 = vst [vmem:[#allocation31_spill] sm:$0xff] %v11621_v31  ;;  %8365 = vmatprep.mubr.bf16.mxu1 %v11628_v25  ;;  %v1493_v19 = vrot.slane %v11632_v49, 1  ;;  %8394 = vmatpush3.bf16.msra.mxu1 %v9422_v43  ;;  %v11676_v43 = vpack.c.bf16 %v1486_v50, %v1484_v17  ;;  %v11686_v53 = vld [vmem:[#allocation2 + $0xe8] sm:$0x3]  ;;  %v11695_v41 = vld [vmem:[#allocation2 + $0xf8] sm:$0xff]  ;;  %v11710_v17 = vpack.c.bf16 %v11671_v58, %v11669_v24 }
 0x29a   :  { %16758 = vst [vmem:[#allocation32_spill] sm:$0xff] %v11623_v44  ;;  %16759 = vst [vmem:[#allocation33_spill] sm:$0xff] %v11628_v25  ;;  %8395 = vmatprep.subr.bf16.mxu1 %v11611_v18  ;;  %v11682_v25 = vpack.c.bf16 %v11649_v27, %v11647_v38  ;;  %v11697_v31 = vld [vmem:[#allocation2 + $0x100] sm:$0x3]  ;;  %v9425_v7 = vld [vmem:[%s16259_s4 + $0x138] sm:$0xff]   ;;  %v1497_v22 = vrot.slane %v11673_v32, 1 }
 0x29b   :  { %16760 = vst [vmem:[#allocation34_spill] sm:$0xff] %v11632_v49  ;;  %16761 = vst [vmem:[#allocation35_spill] sm:$0xff] %v11634_v34  ;;  %v11688_v34 = vld [vmem:[#allocation2 + $0xf0] sm:$0xff]  ;;  %8093 = vmatprep.mubr.bf16.mxu0 %v11676_v43  ;;  %v1496_v35 = vsel %vm1451_vm0, %v1493_v19, %v1495_v57  ;;  %v11712_v50 = vld [vmem:[#allocation2 + $0x2b8] sm:$0xff]  ;;  %v1498_v0 = vrot.slane %v11684_v10, 1  ;;  %v1503_v12 = vrot.slane %v11695_v41, 1 }
 0x29c   :  { %16762 = vst [vmem:[#allocation36_spill] sm:$0xff] %v11640_v60  ;;  %16763 = vst [vmem:[#allocation37_spill] sm:$0xff] %v11642_v55  ;;  %v1502_v57 = vrot.slane %v11688_v34, 1  ;;  %v1505_v16 = vrot.slane %v11697_v31, 1  ;;  %v11725_v63 = vld [vmem:[#allocation2 + $0x110] sm:$0xff]  ;;  %v9434_v1 = vld [vmem:[%s16259_s4 + $0x20] sm:$0xff]  }
 0x29d   :  { %16764 = vst [vmem:[#allocation38_spill] sm:$0xff] %v11647_v38  ;;  %16765 = vst [vmem:[#allocation39_spill] sm:$0xff] %v11649_v27  ;;  %8396 = vmatpush3.bf16.msra.mxu1 %v11611_v18  ;;  %v11754_v54 = vld [vmem:[#allocation2 + $0x130] sm:$0x3]  ;;  %v11762_v49 = vld [vmem:[#allocation2 + $0x2d8] sm:$0xff]  ;;  %8153 = vmatprep.subr.bf16.mxu0 %v9434_v1 }
 0x29e   :  { %16766 = vst [vmem:[#allocation40_spill] sm:$0xff] %v11661_v30  ;;  %16767 = vst [vmem:[#allocation41_spill] sm:$0xff] %v11665_v46  ;;  %v1494_v30 = vsel %vm1451_vm0, %v1492_v48, %v1493_v19  ;;  %v1500_v19 = vrot.slane %v11686_v53, 1  ;;  %v11719_v48 = vld [vmem:[#allocation2 + $0x108] sm:$0xff]  ;;  %8397 = vmatprep.subr.bf16.mxu1 %v9424_v8  ;;  %v1506_v18 = vsel %vm1451_vm0, %v1503_v12, %v1505_v16  ;;  %8154 = vmatpush3.bf16.msra.mxu0 %v9434_v1  ;;  %v11812_v3 = vld [vmem:[#allocation2 + $0x158] sm:$0xff] }
 0x29f   :  { %16768 = vst [vmem:[#allocation42_spill] sm:$0xff] %v11669_v24  ;;  %16769 = vst [vmem:[#allocation43_spill] sm:$0xff] %v11671_v58  ;;  %v11733_v51 = vpack.c.bf16 %v1496_v35, %v1494_v30  ;;  %v11752_v35 = vld [vmem:[#allocation2 + $0x128] sm:$0xff]  ;;  %v11767_v30 = vld [vmem:[%s16259_s4 + $0x140] sm:$0xff]  }
 0x2a0   :  { %16770 = vst [vmem:[#allocation44_spill] sm:$0xff] %v11673_v32  ;;  %16771 = vst [vmem:[#allocation45_spill] sm:$0xff] %v11676_v43  ;;  %v11714_v43 = vld [vmem:[#allocation2 + $0x2c0] sm:$0xff]  ;;  %8366 = vmatmul.mubr.bf16.gmra.mrb[12].mxu1 %v11665_v46  ;;  %v1501_v46 = vsel %vm1451_vm0, %v1498_v0, %v1500_v19  ;;  %v11760_v32 = vld [vmem:[#allocation2 + $0x2d0] sm:$0xff]  ;;  %v1508_v19 = vrot.slane %v11725_v63, 1  ;;  %v1513_v56 = vrot.slane %v11752_v35, 1 }
 0x2a1   :  { %16772 = vst [vmem:[#allocation46_spill] sm:$0xff] %v11682_v25  ;;  %16773 = vst [vmem:[#allocation47_spill] sm:$0xff] %v11684_v10  ;;  %8369 = vmatprep.mubr.bf16.mxu1 %v11682_v25  ;;  %8398 = vmatpush3.bf16.msra.mxu1 %v9424_v8  ;;  %v1499_v25 = vsel %vm1451_vm0, %v1497_v22, %v1498_v0  ;;  %v1504_v8 = vsel %vm1451_vm0, %v1502_v57, %v1503_v12  ;;  %v11771_v10 = vld [vmem:[#allocation2 + $0x2e8] sm:$0xff]  ;;  %v11773_v22 = vld [vmem:[#allocation2 + $0x2f0] sm:$0xff]  ;;  %v1507_v0 = vrot.slane %v11719_v48, 1 }
 0x2a2   :  { %16774 = vst [vmem:[#allocation48_spill] sm:$0xff] %v11686_v53  ;;  %16775 = vst [vmem:[#allocation49_spill] sm:$0xff] %v11688_v34  ;;  %v11731_v53 = vpack.c.bf16 %v1491_v62, %v1489_v11  ;;  %v11737_v34 = vld [vmem:[#allocation2 + $0x118] sm:$0x3]  ;;  %v11748_v62 = vpack.c.bf16 %v11714_v43, %v11712_v50  ;;  %8399 = vmatprep.subr.bf16.mxu1 %v9425_v7  ;;  %v1515_v57 = vrot.slane %v11754_v54, 1  ;;  %v9436_v12 = vld [vmem:[%s16259_s4 + $0x30] sm:$0xff]  }
 0x2a3   :  { %16776 = vst [vmem:[#allocation50_spill] sm:$0xff] %v11695_v41  ;;  %16777 = vst [vmem:[#allocation51_spill] sm:$0xff] %v11697_v31  ;;  %v11739_v41 = vld [vmem:[#allocation2 + $0x120] sm:$0xff]  ;;  %v9435_v31 = vld [vmem:[%s16259_s4 + $0x28] sm:$0xff]   ;;  %v1510_v11 = vrot.slane %v11737_v34, 1  ;;  %v11788_v1 = vpack.c.bf16 %v11762_v49, %v11760_v32  ;;  %v11806_v16 = vpack.c.bf16 %v11773_v22, %v11771_v10 }
 0x2a4   :  { %16778 = vst [vmem:[#allocation52_spill] sm:$0xff] %v11710_v17  ;;  %16779 = vst [vmem:[#allocation53_spill] sm:$0xff] %v11712_v50  ;;  %8094 = vmatmul.mubr.bf16.gmra.mrb[76].mxu0 %v11731_v53  ;;  %v1512_v44 = vrot.slane %v11739_v41, 1  ;;  %8155 = vmatprep.subr.bf16.mxu0 %v9435_v31  ;;  %v11849_v59 = vld [vmem:[#allocation2 + $0x170] sm:$0xff]  ;;  %v11862_v61 = vld [vmem:[#allocation2 + $0x1d8] sm:$0x3] }
 0x2a5   :  { %16780 = vst [vmem:[#allocation54_spill] sm:$0xff] %v11714_v43  ;;  %16781 = vst [vmem:[#allocation55_spill] sm:$0xff] %v11719_v48  ;;  %8097 = vmatprep.mubr.bf16.mxu0 %v11733_v51  ;;  %8400 = vmatpush3.bf16.msra.mxu1 %v9425_v7  ;;  %v11821_v48 = vld [vmem:[#allocation2 + $0x160] sm:$0x3]  ;;  %v1511_v42 = vsel %vm1451_vm0, %v1508_v19, %v1510_v11  ;;  %v11827_v7 = vld [vmem:[#allocation2 + $0x318] sm:$0xff] }
 0x2a6   :  { %16782 = vst [vmem:[#allocation56_spill] sm:$0xff] %v11725_v63  ;;  %16783 = vst [vmem:[#allocation57_spill] sm:$0xff] %v11731_v53  ;;  %v11799_v63 = vpack.c.bf16 %v1501_v46, %v1499_v25  ;;  %v11808_v53 = vld [vmem:[#allocation2 + $0x148] sm:$0x3]  ;;  %8465 = vmatprep.subr.bf16.mxu1 %v11767_v30  ;;  %8156 = vmatpush3.bf16.msra.mxu0 %v9435_v31  ;;  %v1514_v40 = vsel %vm1451_vm0, %v1512_v44, %v1513_v56  ;;  %v11829_v25 = vld [vmem:[#allocation2 + $0x320] sm:$0xff] }
 0x2a7   :  { %16784 = vst [vmem:[#allocation58_spill] sm:$0xff] %v11733_v51  ;;  %16785 = vst [vmem:[#allocation59_spill] sm:$0xff] %v11737_v34  ;;  %v11801_v51 = vpack.c.bf16 %v1506_v18, %v1504_v8  ;;  %v11810_v34 = vld [vmem:[#allocation2 + $0x150] sm:$0xff]  ;;  %v1509_v18 = vsel %vm1451_vm0, %v1507_v0, %v1508_v19  ;;  %v11819_v8 = vld [vmem:[#allocation2 + $0x308] sm:$0xff]  ;;  %8157 = vmatprep.subr.bf16.mxu0 %v9436_v12  ;;  %v1520_v11 = vrot.slane %v11808_v53, 1 }
 0x2a8   :  { %16786 = vst [vmem:[#allocation60_spill] sm:$0xff] %v11739_v41  ;;  %16787 = vst [vmem:[#allocation61_spill] sm:$0xff] %v11748_v62  ;;  %v11797_v41 = vld [vmem:[#allocation2 + $0x140] sm:$0xff]  ;;  %8370 = vmatmul.mubr.bf16.gmra.mrb[16].mxu1 %v11710_v17  ;;  %v9437_v0 = vld [vmem:[%s16259_s4 + $0x38] sm:$0xff]   ;;  %v1522_v44 = vrot.slane %v11810_v34, 1 }
 0x2a9   :  { %16788 = vst [vmem:[#allocation62_spill] sm:$0xff] %v11752_v35  ;;  %16789 = vst [vmem:[#allocation63_spill] sm:$0xff] %v11754_v54  ;;  %v11793_v35 = vld [vmem:[#allocation2 + $0x300] sm:$0xff]  ;;  %v11795_v54 = vld [vmem:[#allocation2 + $0x138] sm:$0xff]  ;;  %8373 = vmatprep.mubr.bf16.mxu1 %v11748_v62  ;;  %v1518_v31 = vrot.slane %v11797_v41, 1  ;;  %v1525_v62 = vrot.slane %v11821_v48, 1 }
 0x2aa   :  { %16790 = vst [vmem:[#allocation64_spill] sm:$0xff] %v11760_v32  ;;  %16791 = vst [vmem:[#allocation65_spill] sm:$0xff] %v11762_v49  ;;  %v1517_v46 = vrot.slane %v11795_v54, 1  ;;  %v11840_v19 = vld [vmem:[#allocation2 + $0x168] sm:$0xff]  ;;  %v11864_v17 = vld [vmem:[#allocation2 + $0x1f0] sm:$0x3]  ;;  %8158 = vmatpush3.bf16.msra.mxu0 %v9436_v12 }
 0x2ab   :  { %16792 = vst [vmem:[#allocation66_spill] sm:$0xff] %v11767_v30  ;;  %16793 = vst [vmem:[#allocation67_spill] sm:$0xff] %v11771_v10  ;;  %v1516_v30 = vsel %vm1451_vm0, %v1513_v56, %v1515_v57  ;;  %v1523_v56 = vrot.slane %v11812_v3, 1  ;;  %v11844_v57 = vpack.c.bf16 %v11819_v8, %v11793_v35  ;;  %8159 = vmatprep.subr.bf16.mxu0 %v9437_v0  ;;  %v1528_v12 = vrot.slane %v11849_v59, 1  ;;  %v11902_v4 = vld [vmem:[#allocation2 + $0x220] sm:$0x3] }
 0x2ac   :  { %16794 = vst [vmem:[#allocation68_spill] sm:$0xff] %v11773_v22  ;;  %16795 = vst [vmem:[#allocation69_spill] sm:$0xff] %v11788_v1  ;;  %v1519_v9 = vsel %vm1451_vm0, %v1517_v46, %v1518_v31  ;;  %8098 = vmatmul.mubr.bf16.gmra.mrb[80].mxu0 %v11799_v63 }
 0x2ad   :  { %16796 = vst [vmem:[#allocation70_spill] sm:$0xff] %v11793_v35  ;;  %16797 = vst [vmem:[#allocation71_spill] sm:$0xff] %v11795_v54  ;;  %v1521_v54 = vsel %vm1451_vm0, %v1518_v31, %v1520_v11  ;;  %8101 = vmatprep.mubr.bf16.mxu0 %v11801_v51  ;;  %v16815_v31 = vrot.slane %v11441_v26, 1  ;;  %v16816_v11 = vrot.slane %v11439_v21, 1  ;;  %v16833_v21 = vrot.slane %v11519_v45, 1 }
 0x2ae   :  { %16798 = vst [vmem:[#allocation72_spill] sm:$0xff] %v11797_v41  ;;  %16799 = vst [vmem:[#allocation73_spill] sm:$0xff] %v11799_v63  ;;  %v11851_v41 = vld [vmem:[#allocation2 + $0x178] sm:$0x3]  ;;  %8160 = vmatpush3.bf16.msra.mxu0 %v9437_v0  ;;  %v16838_v45 = vrot.slane %v11589_v15, 1  ;;  %v16843_v15 = vrot.slane %v11642_v55, 1 }
 0x2af   :  { %16800 = vst [vmem:[#allocation74_spill] sm:$0xff] %v11801_v51  ;;  %16801 = vst [vmem:[#allocation75_spill] sm:$0xff] %v11806_v16  ;;  %v1530_v63 = vrot.slane %v11851_v41, 1  ;;  %v16818_v51 = vrot.slane %v11443_v29, 1  ;;  %v11904_v29 = vld [vmem:[#allocation2 + $0x238] sm:$0x3] }
 0x2b0   :  { %16802 = vst [vmem:[#allocation76_spill] sm:$0xff] %v11808_v53  ;;  %16803 = vst [vmem:[#allocation77_spill] sm:$0xff] %v11810_v34  ;;  %v11853_v53 = vpack.c.bf16 %v1511_v42, %v1509_v18  ;;  %v11855_v34 = vpack.c.bf16 %v1516_v30, %v1514_v40  ;;  %v1524_v42 = vsel %vm1451_vm0, %v1522_v44, %v1523_v56  ;;  %v1527_v30 = vrot.slane %v11840_v19, 1  ;;  %v11871_v18 = vld [vmem:[#allocation2 + $0x1c0] sm:$0x3] }
 0x2b1   :  { %16804 = vst [vmem:[#allocation78_spill] sm:$0xff] %v11812_v3  ;;  %16805 = vst [vmem:[#allocation79_spill] sm:$0xff] %v11821_v48  ;;  %v11859_v3 = vpack.c.bf16 %v11829_v25, %v11827_v7  ;;  %v1526_v40 = vsel %vm1451_vm0, %v1523_v56, %v1525_v62  ;;  %v1539_v62 = vsel %vm1451_vm0, %v16816_v11, %v16815_v31  ;;  %v1540_v44 = vrot.slane %v11862_v61, 1 }
 0x2b2   :  { %16806 = vst [vmem:[#allocation80_spill] sm:$0xff] %v11827_v7  ;;  %16807 = vst [vmem:[#allocation81_spill] sm:$0xff] %v11840_v19  ;;  %v16817_v56 = vrot.slane %v11449_v37, 1  ;;  %v1545_v48 = vrot.slane %v11864_v17, 1  ;;  %v11890_v19 = vld [vmem:[#allocation2 + $0x208] sm:$0x3]  ;;  %8374 = vmatmul.mubr.bf16.gmra.mrb[20].mxu1 %v11788_v1 }
 0x2b3   :  { %16808 = vst [vmem:[#allocation82_spill] sm:$0xff] %v11844_v57  ;;  %16809 = vst [vmem:[#allocation83_spill] sm:$0xff] %v11849_v59  ;;  %v11892_v59 = vpack.c.bf16 %v1521_v54, %v1519_v9  ;;  %v16821_v31 = vrot.slane %v11453_v5, 1  ;;  %v16822_v11 = vrot.slane %v11451_v14, 1  ;;  %v11908_v54 = vsel %vm1451_vm0, %v1527_v30, %v1528_v12  ;;  %8377 = vmatprep.mubr.bf16.mxu1 %v11806_v16 }
 0x2b4   :  { %16810 = vst [vmem:[#allocation84_spill] sm:$0xff] %v11851_v41  ;;  %16811 = vst [vmem:[#allocation85_spill] sm:$0xff] %v11853_v53  ;;  %v1544_v46 = vsel %vm1451_vm0, %v16818_v51, %v16817_v56  ;;  %v11894_v41 = vpack.c.bf16 %v1526_v40, %v1524_v42  ;;  %v11911_v51 = vsel %vm1451_vm0, %v1528_v12, %v1530_v63  ;;  %v16825_v9 = vrot.slane %v11441_v26, 1 }
 0x2b5   :  { %16812 = vst [vmem:[#allocation86_spill] sm:$0xff] %v11855_v34  ;;  %16813 = vst [vmem:[#allocation87_spill] sm:$0xff] %v11859_v3  ;;  %v16826_v40 = vmov %v16817_v56  ;;  %v1550_v63 = vrot.slane %v11890_v19, 1  ;;  %v16830_v12 = vrot.slane %v11512_v36, 1  ;;  %v16836_v1 = vrot.slane %v11453_v5, 1  ;;  %8102 = vmatmul.mubr.bf16.gmra.mrb[84].mxu0 %v11853_v53 }
 0x2b6   :  { %16814 = vst [vmem:[#allocation88_spill] sm:$0xff] %v11862_v61  ;;  %16819 = vst [vmem:[#allocation89_spill] sm:$0xff] %v11892_v59  ;;  %v1549_v61 = vsel %vm1451_vm0, %v16822_v11, %v16821_v31  ;;  %v1541_v42 = vsel %vm1451_vm0, %v16825_v9, %v1540_v44  ;;  %v1546_v56 = vsel %vm1451_vm0, %v16826_v40, %v1545_v48  ;;  %v11919_v31 = vld [vmem:[#allocation2 + $0x250] sm:$0x3]  ;;  %v11921_v11 = vld [vmem:[#allocation2 + $0x268] sm:$0x3]  ;;  %8105 = vmatprep.mubr.bf16.mxu0 %v11855_v34 }
 0x2b7   :  { %16820 = vst [vmem:[#allocation90_spill] sm:$0xff] %v11894_v41  ;;  %16823 = vst [vmem:[#allocation91_spill] sm:$0xff] %v11902_v4  ;;  %v11924_v0 = vpack.c.bf16 %v1541_v42, %v1539_v62  ;;  %v11926_v30 = vpack.c.bf16 %v1546_v56, %v1544_v46  ;;  %v16831_v44 = vrot.slane %v11510_v33, 1  ;;  %v1555_v48 = vrot.slane %v11902_v4, 1  ;;  %v11987_v53 = vld [vmem:[#allocation2 + $0x2c8] sm:$0x3] }
 0x2b8   :  { %16824 = vst [vmem:[#allocation92_spill] sm:$0xff] %v11904_v29  ;;  %16827 = vst [vmem:[#allocation93_spill] sm:$0xff] %v11919_v31  ;;  %v16832_v40 = vrot.slane %v11521_v6, 1  ;;  %v1560_v62 = vrot.slane %v11904_v29, 1  ;;  %v16834_v46 = vrot.slane %v11581_v20, 1  ;;  %v16835_v42 = vrot.slane %v11579_v39, 1 }
 0x2b9   :  { %16828 = vst [vmem:[#allocation94_spill] sm:$0xff] %v11921_v11  ;;  %16829 = vst [vmem:[#allocation95_spill] sm:$0xff] %v11926_v30  ;;  %v1554_v9 = vsel %vm1451_vm0, %v16831_v44, %v16830_v12  ;;  %v1551_v12 = vsel %vm1451_vm0, %v16836_v1, %v1550_v63  ;;  %v1565_v44 = vrot.slane %v11919_v31, 1  ;;  %v16837_v4 = vrot.slane %v11591_v13, 1  ;;  %v11956_v29 = vld [vmem:[#allocation2 + $0x280] sm:$0x3] }
 0x2ba   :  { %v1559_v16 = vsel %vm1451_vm0, %v16833_v21, %v16832_v40  ;;  %v1564_v56 = vsel %vm1451_vm0, %v16835_v42, %v16834_v46  ;;  %v1570_v40 = vrot.slane %v11921_v11, 1  ;;  %16839 = vst [vmem:[#allocation96_spill] sm:$0xff] %v11956_v29  ;;  %v11959_v39 = vpack.c.bf16 %v1551_v12, %v1549_v61  ;;  %v11972_v11 = vld [vmem:[#allocation2 + $0x298] sm:$0x3]  ;;  %v11974_v31 = vld [vmem:[#allocation2 + $0x2b0] sm:$0x3]  ;;  %8378 = vmatmul.mubr.bf16.gmra.mrb[24].mxu1 %v11844_v57 }
 0x2bb   :  { %v1569_v21 = vsel %vm1451_vm0, %v16838_v45, %v16837_v4  ;;  %v16841_v46 = vrot.slane %v11512_v36, 1  ;;  %v16842_v63 = vrot.slane %v11521_v6, 1  ;;  %v16844_v4 = vrot.slane %v11640_v60, 1  ;;  %16845 = vst [vmem:[#allocation98_spill] sm:$0xff] %v11972_v11  ;;  %16846 = vst [vmem:[#allocation99_spill] sm:$0xff] %v11974_v31  ;;  %8381 = vmatprep.mubr.bf16.mxu1 %v11859_v3 }
 0x2bc   :  { %16840 = vst [vmem:[#allocation97_spill] sm:$0xff] %v11959_v39  ;;  %16851 = vst [vmem:[#allocation102_spill] sm:$0xff] %v11987_v53  ;;  %v1590_v34 = vrot.slane %v11987_v53, 1  ;;  %v12044_v53 = vld [vmem:[#allocation2 + $0x310] sm:$0x3] }
 0x2bd   :  { %v1556_v1 = vsel %vm1451_vm0, %v16841_v46, %v1555_v48  ;;  %v1561_v42 = vsel %vm1451_vm0, %v16842_v63, %v1560_v62  ;;  %v1574_v45 = vsel %vm1451_vm0, %v16844_v4, %v16843_v15  ;;  %v16849_v48 = vrot.slane %v11581_v20, 1  ;;  %v11989_v15 = vld [vmem:[#allocation2 + $0x2e0] sm:$0x3]  ;;  %16870 = vst [vmem:[#allocation108_spill] sm:$0xff] %v12044_v53  ;;  %8106 = vmatmul.mubr.bf16.gmra.mrb[88].mxu0 %v11892_v59 }
 0x2be   :  { %v11977_v61 = vpack.c.bf16 %v1556_v1, %v1554_v9  ;;  %v11979_v12 = vpack.c.bf16 %v1561_v42, %v1559_v16  ;;  %v16850_v46 = vrot.slane %v11591_v13, 1  ;;  %16852 = vst [vmem:[#allocation103_spill] sm:$0xff] %v11989_v15  ;;  %v1575_v9 = vrot.slane %v11956_v29, 1  ;;  %8109 = vmatprep.mubr.bf16.mxu0 %v11894_v41  ;;  %v16928_v29 = vld [vmem:[#allocation83_spill] sm:$0xff] }
 0x2bf   :  { %v1566_v62 = vsel %vm1451_vm0, %v16849_v48, %v1565_v44  ;;  %v16855_v16 = vrot.slane %v11649_v27, 1  ;;  %v16856_v1 = vrot.slane %v11647_v38, 1  ;;  %v1580_v42 = vrot.slane %v11972_v11, 1  ;;  %v16932_v38 = vld [vmem:[#allocation10_spill] sm:$0xff] }
 0x2c0   :  { %16847 = vst [vmem:[#allocation100_spill] sm:$0xff] %v11977_v61  ;;  %16848 = vst [vmem:[#allocation101_spill] sm:$0xff] %v11979_v12  ;;  %v1571_v63 = vsel %vm1451_vm0, %v16850_v46, %v1570_v40  ;;  %v11991_v4 = vpack.c.bf16 %v1566_v62, %v1564_v56  ;;  %v16857_v40 = vrot.slane %v11671_v58, 1  ;;  %v16858_v48 = vrot.slane %v11669_v24, 1  ;;  %v12024_v24 = vld [vmem:[#allocation2 + $0x2f8] sm:$0x3] }
 0x2c1   :  { %v11993_v60 = vpack.c.bf16 %v1571_v63, %v1569_v21  ;;  %v1579_v44 = vsel %vm1451_vm0, %v16856_v1, %v16855_v16  ;;  %v1585_v56 = vrot.slane %v11974_v31, 1  ;;  %v16859_v21 = vrot.slane %v11714_v43, 1  ;;  %16864 = vst [vmem:[#allocation106_spill] sm:$0xff] %v12024_v24 }
 0x2c2   :  { %16853 = vst [vmem:[#allocation104_spill] sm:$0xff] %v11991_v4  ;;  %v1584_v46 = vsel %vm1451_vm0, %v16858_v48, %v16857_v40  ;;  %v16860_v62 = vrot.slane %v11712_v50, 1  ;;  %v16861_v16 = vrot.slane %v11642_v55, 1  ;;  %v16863_v40 = vrot.slane %v11760_v32, 1 }
 0x2c3   :  { %16854 = vst [vmem:[#allocation105_spill] sm:$0xff] %v11993_v60  ;;  %v16862_v60 = vrot.slane %v11762_v49, 1  ;;  %v1595_v31 = vrot.slane %v11989_v15, 1  ;;  %v16867_v32 = vrot.slane %v11671_v58, 1  ;;  %v16869_v15 = vrot.slane %v11771_v10, 1  ;;  %v16925_v58 = vld [vmem:[#allocation78_spill] sm:$0xff] }
 0x2c4   :  { %v1589_v63 = vsel %vm1451_vm0, %v16860_v62, %v16859_v21  ;;  %v1576_v1 = vsel %vm1451_vm0, %v16861_v16, %v1575_v9  ;;  %v12027_v21 = vld [vmem:[#allocation2 + $0x330] sm:$0xff]  ;;  %v12029_v62 = vld [vmem:[#allocation2 + $0x338] sm:$0xff]  ;;  %v16866_v9 = vrot.slane %v11649_v27, 1  ;;  %v12108_v59 = vpack.c.bf16 %v11431_v23, %v11429_v28 }
 0x2c5   :  { %v1594_v48 = vsel %vm1451_vm0, %v16863_v40, %v16862_v60  ;;  %v12031_v57 = vpack.c.bf16 %v1576_v1, %v1574_v45  ;;  %v1586_v60 = vsel %vm1451_vm0, %v16867_v32, %v1585_v56  ;;  %v16868_v40 = vrot.slane %v11773_v22, 1  ;;  %v12056_v56 = vld [vmem:[#allocation2 + $0x328] sm:$0x3] }
 0x2c6   :  { %v1581_v16 = vsel %vm1451_vm0, %v16866_v9, %v1580_v42  ;;  %v12048_v45 = vpack.c.bf16 %v1586_v60, %v1584_v46  ;;  %v16873_v1 = vrot.slane %v11714_v43, 1  ;;  %v16874_v9 = vrot.slane %v11762_v49, 1  ;;  %16875 = vst [vmem:[#allocation111_spill] sm:$0xff] %v12056_v56  ;;  %16890 = vst [vmem:[#allocation117_spill] sm:$0xff] %v12108_v59  ;;  %v16907_v59 = vld [vmem:[#allocation34_spill] sm:$0xff]  ;;  %v16922_v49 = vld [vmem:[#allocation72_spill] sm:$0xff] }
 0x2c7   :  { %16865 = vst [vmem:[#allocation107_spill] sm:$0xff] %v12031_v57  ;;  %v1599_v3 = vsel %vm1451_vm0, %v16869_v15, %v16868_v40  ;;  %v12046_v50 = vpack.c.bf16 %v1581_v16, %v1579_v44  ;;  %v1600_v15 = vrot.slane %v12024_v24, 1  ;;  %v16878_v44 = vrot.slane %v11819_v8, 1  ;;  %v16919_v24 = vld [vmem:[#allocation62_spill] sm:$0xff] }
 0x2c8   :  { %16872 = vst [vmem:[#allocation110_spill] sm:$0xff] %v12048_v45  ;;  %v1591_v42 = vsel %vm1451_vm0, %v16873_v1, %v1590_v34  ;;  %v1596_v32 = vsel %vm1451_vm0, %v16874_v9, %v1595_v31  ;;  %v16879_v46 = vrot.slane %v11793_v35, 1  ;;  %v12072_v31 = vpack.c.bf16 %v12029_v62, %v12027_v21  ;;  %v16913_v45 = vld [vmem:[#allocation50_spill] sm:$0xff] }
 0x2c9   :  { %16871 = vst [vmem:[#allocation109_spill] sm:$0xff] %v12046_v50  ;;  %v12058_v57 = vpack.c.bf16 %v1591_v42, %v1589_v63  ;;  %v12060_v10 = vpack.c.bf16 %v1596_v32, %v1594_v48  ;;  %v16881_v63 = vrot.slane %v11871_v18, 1  ;;  %v16882_v48 = vld [vmem:[#allocation27_spill] sm:$0xff]  ;;  %v1605_v40 = vrot.slane %v12044_v53, 1 }
 0x2ca   :  { %v1604_v16 = vsel %vm1451_vm0, %v16879_v46, %v16878_v44  ;;  %16880 = vst [vmem:[#allocation114_spill] sm:$0xff] %v12072_v31  ;;  %v3505_v1 = vrot.slane %v12027_v21, 1  ;;  %v16883_v42 = vrot.slane %v11773_v22, 1  ;;  %v16884_v32 = vrot.slane %v11829_v25, 1  ;;  %8382 = vmatmul.mubr.bf16.gmra.mrb[28].mxu1 %v12072_v31 }
 0x2cb   :  { %16876 = vst [vmem:[#allocation112_spill] sm:$0xff] %v12058_v57  ;;  %16877 = vst [vmem:[#allocation113_spill] sm:$0xff] %v12060_v10  ;;  %v1536_v60 = vsel %vm1451_vm0, %v16882_v48, %v16881_v63  ;;  %v16885_v44 = vrot.slane %v11827_v7, 1  ;;  %v1610_v18 = vrot.slane %v12056_v56, 1  ;;  %v3506_v63 = vrot.slane %v12029_v62, 1  ;;  %v16916_v56 = vld [vmem:[#allocation56_spill] sm:$0xff] }
 0x2cc   :  { %v1601_v9 = vsel %vm1451_vm0, %v16883_v42, %v1600_v15  ;;  %v12093_v34 = vpack.c.bf16 %v11911_v51, %v11908_v54  ;;  %v16888_v10 = vrot.slane %v11819_v8, 1  ;;  %v1692_v42 = vpack.c.bf16 %v1536_v60, %v16882_v48  ;;  %v16896_v48 = vld [vmem:[#allocation9_spill] sm:$0xff] }
 0x2cd   :  { %v1609_v46 = vsel %vm1451_vm0, %v16885_v44, %v16884_v32  ;;  %v12095_v41 = vpack.c.bf16 %v1601_v9, %v1599_v3  ;;  %v1611_v44 = vsel %vm1451_vm0, %v16884_v32, %v1610_v18  ;;  %v12115_v54 = vpack.c.bf16 %v11485_v47, %v11483_v52  ;;  %v16899_v9 = vld [vmem:[#allocation19_spill] sm:$0xff]  ;;  %v16900_v18 = vld [vmem:[#allocation14_spill] sm:$0xff]  ;;  %v16903_v32 = vld [vmem:[#allocation28_spill] sm:$0xff] }
 0x2ce   :  { %16886 = vst [vmem:[#allocation27_spill] sm:$0xff] %v12093_v34  ;;  %v1606_v15 = vsel %vm1451_vm0, %v16888_v10, %v1605_v40  ;;  %v12111_v3 = vpack.c.bf16 %v1611_v44, %v1609_v46  ;;  %v16893_v10 = vld [vmem:[#allocation21_spill] sm:$0xff]  ;;  %v12125_v40 = vld [vmem:[#allocation2 + $0x340] sm:$0x3]  ;;  %8401 = vmatprep.mubr.bf16.mxu1 %v16899_v9  ;;  %8110 = vmatmul.mubr.bf16.gmra.mrb[92].mxu0 %v12093_v34  ;;  %v16933_v35 = vrot.slane %v16932_v38, 2  ;;  %v2415_v34 = vrot.slane %v11483_v52, 2 }
 0x2cf   :  { %16887 = vst [vmem:[#allocation115_spill] sm:$0xff] %v12095_v41  ;;  %v12101_v57 = vpack.c.bf16 %v1606_v15, %v1604_v16  ;;  %16892 = vst [vmem:[#allocation119_spill] sm:$0xff] %v12115_v54  ;;  %v12119_v51 = vpack.c.bf16 %v16893_v10, %v11500_v2  ;;  %v16895_v16 = vld [vmem:[#allocation7_spill] sm:$0xff]  ;;  %v16904_v44 = vld [vmem:[#allocation29_spill] sm:$0xff]  ;;  %8113 = vmatprep.mubr.bf16.mxu0 %v1692_v42  ;;  %v2420_v52 = vrot.slane %v11500_v2, 2  ;;  %v2430_v38 = vrot.slane %v16900_v18, 2 }
 0x2d0   :  { %16891 = vst [vmem:[#allocation118_spill] sm:$0xff] %v12111_v3  ;;  %v12123_v60 = vpack.c.bf16 %v16896_v48, %v16895_v16  ;;  %16898 = vst [vmem:[#allocation9_spill] sm:$0xff] %v12125_v40  ;;  %v16901_v15 = vld [vmem:[#allocation11_spill] sm:$0xff]  ;;  %v12134_v31 = vpack.c.bf16 %v16904_v44, %v16903_v32  ;;  %v16906_v54 = vld [vmem:[#allocation32_spill] sm:$0xff] }
 0x2d1   :  { %16889 = vst [vmem:[#allocation116_spill] sm:$0xff] %v12101_v57  ;;  %16894 = vst [vmem:[#allocation21_spill] sm:$0xff] %v12119_v51  ;;  %v12130_v46 = vpack.c.bf16 %v16901_v15, %v16900_v18  ;;  %v12138_v3 = vpack.c.bf16 %v16907_v59, %v16906_v54  ;;  %v16909_v51 = vld [vmem:[#allocation44_spill] sm:$0xff]  ;;  %v16910_v57 = vld [vmem:[#allocation47_spill] sm:$0xff] }
 0x2d2   :  { %16897 = vst [vmem:[#allocation7_spill] sm:$0xff] %v12123_v60  ;;  %16905 = vst [vmem:[#allocation14_spill] sm:$0xff] %v12134_v31  ;;  %v12142_v41 = vpack.c.bf16 %v16910_v57, %v16909_v51  ;;  %v16912_v60 = vld [vmem:[#allocation49_spill] sm:$0xff]  ;;  %v16915_v9 = vld [vmem:[#allocation55_spill] sm:$0xff] }
 0x2d3   :  { %16902 = vst [vmem:[#allocation19_spill] sm:$0xff] %v12130_v46  ;;  %16908 = vst [vmem:[#allocation11_spill] sm:$0xff] %v12138_v3  ;;  %v12146_v50 = vpack.c.bf16 %v16913_v45, %v16912_v60  ;;  %v12150_v53 = vpack.c.bf16 %v16916_v56, %v16915_v9  ;;  %v16918_v46 = vld [vmem:[#allocation60_spill] sm:$0xff]  ;;  %v16921_v31 = vld [vmem:[#allocation71_spill] sm:$0xff] }
 0x2d4   :  { %16911 = vst [vmem:[#allocation28_spill] sm:$0xff] %v12142_v41  ;;  %v12154_v22 = vpack.c.bf16 %v16919_v24, %v16918_v46  ;;  %v12158_v43 = vpack.c.bf16 %v16922_v49, %v16921_v31  ;;  %v16924_v3 = vld [vmem:[#allocation77_spill] sm:$0xff]  ;;  %v3507_v41 = vsel %vm1451_vm0, %v3505_v1, %v3506_v63  ;;  %v16930_v1 = vrot.slane %v11431_v23, 2  ;;  %v16938_v42 = vld [vmem:[#allocation22_spill] sm:$0xff] }
 0x2d5   :  { %16914 = vst [vmem:[#allocation29_spill] sm:$0xff] %v12146_v50  ;;  %16917 = vst [vmem:[#allocation32_spill] sm:$0xff] %v12150_v53  ;;  %v12162_v11 = vpack.c.bf16 %v16925_v58, %v16924_v3  ;;  %v3508_v50 = vrot.slane %v12125_v40, 1  ;;  %v16931_v40 = vrot.slane %v11429_v28, 2  ;;  %v2416_v23 = vrot.slane %v11485_v47, 2  ;;  %v16942_v18 = vld [vmem:[#allocation13_spill] sm:$0xff] }
 0x2d6   :  { %16920 = vst [vmem:[#allocation34_spill] sm:$0xff] %v12154_v22  ;;  %16923 = vst [vmem:[#allocation44_spill] sm:$0xff] %v12158_v43  ;;  %v16927_v22 = vld [vmem:[#allocation81_spill] sm:$0xff]  ;;  %v16934_v53 = vmov %v16930_v1  ;;  %v2423_v7 = vrot.slane %v16938_v42, 2  ;;  %8114 = vmatmul.mubr.bf16.gmra.mrb[96].mxu0 %v11924_v0 }
 0x2d7   :  { %16926 = vst [vmem:[#allocation47_spill] sm:$0xff] %v12162_v11  ;;  %v12172_v43 = vpack.c.bf16 %v16928_v29, %v16927_v22  ;;  %v3509_v11 = vsel %vm1451_vm0, %v3506_v63, %v3508_v50  ;;  %v2412_v55 = vsel %vm2399_vm1, %v16931_v40, %v16930_v1  ;;  %v2414_v27 = vsel %vm2399_vm1, %v16934_v53, %v16933_v35  ;;  %v9427_v50 = vld [vmem:[%s16259_s4 + $0x148] sm:$0xff]   ;;  %v16936_v40 = vld [vmem:[#allocation18_spill] sm:$0xff] }
 0x2d8   :  { %v12191_v63 = vpack.c.bf16 %v3509_v11, %v3507_v41  ;;  %v12193_v28 = vpack.c.bf16 %v2414_v27, %v2412_v55  ;;  %v2418_v53 = vrot.slane %v16936_v40, 2  ;;  %v16937_v35 = vld [vmem:[#allocation20_spill] sm:$0xff]  ;;  %v2421_v1 = vrot.slane %v16893_v10, 2  ;;  %v16939_v55 = vld [vmem:[#allocation66_spill] sm:$0xff]  ;;  %v16940_v27 = vld [vmem:[#allocation15_spill] sm:$0xff]  ;;  %8117 = vmatprep.mubr.bf16.mxu0 %v11926_v30 }
 0x2d9   :  { %16929 = vst [vmem:[#allocation49_spill] sm:$0xff] %v12172_v43  ;;  %8402 = vmatmul.mubr.bf16.vlgmr.msra.gmra.mrb[32].mxu1 %v16937_v35  ;;  %v2425_v43 = vrot.slane %v16895_v16, 2  ;;  %v2426_v41 = vrot.slane %v16896_v48, 2  ;;  %v2417_v47 = vsel %vm2399_vm1, %v2415_v34, %v2416_v23  ;;  %v16941_v40 = vld [vmem:[#allocation12_spill] sm:$0xff]  ;;  %v9428_v10 = vld [vmem:[%s16259_s4 + $0x150] sm:$0xff]  }
 0x2da   :  { %16935 = vst [vmem:[#allocation50_spill] sm:$0xff] %v12191_v63  ;;  %8466 = vmatpush3.bf16.msra.mxu1 %v16939_v55  ;;  %8405 = vmatprep.mubr.bf16.mxu1 %v16940_v27  ;;  %v2419_v11 = vsel %vm2399_vm1, %v2416_v23, %v2418_v53  ;;  %v2428_v2 = vrot.slane %v16941_v40, 2  ;;  %v2422_v48 = vsel %vm2399_vm1, %v2420_v52, %v2421_v1  ;;  %v2431_v53 = vrot.slane %v16901_v15, 2 }
 0x2db   :  { %8467 = vmatprep.subr.bf16.mxu1 %v9427_v50  ;;  %v12213_v16 = vpack.c.bf16 %v2419_v11, %v2417_v47  ;;  %v2424_v42 = vsel %vm2399_vm1, %v2421_v1, %v2423_v7  ;;  %v2427_v55 = vsel %vm2399_vm1, %v2425_v43, %v2426_v41  ;;  %v2433_v40 = vrot.slane %v16942_v18, 2  ;;  %v16943_v11 = vld [vmem:[#allocation31_spill] sm:$0xff]  ;;  %v16946_v18 = vld [vmem:[#allocation48_spill] sm:$0xff] }
 0x2dc   :  { %v12218_v34 = vpack.c.bf16 %v2424_v42, %v2422_v48  ;;  %v2429_v23 = vsel %vm2399_vm1, %v2426_v41, %v2428_v2  ;;  %v2435_v47 = vrot.slane %v16903_v32, 2  ;;  %v2436_v52 = vrot.slane %v16904_v44, 2  ;;  %v9433_v32 = vld [vmem:[%s16259_s4 + $0x158] sm:$0xff]  }
 0x2dd   :  { %v12224_v27 = vpack.c.bf16 %v2429_v23, %v2427_v55  ;;  %v2438_v7 = vrot.slane %v16943_v11, 2  ;;  %v2432_v43 = vsel %vm2399_vm1, %v2430_v38, %v2431_v53  ;;  %v2434_v1 = vsel %vm2399_vm1, %v2431_v53, %v2433_v40  ;;  %v16945_v23 = vld [vmem:[#allocation26_spill] sm:$0xff]  ;;  %v16947_v11 = vld [vmem:[#allocation40_spill] sm:$0xff] }
 0x2de   :  { %8468 = vmatpush3.bf16.msra.mxu1 %v9427_v50  ;;  %v2440_v15 = vrot.slane %v16906_v54, 2  ;;  %v2441_v41 = vrot.slane %v16907_v59, 2  ;;  %v12237_v2 = vpack.c.bf16 %v2434_v1, %v2432_v43  ;;  %v2437_v44 = vsel %vm2399_vm1, %v2435_v47, %v2436_v52  ;;  %v16944_v50 = vld [vmem:[#allocation35_spill] sm:$0xff]  ;;  %8118 = vmatmul.mubr.bf16.gmra.mrb[100].mxu0 %v11959_v39 }
 0x2df   :  { %8469 = vmatprep.subr.bf16.mxu1 %v9428_v10  ;;  %v2439_v48 = vsel %vm2399_vm1, %v2436_v52, %v2438_v7  ;;  %v2443_v42 = vrot.slane %v16944_v50, 2  ;;  %v2445_v54 = vrot.slane %v16909_v51, 2  ;;  %v2446_v59 = vrot.slane %v16910_v57, 2  ;;  %v16948_v51 = vld [vmem:[#allocation51_spill] sm:$0xff]  ;;  %8121 = vmatprep.mubr.bf16.mxu0 %v11977_v61 }
 0x2e0   :  { %v12242_v38 = vpack.c.bf16 %v2439_v48, %v2437_v44  ;;  %v2442_v55 = vsel %vm2399_vm1, %v2440_v15, %v2441_v41  ;;  %v2448_v40 = vrot.slane %v16946_v18, 2  ;;  %v2450_v47 = vrot.slane %v16912_v60, 2  ;;  %v9438_v15 = vld [vmem:[%s16259_s4 + $0x160] sm:$0xff]  }
 0x2e1   :  { %8406 = vmatmul.mubr.bf16.gmra.mrb[36].mxu1 %v16945_v23  ;;  %v2444_v53 = vsel %vm2399_vm1, %v2441_v41, %v2443_v42  ;;  %v2451_v52 = vrot.slane %v16913_v45, 2  ;;  %v2447_v43 = vsel %vm2399_vm1, %v2445_v54, %v2446_v59  ;;  %v2453_v1 = vrot.slane %v16948_v51, 2 }
 0x2e2   :  { %8409 = vmatprep.mubr.bf16.mxu1 %v16947_v11  ;;  %8470 = vmatpush3.bf16.msra.mxu1 %v9428_v10  ;;  %v12253_v7 = vpack.c.bf16 %v2444_v53, %v2442_v55  ;;  %v2455_v57 = vrot.slane %v16915_v9, 2  ;;  %v2449_v60 = vsel %vm2399_vm1, %v2446_v59, %v2448_v40  ;;  %v2456_v41 = vrot.slane %v16916_v56, 2  ;;  %v16949_v10 = vld [vmem:[#allocation59_spill] sm:$0xff] }
 0x2e3   :  { %8471 = vmatprep.subr.bf16.mxu1 %v9433_v32  ;;  %v2452_v45 = vsel %vm2399_vm1, %v2450_v47, %v2451_v52  ;;  %v2458_v44 = vrot.slane %v16949_v10, 2  ;;  %v12265_v48 = vpack.c.bf16 %v2449_v60, %v2447_v43  ;;  %v2454_v50 = vsel %vm2399_vm1, %v2451_v52, %v2453_v1  ;;  %v16950_v53 = vld [vmem:[#allocation63_spill] sm:$0xff]  ;;  %v12284_v52 = vld [vmem:[#allocation2 + $0x188] sm:$0xff] }
 0x2e4   :  { %v2460_v42 = vrot.slane %v16918_v46, 2  ;;  %v2461_v9 = vrot.slane %v16919_v24, 2  ;;  %v12271_v55 = vpack.c.bf16 %v2454_v50, %v2452_v45  ;;  %v2457_v54 = vsel %vm2399_vm1, %v2455_v57, %v2456_v41  ;;  %v12282_v47 = vld [vmem:[#allocation2 + $0x180] sm:$0xff]  ;;  %v9439_v43 = vld [vmem:[%s16259_s4 + $0x168] sm:$0xff]   ;;  %v16953_v50 = vld [vmem:[#allocation45_spill] sm:$0xff] }
 0x2e5   :  { %v2459_v59 = vsel %vm2399_vm1, %v2456_v41, %v2458_v44  ;;  %v2463_v56 = vrot.slane %v16950_v53, 2  ;;  %v2465_v46 = vrot.slane %v16921_v31, 2  ;;  %v2466_v24 = vrot.slane %v16922_v49, 2  ;;  %v12293_v31 = vld [vmem:[#allocation2 + $0x190] sm:$0x3]  ;;  %v16952_v41 = vld [vmem:[#allocation79_spill] sm:$0xff] }
 0x2e6   :  { %8472 = vmatpush3.bf16.msra.mxu1 %v9433_v32  ;;  %v12277_v18 = vpack.c.bf16 %v2459_v59, %v2457_v54  ;;  %v2462_v40 = vsel %vm2399_vm1, %v2460_v42, %v2461_v9  ;;  %v16951_v32 = vld [vmem:[#allocation76_spill] sm:$0xff]  ;;  %v2470_v57 = vrot.slane %v16924_v3, 2  ;;  %v2471_v60 = vrot.slane %v16925_v58, 2  ;;  %v16955_v59 = vld [vmem:[#allocation57_spill] sm:$0xff]  ;;  %8122 = vmatmul.mubr.bf16.gmra.mrb[104].mxu0 %v11979_v12  ;;  %v17009_v11 = vld [vmem:[#allocation107_spill] sm:$0xff] }
 0x2e7   :  { %8473 = vmatprep.subr.bf16.mxu1 %v9438_v15  ;;  %v2464_v51 = vsel %vm2399_vm1, %v2461_v9, %v2463_v56  ;;  %v2468_v1 = vrot.slane %v16951_v32, 2  ;;  %v2467_v45 = vsel %vm2399_vm1, %v2465_v46, %v2466_v24  ;;  %v2473_v10 = vrot.slane %v16952_v41, 2  ;;  %v16954_v54 = vld [vmem:[#allocation84_spill] sm:$0xff]  ;;  %v9440_v46 = vld [vmem:[%s16259_s4 + $0x170] sm:$0xff]   ;;  %8125 = vmatprep.mubr.bf16.mxu0 %v11991_v4 }
 0x2e8   :  { %v12295_v49 = vpack.c.bf16 %v2464_v51, %v2462_v40  ;;  %v2475_v44 = vrot.slane %v16927_v22, 2  ;;  %v2472_v9 = vsel %vm2399_vm1, %v2470_v57, %v2471_v60  ;;  %v2476_v3 = vrot.slane %v16928_v29, 2 }
 0x2e9   :  { %8410 = vmatmul.mubr.bf16.gmra.mrb[40].mxu1 %v16953_v50  ;;  %v2469_v42 = vsel %vm2399_vm1, %v2466_v24, %v2468_v1  ;;  %v2478_v58 = vrot.slane %v16954_v54, 2  ;;  %v2474_v56 = vsel %vm2399_vm1, %v2471_v60, %v2473_v10  ;;  %v3934_v40 = vrot.slane %v12282_v47, 2  ;;  %v16957_v60 = vld [vmem:[#allocation24_spill] sm:$0xff] }
 0x2ea   :  { %8413 = vmatprep.mubr.bf16.mxu1 %v16955_v59  ;;  %8474 = vmatpush3.bf16.msra.mxu1 %v9438_v15  ;;  %v12306_v53 = vpack.c.bf16 %v2469_v42, %v2467_v45  ;;  %v3935_v22 = vrot.slane %v12284_v52, 2  ;;  %v12314_v24 = vpack.c.bf16 %v2474_v56, %v2472_v9  ;;  %v2477_v29 = vsel %vm2399_vm1, %v2475_v44, %v2476_v3  ;;  %v16959_v10 = vld [vmem:[#allocation88_spill] sm:$0xff]  ;;  %v17000_v59 = vld [vmem:[#allocation42_spill] sm:$0xff] }
 0x2eb   :  { %8475 = vmatprep.subr.bf16.mxu1 %v9439_v43  ;;  %v2479_v51 = vsel %vm2399_vm1, %v2476_v3, %v2478_v58  ;;  %v3937_v15 = vrot.slane %v12293_v31, 2  ;;  %v16956_v57 = vrot.slane %v11441_v26, 2  ;;  %v16958_v45 = vrot.slane %v16957_v60, 2  ;;  %v16961_v3 = vld [vmem:[#allocation25_spill] sm:$0xff] }
 0x2ec   :  { %v12319_v32 = vpack.c.bf16 %v2479_v51, %v2477_v29  ;;  %v3936_v1 = vsel %vm2399_vm1, %v3934_v40, %v3935_v22  ;;  %v2488_v42 = vrot.slane %v16959_v10, 2  ;;  %v16960_v9 = vrot.slane %v11449_v37, 2 }
 0x2ed   :  { %v2487_v41 = vsel %vm2399_vm1, %v16958_v45, %v16956_v57  ;;  %v3938_v44 = vsel %vm2399_vm1, %v3935_v22, %v3937_v15  ;;  %v16962_v54 = vrot.slane %v16961_v3, 2  ;;  %v2493_v56 = vrot.slane %v11864_v17, 2 }
 0x2ee   :  { %v16963_v40 = vrot.slane %v11453_v5, 2  ;;  %v16964_v29 = vrot.slane %v11451_v14, 2  ;;  %8476 = vmatpush3.bf16.msra.mxu1 %v9439_v43  ;;  %v12342_v57 = vpack.c.bf16 %v3938_v44, %v3936_v1  ;;  %v16965_v22 = vrot.slane %v11441_v26, 2  ;;  %v9441_v14 = vld [vmem:[%s16259_s4 + $0x178] sm:$0xff]  }
 0x2ef   :  { %v2492_v58 = vsel %vm2399_vm1, %v16962_v54, %v16960_v9  ;;  %v2498_v60 = vrot.slane %v11890_v19, 2  ;;  %v16966_v45 = vrot.slane %v11512_v36, 2  ;;  %v16967_v17 = vrot.slane %v11510_v33, 2  ;;  %8477 = vmatprep.subr.bf16.mxu1 %v9440_v46 }
 0x2f0   :  { %v2497_v51 = vsel %vm2399_vm1, %v16964_v29, %v16963_v40  ;;  %v2489_v15 = vsel %vm2399_vm1, %v16965_v22, %v2488_v42  ;;  %v16968_v1 = vmov %v16960_v9  ;;  %v16969_v42 = vld [vmem:[#allocation91_spill] sm:$0xff]  ;;  %v16970_v19 = vrot.slane %v11521_v6, 2 }
 0x2f1   :  { %v2502_v10 = vsel %vm2399_vm1, %v16967_v17, %v16966_v45  ;;  %v12356_v43 = vpack.c.bf16 %v2489_v15, %v2487_v41  ;;  %v2494_v26 = vsel %vm2399_vm1, %v16968_v1, %v2493_v56  ;;  %v2503_v44 = vrot.slane %v16969_v42, 2  ;;  %v16971_v9 = vld [vmem:[#allocation23_spill] sm:$0xff]  ;;  %v16973_v41 = vld [vmem:[#allocation92_spill] sm:$0xff]  ;;  %v16977_v17 = vld [vmem:[#allocation58_spill] sm:$0xff] }
 0x2f2   :  { %v16972_v3 = vrot.slane %v16971_v9, 2  ;;  %v12367_v54 = vpack.c.bf16 %v2494_v26, %v2492_v58  ;;  %v2499_v29 = vsel %vm2399_vm1, %v16963_v40, %v2498_v60  ;;  %v2508_v22 = vrot.slane %v16973_v41, 2  ;;  %v16975_v15 = vld [vmem:[#allocation8_spill] sm:$0xff]  ;;  %8414 = vmatmul.mubr.bf16.gmra.mrb[44].mxu1 %v16977_v17  ;;  %v16979_v26 = vld [vmem:[#allocation93_spill] sm:$0xff]  ;;  %v16998_v17 = vld [vmem:[#allocation43_spill] sm:$0xff] }
 0x2f3   :  { %v16974_v37 = vrot.slane %v11581_v20, 2  ;;  %v16976_v56 = vrot.slane %v16975_v15, 2  ;;  %v12379_v1 = vpack.c.bf16 %v2499_v29, %v2497_v51  ;;  %v16978_v42 = vrot.slane %v11512_v36, 2  ;;  %v16983_v40 = vld [vmem:[#allocation73_spill] sm:$0xff]  ;;  %8478 = vmatpush3.bf16.msra.mxu1 %v9440_v46  ;;  %v16985_v36 = vld [vmem:[#allocation94_spill] sm:$0xff] }
 0x2f4   :  { %v2507_v33 = vsel %vm2399_vm1, %v16972_v3, %v16970_v19  ;;  %v2513_v5 = vrot.slane %v16979_v26, 2  ;;  %v16980_v60 = vrot.slane %v11591_v13, 2  ;;  %v16981_v19 = vld [vmem:[#allocation4_spill] sm:$0xff]  ;;  %8417 = vmatprep.mubr.bf16.mxu1 %v16983_v40  ;;  %v16984_v51 = vrot.slane %v11521_v6, 2  ;;  %8479 = vmatprep.subr.bf16.mxu1 %v9441_v14 }
 0x2f5   :  { %v2512_v45 = vsel %vm2399_vm1, %v16976_v56, %v16974_v37  ;;  %v2504_v58 = vsel %vm2399_vm1, %v16978_v42, %v2503_v44  ;;  %v16982_v9 = vrot.slane %v16981_v19, 2  ;;  %v2518_v37 = vrot.slane %v16985_v36, 2  ;;  %v16986_v44 = vld [vmem:[#allocation37_spill] sm:$0xff]  ;;  %v16988_v56 = vld [vmem:[#allocation36_spill] sm:$0xff]  ;;  %v16992_v19 = vld [vmem:[#allocation39_spill] sm:$0xff] }
 0x2f6   :  { %v12391_v41 = vpack.c.bf16 %v2504_v58, %v2502_v10  ;;  %v2509_v29 = vsel %vm2399_vm1, %v16984_v51, %v2508_v22  ;;  %v16987_v15 = vrot.slane %v16986_v44, 2  ;;  %v16989_v42 = vrot.slane %v16988_v56, 2  ;;  %v16991_v22 = vld [vmem:[#allocation96_spill] sm:$0xff]  ;;  %v16994_v51 = vld [vmem:[#allocation38_spill] sm:$0xff] }
 0x2f7   :  { %v2517_v3 = vsel %vm2399_vm1, %v16982_v9, %v16980_v60  ;;  %v12405_v60 = vld [vmem:[%s16259_s4 + $0x180] sm:$0xff]   ;;  %v12407_v46 = vpack.c.bf16 %v2509_v29, %v2507_v33  ;;  %v16990_v6 = vrot.slane %v11581_v20, 2  ;;  %v2523_v58 = vrot.slane %v16991_v22, 2  ;;  %v16997_v33 = vld [vmem:[#allocation98_spill] sm:$0xff]  ;;  %v17002_v22 = vld [vmem:[#allocation105_spill] sm:$0xff]  ;;  %8480 = vmatpush3.bf16.msra.mxu1 %v9441_v14 }
 0x2f8   :  { %v2522_v26 = vsel %vm2399_vm1, %v16989_v42, %v16987_v15  ;;  %v16993_v9 = vrot.slane %v16992_v19, 2  ;;  %v16995_v36 = vrot.slane %v16994_v51, 2  ;;  %v16996_v42 = vrot.slane %v11591_v13, 2  ;;  %8126 = vmatmul.mubr.bf16.gmra.mrb[108].mxu0 %v17002_v22  ;;  %v17005_v51 = vld [vmem:[#allocation54_spill] sm:$0xff]  ;;  %8545 = vmatprep.subr.bf16.mxu1 %v12405_v60 }
 0x2f9   :  { %v2514_v10 = vsel %vm2399_vm1, %v16990_v6, %v2513_v5  ;;  %v2528_v29 = vrot.slane %v16997_v33, 2  ;;  %v16999_v20 = vrot.slane %v16998_v17, 2  ;;  %v17001_v5 = vrot.slane %v17000_v59, 2  ;;  %8129 = vmatprep.mubr.bf16.mxu0 %v17009_v11 }
 0x2fa   :  { %v2527_v15 = vsel %vm2399_vm1, %v16995_v36, %v16993_v9  ;;  %v12418_v56 = vpack.c.bf16 %v2514_v10, %v2512_v45  ;;  %v2519_v40 = vsel %vm2399_vm1, %v16996_v42, %v2518_v37  ;;  %v17003_v9 = vrot.slane %v16986_v44, 2  ;;  %v17004_v10 = vld [vmem:[#allocation99_spill] sm:$0xff]  ;;  %v17007_v36 = vld [vmem:[#allocation53_spill] sm:$0xff]  ;;  %v17011_v44 = vld [vmem:[#allocation102_spill] sm:$0xff] }
 0x2fb   :  { %v2532_v6 = vsel %vm2399_vm1, %v17001_v5, %v16999_v20  ;;  %v12430_v50 = vpack.c.bf16 %v2519_v40, %v2517_v3  ;;  %v2533_v13 = vrot.slane %v17004_v10, 2  ;;  %v17006_v37 = vrot.slane %v17005_v51, 2 }
 0x2fc   :  { %v2524_v45 = vsel %vm2399_vm1, %v17003_v9, %v2523_v58  ;;  %v17008_v42 = vrot.slane %v17007_v36, 2  ;;  %v17010_v3 = vrot.slane %v16992_v19, 2  ;;  %v2538_v20 = vrot.slane %v17011_v44, 2  ;;  %v17012_v58 = vld [vmem:[#allocation65_spill] sm:$0xff]  ;;  %v17014_v9 = vld [vmem:[#allocation64_spill] sm:$0xff] }
 0x2fd   :  { %v12442_v59 = vpack.c.bf16 %v2524_v45, %v2522_v26  ;;  %v17013_v5 = vrot.slane %v17012_v58, 2  ;;  %v17015_v10 = vrot.slane %v17014_v9, 2  ;;  %v17017_v14 = vrot.slane %v16998_v17, 2  ;;  %v17018_v45 = vld [vmem:[#allocation103_spill] sm:$0xff]  ;;  %v17019_v36 = vld [vmem:[#allocation68_spill] sm:$0xff] }
 0x2fe   :  { %v2537_v33 = vsel %vm2399_vm1, %v17008_v42, %v17006_v37  ;;  %v2529_v40 = vsel %vm2399_vm1, %v17010_v3, %v2528_v29  ;;  %v2543_v19 = vrot.slane %v17018_v45, 2  ;;  %v17020_v29 = vrot.slane %v17019_v36, 2  ;;  %v17021_v42 = vld [vmem:[#allocation67_spill] sm:$0xff]  ;;  %v17028_v45 = vld [vmem:[#allocation74_spill] sm:$0xff] }
 0x2ff   :  { %v2542_v23 = vsel %vm2399_vm1, %v17015_v10, %v17013_v5  ;;  %v12454_v37 = vpack.c.bf16 %v2529_v40, %v2527_v15  ;;  %v2534_v26 = vsel %vm2399_vm1, %v17017_v14, %v2533_v13  ;;  %v17022_v3 = vrot.slane %v17021_v42, 2  ;;  %v17024_v15 = vld [vmem:[#allocation106_spill] sm:$0xff]  ;;  %8418 = vmatmul.mubr.bf16.gmra.mrb[48].mxu1 %v17028_v45  ;;  %v17032_v42 = vld [vmem:[#allocation80_spill] sm:$0xff]  ;;  %v9494_v45 = vld [vmem:[#allocation2 + $0x10] sm:$0x3] }
 0x300   :  { %v12465_v35 = vpack.c.bf16 %v2534_v26, %v2532_v6  ;;  %v17023_v5 = vrot.slane %v17005_v51, 2  ;;  %v2548_v40 = vrot.slane %v17024_v15, 2  ;;  %v17025_v17 = vrot.slane %v11819_v8, 2  ;;  %v17026_v10 = vld [vmem:[#allocation70_spill] sm:$0xff]  ;;  %v17030_v26 = vld [vmem:[#allocation108_spill] sm:$0xff]  ;;  %v17034_v15 = vld [vmem:[#allocation85_spill] sm:$0xff] }
 0x301   :  { %17016 = vst [vmem:[#allocation55_spill] sm:$0xff] %v12454_v37  ;;  %v2547_v44 = vsel %vm2399_vm1, %v17022_v3, %v17020_v29  ;;  %v17027_v13 = vrot.slane %v17026_v10, 2  ;;  %v17029_v29 = vrot.slane %v17012_v58, 2  ;;  %v2553_v51 = vrot.slane %v17030_v26, 2  ;;  %8421 = vmatprep.mubr.bf16.mxu1 %v17034_v15  ;;  %v17080_v15 = vld [vmem:[#allocation69_spill] sm:$0xff] }
 0x302   :  { %v2539_v9 = vsel %vm2399_vm1, %v17023_v5, %v2538_v20  ;;  %v17031_v20 = vrot.slane %v11829_v25, 2  ;;  %v17033_v3 = vrot.slane %v17032_v42, 2 }
 0x303   :  { %v2552_v14 = vsel %vm2399_vm1, %v17027_v13, %v17025_v17  ;;  %v12477_v37 = vpack.c.bf16 %v2539_v9, %v2537_v33  ;;  %v2544_v6 = vsel %vm2399_vm1, %v17029_v29, %v2543_v19  ;;  %v17035_v17 = vrot.slane %v17019_v36, 2  ;;  %v17036_v9 = vld [vmem:[#allocation111_spill] sm:$0xff] }
 0x304   :  { %v2557_v5 = vsel %vm2399_vm1, %v17033_v3, %v17031_v20  ;;  %v12489_v10 = vpack.c.bf16 %v2544_v6, %v2542_v23  ;;  %v2558_v58 = vrot.slane %v17036_v9, 2  ;;  %v17037_v19 = vrot.slane %v12029_v62, 2  ;;  %v17040_v23 = vld [vmem:[#allocation9_spill] sm:$0xff]  ;;  %v17044_v9 = vld [vmem:[#allocation110_spill] sm:$0xff] }
 0x305   :  { %v2549_v33 = vsel %vm2399_vm1, %v17035_v17, %v2548_v40  ;;  %v17038_v13 = vrot.slane %v12027_v21, 2  ;;  %v17039_v20 = vrot.slane %v11819_v8, 2  ;;  %v3942_v6 = vrot.slane %v17040_v23, 2  ;;  %v17042_v17 = vld [vmem:[#allocation109_spill] sm:$0xff]  ;;  %v9445_v8 = vld [vmem:[%s16259_s4 + $0x80] sm:$0xff]  }
 0x306   :  { %v12500_v26 = vpack.c.bf16 %v2549_v33, %v2547_v44  ;;  %v12508_v36 = vpack.c.bf16 %v12284_v52, %v12282_v47  ;;  %v17041_v3 = vrot.slane %v11829_v25, 2  ;;  %8130 = vmatmul.mubr.bf16.gmra.mrb[112].mxu0 %v17042_v17  ;;  %8225 = vmatprep.subr.bf16.mxu0 %v9445_v8  ;;  %v17045_v25 = vld [vmem:[#allocation86_spill] sm:$0xff]  ;;  %v3503_v62 = vrot.slane %v12293_v31, 1  ;;  %v17050_v23 = vld [vmem:[#allocation27_spill] sm:$0xff] }
 0x307   :  { %v3941_v29 = vsel %vm2399_vm1, %v17038_v13, %v17037_v19  ;;  %v2554_v42 = vsel %vm2399_vm1, %v17039_v20, %v2553_v51  ;;  %v17043_v51 = vmov %v17037_v19  ;;  %8133 = vmatprep.mubr.bf16.mxu0 %v17044_v9  ;;  %8422 = vmatmul.mubr.bf16.gmra.mrb[52].mxu1 %v17045_v25  ;;  %v17047_v19 = vld [vmem:[#allocation112_spill] sm:$0xff]  ;;  %v17048_v13 = vld [vmem:[#allocation113_spill] sm:$0xff]  ;;  %v3501_v20 = vrot.slane %v12284_v52, 1  ;;  %v17054_v31 = vld [vmem:[#allocation118_spill] sm:$0xff] }
 0x308   :  { %v12510_v40 = vpack.c.bf16 %v2554_v42, %v2552_v14  ;;  %v2559_v21 = vsel %vm2399_vm1, %v17041_v3, %v2558_v58  ;;  %v3943_v33 = vsel %vm2399_vm1, %v17043_v51, %v3942_v6  ;;  %v17046_v58 = vld [vmem:[#allocation89_spill] sm:$0xff]  ;;  %v17049_v42 = vld [vmem:[#allocation90_spill] sm:$0xff]  ;;  %v17051_v3 = vld [vmem:[#allocation115_spill] sm:$0xff] }
 0x309   :  { %v12519_v44 = vpack.c.bf16 %v2559_v21, %v2557_v5  ;;  %v12525_v14 = vpack.c.bf16 %v3943_v33, %v3941_v29  ;;  %8425 = vmatprep.mubr.bf16.mxu1 %v17046_v58  ;;  %v3500_v5 = vrot.slane %v12282_v47, 1  ;;  %v3504_v6 = vsel %vm1451_vm0, %v3501_v20, %v3503_v62  ;;  %v17052_v21 = vld [vmem:[#allocation116_spill] sm:$0xff]  ;;  %v12544_v47 = vld [vmem:[#allocation2] sm:$0xff]  ;;  %v9490_v33 = vld [vmem:[#allocation2 + $0x18] sm:$0xff] }
 0x30a   :  { %v12548_v52 = vpack.c.bf16 %v12544_v47, %v12544_v47  ;;  %v17055_v62 = vld [vmem:[#allocation117_spill] sm:$0xff]  ;;  %v17067_v58 = vld [vmem:[#allocation47_spill] sm:$0xff] }
 0x30b   :  { %v3502_v29 = vsel %vm1451_vm0, %v3500_v5, %v3501_v20  ;;  %v9491_v5 = vld [vmem:[#allocation2 + $0x20] sm:$0xff]  ;;  %v17079_v25 = vld [vmem:[#allocation61_spill] sm:$0xff] }
 0x30c   :  { %v12540_v51 = vpack.c.bf16 %v3504_v6, %v3502_v29  ;;  %v12554_v20 = vpack.c.bf16 %v9491_v5, %v9490_v33  ;;  %v9447_v29 = vld [vmem:[%s16259_s4 + $0x90] sm:$0xff]   ;;  %v9448_v6 = vld [vmem:[%s16259_s4 + $0x98] sm:$0xff]  }
 0x30e   :  { %8134 = vmatmul.mubr.bf16.gmra.mrb[116].mxu0 %v17047_v19  ;;  %17053 = vst [vmem:[#allocation56_spill] sm:$0xff] %v12540_v51 }
 0x30f   :  { %8137 = vmatprep.mubr.bf16.mxu0 %v17048_v13  ;;  %8426 = vmatmul.mubr.bf16.gmra.mrb[56].mxu1 %v17049_v42 }
 0x310   :  { %8429 = vmatprep.mubr.bf16.mxu1 %v17050_v23  ;;  %v17066_v23 = vld [vmem:[#allocation44_spill] sm:$0xff] }
 0x316   :  { %8138 = vmatmul.mubr.bf16.gmra.mrb[120].mxu0 %v17051_v3 }
 0x317   :  { %8141 = vmatprep.mubr.bf16.mxu0 %v17052_v21  ;;  %8430 = vmatmul.mubr.bf16.gmra.mrb[60].mxu1 %v12540_v51 }
 0x318   :  { %8433 = vmatprep.mubr.bf16.mxu1 %v11924_v0  ;;  %v9446_v0 = vld [vmem:[%s16259_s4 + $0x88] sm:$0xff]  }
 0x31e   :  { %8142 = vmatmul.mubr.bf16.gmra.mrb[124].mxu0 %v17054_v31 }
 0x31f   :  { %8161 = vmatprep.mubr.bf16.mxu0 %v12548_v52  ;;  %8434 = vmatmul.mubr.bf16.gmra.mrb[0].mxu1 %v11926_v30  ;;  %v17057_v30 = vld [vmem:[#allocation21_spill] sm:$0xff] }
 0x320   :  { %8437 = vmatprep.mubr.bf16.mxu1 %v11959_v39  ;;  %v17056_v39 = vld [vmem:[#allocation119_spill] sm:$0xff] }
 0x326   :  { %8162 = vmatmul.mubr.bf16.vlgmr.msra.gmra.mrb[64].mxu0 %v12554_v20 }
 0x327   :  { %8165 = vmatprep.mubr.bf16.mxu0 %v17055_v62  ;;  %8226 = vmatpush3.bf16.msra.mxu0 %v9445_v8  ;;  %v9450_v8 = vld [vmem:[%s16259_s4 + $0xa0] sm:$0xff]  }
 0x328   :  { %8227 = vmatprep.subr.bf16.mxu0 %v9446_v0  ;;  %8438 = vmatmul.mubr.bf16.gmra.mrb[4].mxu1 %v11977_v61  ;;  %v17059_v61 = vld [vmem:[#allocation19_spill] sm:$0xff] }
 0x329   :  { %8441 = vmatprep.mubr.bf16.mxu1 %v11979_v12  ;;  %v17058_v12 = vld [vmem:[#allocation7_spill] sm:$0xff] }
 0x32b   :  { %8228 = vmatpush3.bf16.msra.mxu0 %v9446_v0  ;;  %v9451_v0 = vld [vmem:[%s16259_s4 + $0xa8] sm:$0xff]  }
 0x32c   :  { %8229 = vmatprep.subr.bf16.mxu0 %v9447_v29 }
 0x32e   :  { %8166 = vmatmul.mubr.bf16.gmra.mrb[68].mxu0 %v17056_v39 }
 0x32f   :  { %8169 = vmatprep.mubr.bf16.mxu0 %v17057_v30  ;;  %8230 = vmatpush3.bf16.msra.mxu0 %v9447_v29  ;;  %v9452_v29 = vld [vmem:[%s16259_s4 + $0xb0] sm:$0xff]  }
 0x330   :  { %8231 = vmatprep.subr.bf16.mxu0 %v9448_v6  ;;  %8442 = vmatmul.mubr.bf16.gmra.mrb[8].mxu1 %v11991_v4  ;;  %v17061_v4 = vld [vmem:[#allocation11_spill] sm:$0xff] }
 0x331   :  { %8445 = vmatprep.mubr.bf16.mxu1 %v17002_v22  ;;  %v17060_v22 = vld [vmem:[#allocation14_spill] sm:$0xff] }
 0x333   :  { %8232 = vmatpush3.bf16.msra.mxu0 %v9448_v6  ;;  %v9453_v6 = vld [vmem:[%s16259_s4 + $0xb8] sm:$0xff]  }
 0x334   :  { %8233 = vmatprep.subr.bf16.mxu0 %v9450_v8 }
 0x336   :  { %8170 = vmatmul.mubr.bf16.gmra.mrb[72].mxu0 %v17058_v12 }
 0x337   :  { %8173 = vmatprep.mubr.bf16.mxu0 %v17059_v61  ;;  %8234 = vmatpush3.bf16.msra.mxu0 %v9450_v8  ;;  %v12596_v8 = vld [vmem:[%s16259_s4 + $0xc0] sm:$0xff]  }
 0x338   :  { %8235 = vmatprep.subr.bf16.mxu0 %v9451_v0  ;;  %8446 = vmatmul.mubr.bf16.gmra.mrb[12].mxu1 %v17009_v11  ;;  %v9493_v11 = vld [vmem:[#allocation2 + $0x28] sm:$0x3] }
 0x339   :  { %8449 = vmatprep.mubr.bf16.mxu1 %v17042_v17  ;;  %v17063_v17 = vld [vmem:[#allocation29_spill] sm:$0xff]  ;;  %v2408_v51 = vrot.slane %v9493_v11, 2  ;;  %v9443_v11 = vld [vmem:[%s16259_s4 + $0x188] sm:$0xff]  }
 0x33b   :  { %8236 = vmatpush3.bf16.msra.mxu0 %v9451_v0  ;;  %v17062_v0 = vld [vmem:[#allocation28_spill] sm:$0xff] }
 0x33c   :  { %8237 = vmatprep.subr.bf16.mxu0 %v9452_v29 }
 0x33e   :  { %8174 = vmatmul.mubr.bf16.gmra.mrb[76].mxu0 %v17060_v22 }
 0x33f   :  { %8177 = vmatprep.mubr.bf16.mxu0 %v17061_v4  ;;  %8238 = vmatpush3.bf16.msra.mxu0 %v9452_v29  ;;  %v17064_v29 = vld [vmem:[#allocation32_spill] sm:$0xff] }
 0x340   :  { %8239 = vmatprep.subr.bf16.mxu0 %v9453_v6  ;;  %8450 = vmatmul.mubr.bf16.gmra.mrb[16].mxu1 %v17044_v9  ;;  %v17065_v9 = vld [vmem:[#allocation34_spill] sm:$0xff] }
 0x341   :  { %8453 = vmatprep.mubr.bf16.mxu1 %v17047_v19  ;;  %v2406_v19 = vrot.slane %v9491_v5, 2  ;;  %v17071_v5 = vld [vmem:[#allocation5_spill] sm:$0xff] }
 0x343   :  { %8240 = vmatpush3.bf16.msra.mxu0 %v9453_v6  ;;  %v2405_v6 = vrot.slane %v9490_v33, 2  ;;  %v17068_v33 = vld [vmem:[#allocation49_spill] sm:$0xff] }
 0x344   :  { %8305 = vmatprep.subr.bf16.mxu0 %v12596_v8 }
 0x345   :  { %v2407_v42 = vsel %vm2399_vm1, %v2405_v6, %v2406_v19  ;;  %v17072_v6 = vld [vmem:[#allocation6_spill] sm:$0xff] }
 0x346   :  { %8178 = vmatmul.mubr.bf16.gmra.mrb[80].mxu0 %v17062_v0 }
 0x347   :  { %8181 = vmatprep.mubr.bf16.mxu0 %v17063_v17 }
 0x348   :  { %8454 = vmatmul.mubr.bf16.gmra.mrb[20].mxu1 %v17048_v13  ;;  %v2409_v13 = vsel %vm2399_vm1, %v2406_v19, %v2408_v51  ;;  %v9444_v19 = vld [vmem:[%s16259_s4 + $0x190] sm:$0xff]   ;;  %v9449_v51 = vld [vmem:[%s16259_s4 + $0x198] sm:$0xff]  }
 0x349   :  { %8457 = vmatprep.mubr.bf16.mxu1 %v17051_v3  ;;  %v12611_v3 = vpack.c.bf16 %v2409_v13, %v2407_v42  ;;  %v17069_v13 = vld [vmem:[#allocation16_spill] sm:$0xff]  ;;  %v17070_v42 = vld [vmem:[#allocation17_spill] sm:$0xff] }
 0x34e   :  { %8182 = vmatmul.mubr.bf16.gmra.mrb[84].mxu0 %v17064_v29 }
 0x34f   :  { %8185 = vmatprep.mubr.bf16.mxu0 %v17065_v9 }
 0x350   :  { %8458 = vmatmul.mubr.bf16.gmra.mrb[24].mxu1 %v17052_v21  ;;  %v17076_v21 = vld [vmem:[#allocation41_spill] sm:$0xff] }
 0x351   :  { %8461 = vmatprep.mubr.bf16.mxu1 %v17054_v31  ;;  %v17075_v31 = vld [vmem:[#allocation33_spill] sm:$0xff] }
 0x356   :  { %8186 = vmatmul.mubr.bf16.gmra.mrb[88].mxu0 %v17066_v23 }
 0x357   :  { %8189 = vmatprep.mubr.bf16.mxu0 %v17067_v58 }
 0x358   :  { %8462 = vmatmul.mubr.bf16.gmra.mrb[28].mxu1 %v12191_v63  ;;  %v17074_v63 = vld [vmem:[#allocation30_spill] sm:$0xff] }
 0x359   :  { %8481 = vmatprep.mubr.bf16.mxu1 %v12611_v3 }
 0x35e   :  { %8190 = vmatmul.mubr.bf16.gmra.mrb[92].mxu0 %v17068_v33 }
 0x35f   :  { %8193 = vmatprep.mubr.bf16.mxu0 %v12548_v52 }
 0x360   :  { %8482 = vmatmul.mubr.bf16.vlgmr.msra.gmra.mrb[32].mxu1 %v12193_v28 }
 0x361   :  { %8546 = vmatpush3.bf16.msra.mxu1 %v12405_v60  ;;  %8485 = vmatprep.mubr.bf16.mxu1 %v12213_v16  ;;  %v9454_v60 = vld [vmem:[%s16259_s4 + $0x1a0] sm:$0xff]  }
 0x362   :  { %8547 = vmatprep.subr.bf16.mxu1 %v9443_v11 }
 0x365   :  { %8548 = vmatpush3.bf16.msra.mxu1 %v9443_v11  ;;  %v9455_v11 = vld [vmem:[%s16259_s4 + $0x1a8] sm:$0xff]  }
 0x366   :  { %8194 = vmatmul.mubr.bf16.gmra.mrb[96].mxu0 %v17069_v13  ;;  %8549 = vmatprep.subr.bf16.mxu1 %v9444_v19  ;;  %v17073_v13 = vld [vmem:[#allocation3_spill] sm:$0xff] }
 0x367   :  { %8197 = vmatprep.mubr.bf16.mxu0 %v17070_v42 }
 0x368   :  { %8486 = vmatmul.mubr.bf16.gmra.mrb[36].mxu1 %v12218_v34 }
 0x369   :  { %8489 = vmatprep.mubr.bf16.mxu1 %v12224_v27  ;;  %8550 = vmatpush3.bf16.msra.mxu1 %v9444_v19  ;;  %v9456_v19 = vld [vmem:[%s16259_s4 + $0x1b0] sm:$0xff]  }
 0x36a   :  { %8551 = vmatprep.subr.bf16.mxu1 %v9449_v51 }
 0x36d   :  { %8552 = vmatpush3.bf16.msra.mxu1 %v9449_v51  ;;  %v9457_v51 = vld [vmem:[%s16259_s4 + $0x1b8] sm:$0xff]  }
 0x36e   :  { %8198 = vmatmul.mubr.bf16.gmra.mrb[100].mxu0 %v17071_v5  ;;  %8553 = vmatprep.subr.bf16.mxu1 %v9454_v60 }
 0x36f   :  { %8201 = vmatprep.mubr.bf16.mxu0 %v17072_v6 }
 0x370   :  { %8490 = vmatmul.mubr.bf16.gmra.mrb[40].mxu1 %v12237_v2 }
 0x371   :  { %8493 = vmatprep.mubr.bf16.mxu1 %v12242_v38  ;;  %8554 = vmatpush3.bf16.msra.mxu1 %v9454_v60  ;;  %v12656_v60 = vld [vmem:[%s16259_s4 + $0x1c0] sm:$0xff]  }
 0x372   :  { %8555 = vmatprep.subr.bf16.mxu1 %v9455_v11 }
 0x375   :  { %8556 = vmatpush3.bf16.msra.mxu1 %v9455_v11  ;;  %v17077_v11 = vld [vmem:[#allocation46_spill] sm:$0xff] }
 0x376   :  { %8202 = vmatmul.mubr.bf16.gmra.mrb[104].mxu0 %v17073_v13  ;;  %8557 = vmatprep.subr.bf16.mxu1 %v9456_v19 }
 0x377   :  { %8205 = vmatprep.mubr.bf16.mxu0 %v17074_v63 }
 0x378   :  { %8494 = vmatmul.mubr.bf16.gmra.mrb[44].mxu1 %v12253_v7 }
 0x379   :  { %8497 = vmatprep.mubr.bf16.mxu1 %v12265_v48  ;;  %8558 = vmatpush3.bf16.msra.mxu1 %v9456_v19  ;;  %v17078_v19 = vld [vmem:[#allocation52_spill] sm:$0xff] }
 0x37a   :  { %8559 = vmatprep.subr.bf16.mxu1 %v9457_v51 }
 0x37d   :  { %8560 = vmatpush3.bf16.msra.mxu1 %v9457_v51  ;;  %v12672_v51 = vrot.slane %v12544_v47, 2 }
 0x37e   :  { %8206 = vmatmul.mubr.bf16.gmra.mrb[108].mxu0 %v17075_v31  ;;  %8625 = vmatprep.subr.bf16.mxu1 %v12656_v60 }
 0x37f   :  { %8209 = vmatprep.mubr.bf16.mxu0 %v17076_v21  ;;  %v2403_v21 = vrot.slane %v9494_v45, 2  ;;  %v9495_v45 = vld [vmem:[%s16259_s4 + $0xc8] sm:$0xff]  }
 0x380   :  { %8498 = vmatmul.mubr.bf16.gmra.mrb[48].mxu1 %v12271_v55 }
 0x381   :  { %8501 = vmatprep.mubr.bf16.mxu1 %v12277_v18  ;;  %v2404_v31 = vsel %vm2399_vm1, %v12672_v51, %v2403_v21  ;;  %v9498_v21 = vld [vmem:[%s16259_s4 + $0xe0] sm:$0xff]  }
 0x386   :  { %8210 = vmatmul.mubr.bf16.gmra.mrb[112].mxu0 %v17077_v11  ;;  %v17081_v11 = vld [vmem:[#allocation75_spill] sm:$0xff] }
 0x387   :  { %8213 = vmatprep.mubr.bf16.mxu0 %v17078_v19  ;;  %v17082_v19 = vld [vmem:[#allocation82_spill] sm:$0xff] }
 0x388   :  { %8502 = vmatmul.mubr.bf16.gmra.mrb[52].mxu1 %v12295_v49 }
 0x389   :  { %8505 = vmatprep.mubr.bf16.mxu1 %v12306_v53 }
 0x38e   :  { %8214 = vmatmul.mubr.bf16.gmra.mrb[116].mxu0 %v17079_v25  ;;  %v17083_v25 = vld [vmem:[#allocation87_spill] sm:$0xff] }
 0x38f   :  { %8217 = vmatprep.mubr.bf16.mxu0 %v17080_v15  ;;  %v2624_v15 = vpack.c.bf16 %v2404_v31, %v12672_v51  ;;  %v9499_v31 = vld [vmem:[%s16259_s4 + $0xe8] sm:$0xff]  }
 0x390   :  { %8506 = vmatmul.mubr.bf16.gmra.mrb[56].mxu1 %v12314_v24 }
 0x391   :  { %8509 = vmatprep.mubr.bf16.mxu1 %v12319_v32 }
 0x396   :  { %8218 = vmatmul.mubr.bf16.gmra.mrb[120].mxu0 %v17081_v11 }
 0x397   :  { %8221 = vmatprep.mubr.bf16.mxu0 %v17082_v19 }
 0x398   :  { %8510 = vmatmul.mubr.bf16.gmra.mrb[60].mxu1 %v12342_v57 }
 0x399   :  { %8513 = vmatprep.mubr.bf16.mxu1 %v12356_v43 }
 0x39e   :  { %8222 = vmatmul.mubr.bf16.gmra.mrb[124].mxu0 %v17083_v25 }
 0x39f   :  { %8241 = vmatprep.mubr.bf16.mxu0 %v2624_v15  ;;  %v9496_v15 = vld [vmem:[%s16259_s4 + $0xd0] sm:$0xff]  }
 0x3a0   :  { %8514 = vmatmul.mubr.bf16.gmra.mrb[0].mxu1 %v12367_v54 }
 0x3a1   :  { %8517 = vmatprep.mubr.bf16.mxu1 %v12379_v1 }
 0x3a6   :  { %8242 = vmatmul.mubr.bf16.vlgmr.msra.gmra.mrb[64].mxu0 %v12611_v3  ;;  %v9497_v3 = vld [vmem:[%s16259_s4 + $0xd8] sm:$0xff]  }
 0x3a7   :  { %8245 = vmatprep.mubr.bf16.mxu0 %v12193_v28  ;;  %8306 = vmatpush3.bf16.msra.mxu0 %v12596_v8  ;;  %v17084_v8 = vld [vmem:[#allocation55_spill] sm:$0xff] }
 0x3a8   :  { %8307 = vmatprep.subr.bf16.mxu0 %v9495_v45  ;;  %8518 = vmatmul.mubr.bf16.gmra.mrb[4].mxu1 %v12391_v41 }
 0x3a9   :  { %8521 = vmatprep.mubr.bf16.mxu1 %v12407_v46 }
 0x3ab   :  { %8308 = vmatpush3.bf16.msra.mxu0 %v9495_v45  ;;  %v9500_v45 = vld [vmem:[%s16259_s4 + $0xf0] sm:$0xff]  }
 0x3ac   :  { %8309 = vmatprep.subr.bf16.mxu0 %v9496_v15 }
 0x3ae   :  { %8246 = vmatmul.mubr.bf16.gmra.mrb[68].mxu0 %v12213_v16 }
 0x3af   :  { %8249 = vmatprep.mubr.bf16.mxu0 %v12218_v34  ;;  %8310 = vmatpush3.bf16.msra.mxu0 %v9496_v15  ;;  %v9501_v15 = vld [vmem:[%s16259_s4 + $0xf8] sm:$0xff]  }
 0x3b0   :  { %8311 = vmatprep.subr.bf16.mxu0 %v9497_v3  ;;  %8522 = vmatmul.mubr.bf16.gmra.mrb[8].mxu1 %v12418_v56 }
 0x3b1   :  { %8525 = vmatprep.mubr.bf16.mxu1 %v12430_v50 }
 0x3b3   :  { %8312 = vmatpush3.bf16.msra.mxu0 %v9497_v3  ;;  %v9502_v3 = vld [vmem:[#allocation2 + $0x1c0] sm:$0x3] }
 0x3b4   :  { %8313 = vmatprep.subr.bf16.mxu0 %v9498_v21 }
 0x3b6   :  { %8250 = vmatmul.mubr.bf16.gmra.mrb[72].mxu0 %v12224_v27 }
 0x3b7   :  { %8253 = vmatprep.mubr.bf16.mxu0 %v12237_v2  ;;  %8314 = vmatpush3.bf16.msra.mxu0 %v9498_v21  ;;  %v2483_v21 = vrot.slane %v9502_v3, 2  ;;  %v9460_v3 = vld [vmem:[%s16259_s4 + $0x1d0] sm:$0xff]  }
 0x3b8   :  { %8315 = vmatprep.subr.bf16.mxu0 %v9499_v31  ;;  %8526 = vmatmul.mubr.bf16.gmra.mrb[12].mxu1 %v12442_v59 }
 0x3b9   :  { %8529 = vmatprep.mubr.bf16.mxu1 %v17084_v8 }
 0x3bb   :  { %8316 = vmatpush3.bf16.msra.mxu0 %v9499_v31  ;;  %v2484_v31 = vsel %vm2399_vm1, %v12672_v51, %v2483_v21  ;;  %v9461_v21 = vld [vmem:[%s16259_s4 + $0x1d8] sm:$0xff]  }
 0x3bc   :  { %8317 = vmatprep.subr.bf16.mxu0 %v9500_v45 }
 0x3be   :  { %8254 = vmatmul.mubr.bf16.gmra.mrb[76].mxu0 %v12242_v38 }
 0x3bf   :  { %8257 = vmatprep.mubr.bf16.mxu0 %v12253_v7  ;;  %8318 = vmatpush3.bf16.msra.mxu0 %v9500_v45  ;;  %v2640_v45 = vpack.c.bf16 %v2484_v31, %v12672_v51  ;;  %v9464_v31 = vld [vmem:[%s16259_s4 + $0x1f0] sm:$0xff]  }
 0x3c0   :  { %8319 = vmatprep.subr.bf16.mxu0 %v9501_v15  ;;  %8530 = vmatmul.mubr.bf16.gmra.mrb[16].mxu1 %v12465_v35 }
 0x3c1   :  { %8533 = vmatprep.mubr.bf16.mxu1 %v12477_v37 }
 0x3c3   :  { %8320 = vmatpush3.bf16.msra.mxu0 %v9501_v15  ;;  %v9459_v15 = vld [vmem:[%s16259_s4 + $0x1c8] sm:$0xff]  }
 0x3c6   :  { %8258 = vmatmul.mubr.bf16.gmra.mrb[80].mxu0 %v12265_v48 }
 0x3c7   :  { %8261 = vmatprep.mubr.bf16.mxu0 %v12271_v55 }
 0x3c8   :  { %8534 = vmatmul.mubr.bf16.gmra.mrb[20].mxu1 %v12489_v10 }
 0x3c9   :  { %8537 = vmatprep.mubr.bf16.mxu1 %v12500_v26 }
 0x3ce   :  { %8262 = vmatmul.mubr.bf16.gmra.mrb[84].mxu0 %v12277_v18 }
 0x3cf   :  { %8265 = vmatprep.mubr.bf16.mxu0 %v12295_v49 }
 0x3d0   :  { %8538 = vmatmul.mubr.bf16.gmra.mrb[24].mxu1 %v12510_v40 }
 0x3d1   :  { %8541 = vmatprep.mubr.bf16.mxu1 %v12519_v44 }
 0x3d6   :  { %8266 = vmatmul.mubr.bf16.gmra.mrb[88].mxu0 %v12306_v53 }
 0x3d7   :  { %8269 = vmatprep.mubr.bf16.mxu0 %v12314_v24 }
 0x3d8   :  { %8542 = vmatmul.mubr.bf16.gmra.mrb[28].mxu1 %v12525_v14 }
 0x3d9   :  { %8561 = vmatprep.mubr.bf16.mxu1 %v17055_v62 }
 0x3de   :  { %8270 = vmatmul.mubr.bf16.gmra.mrb[92].mxu0 %v12319_v32 }
 0x3df   :  { %8273 = vmatprep.mubr.bf16.mxu0 %v2640_v45  ;;  %v9465_v45 = vld [vmem:[%s16259_s4 + $0x1f8] sm:$0xff]  }
 0x3e0   :  { %8562 = vmatmul.mubr.bf16.vlgmr.msra.gmra.mrb[32].mxu1 %v17056_v39 }
 0x3e1   :  { %8626 = vmatpush3.bf16.msra.mxu1 %v12656_v60  ;;  %8565 = vmatprep.mubr.bf16.mxu1 %v17057_v30  ;;  %v9462_v60 = vld [vmem:[%s16259_s4 + $0x1e0] sm:$0xff]  }
 0x3e2   :  { %8627 = vmatprep.subr.bf16.mxu1 %v9459_v15 }
 0x3e5   :  { %8628 = vmatpush3.bf16.msra.mxu1 %v9459_v15  ;;  %v9466_v15 = vld [vmem:[%s16259_s4 + $0x200] sm:$0xff]  }
 0x3e6   :  { %8274 = vmatmul.mubr.bf16.gmra.mrb[96].mxu0 %v12356_v43  ;;  %8629 = vmatprep.subr.bf16.mxu1 %v9460_v3  ;;  %v9463_v43 = vld [vmem:[%s16259_s4 + $0x1e8] sm:$0xff]  }
 0x3e7   :  { %8277 = vmatprep.mubr.bf16.mxu0 %v12367_v54 }
 0x3e8   :  { %8566 = vmatmul.mubr.bf16.gmra.mrb[36].mxu1 %v17058_v12 }
 0x3e9   :  { %8569 = vmatprep.mubr.bf16.mxu1 %v17059_v61  ;;  %8630 = vmatpush3.bf16.msra.mxu1 %v9460_v3  ;;  %v17086_v3 = vld [vmem:[#allocation41_spill] sm:$0xff] }
 0x3ea   :  { %8631 = vmatprep.subr.bf16.mxu1 %v9461_v21 }
 0x3ed   :  { %8632 = vmatpush3.bf16.msra.mxu1 %v9461_v21  ;;  %v17100_v21 = vld [vmem:[#allocation74_spill] sm:$0xff] }
 0x3ee   :  { %8278 = vmatmul.mubr.bf16.gmra.mrb[100].mxu0 %v12379_v1  ;;  %8633 = vmatprep.subr.bf16.mxu1 %v9462_v60 }
 0x3ef   :  { %8281 = vmatprep.mubr.bf16.mxu0 %v12391_v41 }
 0x3f0   :  { %8570 = vmatmul.mubr.bf16.gmra.mrb[40].mxu1 %v17060_v22 }
 0x3f1   :  { %8573 = vmatprep.mubr.bf16.mxu1 %v17061_v4  ;;  %8634 = vmatpush3.bf16.msra.mxu1 %v9462_v60  ;;  %v17101_v60 = vld [vmem:[#allocation85_spill] sm:$0xff] }
 0x3f2   :  { %8635 = vmatprep.subr.bf16.mxu1 %v9463_v43 }
 0x3f5   :  { %8636 = vmatpush3.bf16.msra.mxu1 %v9463_v43  ;;  %v17102_v43 = vld [vmem:[#allocation86_spill] sm:$0xff] }
 0x3f6   :  { %8282 = vmatmul.mubr.bf16.gmra.mrb[104].mxu0 %v12407_v46  ;;  %8637 = vmatprep.subr.bf16.mxu1 %v9464_v31 }
 0x3f7   :  { %8285 = vmatprep.mubr.bf16.mxu0 %v12418_v56 }
 0x3f8   :  { %8574 = vmatmul.mubr.bf16.gmra.mrb[44].mxu1 %v17062_v0 }
 0x3f9   :  { %8577 = vmatprep.mubr.bf16.mxu1 %v17063_v17  ;;  %8638 = vmatpush3.bf16.msra.mxu1 %v9464_v31  ;;  %v17103_v31 = vld [vmem:[#allocation89_spill] sm:$0xff] }
 0x3fa   :  { %8639 = vmatprep.subr.bf16.mxu1 %v9465_v45 }
 0x3fd   :  { %8640 = vmatpush3.bf16.msra.mxu1 %v9465_v45  ;;  %v17104_v45 = vld [vmem:[#allocation90_spill] sm:$0xff] }
 0x3fe   :  { %8286 = vmatmul.mubr.bf16.gmra.mrb[108].mxu0 %v12430_v50  ;;  %8705 = vmatprep.subr.bf16.mxu1 %v9466_v15 }
 0x3ff   :  { %8289 = vmatprep.mubr.bf16.mxu0 %v12442_v59 }
 0x400   :  { %8578 = vmatmul.mubr.bf16.gmra.mrb[48].mxu1 %v17064_v29 }
 0x401   :  { %8581 = vmatprep.mubr.bf16.mxu1 %v17065_v9 }
 0x406   :  { %8290 = vmatmul.mubr.bf16.gmra.mrb[112].mxu0 %v17084_v8 }
 0x407   :  { %8293 = vmatprep.mubr.bf16.mxu0 %v12465_v35 }
 0x408   :  { %8582 = vmatmul.mubr.bf16.gmra.mrb[52].mxu1 %v17066_v23 }
 0x409   :  { %8585 = vmatprep.mubr.bf16.mxu1 %v17067_v58 }
 0x40e   :  { %8294 = vmatmul.mubr.bf16.gmra.mrb[116].mxu0 %v12477_v37 }
 0x40f   :  { %8297 = vmatprep.mubr.bf16.mxu0 %v12489_v10 }
 0x410   :  { %8586 = vmatmul.mubr.bf16.gmra.mrb[56].mxu1 %v17068_v33 }
 0x411   :  { %8589 = vmatprep.mubr.bf16.mxu1 %v12508_v36 }
 0x416   :  { %8298 = vmatmul.mubr.bf16.gmra.mrb[120].mxu0 %v12500_v26 }
 0x417   :  { %8301 = vmatprep.mubr.bf16.mxu0 %v12510_v40 }
 0x418   :  { %8590 = vmatmul.mubr.bf16.gmra.mrb[60].mxu1 %v12548_v52 }
 0x419   :  { %8593 = vmatprep.mubr.bf16.mxu1 %v17070_v42  ;;  %v17085_v42 = vld [vmem:[#allocation33_spill] sm:$0xff] }
 0x41e   :  { %8302 = vmatmul.mubr.bf16.gmra.mrb[124].mxu0 %v12519_v44 }
 0x41f   :  { %8321 = vmatprep.mubr.bf16.mxu0 %v12554_v20  ;;  %v17087_v20 = vld [vmem:[#allocation46_spill] sm:$0xff] }
 0x420   :  { %8594 = vmatmul.mubr.bf16.gmra.mrb[0].mxu1 %v17071_v5  ;;  %v17097_v5 = vld [vmem:[#allocation57_spill] sm:$0xff] }
 0x421   :  { %8597 = vmatprep.mubr.bf16.mxu1 %v17072_v6  ;;  %v17098_v6 = vld [vmem:[#allocation58_spill] sm:$0xff] }
 0x426   :  { %8322 = vmatmul.mubr.bf16.vlgmr.msra.gmra.mrb[64].mxu0 %v17055_v62  ;;  %v17088_v62 = vld [vmem:[#allocation52_spill] sm:$0xff] }
 0x427   :  { %8325 = vmatprep.mubr.bf16.mxu0 %v17056_v39  ;;  %v17089_v39 = vld [vmem:[#allocation61_spill] sm:$0xff] }
 0x428   :  { %8598 = vmatmul.mubr.bf16.gmra.mrb[4].mxu1 %v17073_v13  ;;  %v9472_v13 = vld [vmem:[%s16259_s4 + $0x230] sm:$0xff]  }
 0x429   :  { %8601 = vmatprep.mubr.bf16.mxu1 %v17074_v63  ;;  %v12828_v63 = vld [vmem:[#allocation2 + $0x358] sm:$0x3] }
 0x42e   :  { %8326 = vmatmul.mubr.bf16.gmra.mrb[68].mxu0 %v17057_v30  ;;  %v17090_v30 = vld [vmem:[#allocation69_spill] sm:$0xff] }
 0x42f   :  { %8329 = vmatprep.mubr.bf16.mxu0 %v17058_v12  ;;  %v12825_v12 = vrot.slane %v12544_v47, 1  ;;  %v9469_v47 = vld [vmem:[%s16259_s4 + $0x218] sm:$0xff]  }
 0x430   :  { %8602 = vmatmul.mubr.bf16.gmra.mrb[8].mxu1 %v17085_v42 }
 0x431   :  { %8605 = vmatprep.mubr.bf16.mxu1 %v17086_v3  ;;  %v17105_v3 = vld [vmem:[#allocation27_spill] sm:$0xff] }
 0x436   :  { %8330 = vmatmul.mubr.bf16.gmra.mrb[72].mxu0 %v17059_v61  ;;  %v17091_v61 = vld [vmem:[#allocation114_spill] sm:$0xff] }
 0x437   :  { %8333 = vmatprep.mubr.bf16.mxu0 %v17060_v22  ;;  %v4802_v22 = vrot.slane %v12828_v63, 1 }
 0x438   :  { %8606 = vmatmul.mubr.bf16.gmra.mrb[12].mxu1 %v17087_v20  ;;  %v17106_v20 = vld [vmem:[#allocation56_spill] sm:$0xff] }
 0x439   :  { %8609 = vmatprep.mubr.bf16.mxu1 %v17088_v62 }
 0x43e   :  { %8334 = vmatmul.mubr.bf16.gmra.mrb[76].mxu0 %v17061_v4  ;;  %v17092_v4 = vld [vmem:[#allocation20_spill] sm:$0xff] }
 0x43f   :  { %8337 = vmatprep.mubr.bf16.mxu0 %v17062_v0  ;;  %v17096_v0 = vld [vmem:[#allocation45_spill] sm:$0xff] }
 0x440   :  { %8610 = vmatmul.mubr.bf16.gmra.mrb[16].mxu1 %v17089_v39 }
 0x441   :  { %8613 = vmatprep.mubr.bf16.mxu1 %v17090_v30  ;;  %v17107_v30 = vld [vmem:[#allocation95_spill] sm:$0xff] }
 0x446   :  { %8338 = vmatmul.mubr.bf16.gmra.mrb[80].mxu0 %v17063_v17  ;;  %v12834_v17 = vsel %vm1451_vm0, %v12825_v12, %v4802_v22  ;;  %v17110_v22 = vld [vmem:[#allocation101_spill] sm:$0xff] }
 0x447   :  { %8341 = vmatprep.mubr.bf16.mxu0 %v17064_v29  ;;  %v9470_v29 = vld [vmem:[%s16259_s4 + $0x220] sm:$0xff]  }
 0x448   :  { %8614 = vmatmul.mubr.bf16.gmra.mrb[20].mxu1 %v17081_v11  ;;  %v9473_v11 = vld [vmem:[%s16259_s4 + $0x238] sm:$0xff]  }
 0x449   :  { %8617 = vmatprep.mubr.bf16.mxu1 %v17082_v19  ;;  %v17099_v19 = vld [vmem:[#allocation73_spill] sm:$0xff] }
 0x44e   :  { %8342 = vmatmul.mubr.bf16.gmra.mrb[84].mxu0 %v17065_v9  ;;  %v9467_v9 = vld [vmem:[%s16259_s4 + $0x208] sm:$0xff]  }
 0x44f   :  { %8345 = vmatprep.mubr.bf16.mxu0 %v17066_v23  ;;  %v17094_v23 = vld [vmem:[#allocation26_spill] sm:$0xff] }
 0x450   :  { %8618 = vmatmul.mubr.bf16.gmra.mrb[24].mxu1 %v17083_v25  ;;  %v4809_v25 = vpack.c.bf16 %v12834_v17, %v12825_v12 }
 0x451   :  { %8621 = vmatprep.mubr.bf16.mxu1 %v17091_v61  ;;  %v17108_v61 = vld [vmem:[#allocation97_spill] sm:$0xff] }
 0x456   :  { %8346 = vmatmul.mubr.bf16.gmra.mrb[88].mxu0 %v17067_v58  ;;  %v17093_v58 = vld [vmem:[#allocation15_spill] sm:$0xff] }
 0x457   :  { %8349 = vmatprep.mubr.bf16.mxu0 %v17068_v33  ;;  %v9471_v33 = vld [vmem:[%s16259_s4 + $0x228] sm:$0xff]  }
 0x458   :  { %8622 = vmatmul.mubr.bf16.gmra.mrb[28].mxu1 %v12548_v52  ;;  %v17095_v52 = vld [vmem:[#allocation40_spill] sm:$0xff] }
 0x459   :  { %8641 = vmatprep.mubr.bf16.mxu1 %v17092_v4  ;;  %v17109_v4 = vld [vmem:[#allocation100_spill] sm:$0xff] }
 0x45e   :  { %8350 = vmatmul.mubr.bf16.gmra.mrb[92].mxu0 %v12508_v36  ;;  %v9468_v36 = vld [vmem:[%s16259_s4 + $0x210] sm:$0xff]  }
 0x460   :  { %8642 = vmatmul.mubr.bf16.vlgmr.msra.gmra.mrb[32].mxu1 %v17093_v58  ;;  %v17112_v58 = vld [vmem:[#allocation105_spill] sm:$0xff] }
 0x461   :  { %8706 = vmatpush3.bf16.msra.mxu1 %v9466_v15  ;;  %8645 = vmatprep.mubr.bf16.mxu1 %v17094_v23  ;;  %v12871_v15 = vld [vmem:[#allocation2 + $0x1a8] sm:$0x3]  ;;  %v17113_v23 = vld [vmem:[#allocation107_spill] sm:$0xff] }
 0x462   :  { %8707 = vmatprep.subr.bf16.mxu1 %v9467_v9  ;;  %v4797_v42 = vrot.slane %v12871_v15, 1 }
 0x464   :  { %v4798_v62 = vsel %vm1451_vm0, %v12825_v12, %v4797_v42  ;;  %v17119_v42 = vld [vmem:[#allocation116_spill] sm:$0xff] }
 0x465   :  { %8708 = vmatpush3.bf16.msra.mxu1 %v9467_v9  ;;  %v4808_v39 = vpack.c.bf16 %v4798_v62, %v12825_v12  ;;  %v17111_v9 = vld [vmem:[#allocation104_spill] sm:$0xff] }
 0x466   :  { %8709 = vmatprep.subr.bf16.mxu1 %v9468_v36 }
 0x468   :  { %8646 = vmatmul.mubr.bf16.gmra.mrb[36].mxu1 %v17095_v52  ;;  %v17114_v52 = vld [vmem:[#allocation109_spill] sm:$0xff] }
 0x469   :  { %8649 = vmatprep.mubr.bf16.mxu1 %v17096_v0  ;;  %8710 = vmatpush3.bf16.msra.mxu1 %v9468_v36 }
 0x46a   :  { %8711 = vmatprep.subr.bf16.mxu1 %v9469_v47 }
 0x46d   :  { %8712 = vmatpush3.bf16.msra.mxu1 %v9469_v47 }
 0x46e   :  { %8713 = vmatprep.subr.bf16.mxu1 %v9470_v29 }
 0x470   :  { %8650 = vmatmul.mubr.bf16.gmra.mrb[40].mxu1 %v17097_v5 }
 0x471   :  { %8653 = vmatprep.mubr.bf16.mxu1 %v17098_v6  ;;  %8714 = vmatpush3.bf16.msra.mxu1 %v9470_v29  ;;  %v17115_v29 = vld [vmem:[#allocation110_spill] sm:$0xff] }
 0x472   :  { %8715 = vmatprep.subr.bf16.mxu1 %v9471_v33 }
 0x475   :  { %8716 = vmatpush3.bf16.msra.mxu1 %v9471_v33 }
 0x476   :  { %8717 = vmatprep.subr.bf16.mxu1 %v9472_v13 }
 0x478   :  { %8654 = vmatmul.mubr.bf16.gmra.mrb[44].mxu1 %v17099_v19  ;;  %v17117_v19 = vld [vmem:[#allocation113_spill] sm:$0xff] }
 0x479   :  { %8657 = vmatprep.mubr.bf16.mxu1 %v17100_v21  ;;  %8718 = vmatpush3.bf16.msra.mxu1 %v9472_v13  ;;  %v17116_v13 = vld [vmem:[#allocation112_spill] sm:$0xff] }
 0x47a   :  { %8719 = vmatprep.subr.bf16.mxu1 %v9473_v11 }
 0x47d   :  { %8720 = vmatpush3.bf16.msra.mxu1 %v9473_v11 }
 0x480   :  { %8658 = vmatmul.mubr.bf16.gmra.mrb[48].mxu1 %v17101_v60 }
 0x481   :  { %8661 = vmatprep.mubr.bf16.mxu1 %v17102_v43 }
 0x488   :  { %8662 = vmatmul.mubr.bf16.gmra.mrb[52].mxu1 %v17103_v31  ;;  %v17118_v31 = vld [vmem:[#allocation115_spill] sm:$0xff] }
 0x489   :  { %8665 = vmatprep.mubr.bf16.mxu1 %v17104_v45 }
 0x490   :  { %8666 = vmatmul.mubr.bf16.gmra.mrb[56].mxu1 %v17105_v3 }
 0x491   :  { %8669 = vmatprep.mubr.bf16.mxu1 %v17106_v20 }
 0x498   :  { %8670 = vmatmul.mubr.bf16.gmra.mrb[60].mxu1 %v4808_v39  ;;  %v17120_v39 = vld [vmem:[#allocation118_spill] sm:$0xff] }
 0x499   :  { %8673 = vmatprep.mubr.bf16.mxu1 %v17107_v30 }
 0x4a0   :  { %8674 = vmatmul.mubr.bf16.gmra.mrb[0].mxu1 %v17108_v61  ;;  %v17121_v61 = vld [vmem:[#allocation50_spill] sm:$0xff] }
 0x4a1   :  { %8677 = vmatprep.mubr.bf16.mxu1 %v17109_v4 }
 0x4a8   :  { %8678 = vmatmul.mubr.bf16.gmra.mrb[4].mxu1 %v17110_v22 }
 0x4a9   :  { %8681 = vmatprep.mubr.bf16.mxu1 %v17111_v9 }
 0x4b0   :  { %8682 = vmatmul.mubr.bf16.gmra.mrb[8].mxu1 %v17112_v58 }
 0x4b1   :  { %8685 = vmatprep.mubr.bf16.mxu1 %v17113_v23 }
 0x4b8   :  { %8686 = vmatmul.mubr.bf16.gmra.mrb[12].mxu1 %v17114_v52 }
 0x4b9   :  { %v12886_v36 = vpop.f32.mrb[96].mxu0  ;;  %8689 = vmatprep.mubr.bf16.mxu1 %v17115_v29 }
 0x4ba   :  { %v12888_v47 = vpop.f32.mrb[97].mxu0 }
 0x4bb   :  { %v12891_v0 = vpop.f32.mrb[98].mxu0 }
 0x4bc   :  { %v12894_v33 = vpop.f32.mrb[99].mxu0 }
 0x4c0   :  { %8690 = vmatmul.mubr.bf16.gmra.mrb[16].mxu1 %v17116_v13 }
 0x4c1   :  { %v12896_v5 = vpop.f32.mrb[100].mxu0  ;;  %8693 = vmatprep.mubr.bf16.mxu1 %v17117_v19 }
 0x4c2   :  { %v12898_v6 = vpop.f32.mrb[101].mxu0 }
 0x4c3   :  { %v12901_v11 = vpop.f32.mrb[102].mxu0 }
 0x4c4   :  { %v12904_v21 = vpop.f32.mrb[103].mxu0 }
 0x4c8   :  { %8694 = vmatmul.mubr.bf16.gmra.mrb[20].mxu1 %v17118_v31 }
 0x4c9   :  { %v12906_v60 = vpop.f32.mrb[104].mxu0  ;;  %8697 = vmatprep.mubr.bf16.mxu1 %v17119_v42 }
 0x4ca   :  { %v12908_v43 = vpop.f32.mrb[105].mxu0 }
 0x4cb   :  { %v12911_v45 = vpop.f32.mrb[106].mxu0 }
 0x4cc   :  { %v12914_v3 = vpop.f32.mrb[107].mxu0 }
 0x4d0   :  { %8698 = vmatmul.mubr.bf16.gmra.mrb[24].mxu1 %v17120_v39 }
 0x4d1   :  { %v12916_v20 = vpop.f32.mrb[108].mxu0  ;;  %8701 = vmatprep.mubr.bf16.mxu1 %v17121_v61 }
 0x4d2   :  { %v12918_v62 = vpop.f32.mrb[109].mxu0 }
 0x4d3   :  { %v12921_v30 = vpop.f32.mrb[110].mxu0 }
 0x4d4   :  { %v12924_v4 = vpop.f32.mrb[111].mxu0 }
 0x4d8   :  { %8702 = vmatmul.mubr.bf16.gmra.mrb[28].mxu1 %v4809_v25 }
 0x4d9   :  { %v12926_v22 = vpop.f32.mrb[112].mxu0  ;;  %8721 = vmatprep.mubr.bf16.mxu1 %v12193_v28 }
 0x4da   :  { %v12928_v9 = vpop.f32.mrb[113].mxu0 }
 0x4db   :  { %v12933_v58 = vpop.f32.mrb[114].mxu0 }
 0x4dc   :  { %17122 = vst [vmem:[#allocation60_spill] sm:$0xff] %v12933_v58  ;;  %v12936_v23 = vpop.f32.mrb[115].mxu0 }
 0x4dd   :  { %17123 = vst [vmem:[#allocation62_spill] sm:$0xff] %v12936_v23 }
 0x4e0   :  { %8722 = vmatmul.mubr.bf16.vlgmr.msra.gmra.mrb[32].mxu1 %v12213_v16 }
 0x4e1   :  { %v12938_v52 = vpop.f32.mrb[116].mxu0  ;;  %8725 = vmatprep.mubr.bf16.mxu1 %v12218_v34 }
 0x4e2   :  { %17124 = vst [vmem:[#allocation71_spill] sm:$0xff] %v12938_v52  ;;  %v12940_v29 = vpop.f32.mrb[117].mxu0 }
 0x4e3   :  { %17125 = vst [vmem:[#allocation72_spill] sm:$0xff] %v12940_v29  ;;  %v12943_v13 = vpop.f32.mrb[118].mxu0 }
 0x4e4   :  { %17126 = vst [vmem:[#allocation77_spill] sm:$0xff] %v12943_v13  ;;  %v12946_v19 = vpop.f32.mrb[119].mxu0 }
 0x4e5   :  { %17127 = vst [vmem:[#allocation78_spill] sm:$0xff] %v12946_v19 }
 0x4e8   :  { %8726 = vmatmul.mubr.bf16.gmra.mrb[36].mxu1 %v12224_v27 }
 0x4e9   :  { %v12948_v12 = vpop.f32.mrb[120].mxu0  ;;  %8729 = vmatprep.mubr.bf16.mxu1 %v12237_v2 }
 0x4ea   :  { %17128 = vst [vmem:[#allocation81_spill] sm:$0xff] %v12948_v12  ;;  %v12950_v17 = vpop.f32.mrb[121].mxu0 }
 0x4eb   :  { %17129 = vst [vmem:[#allocation83_spill] sm:$0xff] %v12950_v17  ;;  %v12953_v28 = vpop.f32.mrb[122].mxu0 }
 0x4ec   :  { %17130 = vst [vmem:[#allocation10_spill] sm:$0xff] %v12953_v28  ;;  %v12956_v25 = vpop.f32.mrb[123].mxu0 }
 0x4ed   :  { %17131 = vst [vmem:[#allocation18_spill] sm:$0xff] %v12956_v25 }
 0x4f0   :  { %8730 = vmatmul.mubr.bf16.gmra.mrb[40].mxu1 %v12242_v38 }
 0x4f1   :  { %v12958_v31 = vpop.f32.mrb[124].mxu0  ;;  %8733 = vmatprep.mubr.bf16.mxu1 %v12253_v7 }
 0x4f2   :  { %17132 = vst [vmem:[#allocation22_spill] sm:$0xff] %v12958_v31  ;;  %v12960_v16 = vpop.f32.mrb[125].mxu0 }
 0x4f3   :  { %17133 = vst [vmem:[#allocation66_spill] sm:$0xff] %v12960_v16  ;;  %v12963_v34 = vpop.f32.mrb[126].mxu0 }
 0x4f4   :  { %17134 = vst [vmem:[#allocation12_spill] sm:$0xff] %v12963_v34  ;;  %v12966_v42 = vpop.f32.mrb[127].mxu0 }
 0x4f5   :  { %17135 = vst [vmem:[#allocation13_spill] sm:$0xff] %v12966_v42 }
 0x4f8   :  { %8734 = vmatmul.mubr.bf16.gmra.mrb[44].mxu1 %v12265_v48 }
 0x4f9   :  { %v12968_v39 = vpop.f32.mrb[64].mxu0  ;;  %8737 = vmatprep.mubr.bf16.mxu1 %v12271_v55 }
 0x4fa   :  { %v12970_v27 = vpop.f32.mrb[65].mxu0 }
 0x4fb   :  { %v12973_v2 = vpop.f32.mrb[66].mxu0 }
 0x4fc   :  { %v12976_v61 = vpop.f32.mrb[67].mxu0 }
 0x500   :  { %8738 = vmatmul.mubr.bf16.gmra.mrb[48].mxu1 %v12277_v18  ;;  %v5231_v18 = vrot.slane %v12871_v15, 2 }
 0x501   :  { %v12978_v16 = vpop.f32.mrb[68].mxu0  ;;  %8741 = vmatprep.mubr.bf16.mxu1 %v12295_v49 }
 0x502   :  { %v12980_v38 = vpop.f32.mrb[69].mxu0 }
 0x503   :  { %v12983_v7 = vpop.f32.mrb[70].mxu0 }
 0x504   :  { %v12986_v42 = vpop.f32.mrb[71].mxu0 }
 0x508   :  { %8742 = vmatmul.mubr.bf16.gmra.mrb[52].mxu1 %v12306_v53  ;;  %v5232_v53 = vsel %vm2399_vm1, %v12672_v51, %v5231_v18 }
 0x509   :  { %v12988_v34 = vpop.f32.mrb[72].mxu0  ;;  %8745 = vmatprep.mubr.bf16.mxu1 %v12314_v24  ;;  %v5242_v24 = vpack.c.bf16 %v5232_v53, %v12672_v51 }
 0x50a   :  { %v12990_v48 = vpop.f32.mrb[73].mxu0 }
 0x50b   :  { %v12993_v55 = vpop.f32.mrb[74].mxu0 }
 0x50c   :  { %v12996_v31 = vpop.f32.mrb[75].mxu0 }
 0x510   :  { %8746 = vmatmul.mubr.bf16.gmra.mrb[56].mxu1 %v12319_v32 }
 0x511   :  { %v12999_v25 = vpop.f32.mrb[76].mxu0  ;;  %8749 = vmatprep.mubr.bf16.mxu1 %v12342_v57 }
 0x512   :  { %v13001_v28 = vpop.f32.mrb[77].mxu0 }
 0x513   :  { %v13004_v49 = vpop.f32.mrb[78].mxu0 }
 0x514   :  { %v13009_v17 = vpop.f32.mrb[79].mxu0 }
 0x518   :  { %8750 = vmatmul.mubr.bf16.gmra.mrb[60].mxu1 %v5242_v24 }
 0x519   :  { %v13012_v12 = vpop.f32.mrb[80].mxu0  ;;  %8753 = vmatprep.mubr.bf16.mxu1 %v12367_v54 }
 0x51a   :  { %v13014_v15 = vpop.f32.mrb[81].mxu0 }
 0x51b   :  { %v13016_v19 = vpop.f32.mrb[82].mxu0 }
 0x51c   :  { %v13019_v32 = vpop.f32.mrb[83].mxu0 }
 0x520   :  { %8754 = vmatmul.mubr.bf16.gmra.mrb[0].mxu1 %v12379_v1 }
 0x521   :  { %v13021_v13 = vpop.f32.mrb[84].mxu0  ;;  %8757 = vmatprep.mubr.bf16.mxu1 %v12391_v41 }
 0x522   :  { %v13023_v57 = vpop.f32.mrb[85].mxu0 }
 0x523   :  { %v13026_v18 = vpop.f32.mrb[86].mxu0 }
 0x524   :  { %v13029_v53 = vpop.f32.mrb[87].mxu0 }
 0x528   :  { %8758 = vmatmul.mubr.bf16.gmra.mrb[4].mxu1 %v12407_v46 }
 0x529   :  { %v13031_v29 = vpop.f32.mrb[88].mxu0  ;;  %8761 = vmatprep.mubr.bf16.mxu1 %v12418_v56 }
 0x52a   :  { %v13033_v24 = vpop.f32.mrb[89].mxu0 }
 0x52b   :  { %v13036_v54 = vpop.f32.mrb[90].mxu0 }
 0x52c   :  { %v13039_v52 = vpop.f32.mrb[91].mxu0 }
 0x530   :  { %8762 = vmatmul.mubr.bf16.gmra.mrb[8].mxu1 %v12430_v50  ;;  %v5236_v50 = vrot.slane %v12828_v63, 2 }
 0x531   :  { %v13041_v23 = vpop.f32.mrb[92].mxu0  ;;  %8765 = vmatprep.mubr.bf16.mxu1 %v12442_v59 }
 0x532   :  { %v13043_v1 = vpop.f32.mrb[93].mxu0  ;;  %v5237_v46 = vsel %vm2399_vm1, %v12672_v51, %v5236_v50 }
 0x533   :  { %v13046_v41 = vpop.f32.mrb[94].mxu0  ;;  %v5243_v56 = vpack.c.bf16 %v5237_v46, %v12672_v51 }
 0x534   :  { %v13049_v58 = vpop.f32.mrb[95].mxu0 }
 0x538   :  { %8766 = vmatmul.mubr.bf16.gmra.mrb[12].mxu1 %v17084_v8 }
 0x539   :  { %8769 = vmatprep.mubr.bf16.mxu1 %v12465_v35 }
 0x540   :  { %8770 = vmatmul.mubr.bf16.gmra.mrb[16].mxu1 %v12477_v37 }
 0x541   :  { %8773 = vmatprep.mubr.bf16.mxu1 %v12489_v10 }
 0x548   :  { %8774 = vmatmul.mubr.bf16.gmra.mrb[20].mxu1 %v12500_v26 }
 0x549   :  { %8777 = vmatprep.mubr.bf16.mxu1 %v12510_v40 }
 0x550   :  { %8778 = vmatmul.mubr.bf16.gmra.mrb[24].mxu1 %v12519_v44 }
 0x551   :  { %8781 = vmatprep.mubr.bf16.mxu1 %v12525_v14 }
 0x558   :  { %8782 = vmatmul.mubr.bf16.gmra.mrb[28].mxu1 %v5243_v56 }
 0x5b3   :  { %v8723_v35 = vpop.f32.mrb[32].mxu1 }
 0x5b4   :  { %v13064_v59 = vadd.f32 %v8723_v35, %v12968_v39  ;;  %v5343_v37 = vpop.f32.mrb[33].mxu1 }
 0x5b5   :  { %v13067_v10 = vadd.f32 %v5343_v37, %v12970_v27  ;;  %v8724_v26 = vpop.f32.mrb[34].mxu1 }
 0x5b6   :  { %v13070_v40 = vadd.f32 %v8724_v26, %v12973_v2  ;;  %v5346_v44 = vpop.f32.mrb[35].mxu1 }
 0x5b7   :  { %v13073_v14 = vadd.f32 %v5346_v44, %v12976_v61 }
 0x5b9   :  { %v5664_v51 = vadd.f32 %v13073_v14, %v13067_v10 }
 0x5bb   :  { %v5665_v8 = vadd.f32 %v13064_v59, %v5664_v51  ;;  %v8727_v63 = vpop.f32.mrb[36].mxu1 }
 0x5bc   :  { %v13079_v39 = vadd.f32 %v8727_v63, %v12978_v16  ;;  %v5359_v50 = vpop.f32.mrb[37].mxu1 }
 0x5bd   :  { %v13082_v27 = vadd.f32 %v5359_v50, %v12980_v38  ;;  %v5666_v2 = vadd.f32 %v13070_v40, %v5665_v8  ;;  %v8728_v46 = vpop.f32.mrb[38].mxu1 }
 0x5be   :  { %v13086_v56 = vadd.f32 %v8728_v46, %v12983_v7  ;;  %v5362_v61 = vpop.f32.mrb[39].mxu1 }
 0x5bf   :  { %v5667_v35 = vadd.f32 %v13082_v27, %v5666_v2  ;;  %v13090_v37 = vadd.f32 %v5362_v61, %v12986_v42 }
 0x5c1   :  { %v5668_v26 = vadd.f32 %v13090_v37, %v5667_v35 }
 0x5c3   :  { %v5669_v16 = vadd.f32 %v13079_v39, %v5668_v26  ;;  %v8731_v44 = vpop.f32.mrb[40].mxu1 }
 0x5c4   :  { %v13095_v38 = vadd.f32 %v8731_v44, %v12988_v34  ;;  %v5375_v51 = vpop.f32.mrb[41].mxu1 }
 0x5c5   :  { %v13098_v8 = vadd.f32 %v5375_v51, %v12990_v48  ;;  %v5670_v7 = vadd.f32 %v13086_v56, %v5669_v16  ;;  %v8732_v63 = vpop.f32.mrb[42].mxu1 }
 0x5c6   :  { %v13102_v50 = vadd.f32 %v8732_v63, %v12993_v55  ;;  %v5378_v42 = vpop.f32.mrb[43].mxu1 }
 0x5c7   :  { %v5671_v2 = vadd.f32 %v13098_v8, %v5670_v7  ;;  %v13106_v46 = vadd.f32 %v5378_v42, %v12996_v31 }
 0x5c9   :  { %v5672_v61 = vadd.f32 %v13106_v46, %v5671_v2 }
 0x5cb   :  { %v5673_v34 = vadd.f32 %v13095_v38, %v5672_v61  ;;  %v8735_v35 = vpop.f32.mrb[44].mxu1 }
 0x5cc   :  { %v13111_v48 = vadd.f32 %v8735_v35, %v12999_v25  ;;  %v5391_v26 = vpop.f32.mrb[45].mxu1 }
 0x5cd   :  { %v13114_v16 = vadd.f32 %v5391_v26, %v13001_v28  ;;  %v5674_v55 = vadd.f32 %v13102_v50, %v5673_v34  ;;  %v8736_v44 = vpop.f32.mrb[46].mxu1 }
 0x5ce   :  { %v13118_v51 = vadd.f32 %v8736_v44, %v13004_v49  ;;  %v5394_v31 = vpop.f32.mrb[47].mxu1 }
 0x5cf   :  { %v5675_v7 = vadd.f32 %v13114_v16, %v5674_v55  ;;  %v13122_v63 = vadd.f32 %v5394_v31, %v13009_v17 }
 0x5d1   :  { %v5676_v42 = vadd.f32 %v13122_v63, %v5675_v7 }
 0x5d3   :  { %v5677_v25 = vadd.f32 %v13111_v48, %v5676_v42  ;;  %v8739_v2 = vpop.f32.mrb[48].mxu1 }
 0x5d4   :  { %v13127_v28 = vadd.f32 %v8739_v2, %v13012_v12  ;;  %v5407_v61 = vpop.f32.mrb[49].mxu1 }
 0x5d5   :  { %v13130_v34 = vadd.f32 %v5407_v61, %v13014_v15  ;;  %v5678_v49 = vadd.f32 %v13118_v51, %v5677_v25  ;;  %v8740_v35 = vpop.f32.mrb[50].mxu1 }
 0x5d6   :  { %v13134_v26 = vadd.f32 %v8740_v35, %v13016_v19  ;;  %v5410_v17 = vpop.f32.mrb[51].mxu1 }
 0x5d7   :  { %v5679_v55 = vadd.f32 %v13130_v34, %v5678_v49  ;;  %v13138_v44 = vadd.f32 %v5410_v17, %v13019_v32 }
 0x5d9   :  { %v5680_v31 = vadd.f32 %v13138_v44, %v5679_v55 }
 0x5db   :  { %v5681_v12 = vadd.f32 %v13127_v28, %v5680_v31  ;;  %v8743_v7 = vpop.f32.mrb[52].mxu1 }
 0x5dc   :  { %v13143_v15 = vadd.f32 %v8743_v7, %v13021_v13  ;;  %v5423_v42 = vpop.f32.mrb[53].mxu1 }
 0x5dd   :  { %v13146_v25 = vadd.f32 %v5423_v42, %v13023_v57  ;;  %v5682_v19 = vadd.f32 %v13134_v26, %v5681_v12  ;;  %v8744_v2 = vpop.f32.mrb[54].mxu1 }
 0x5de   :  { %v13150_v61 = vadd.f32 %v8744_v2, %v13026_v18  ;;  %v5426_v32 = vpop.f32.mrb[55].mxu1 }
 0x5df   :  { %v5683_v49 = vadd.f32 %v13146_v25, %v5682_v19  ;;  %v13154_v35 = vadd.f32 %v5426_v32, %v13029_v53 }
 0x5e1   :  { %v5684_v17 = vadd.f32 %v13154_v35, %v5683_v49 }
 0x5e3   :  { %v5685_v13 = vadd.f32 %v13143_v15, %v5684_v17  ;;  %v8747_v55 = vpop.f32.mrb[56].mxu1 }
 0x5e4   :  { %v13159_v57 = vadd.f32 %v8747_v55, %v13031_v29  ;;  %v5439_v31 = vpop.f32.mrb[57].mxu1 }
 0x5e5   :  { %v13162_v12 = vadd.f32 %v5439_v31, %v13033_v24  ;;  %v5686_v18 = vadd.f32 %v13150_v61, %v5685_v13  ;;  %v8748_v7 = vpop.f32.mrb[58].mxu1 }
 0x5e6   :  { %17136 = vst [vmem:[#allocation31_spill] sm:$0xff] %v13159_v57  ;;  %v13166_v42 = vadd.f32 %v8748_v7, %v13036_v54  ;;  %v5442_v53 = vpop.f32.mrb[59].mxu1 }
 0x5e7   :  { %v5687_v19 = vadd.f32 %v13162_v12, %v5686_v18  ;;  %v13170_v2 = vadd.f32 %v5442_v53, %v13039_v52 }
 0x5e8   :  { %17137 = vst [vmem:[#allocation35_spill] sm:$0xff] %v13166_v42 }
 0x5e9   :  { %v5688_v32 = vadd.f32 %v13170_v2, %v5687_v19 }
 0x5eb   :  { %v5689_v29 = vadd.f32 %v13159_v57, %v5688_v32  ;;  %v8751_v49 = vpop.f32.mrb[60].mxu1 }
 0x5ec   :  { %v13175_v24 = vadd.f32 %v8751_v49, %v13041_v23  ;;  %v5455_v17 = vpop.f32.mrb[61].mxu1 }
 0x5ed   :  { %v13178_v13 = vadd.f32 %v5455_v17, %v13043_v1  ;;  %v5690_v54 = vadd.f32 %v13166_v42, %v5689_v29  ;;  %v8752_v55 = vpop.f32.mrb[62].mxu1 }
 0x5ee   :  { %17138 = vst [vmem:[#allocation48_spill] sm:$0xff] %v13175_v24  ;;  %v13182_v31 = vadd.f32 %v8752_v55, %v13046_v41  ;;  %v5458_v52 = vpop.f32.mrb[63].mxu1 }
 0x5ef   :  { %17139 = vst [vmem:[#allocation51_spill] sm:$0xff] %v13178_v13  ;;  %v5691_v18 = vadd.f32 %v13178_v13, %v5690_v54  ;;  %v13186_v7 = vadd.f32 %v5458_v52, %v13049_v58  ;;  %v17168_v13 = vld [vmem:[#allocation13_spill] sm:$0xff] }
 0x5f0   :  { %17140 = vst [vmem:[#allocation59_spill] sm:$0xff] %v13182_v31 }
 0x5f1   :  { %17141 = vst [vmem:[#allocation63_spill] sm:$0xff] %v13186_v7  ;;  %v5692_v53 = vadd.f32 %v13186_v7, %v5691_v18  ;;  %v17167_v7 = vld [vmem:[#allocation12_spill] sm:$0xff] }
 0x5f3   :  { %v5693_v23 = vadd.f32 %v13175_v24, %v5692_v53  ;;  %v8755_v19 = vpop.f32.mrb[0].mxu1 }
 0x5f4   :  { %v13191_v1 = vadd.f32 %v8755_v19, %v12886_v36  ;;  %v5471_v32 = vpop.f32.mrb[1].mxu1 }
 0x5f5   :  { %v13194_v29 = vadd.f32 %v5471_v32, %v12888_v47  ;;  %v5694_v41 = vadd.f32 %v13182_v31, %v5693_v23  ;;  %v8756_v49 = vpop.f32.mrb[2].mxu1 }
 0x5f6   :  { %17142 = vst [vmem:[#allocation76_spill] sm:$0xff] %v13191_v1  ;;  %v13198_v17 = vadd.f32 %v8756_v49, %v12891_v0  ;;  %v5474_v58 = vpop.f32.mrb[3].mxu1 }
 0x5f7   :  { %17143 = vst [vmem:[#allocation79_spill] sm:$0xff] %v13194_v29  ;;  %v5695_v54 = vadd.f32 %v13194_v29, %v5694_v41  ;;  %v13202_v55 = vadd.f32 %v5474_v58, %v12894_v33  ;;  %v17164_v29 = vld [vmem:[#allocation18_spill] sm:$0xff] }
 0x5f8   :  { %17144 = vst [vmem:[#allocation84_spill] sm:$0xff] %v13198_v17 }
 0x5f9   :  { %17145 = vst [vmem:[#allocation24_spill] sm:$0xff] %v13202_v55  ;;  %v5696_v52 = vadd.f32 %v13202_v55, %v5695_v54  ;;  %v17163_v55 = vld [vmem:[#allocation10_spill] sm:$0xff] }
 0x5fb   :  { %v5697_v36 = vadd.f32 %v13191_v1, %v5696_v52  ;;  %v8759_v18 = vpop.f32.mrb[4].mxu1 }
 0x5fc   :  { %v13207_v47 = vadd.f32 %v8759_v18, %v12896_v5  ;;  %v5487_v53 = vpop.f32.mrb[5].mxu1 }
 0x5fd   :  { %v13210_v23 = vadd.f32 %v5487_v53, %v12898_v6  ;;  %v5698_v0 = vadd.f32 %v13198_v17, %v5697_v36  ;;  %v8760_v19 = vpop.f32.mrb[6].mxu1 }
 0x5fe   :  { %17146 = vst [vmem:[#allocation88_spill] sm:$0xff] %v13207_v47  ;;  %v13214_v32 = vadd.f32 %v8760_v19, %v12901_v11  ;;  %v5490_v33 = vpop.f32.mrb[7].mxu1 }
 0x5ff   :  { %17147 = vst [vmem:[#allocation25_spill] sm:$0xff] %v13210_v23  ;;  %v5699_v41 = vadd.f32 %v13210_v23, %v5698_v0  ;;  %v13218_v49 = vadd.f32 %v5490_v33, %v12904_v21  ;;  %v17160_v23 = vld [vmem:[#allocation78_spill] sm:$0xff] }
 0x600   :  { %17148 = vst [vmem:[#allocation91_spill] sm:$0xff] %v13214_v32 }
 0x601   :  { %17149 = vst [vmem:[#allocation23_spill] sm:$0xff] %v13218_v49  ;;  %v5700_v58 = vadd.f32 %v13218_v49, %v5699_v41 }
 0x603   :  { %v5701_v5 = vadd.f32 %v13207_v47, %v5700_v58  ;;  %v8763_v54 = vpop.f32.mrb[8].mxu1 }
 0x604   :  { %v13223_v6 = vadd.f32 %v8763_v54, %v12906_v60  ;;  %v5503_v52 = vpop.f32.mrb[9].mxu1 }
 0x605   :  { %v13226_v36 = vadd.f32 %v5503_v52, %v12908_v43  ;;  %v5702_v11 = vadd.f32 %v13214_v32, %v5701_v5  ;;  %v8764_v18 = vpop.f32.mrb[10].mxu1  ;;  %v17158_v32 = vld [vmem:[#allocation72_spill] sm:$0xff] }
 0x606   :  { %17150 = vst [vmem:[#allocation92_spill] sm:$0xff] %v13223_v6  ;;  %v13230_v53 = vadd.f32 %v8764_v18, %v12911_v45  ;;  %v5506_v21 = vpop.f32.mrb[11].mxu1 }
 0x607   :  { %17151 = vst [vmem:[#allocation8_spill] sm:$0xff] %v13226_v36  ;;  %v5703_v0 = vadd.f32 %v13226_v36, %v5702_v11  ;;  %v13234_v19 = vadd.f32 %v5506_v21, %v12914_v3 }
 0x608   :  { %17152 = vst [vmem:[#allocation93_spill] sm:$0xff] %v13230_v53 }
 0x609   :  { %17153 = vst [vmem:[#allocation4_spill] sm:$0xff] %v13234_v19  ;;  %v5704_v33 = vadd.f32 %v13234_v19, %v5703_v0  ;;  %v17156_v19 = vld [vmem:[#allocation62_spill] sm:$0xff] }
 0x60b   :  { %v5705_v60 = vadd.f32 %v13223_v6, %v5704_v33  ;;  %v8767_v41 = vpop.f32.mrb[12].mxu1 }
 0x60c   :  { %v13239_v43 = vadd.f32 %v8767_v41, %v12916_v20  ;;  %v5519_v58 = vpop.f32.mrb[13].mxu1 }
 0x60d   :  { %v13242_v5 = vadd.f32 %v5519_v58, %v12918_v62  ;;  %v5706_v45 = vadd.f32 %v13230_v53, %v5705_v60  ;;  %v8768_v54 = vpop.f32.mrb[14].mxu1  ;;  %v17155_v53 = vld [vmem:[#allocation60_spill] sm:$0xff] }
 0x60e   :  { %v13246_v52 = vadd.f32 %v8768_v54, %v12921_v30  ;;  %v5522_v3 = vpop.f32.mrb[15].mxu1 }
 0x60f   :  { %17154 = vst [vmem:[#allocation94_spill] sm:$0xff] %v13242_v5  ;;  %v5707_v11 = vadd.f32 %v13242_v5, %v5706_v45  ;;  %v8928_v18 = vadd.f32 %v5522_v3, %v12924_v4 }
 0x611   :  { %v5708_v21 = vadd.f32 %v8928_v18, %v5707_v11  ;;  %v17157_v11 = vld [vmem:[#allocation71_spill] sm:$0xff] }
 0x613   :  { %v5709_v0 = vadd.f32 %v13239_v43, %v5708_v21  ;;  %v8771_v20 = vpop.f32.mrb[16].mxu1 }
 0x614   :  { %v8929_v33 = vadd.f32 %v8771_v20, %v12926_v22  ;;  %v5535_v41 = vpop.f32.mrb[17].mxu1 }
 0x615   :  { %v8930_v62 = vadd.f32 %v5535_v41, %v12928_v9  ;;  %v5710_v60 = vadd.f32 %v13246_v52, %v5709_v0  ;;  %v8772_v58 = vpop.f32.mrb[18].mxu1  ;;  %v17159_v9 = vld [vmem:[#allocation77_spill] sm:$0xff] }
 0x616   :  { %v8931_v30 = vadd.f32 %v8772_v58, %v17155_v53  ;;  %v5538_v54 = vpop.f32.mrb[19].mxu1 }
 0x617   :  { %v5711_v6 = vadd.f32 %v8930_v62, %v5710_v60  ;;  %v8932_v45 = vadd.f32 %v5538_v54, %v17156_v19  ;;  %v17161_v19 = vld [vmem:[#allocation81_spill] sm:$0xff]  ;;  %v17162_v54 = vld [vmem:[#allocation83_spill] sm:$0xff] }
 0x619   :  { %v5712_v5 = vadd.f32 %v8932_v45, %v5711_v6 }
 0x61b   :  { %v5713_v4 = vadd.f32 %v8929_v33, %v5712_v5  ;;  %v8775_v3 = vpop.f32.mrb[20].mxu1 }
 0x61c   :  { %v8933_v21 = vadd.f32 %v8775_v3, %v17157_v11  ;;  %v5551_v36 = vpop.f32.mrb[21].mxu1 }
 0x61d   :  { %v8934_v22 = vadd.f32 %v5551_v36, %v17158_v32  ;;  %v5714_v20 = vadd.f32 %v8931_v30, %v5713_v4  ;;  %v8776_v47 = vpop.f32.mrb[22].mxu1 }
 0x61e   :  { %v8935_v41 = vadd.f32 %v8776_v47, %v17159_v9  ;;  %v5554_v0 = vpop.f32.mrb[23].mxu1 }
 0x61f   :  { %v5715_v49 = vadd.f32 %v8934_v22, %v5714_v20  ;;  %v8936_v53 = vadd.f32 %v5554_v0, %v17160_v23  ;;  %v17165_v23 = vld [vmem:[#allocation22_spill] sm:$0xff] }
 0x621   :  { %v5716_v58 = vadd.f32 %v8936_v53, %v5715_v49 }
 0x623   :  { %v5717_v60 = vadd.f32 %v8933_v21, %v5716_v58  ;;  %v8779_v17 = vpop.f32.mrb[24].mxu1  ;;  %v17166_v58 = vld [vmem:[#allocation66_spill] sm:$0xff] }
 0x624   :  { %v8937_v6 = vadd.f32 %v8779_v17, %v17161_v19  ;;  %v5567_v5 = vpop.f32.mrb[25].mxu1 }
 0x625   :  { %v8938_v1 = vadd.f32 %v5567_v5, %v17162_v54  ;;  %v5718_v3 = vadd.f32 %v8935_v41, %v5717_v60  ;;  %v8780_v11 = vpop.f32.mrb[26].mxu1 }
 0x626   :  { %v8939_v32 = vadd.f32 %v8780_v11, %v17163_v55  ;;  %v5570_v36 = vpop.f32.mrb[27].mxu1 }
 0x627   :  { %v5719_v4 = vadd.f32 %v8938_v1, %v5718_v3  ;;  %v8940_v47 = vadd.f32 %v5570_v36, %v17164_v29 }
 0x629   :  { %v5720_v9 = vadd.f32 %v8940_v47, %v5719_v4 }
 0x62b   :  { %v5721_v20 = vadd.f32 %v8937_v6, %v5720_v9  ;;  %v8783_v31 = vpop.f32.mrb[28].mxu1 }
 0x62c   :  { %v8941_v49 = vadd.f32 %v8783_v31, %v17165_v23  ;;  %v5583_v0 = vpop.f32.mrb[29].mxu1 }
 0x62d   :  { %v8942_v24 = vadd.f32 %v5583_v0, %v17166_v58  ;;  %v5722_v17 = vadd.f32 %v8939_v32, %v5721_v20  ;;  %v8784_v19 = vpop.f32.mrb[30].mxu1 }
 0x62e   :  { %v8943_v5 = vadd.f32 %v8784_v19, %v17167_v7  ;;  %v5586_v60 = vpop.f32.mrb[31].mxu1 }
 0x62f   :  { %v5723_v54 = vadd.f32 %v8942_v24, %v5722_v17  ;;  %v8944_v55 = vadd.f32 %v5586_v60, %v17168_v13 }
 0x631   :  { %v5724_v11 = vadd.f32 %v8944_v55, %v5723_v54 }
 0x633   :  { %v5725_v3 = vadd.f32 %v8941_v49, %v5724_v11 }
 0x635   :  { %v5726_v42 = vadd.f32 %v8943_v5, %v5725_v3 }
 0x637   :  { %v5727_v29 = vrot.slane %v5726_v42, 4 }
 0x639   :  { %v5728_v36 = vadd.f32 %v5727_v29, %v5726_v42 }
 0x63b   :  { %v5729_v4 = vrot.slane %v5728_v36, 2 }
 0x63d   :  { %v5730_v9 = vadd.f32 %v5729_v4, %v5728_v36 }
 0x63f   :  { %v5731_v57 = vrot.slane %v5730_v9, 1 }
 0x641   :  { %v5732_v31 = vadd.f32 %v5731_v57, %v5730_v9 }
 0x643   :  { %v13268_v23 = vmul.f32 0.001953125, %v5732_v31 }
 0x645   :  { %v13271_v20 = vsub.f32 %v8928_v18, %v13268_v23  ;;  %v13275_v7 = vsub.f32 %v13239_v43, %v13268_v23  ;;  %v13279_v13 = vsub.f32 %v13246_v52, %v13268_v23  ;;  %v13282_v0 = vsub.f32 %v8930_v62, %v13268_v23 }
 0x646   :  { %v13285_v42 = vsub.f32 %v8932_v45, %v13268_v23  ;;  %v13288_v57 = vsub.f32 %v8929_v33, %v13268_v23  ;;  %v13291_v18 = vsub.f32 %v8931_v30, %v13268_v23  ;;  %v13294_v58 = vsub.f32 %v8934_v22, %v13268_v23 }
 0x647   :  { %17169 = vst [vmem:[#allocation37_spill] sm:$0xff] %v13271_v20  ;;  %v13297_v43 = vsub.f32 %v8936_v53, %v13268_v23  ;;  %v13300_v52 = vsub.f32 %v8933_v21, %v13268_v23  ;;  %v13303_v62 = vsub.f32 %v8935_v41, %v13268_v23  ;;  %v13306_v45 = vsub.f32 %v8938_v1, %v13268_v23 }
 0x648   :  { %v13309_v33 = vsub.f32 %v8940_v47, %v13268_v23  ;;  %v13312_v30 = vsub.f32 %v8937_v6, %v13268_v23  ;;  %v13315_v22 = vsub.f32 %v8939_v32, %v13268_v23  ;;  %v13318_v53 = vsub.f32 %v8942_v24, %v13268_v23 }
 0x649   :  { %v13321_v21 = vsub.f32 %v8944_v55, %v13268_v23  ;;  %v13324_v41 = vsub.f32 %v8941_v49, %v13268_v23  ;;  %v13327_v1 = vsub.f32 %v8943_v5, %v13268_v23  ;;  %v13331_v47 = vsub.f32 %v13067_v10, %v13268_v23 }
 0x64a   :  { %17170 = vst [vmem:[#allocation36_spill] sm:$0xff] %v13309_v33  ;;  %17171 = vst [vmem:[#allocation96_spill] sm:$0xff] %v13312_v30  ;;  %v13335_v6 = vsub.f32 %v13073_v14, %v13268_v23  ;;  %v13339_v24 = vsub.f32 %v13064_v59, %v13268_v23  ;;  %v13347_v17 = vsub.f32 %v13070_v40, %v13268_v23 }
 0x64b   :  { %17172 = vst [vmem:[#allocation39_spill] sm:$0xff] %v13315_v22  ;;  %17173 = vst [vmem:[#allocation38_spill] sm:$0xff] %v13318_v53  ;;  %v5798_v32 = vmul.f32 %v13331_v47, %v13331_v47  ;;  %v13351_v10 = vsub.f32 %v13082_v27, %v13268_v23  ;;  %v13357_v59 = vsub.f32 %v13090_v37, %v13268_v23 }
 0x64c   :  { %v5799_v49 = vmul.f32 %v13335_v6, %v13335_v6  ;;  %v5800_v14 = vmul.f32 %v13339_v24, %v13339_v24  ;;  %v5801_v5 = vmul.f32 %v13347_v17, %v13347_v17  ;;  %v13363_v40 = vsub.f32 %v13079_v39, %v13268_v23 }
 0x64d   :  { %v5802_v27 = vmul.f32 %v13351_v10, %v13351_v10  ;;  %v13369_v55 = vsub.f32 %v13086_v56, %v13268_v23  ;;  %v5803_v37 = vmul.f32 %v13357_v59, %v13357_v59  ;;  %v13375_v3 = vsub.f32 %v13098_v8, %v13268_v23 }
 0x64e   :  { %v5862_v19 = vadd.f32 %v5799_v49, %v5798_v32  ;;  %v5804_v39 = vmul.f32 %v13363_v40, %v13363_v40  ;;  %v13381_v36 = vsub.f32 %v13106_v46, %v13268_v23  ;;  %v13387_v9 = vsub.f32 %v13095_v38, %v13268_v23 }
 0x64f   :  { %v5805_v56 = vmul.f32 %v13369_v55, %v13369_v55  ;;  %v5806_v8 = vmul.f32 %v13375_v3, %v13375_v3  ;;  %v13393_v32 = vsub.f32 %v13102_v50, %v13268_v23 }
 0x650   :  { %v5863_v60 = vadd.f32 %v5862_v19, %v5800_v14  ;;  %v5807_v46 = vmul.f32 %v13381_v36, %v13381_v36  ;;  %v13399_v14 = vsub.f32 %v13114_v16, %v13268_v23  ;;  %v5808_v38 = vmul.f32 %v13387_v9, %v13387_v9 }
 0x651   :  { %v5809_v50 = vmul.f32 %v13393_v32, %v13393_v32 }
 0x652   :  { %v5864_v54 = vadd.f32 %v5863_v60, %v5801_v5  ;;  %v13405_v5 = vsub.f32 %v13122_v63, %v13268_v23  ;;  %v5810_v16 = vmul.f32 %v13399_v14, %v13399_v14 }
 0x654   :  { %v5865_v11 = vadd.f32 %v5864_v54, %v5802_v27  ;;  %v13411_v27 = vsub.f32 %v13111_v48, %v13268_v23  ;;  %v5811_v63 = vmul.f32 %v13405_v5, %v13405_v5 }
 0x656   :  { %v5866_v29 = vadd.f32 %v5865_v11, %v5803_v37  ;;  %v13417_v37 = vsub.f32 %v13118_v51, %v13268_v23  ;;  %v5812_v48 = vmul.f32 %v13411_v27, %v13411_v27 }
 0x658   :  { %v5867_v4 = vadd.f32 %v5866_v29, %v5804_v39  ;;  %v13423_v39 = vsub.f32 %v13130_v34, %v13268_v23  ;;  %v5813_v51 = vmul.f32 %v13417_v37, %v13417_v37 }
 0x65a   :  { %v5868_v31 = vadd.f32 %v5867_v4, %v5805_v56  ;;  %v13429_v56 = vsub.f32 %v13138_v44, %v13268_v23  ;;  %v5814_v34 = vmul.f32 %v13423_v39, %v13423_v39 }
 0x65c   :  { %v5869_v49 = vadd.f32 %v5868_v31, %v5806_v8  ;;  %v13435_v8 = vsub.f32 %v13127_v28, %v13268_v23  ;;  %v5815_v44 = vmul.f32 %v13429_v56, %v13429_v56 }
 0x65e   :  { %v5870_v19 = vadd.f32 %v5869_v49, %v5807_v46  ;;  %v13441_v46 = vsub.f32 %v13134_v26, %v13268_v23  ;;  %v5816_v28 = vmul.f32 %v13435_v8, %v13435_v8 }
 0x660   :  { %v5871_v60 = vadd.f32 %v5870_v19, %v5808_v38  ;;  %v13447_v38 = vsub.f32 %v13146_v25, %v13268_v23  ;;  %v5817_v26 = vmul.f32 %v13441_v46, %v13441_v46 }
 0x662   :  { %v5872_v54 = vadd.f32 %v5871_v60, %v5809_v50  ;;  %v13453_v50 = vsub.f32 %v13154_v35, %v13268_v23  ;;  %v5818_v25 = vmul.f32 %v13447_v38, %v13447_v38 }
 0x664   :  { %v5873_v11 = vadd.f32 %v5872_v54, %v5810_v16  ;;  %17174 = vst [vmem:[#allocation98_spill] sm:$0xff] %v13453_v50  ;;  %v13459_v16 = vsub.f32 %v13143_v15, %v13268_v23  ;;  %v5819_v35 = vmul.f32 %v13453_v50, %v13453_v50 }
 0x666   :  { %v5874_v29 = vadd.f32 %v5873_v11, %v5811_v63  ;;  %17175 = vst [vmem:[#allocation43_spill] sm:$0xff] %v13459_v16  ;;  %v13465_v63 = vsub.f32 %v13150_v61, %v13268_v23  ;;  %v5820_v15 = vmul.f32 %v13459_v16, %v13459_v16 }
 0x668   :  { %v5875_v4 = vadd.f32 %v5874_v29, %v5812_v48  ;;  %17176 = vst [vmem:[#allocation42_spill] sm:$0xff] %v13465_v63  ;;  %v13471_v48 = vsub.f32 %v13162_v12, %v13268_v23  ;;  %v5821_v61 = vmul.f32 %v13465_v63, %v13465_v63 }
 0x66a   :  { %v5876_v31 = vadd.f32 %v5875_v4, %v5813_v51  ;;  %17177 = vst [vmem:[#allocation99_spill] sm:$0xff] %v13471_v48  ;;  %v13477_v51 = vsub.f32 %v13170_v2, %v13268_v23  ;;  %v5822_v12 = vmul.f32 %v13471_v48, %v13471_v48 }
 0x66c   :  { %v5877_v49 = vadd.f32 %v5876_v31, %v5814_v34  ;;  %17178 = vst [vmem:[#allocation54_spill] sm:$0xff] %v13477_v51  ;;  %v17179_v34 = vld [vmem:[#allocation31_spill] sm:$0xff]  ;;  %v5823_v2 = vmul.f32 %v13477_v51, %v13477_v51 }
 0x66d   :  { %v13483_v31 = vsub.f32 %v17179_v34, %v13268_v23 }
 0x66e   :  { %v5878_v19 = vadd.f32 %v5877_v49, %v5815_v44  ;;  %v17181_v49 = vld [vmem:[#allocation35_spill] sm:$0xff] }
 0x66f   :  { %17180 = vst [vmem:[#allocation53_spill] sm:$0xff] %v13483_v31 }
 0x670   :  { %v5879_v60 = vadd.f32 %v5878_v19, %v5816_v28  ;;  %v13489_v28 = vsub.f32 %v17181_v49, %v13268_v23 }
 0x672   :  { %v5880_v54 = vadd.f32 %v5879_v60, %v5817_v26  ;;  %17182 = vst [vmem:[#allocation102_spill] sm:$0xff] %v13489_v28  ;;  %v17183_v26 = vld [vmem:[#allocation51_spill] sm:$0xff] }
 0x673   :  { %v13495_v60 = vsub.f32 %v17183_v26, %v13268_v23  ;;  %v17191_v26 = vld [vmem:[#allocation79_spill] sm:$0xff] }
 0x674   :  { %v5881_v11 = vadd.f32 %v5880_v54, %v5818_v25  ;;  %v5824_v25 = vmul.f32 %v13483_v31, %v13483_v31 }
 0x675   :  { %17184 = vst [vmem:[#allocation65_spill] sm:$0xff] %v13495_v60  ;;  %v5826_v34 = vmul.f32 %v13495_v60, %v13495_v60 }
 0x676   :  { %v5882_v29 = vadd.f32 %v5881_v11, %v5819_v35  ;;  %v17185_v35 = vld [vmem:[#allocation63_spill] sm:$0xff] }
 0x677   :  { %v13501_v11 = vsub.f32 %v17185_v35, %v13268_v23  ;;  %v13519_v35 = vsub.f32 %v17191_v26, %v13268_v23  ;;  %v17196_v26 = vld [vmem:[#allocation84_spill] sm:$0xff] }
 0x678   :  { %v5883_v4 = vadd.f32 %v5882_v29, %v5820_v15  ;;  %v5825_v15 = vmul.f32 %v13489_v28, %v13489_v28 }
 0x679   :  { %17186 = vst [vmem:[#allocation64_spill] sm:$0xff] %v13501_v11  ;;  %17192 = vst [vmem:[#allocation67_spill] sm:$0xff] %v13519_v35 }
 0x67a   :  { %v5884_v44 = vadd.f32 %v5883_v4, %v5821_v61  ;;  %v17187_v61 = vld [vmem:[#allocation48_spill] sm:$0xff] }
 0x67b   :  { %v13507_v4 = vsub.f32 %v17187_v61, %v13268_v23  ;;  %v17193_v61 = vld [vmem:[#allocation24_spill] sm:$0xff] }
 0x67c   :  { %v5885_v19 = vadd.f32 %v5884_v44, %v5822_v12  ;;  %v17189_v44 = vld [vmem:[#allocation59_spill] sm:$0xff]  ;;  %v13525_v60 = vsub.f32 %v17193_v61, %v13268_v23  ;;  %v13543_v61 = vsub.f32 %v17196_v26, %v13268_v23  ;;  %v9476_v26 = vld [vmem:[%s16262_s7 + $0x10] sm:$0xff]  }
 0x67d   :  { %17188 = vst [vmem:[#allocation103_spill] sm:$0xff] %v13507_v4  ;;  %v13513_v49 = vsub.f32 %v17189_v44, %v13268_v23  ;;  %v17195_v44 = vld [vmem:[#allocation76_spill] sm:$0xff] }
 0x67e   :  { %v5886_v54 = vadd.f32 %v5885_v19, %v5823_v2  ;;  %v5827_v2 = vmul.f32 %v13501_v11, %v13501_v11  ;;  %17194 = vst [vmem:[#allocation106_spill] sm:$0xff] %v13525_v60  ;;  %v13531_v11 = vsub.f32 %v17195_v44, %v13268_v23  ;;  %v17197_v44 = vld [vmem:[#allocation25_spill] sm:$0xff] }
 0x67f   :  { %17190 = vst [vmem:[#allocation68_spill] sm:$0xff] %v13513_v49 }
 0x680   :  { %v5887_v29 = vadd.f32 %v5886_v54, %v5824_v25  ;;  %v5828_v25 = vmul.f32 %v13507_v4, %v13507_v4 }
 0x682   :  { %v5888_v12 = vadd.f32 %v5887_v29, %v5825_v15  ;;  %v5829_v15 = vmul.f32 %v13513_v49, %v13513_v49  ;;  %v17198_v49 = vld [vmem:[#allocation23_spill] sm:$0xff] }
 0x683   :  { %v13558_v4 = vsub.f32 %v17198_v49, %v13268_v23  ;;  %v17200_v49 = vld [vmem:[#allocation91_spill] sm:$0xff] }
 0x684   :  { %v5889_v19 = vadd.f32 %v5888_v12, %v5826_v34  ;;  %v5830_v34 = vmul.f32 %v13519_v35, %v13519_v35  ;;  %v13573_v28 = vsub.f32 %v17200_v49, %v13268_v23  ;;  %v17202_v49 = vld [vmem:[#allocation4_spill] sm:$0xff] }
 0x685   :  { %v13588_v51 = vsub.f32 %v17202_v49, %v13268_v23  ;;  %v17204_v49 = vld [vmem:[#allocation93_spill] sm:$0xff] }
 0x686   :  { %v5890_v54 = vadd.f32 %v5889_v19, %v5827_v2  ;;  %v9474_v2 = vld [vmem:[%s16262_s7] sm:$0xff]   ;;  %v9475_v19 = vld [vmem:[%s16262_s7 + $0x8] sm:$0xff]   ;;  %v13603_v63 = vsub.f32 %v17204_v49, %v13268_v23 }
 0x687   :  { %8785 = vmatprep.subr.bf16.mxu0 %v9474_v2 }
 0x688   :  { %v5891_v29 = vadd.f32 %v5890_v54, %v5828_v25  ;;  %v5831_v25 = vmul.f32 %v13525_v60, %v13525_v60  ;;  %8786 = vmatpush3.bf16.msra.mxu0 %v9474_v2  ;;  %v5841_v49 = vmul.f32 %v13603_v63, %v13603_v63 }
 0x689   :  { %8787 = vmatprep.subr.bf16.mxu0 %v9475_v19 }
 0x68a   :  { %v5892_v12 = vadd.f32 %v5891_v29, %v5829_v15  ;;  %v13549_v15 = vsub.f32 %v17197_v44, %v13268_v23  ;;  %v5832_v29 = vmul.f32 %v13531_v11, %v13531_v11  ;;  %v17199_v44 = vld [vmem:[#allocation88_spill] sm:$0xff] }
 0x68b   :  { %v13564_v60 = vsub.f32 %v17199_v44, %v13268_v23  ;;  %v17201_v44 = vld [vmem:[#allocation8_spill] sm:$0xff] }
 0x68c   :  { %v5893_v54 = vadd.f32 %v5892_v12, %v5830_v34  ;;  %v5833_v34 = vmul.f32 %v13543_v61, %v13543_v61  ;;  %v5834_v2 = vmul.f32 %v13549_v15, %v13549_v15  ;;  %8788 = vmatpush3.bf16.msra.mxu0 %v9475_v19  ;;  %v13579_v31 = vsub.f32 %v17201_v44, %v13268_v23  ;;  %v17203_v44 = vld [vmem:[#allocation92_spill] sm:$0xff] }
 0x68d   :  { %8789 = vmatprep.subr.bf16.mxu0 %v9476_v26  ;;  %v5836_v19 = vmul.f32 %v13564_v60, %v13564_v60  ;;  %v13594_v48 = vsub.f32 %v17203_v44, %v13268_v23  ;;  %v17205_v44 = vld [vmem:[#allocation94_spill] sm:$0xff] }
 0x68e   :  { %v5894_v35 = vadd.f32 %v5893_v54, %v5831_v25  ;;  %v9477_v54 = vld [vmem:[%s16262_s7 + $0x18] sm:$0xff]   ;;  %v13609_v16 = vsub.f32 %v17205_v44, %v13268_v23 }
 0x68f   :  { %v9481_v23 = vld [vmem:[%s16262_s7 + $0x38] sm:$0xff]  }
 0x690   :  { %v5895_v12 = vadd.f32 %v5894_v35, %v5832_v29  ;;  %v5835_v35 = vmul.f32 %v13558_v4, %v13558_v4  ;;  %8790 = vmatpush3.bf16.msra.mxu0 %v9476_v26  ;;  %v5838_v26 = vmul.f32 %v13579_v31, %v13579_v31 }
 0x691   :  { %8791 = vmatprep.subr.bf16.mxu0 %v9477_v54 }
 0x692   :  { %v5896_v25 = vadd.f32 %v5895_v12, %v5833_v34  ;;  %v9478_v12 = vld [vmem:[%s16262_s7 + $0x20] sm:$0xff]  }
 0x694   :  { %v5897_v29 = vadd.f32 %v5896_v25, %v5834_v2  ;;  %v5837_v2 = vmul.f32 %v13573_v28, %v13573_v28  ;;  %8792 = vmatpush3.bf16.msra.mxu0 %v9477_v54  ;;  %v5840_v54 = vmul.f32 %v13594_v48, %v13594_v48 }
 0x695   :  { %8793 = vmatprep.subr.bf16.mxu0 %v9478_v12 }
 0x696   :  { %v5898_v34 = vadd.f32 %v5897_v29, %v5835_v35  ;;  %v9479_v29 = vld [vmem:[%s16262_s7 + $0x28] sm:$0xff]  }
 0x698   :  { %v5899_v25 = vadd.f32 %v5898_v34, %v5836_v19  ;;  %v5839_v19 = vmul.f32 %v13588_v51, %v13588_v51  ;;  %8794 = vmatpush3.bf16.msra.mxu0 %v9478_v12  ;;  %v5843_v12 = vmul.f32 %v13271_v20, %v13271_v20 }
 0x699   :  { %8795 = vmatprep.subr.bf16.mxu0 %v9479_v29 }
 0x69a   :  { %v5900_v35 = vadd.f32 %v5899_v25, %v5837_v2  ;;  %v9480_v25 = vld [vmem:[%s16262_s7 + $0x30] sm:$0xff]  }
 0x69c   :  { %v5901_v34 = vadd.f32 %v5900_v35, %v5838_v26  ;;  %v5842_v26 = vmul.f32 %v13609_v16, %v13609_v16  ;;  %8796 = vmatpush3.bf16.msra.mxu0 %v9479_v29  ;;  %v5846_v29 = vmul.f32 %v13282_v0, %v13282_v0 }
 0x69d   :  { %8797 = vmatprep.subr.bf16.mxu0 %v9480_v25 }
 0x69e   :  { %v5902_v2 = vadd.f32 %v5901_v34, %v5839_v19  ;;  %v5844_v34 = vmul.f32 %v13275_v7, %v13275_v7 }
 0x6a0   :  { %v5903_v50 = vadd.f32 %v5902_v2, %v5840_v54  ;;  %8798 = vmatpush3.bf16.msra.mxu0 %v9480_v25  ;;  %v5845_v54 = vmul.f32 %v13279_v13, %v13279_v13  ;;  %v5849_v25 = vmul.f32 %v13291_v18, %v13291_v18 }
 0x6a1   :  { %8799 = vmatprep.subr.bf16.mxu0 %v9481_v23 }
 0x6a2   :  { %v5904_v35 = vadd.f32 %v5903_v50, %v5841_v49  ;;  %v5847_v49 = vmul.f32 %v13285_v42, %v13285_v42 }
 0x6a4   :  { %v5905_v19 = vadd.f32 %v5904_v35, %v5842_v26  ;;  %8800 = vmatpush3.bf16.msra.mxu0 %v9481_v23  ;;  %v5848_v26 = vmul.f32 %v13288_v57, %v13288_v57 }
 0x6a6   :  { %v5906_v44 = vadd.f32 %v5905_v19, %v5843_v12  ;;  %v5850_v19 = vmul.f32 %v13294_v58, %v13294_v58 }
 0x6a8   :  { %v5907_v50 = vadd.f32 %v5906_v44, %v5844_v34  ;;  %v5851_v44 = vmul.f32 %v13297_v43, %v13297_v43 }
 0x6aa   :  { %v5908_v2 = vadd.f32 %v5907_v50, %v5845_v54  ;;  %v5852_v54 = vmul.f32 %v13300_v52, %v13300_v52 }
 0x6ac   :  { %v5909_v20 = vadd.f32 %v5908_v2, %v5846_v29  ;;  %v5853_v29 = vmul.f32 %v13303_v62, %v13303_v62  ;;  %v5854_v2 = vmul.f32 %v13306_v45, %v13306_v45 }
 0x6ae   :  { %v5910_v35 = vadd.f32 %v5909_v20, %v5847_v49 }
 0x6b0   :  { %v5911_v12 = vadd.f32 %v5910_v35, %v5848_v26  ;;  %v5855_v26 = vmul.f32 %v13309_v33, %v13309_v33 }
 0x6b2   :  { %v5912_v34 = vadd.f32 %v5911_v12, %v5849_v25  ;;  %v5856_v25 = vmul.f32 %v13312_v30, %v13312_v30 }
 0x6b4   :  { %v5913_v23 = vadd.f32 %v5912_v34, %v5850_v19  ;;  %v5857_v19 = vmul.f32 %v13315_v22, %v13315_v22 }
 0x6b6   :  { %v5914_v50 = vadd.f32 %v5913_v23, %v5851_v44  ;;  %v5858_v44 = vmul.f32 %v13318_v53, %v13318_v53 }
 0x6b8   :  { %v5915_v20 = vadd.f32 %v5914_v50, %v5852_v54  ;;  %v5859_v54 = vmul.f32 %v13321_v21, %v13321_v21 }
 0x6ba   :  { %v5916_v49 = vadd.f32 %v5915_v20, %v5853_v29  ;;  %v5860_v29 = vmul.f32 %v13324_v41, %v13324_v41 }
 0x6bc   :  { %v5917_v35 = vadd.f32 %v5916_v49, %v5854_v2  ;;  %v5861_v2 = vmul.f32 %v13327_v1, %v13327_v1 }
 0x6be   :  { %v5918_v12 = vadd.f32 %v5917_v35, %v5855_v26 }
 0x6c0   :  { %v5919_v34 = vadd.f32 %v5918_v12, %v5856_v25 }
 0x6c2   :  { %v5920_v23 = vadd.f32 %v5919_v34, %v5857_v19 }
 0x6c4   :  { %v5921_v50 = vadd.f32 %v5920_v23, %v5858_v44  ;;  %v13666_v44 = vld [vmem:[%s16263_s5] ss:$0 sm:$0xff] }
 0x6c6   :  { %v5922_v20 = vadd.f32 %v5921_v50, %v5859_v54 }
 0x6c8   :  { %v5923_v49 = vadd.f32 %v5922_v20, %v5860_v29 }
 0x6ca   :  { %v5924_v26 = vadd.f32 %v5923_v49, %v5861_v2  ;;  %v17207_v2 = vld [vmem:[#allocation37_spill] sm:$0xff] }
 0x6cc   :  { %v5925_v35 = vrot.slane %v5924_v26, 4 }
 0x6ce   :  { %v5926_v22 = vadd.f32 %v5925_v35, %v5924_v26  ;;  %v17208_v26 = vld [vmem:[#allocation36_spill] sm:$0xff] }
 0x6cf   :  { %v17209_v35 = vld [vmem:[#allocation96_spill] sm:$0xff] }
 0x6d0   :  { %v5927_v25 = vrot.slane %v5926_v22, 2 }
 0x6d2   :  { %v5928_v12 = vadd.f32 %v5927_v25, %v5926_v22  ;;  %v17210_v25 = vld [vmem:[#allocation39_spill] sm:$0xff] }
 0x6d4   :  { %v5929_v30 = vrot.slane %v5928_v12, 1 }
 0x6d6   :  { %v5930_v53 = vadd.f32 %v5929_v30, %v5928_v12  ;;  %v17211_v12 = vld [vmem:[#allocation38_spill] sm:$0xff] }
 0x6d8   :  { %v5931_v19 = vmul.f32 0.001953125, %v5930_v53 }
 0x6da   :  { %v5932_v34 = vadd.f32 1e-05, %v5931_v19 }
 0x6dc   :  { %9484 = vrsqrt.f32 %v5932_v34 }
 0x6e6   :  { %v13661_v33 = vpop.eup %9484 }
 0x6e7   :  { %v5995_v23 = vmul.f32 %v13661_v33, %v13321_v21  ;;  %v5934_v22 = vmul.f32 %v13661_v33, %v13331_v47  ;;  %v5935_v30 = vmul.f32 %v13661_v33, %v13335_v6  ;;  %v5936_v53 = vmul.f32 %v13661_v33, %v13339_v24 }
 0x6e8   :  { %v5937_v50 = vmul.f32 %v13661_v33, %v13347_v17  ;;  %v5938_v29 = vmul.f32 %v13661_v33, %v13351_v10  ;;  %v5939_v21 = vmul.f32 %v13661_v33, %v13357_v59  ;;  %v5940_v20 = vmul.f32 %v13661_v33, %v13363_v40 }
 0x6e9   :  { %v13671_v54 = vmul.f32 %v13666_v44, %v5995_v23  ;;  %v5941_v47 = vmul.f32 %v13661_v33, %v13369_v55  ;;  %v13691_v6 = vmul.f32 %v13661_v33, %v13375_v3  ;;  %v13695_v24 = vmul.f32 %v13661_v33, %v13381_v36 }
 0x6ea   :  { %v13699_v17 = vmul.f32 %v13661_v33, %v13387_v9  ;;  %v13703_v10 = vmul.f32 %v13661_v33, %v13393_v32  ;;  %v13707_v59 = vmul.f32 %v13661_v33, %v13399_v14  ;;  %v13711_v40 = vmul.f32 %v13661_v33, %v13405_v5 }
 0x6eb   :  { %17206 = vst [vmem:[#allocation70_spill] sm:$0xff] %v13671_v54  ;;  %v13715_v55 = vmul.f32 %v13661_v33, %v13411_v27  ;;  %v13719_v3 = vmul.f32 %v13661_v33, %v13417_v37  ;;  %v13723_v36 = vmul.f32 %v13661_v33, %v13423_v39  ;;  %v13727_v9 = vmul.f32 %v13661_v33, %v13429_v56 }
 0x6ec   :  { %v13731_v32 = vmul.f32 %v13661_v33, %v13435_v8  ;;  %v13735_v14 = vmul.f32 %v13661_v33, %v13441_v46  ;;  %v13739_v5 = vmul.f32 %v13661_v33, %v13447_v38  ;;  %v5968_v27 = vmul.f32 %v13661_v33, %v13531_v11 }
 0x6ed   :  { %v5969_v37 = vmul.f32 %v13661_v33, %v13543_v61  ;;  %v5970_v39 = vmul.f32 %v13661_v33, %v13549_v15  ;;  %v5971_v56 = vmul.f32 %v13661_v33, %v13558_v4  ;;  %v5972_v8 = vmul.f32 %v13661_v33, %v13564_v60 }
 0x6ee   :  { %v5973_v46 = vmul.f32 %v13661_v33, %v13573_v28  ;;  %v5974_v38 = vmul.f32 %v13661_v33, %v13579_v31  ;;  %v5975_v11 = vmul.f32 %v13661_v33, %v13588_v51  ;;  %v5976_v61 = vmul.f32 %v13661_v33, %v13594_v48 }
 0x6ef   :  { %v5977_v15 = vmul.f32 %v13661_v33, %v13603_v63  ;;  %v5978_v4 = vmul.f32 %v13661_v33, %v13609_v16  ;;  %v5979_v60 = vmul.f32 %v13661_v33, %v17207_v2  ;;  %v5980_v28 = vmul.f32 %v13661_v33, %v13275_v7 }
 0x6f0   :  { %v5981_v31 = vmul.f32 %v13661_v33, %v13279_v13  ;;  %v5982_v51 = vmul.f32 %v13661_v33, %v13282_v0  ;;  %v5983_v48 = vmul.f32 %v13661_v33, %v13285_v42  ;;  %v5984_v63 = vmul.f32 %v13661_v33, %v13288_v57 }
 0x6f1   :  { %v5985_v16 = vmul.f32 %v13661_v33, %v13291_v18  ;;  %v5986_v49 = vmul.f32 %v13661_v33, %v13294_v58  ;;  %v5987_v7 = vmul.f32 %v13661_v33, %v13297_v43  ;;  %v5988_v13 = vmul.f32 %v13661_v33, %v13300_v52 }
 0x6f2   :  { %v5989_v0 = vmul.f32 %v13661_v33, %v13303_v62  ;;  %v5990_v42 = vmul.f32 %v13661_v33, %v13306_v45  ;;  %v5991_v57 = vmul.f32 %v13661_v33, %v17208_v26  ;;  %v5992_v18 = vmul.f32 %v13661_v33, %v17209_v35 }
 0x6f3   :  { %v5993_v58 = vmul.f32 %v13661_v33, %v17210_v25  ;;  %v5994_v43 = vmul.f32 %v13661_v33, %v17211_v12  ;;  %v5996_v52 = vmul.f32 %v13661_v33, %v13324_v41  ;;  %v5997_v62 = vmul.f32 %v13661_v33, %v13327_v1 }
 0x6f4   :  { %v6004_v45 = vmul.f32 %v13666_v44, %v5934_v22  ;;  %v6005_v19 = vmul.f32 %v13666_v44, %v5935_v30  ;;  %v6006_v34 = vmul.f32 %v13666_v44, %v5936_v53  ;;  %v6007_v23 = vmul.f32 %v13666_v44, %v5937_v50 }
 0x6f5   :  { %v6008_v2 = vmul.f32 %v13666_v44, %v5938_v29  ;;  %v6009_v26 = vmul.f32 %v13666_v44, %v5939_v21  ;;  %v6010_v35 = vmul.f32 %v13666_v44, %v5940_v20  ;;  %v6011_v25 = vmul.f32 %v13666_v44, %v5941_v47 }
 0x6f6   :  { %v13808_v41 = vmul.f32 %v13666_v44, %v5968_v27  ;;  %v13811_v1 = vmul.f32 %v13666_v44, %v5969_v37  ;;  %v13814_v22 = vmul.f32 %v13666_v44, %v5970_v39  ;;  %v13817_v30 = vmul.f32 %v13666_v44, %v5971_v56 }
 0x6f7   :  { %v13820_v53 = vmul.f32 %v13666_v44, %v5972_v8  ;;  %v13823_v50 = vmul.f32 %v13666_v44, %v5973_v46  ;;  %v13826_v29 = vmul.f32 %v13666_v44, %v5974_v38  ;;  %v13829_v21 = vmul.f32 %v13666_v44, %v5975_v11  ;;  %v13861_v11 = vld [vmem:[%s16264_s6] ss:$0 sm:$0xff] }
 0x6f8   :  { %v13832_v20 = vmul.f32 %v13666_v44, %v5976_v61  ;;  %v13835_v47 = vmul.f32 %v13666_v44, %v5977_v15  ;;  %v13838_v27 = vmul.f32 %v13666_v44, %v5978_v4  ;;  %v13841_v37 = vmul.f32 %v13666_v44, %v5979_v60 }
 0x6f9   :  { %v13844_v39 = vmul.f32 %v13666_v44, %v5980_v28  ;;  %v13847_v56 = vmul.f32 %v13666_v44, %v5981_v31  ;;  %v13850_v8 = vmul.f32 %v13666_v44, %v5982_v51  ;;  %v13853_v46 = vmul.f32 %v13666_v44, %v5983_v48 }
 0x6fa   :  { %v13856_v38 = vmul.f32 %v13666_v44, %v5984_v63  ;;  %v13864_v61 = vmul.f32 %v13666_v44, %v5985_v16  ;;  %v13867_v15 = vmul.f32 %v13666_v44, %v5986_v49  ;;  %v13870_v4 = vmul.f32 %v13666_v44, %v5987_v7 }
 0x6fb   :  { %v13873_v60 = vmul.f32 %v13666_v44, %v5988_v13  ;;  %v13876_v28 = vmul.f32 %v13666_v44, %v5989_v0  ;;  %v13879_v31 = vmul.f32 %v13666_v44, %v5990_v42  ;;  %v13882_v51 = vmul.f32 %v13666_v44, %v5991_v57 }
 0x6fc   :  { %v13885_v48 = vmul.f32 %v13666_v44, %v5992_v18  ;;  %v13888_v63 = vmul.f32 %v13666_v44, %v5993_v58  ;;  %v13891_v16 = vmul.f32 %v13666_v44, %v5994_v43  ;;  %v13894_v49 = vmul.f32 %v13666_v44, %v5996_v52 }
 0x6fd   :  { %v13897_v7 = vmul.f32 %v13666_v44, %v5997_v62  ;;  %v6076_v13 = vadd.f32 %v13861_v11, %v6006_v34  ;;  %v6077_v0 = vadd.f32 %v13861_v11, %v6007_v23  ;;  %v6074_v42 = vadd.f32 %v13861_v11, %v6004_v45  ;;  %v17217_v45 = vld [vmem:[#allocation43_spill] sm:$0xff] }
 0x6fe   :  { %17212 = vst [vmem:[#allocation108_spill] sm:$0xff] %v13888_v63  ;;  %17213 = vst [vmem:[#allocation80_spill] sm:$0xff] %v13891_v16  ;;  %v6075_v57 = vadd.f32 %v13861_v11, %v6005_v19  ;;  %v6012_v18 = vmul.f32 %v13666_v44, %v13691_v6  ;;  %v6013_v58 = vmul.f32 %v13666_v44, %v13695_v24  ;;  %v17218_v6 = vld [vmem:[#allocation42_spill] sm:$0xff] }
 0x6ff   :  { %17214 = vst [vmem:[#allocation111_spill] sm:$0xff] %v13894_v49  ;;  %17215 = vst [vmem:[#allocation9_spill] sm:$0xff] %v13897_v7  ;;  %v6078_v12 = vadd.f32 %v13861_v11, %v6008_v2  ;;  %v6079_v43 = vadd.f32 %v13861_v11, %v6009_v26  ;;  %v6140_v52 = vmax.f32 %v6076_v13, 0.0  ;;  %v6141_v62 = vmax.f32 %v6077_v0, 0.0  ;;  %v17216_v49 = vld [vmem:[#allocation98_spill] sm:$0xff] }
 0x700   :  { %v6138_v7 = vmax.f32 %v6074_v42, 0.0  ;;  %v6139_v34 = vmax.f32 %v6075_v57, 0.0  ;;  %v5955_v23 = vmul.f32 %v13661_v33, %v17216_v49  ;;  %v5956_v19 = vmul.f32 %v13661_v33, %v17217_v45 }
 0x701   :  { %v6142_v54 = vmax.f32 %v6078_v12, 0.0  ;;  %v6143_v16 = vmax.f32 %v6079_v43, 0.0  ;;  %v5957_v63 = vmul.f32 %v13661_v33, %v17218_v6  ;;  %v6014_v24 = vmul.f32 %v13666_v44, %v13699_v17 }
 0x702   :  { %v6203_v2 = vpack.c.bf16 %v6141_v62, %v6140_v52  ;;  %v6202_v26 = vpack.c.bf16 %v6139_v34, %v6138_v7  ;;  %v6015_v13 = vmul.f32 %v13666_v44, %v13703_v10  ;;  %v6016_v0 = vmul.f32 %v13666_v44, %v13707_v59 }
 0x703   :  { %v6080_v49 = vadd.f32 %v13861_v11, %v6010_v35  ;;  %v6081_v42 = vadd.f32 %v13861_v11, %v6011_v25  ;;  %v6017_v57 = vmul.f32 %v13666_v44, %v13711_v40  ;;  %v6204_v12 = vpack.c.bf16 %v6143_v16, %v6142_v54  ;;  %v17219_v40 = vld [vmem:[#allocation99_spill] sm:$0xff]  ;;  %v17220_v25 = vld [vmem:[#allocation54_spill] sm:$0xff] }
 0x704   :  { %8801 = vmatprep.mubr.bf16.mxu0 %v6202_v26  ;;  %v6082_v43 = vadd.f32 %v13861_v11, %v6012_v18  ;;  %v6083_v17 = vadd.f32 %v13861_v11, %v6013_v58  ;;  %v6018_v7 = vmul.f32 %v13666_v44, %v13715_v55  ;;  %v6019_v10 = vmul.f32 %v13666_v44, %v13719_v3 }
 0x705   :  { %v6020_v59 = vmul.f32 %v13666_v44, %v13723_v36  ;;  %v6021_v35 = vmul.f32 %v13666_v44, %v13727_v9  ;;  %8802 = vmatmul.mubr.bf16.vlgmr.msra.gmra.mrb[128].mxu0 %v6203_v2  ;;  %v5958_v54 = vmul.f32 %v13661_v33, %v17219_v40  ;;  %v5959_v16 = vmul.f32 %v13661_v33, %v17220_v25 }
 0x706   :  { %v6022_v18 = vmul.f32 %v13666_v44, %v13731_v32  ;;  %v6023_v55 = vmul.f32 %v13666_v44, %v13735_v14  ;;  %8805 = vmatprep.mubr.bf16.mxu0 %v6204_v12  ;;  %v6144_v3 = vmax.f32 %v6080_v49, 0.0  ;;  %v6145_v58 = vmax.f32 %v6081_v42, 0.0 }
 0x707   :  { %v6084_v36 = vadd.f32 %v13861_v11, %v6014_v24  ;;  %v6085_v9 = vadd.f32 %v13861_v11, %v6015_v13  ;;  %v6146_v52 = vmax.f32 %v6082_v43, 0.0  ;;  %v6147_v62 = vmax.f32 %v6083_v17, 0.0 }
 0x708   :  { %v6086_v34 = vadd.f32 %v13861_v11, %v6016_v0  ;;  %v6087_v45 = vadd.f32 %v13861_v11, %v6017_v57  ;;  %v6088_v6 = vadd.f32 %v13861_v11, %v6018_v7  ;;  %v6089_v32 = vadd.f32 %v13861_v11, %v6019_v10 }
 0x709   :  { %v6090_v2 = vadd.f32 %v13861_v11, %v6020_v59  ;;  %v6091_v14 = vadd.f32 %v13861_v11, %v6021_v35  ;;  %v6024_v26 = vmul.f32 %v13666_v44, %v13739_v5  ;;  %v6025_v24 = vmul.f32 %v13666_v44, %v5955_v23  ;;  %v17221_v23 = vld [vmem:[#allocation53_spill] sm:$0xff] }
 0x70a   :  { %v6026_v13 = vmul.f32 %v13666_v44, %v5956_v19  ;;  %v6027_v49 = vmul.f32 %v13666_v44, %v5957_v63  ;;  %v6205_v0 = vpack.c.bf16 %v6145_v58, %v6144_v3  ;;  %v6148_v42 = vmax.f32 %v6084_v36, 0.0  ;;  %v17222_v63 = vld [vmem:[#allocation102_spill] sm:$0xff]  ;;  %v17223_v3 = vld [vmem:[#allocation65_spill] sm:$0xff] }
 0x70b   :  { %v6092_v57 = vadd.f32 %v13861_v11, %v6022_v18  ;;  %v6093_v12 = vadd.f32 %v13861_v11, %v6023_v55  ;;  %v6206_v43 = vpack.c.bf16 %v6147_v62, %v6146_v52  ;;  %v6149_v17 = vmax.f32 %v6085_v9, 0.0  ;;  %v17224_v62 = vld [vmem:[#allocation64_spill] sm:$0xff] }
 0x70c   :  { %v6150_v7 = vmax.f32 %v6086_v34, 0.0  ;;  %v6151_v10 = vmax.f32 %v6087_v45, 0.0  ;;  %v6152_v59 = vmax.f32 %v6088_v6, 0.0  ;;  %v6153_v35 = vmax.f32 %v6089_v32, 0.0 }
 0x70d   :  { %8806 = vmatmul.mubr.bf16.gmra.mrb[132].mxu0 %v6205_v0  ;;  %v6154_v5 = vmax.f32 %v6090_v2, 0.0  ;;  %v6155_v40 = vmax.f32 %v6091_v14, 0.0  ;;  %v13960_v19 = vmul.f32 %v13661_v33, %v17221_v23  ;;  %v13964_v25 = vmul.f32 %v13661_v33, %v17222_v63 }
 0x70e   :  { %8809 = vmatprep.mubr.bf16.mxu0 %v6206_v43  ;;  %v13967_v18 = vadd.f32 %v13861_v11, %v6024_v26  ;;  %v13970_v55 = vadd.f32 %v13861_v11, %v6025_v24  ;;  %v13974_v58 = vmul.f32 %v13661_v33, %v17223_v3  ;;  %v6028_v36 = vmul.f32 %v13666_v44, %v5958_v54 }
 0x70f   :  { %v6156_v9 = vmax.f32 %v6092_v57, 0.0  ;;  %v6157_v52 = vmax.f32 %v6093_v12, 0.0  ;;  %v13979_v34 = vmul.f32 %v13661_v33, %v17224_v62  ;;  %v6029_v45 = vmul.f32 %v13666_v44, %v5959_v16 }
 0x710   :  { %v6207_v6 = vpack.c.bf16 %v6149_v17, %v6148_v42  ;;  %v6208_v32 = vpack.c.bf16 %v6151_v10, %v6150_v7  ;;  %v6209_v2 = vpack.c.bf16 %v6153_v35, %v6152_v59  ;;  %v6210_v14 = vpack.c.bf16 %v6155_v40, %v6154_v5 }
 0x711   :  { %v13983_v26 = vadd.f32 %v13861_v11, %v6026_v13  ;;  %v13986_v24 = vadd.f32 %v13861_v11, %v6027_v49  ;;  %v6158_v54 = vmax.f32 %v13967_v18, 0.0  ;;  %v6159_v0 = vmax.f32 %v13970_v55, 0.0 }
 0x712   :  { %v6108_v57 = vadd.f32 %v13861_v11, %v13808_v41  ;;  %v6109_v16 = vadd.f32 %v13861_v11, %v13811_v1  ;;  %v13994_v42 = vpack.c.bf16 %v6157_v52, %v6156_v9  ;;  %v13997_v12 = vadd.f32 %v13861_v11, %v6028_v36 }
 0x713   :  { %v6110_v13 = vadd.f32 %v13861_v11, %v13814_v22  ;;  %v6111_v49 = vadd.f32 %v13861_v11, %v13817_v30  ;;  %v6112_v7 = vadd.f32 %v13861_v11, %v13820_v53  ;;  %v6113_v41 = vadd.f32 %v13861_v11, %v13823_v50 }
 0x714   :  { %v6172_v43 = vmax.f32 %v6108_v57, 0.0  ;;  %v6173_v17 = vmax.f32 %v6109_v16, 0.0  ;;  %v14008_v1 = vadd.f32 %v13861_v11, %v6029_v45  ;;  %v6114_v22 = vadd.f32 %v13861_v11, %v13826_v29 }
 0x715   :  { %8810 = vmatmul.mubr.bf16.gmra.mrb[136].mxu0 %v6207_v6  ;;  %v6174_v10 = vmax.f32 %v6110_v13, 0.0  ;;  %v6175_v59 = vmax.f32 %v6111_v49, 0.0  ;;  %v6176_v30 = vmax.f32 %v6112_v7, 0.0  ;;  %v6177_v5 = vmax.f32 %v6113_v41, 0.0 }
 0x716   :  { %8813 = vmatprep.mubr.bf16.mxu0 %v6208_v32  ;;  %v14012_v35 = vpack.c.bf16 %v6173_v17, %v6172_v43  ;;  %v6115_v53 = vadd.f32 %v13861_v11, %v13829_v21  ;;  %v6178_v50 = vmax.f32 %v6114_v22, 0.0  ;;  %v6116_v23 = vadd.f32 %v13861_v11, %v13832_v20 }
 0x717   :  { %v14016_v40 = vpack.c.bf16 %v6175_v59, %v6174_v10  ;;  %v6117_v63 = vadd.f32 %v13861_v11, %v13835_v47  ;;  %v14022_v3 = vpack.c.bf16 %v6177_v5, %v6176_v30  ;;  %v6118_v36 = vadd.f32 %v13861_v11, %v13838_v27 }
 0x718   :  { %v6179_v29 = vmax.f32 %v6115_v53, 0.0  ;;  %v6119_v9 = vadd.f32 %v13861_v11, %v13841_v37  ;;  %v6180_v52 = vmax.f32 %v6116_v23, 0.0  ;;  %v6120_v62 = vadd.f32 %v13861_v11, %v13844_v39  ;;  %v17225_v53 = vld [vmem:[#allocation108_spill] sm:$0xff] }
 0x719   :  { %v6181_v21 = vmax.f32 %v6117_v63, 0.0  ;;  %v6121_v20 = vadd.f32 %v13861_v11, %v13847_v56  ;;  %v6182_v47 = vmax.f32 %v6118_v36, 0.0  ;;  %v6122_v32 = vadd.f32 %v13861_v11, %v13850_v8  ;;  %v17227_v36 = vld [vmem:[#allocation70_spill] sm:$0xff] }
 0x71a   :  { %v14032_v45 = vpack.c.bf16 %v6179_v29, %v6178_v50  ;;  %v6183_v6 = vmax.f32 %v6119_v9, 0.0  ;;  %v6184_v27 = vmax.f32 %v6120_v62, 0.0  ;;  %v6123_v37 = vadd.f32 %v13861_v11, %v13853_v46 }
 0x71b   :  { %v14036_v57 = vpack.c.bf16 %v6181_v21, %v6180_v52  ;;  %v6185_v16 = vmax.f32 %v6121_v20, 0.0  ;;  %v6186_v39 = vmax.f32 %v6122_v32, 0.0  ;;  %v6124_v56 = vadd.f32 %v13861_v11, %v13856_v38  ;;  %v17228_v21 = vld [vmem:[#allocation111_spill] sm:$0xff]  ;;  %v17229_v20 = vld [vmem:[#allocation9_spill] sm:$0xff] }
 0x71c   :  { %v14040_v13 = vpack.c.bf16 %v6183_v6, %v6182_v47  ;;  %v6125_v49 = vadd.f32 %v13861_v11, %v13864_v61  ;;  %v6187_v8 = vmax.f32 %v6123_v37, 0.0  ;;  %v6126_v17 = vadd.f32 %v13861_v11, %v13867_v15 }
 0x71d   :  { %8814 = vmatmul.mubr.bf16.gmra.mrb[140].mxu0 %v6209_v2  ;;  %v14046_v43 = vpack.c.bf16 %v6185_v16, %v6184_v27  ;;  %v6127_v7 = vadd.f32 %v13861_v11, %v13870_v4  ;;  %v6188_v46 = vmax.f32 %v6124_v56, 0.0  ;;  %v6128_v10 = vadd.f32 %v13861_v11, %v13873_v60 }
 0x71e   :  { %8817 = vmatprep.mubr.bf16.mxu0 %v6210_v14  ;;  %v6189_v41 = vmax.f32 %v6125_v49, 0.0  ;;  %v6129_v38 = vadd.f32 %v13861_v11, %v13876_v28  ;;  %v14056_v61 = vpack.c.bf16 %v6187_v8, %v6186_v39  ;;  %v6190_v2 = vmax.f32 %v6126_v17, 0.0 }
 0x71f   :  { %v6191_v59 = vmax.f32 %v6127_v7, 0.0  ;;  %v6130_v22 = vadd.f32 %v13861_v11, %v13879_v31  ;;  %v6192_v30 = vmax.f32 %v6128_v10, 0.0  ;;  %v6131_v14 = vadd.f32 %v13861_v11, %v13882_v51  ;;  %v17226_v31 = vld [vmem:[#allocation80_spill] sm:$0xff]  ;;  %v17230_v7 = vld [vmem:[#allocation103_spill] sm:$0xff] }
 0x720   :  { %v14060_v15 = vpack.c.bf16 %v6189_v41, %v6188_v46  ;;  %v6193_v4 = vmax.f32 %v6129_v38, 0.0  ;;  %v6132_v28 = vadd.f32 %v13861_v11, %v13885_v48  ;;  %v6133_v50 = vadd.f32 %v13861_v11, %v17225_v53  ;;  %v17231_v41 = vld [vmem:[#allocation68_spill] sm:$0xff] }
 0x721   :  { %v14064_v5 = vpack.c.bf16 %v6191_v59, %v6190_v2  ;;  %v6194_v60 = vmax.f32 %v6130_v22, 0.0  ;;  %v6195_v63 = vmax.f32 %v6131_v14, 0.0  ;;  %v6134_v29 = vadd.f32 %v13861_v11, %v17226_v31  ;;  %v17233_v2 = vld [vmem:[#allocation106_spill] sm:$0xff] }
 0x722   :  { %v14070_v23 = vpack.c.bf16 %v6193_v4, %v6192_v30  ;;  %v6135_v9 = vadd.f32 %v13861_v11, %v17227_v36  ;;  %v6196_v52 = vmax.f32 %v6132_v28, 0.0  ;;  %v6197_v51 = vmax.f32 %v6133_v50, 0.0 }
 0x723   :  { %v6136_v62 = vadd.f32 %v13861_v11, %v17228_v21  ;;  %v6137_v48 = vadd.f32 %v13861_v11, %v17229_v20  ;;  %v6212_v47 = vpack.c.bf16 %v6159_v0, %v6158_v54  ;;  %v14084_v6 = vpack.c.bf16 %v6195_v63, %v6194_v60 }
 0x724   :  { %v6198_v32 = vmax.f32 %v6134_v29, 0.0  ;;  %v6199_v27 = vmax.f32 %v6135_v9, 0.0  ;;  %v6231_v16 = vpack.c.bf16 %v6197_v51, %v6196_v52  ;;  %v6030_v56 = vmul.f32 %v13666_v44, %v13960_v19 }
 0x725   :  { %8818 = vmatmul.mubr.bf16.gmra.mrb[144].mxu0 %v13994_v42  ;;  %v6200_v37 = vmax.f32 %v6136_v62, 0.0  ;;  %v6201_v39 = vmax.f32 %v6137_v48, 0.0  ;;  %v6031_v18 = vmul.f32 %v13666_v44, %v13964_v25  ;;  %v6160_v55 = vmax.f32 %v13983_v26, 0.0  ;;  %v17232_v26 = vld [vmem:[#allocation67_spill] sm:$0xff] }
 0x726   :  { %8821 = vmatprep.mubr.bf16.mxu0 %v6212_v47  ;;  %v6232_v49 = vpack.c.bf16 %v6199_v27, %v6198_v32  ;;  %v6161_v54 = vmax.f32 %v13986_v24, 0.0  ;;  %v6032_v8 = vmul.f32 %v13666_v44, %v13974_v58  ;;  %v6033_v42 = vmul.f32 %v13666_v44, %v13979_v34 }
 0x727   :  { %v6233_v0 = vpack.c.bf16 %v6201_v39, %v6200_v37  ;;  %v6162_v17 = vmax.f32 %v13997_v12, 0.0  ;;  %v6163_v19 = vmax.f32 %v14008_v1, 0.0  ;;  %v5964_v46 = vmul.f32 %v13661_v33, %v17230_v7 }
 0x728   :  { %v5965_v25 = vmul.f32 %v13661_v33, %v17231_v41  ;;  %v5966_v24 = vmul.f32 %v13661_v33, %v17232_v26  ;;  %v6213_v10 = vpack.c.bf16 %v6161_v54, %v6160_v55  ;;  %v6100_v38 = vadd.f32 %v13861_v11, %v6030_v56 }
 0x729   :  { %v6101_v58 = vadd.f32 %v13861_v11, %v6031_v18  ;;  %v5967_v34 = vmul.f32 %v13661_v33, %v17233_v2  ;;  %v6214_v12 = vpack.c.bf16 %v6163_v19, %v6162_v17  ;;  %v6102_v1 = vadd.f32 %v13861_v11, %v6032_v8 }
 0x72a   :  { %v6103_v59 = vadd.f32 %v13861_v11, %v6033_v42  ;;  %v6034_v22 = vmul.f32 %v13666_v44, %v5964_v46  ;;  %v6035_v30 = vmul.f32 %v13666_v44, %v5965_v25  ;;  %v6164_v4 = vmax.f32 %v6100_v38, 0.0 }
 0x72b   :  { %v6165_v14 = vmax.f32 %v6101_v58, 0.0  ;;  %v6036_v60 = vmul.f32 %v13666_v44, %v5966_v24  ;;  %v6037_v28 = vmul.f32 %v13666_v44, %v5967_v34  ;;  %v6166_v53 = vmax.f32 %v6102_v1, 0.0 }
 0x72c   :  { %v6167_v50 = vmax.f32 %v6103_v59, 0.0  ;;  %v6104_v63 = vadd.f32 %v13861_v11, %v6034_v22  ;;  %v6105_v31 = vadd.f32 %v13861_v11, %v6035_v30 }
 0x72d   :  { %8822 = vmatmul.mubr.bf16.gmra.mrb[148].mxu0 %v6213_v10  ;;  %v6215_v33 = vpack.c.bf16 %v6165_v14, %v6164_v4  ;;  %v6106_v36 = vadd.f32 %v13861_v11, %v6036_v60  ;;  %v6107_v9 = vadd.f32 %v13861_v11, %v6037_v28 }
 0x72e   :  { %8825 = vmatprep.mubr.bf16.mxu0 %v6214_v12  ;;  %v6216_v29 = vpack.c.bf16 %v6167_v50, %v6166_v53  ;;  %v6168_v52 = vmax.f32 %v6104_v63, 0.0  ;;  %v6169_v51 = vmax.f32 %v6105_v31, 0.0 }
 0x72f   :  { %v6170_v21 = vmax.f32 %v6106_v36, 0.0  ;;  %v6171_v62 = vmax.f32 %v6107_v9, 0.0 }
 0x730   :  { %v6217_v20 = vpack.c.bf16 %v6169_v51, %v6168_v52 }
 0x731   :  { %v6218_v44 = vpack.c.bf16 %v6171_v62, %v6170_v21 }
 0x735   :  { %8826 = vmatmul.mubr.bf16.gmra.mrb[152].mxu0 %v6215_v33 }
 0x736   :  { %8829 = vmatprep.mubr.bf16.mxu0 %v6216_v29 }
 0x73d   :  { %8830 = vmatmul.mubr.bf16.gmra.mrb[156].mxu0 %v6217_v20 }
 0x73e   :  { %8833 = vmatprep.mubr.bf16.mxu0 %v6218_v44 }
 0x745   :  { %8834 = vmatmul.mubr.bf16.gmra.mrb[160].mxu0 %v14012_v35 }
 0x746   :  { %8837 = vmatprep.mubr.bf16.mxu0 %v14016_v40 }
 0x74d   :  { %8838 = vmatmul.mubr.bf16.gmra.mrb[164].mxu0 %v14022_v3 }
 0x74e   :  { %8841 = vmatprep.mubr.bf16.mxu0 %v14032_v45 }
 0x755   :  { %8842 = vmatmul.mubr.bf16.gmra.mrb[168].mxu0 %v14036_v57 }
 0x756   :  { %8845 = vmatprep.mubr.bf16.mxu0 %v14040_v13 }
 0x75d   :  { %8846 = vmatmul.mubr.bf16.gmra.mrb[172].mxu0 %v14046_v43 }
 0x75e   :  { %8849 = vmatprep.mubr.bf16.mxu0 %v14056_v61 }
 0x765   :  { %8850 = vmatmul.mubr.bf16.gmra.mrb[176].mxu0 %v14060_v15 }
 0x766   :  { %8853 = vmatprep.mubr.bf16.mxu0 %v14064_v5 }
 0x76d   :  { %8854 = vmatmul.mubr.bf16.gmra.mrb[180].mxu0 %v14070_v23 }
 0x76e   :  { %8857 = vmatprep.mubr.bf16.mxu0 %v14084_v6 }
 0x775   :  { %8858 = vmatmul.mubr.bf16.gmra.mrb[184].mxu0 %v6231_v16 }
 0x776   :  { %8861 = vmatprep.mubr.bf16.mxu0 %v6232_v49 }
 0x77d   :  { %8862 = vmatmul.mubr.bf16.gmra.mrb[188].mxu0 %v6233_v0 }
 0x7d8   :  { %v14131_v11 = vpop.f32.mrb[128].mxu0 }
 0x7d9   :  { %v14133_v35 = vpop.f32.mrb[129].mxu0 }
 0x7da   :  { %v14135_v40 = vpop.f32.mrb[130].mxu0 }
 0x7db   :  { %v14137_v3 = vpop.f32.mrb[131].mxu0 }
 0x7dc   :  { %v6589_v45 = vadd.f32 %v14137_v3, %v14133_v35 }
 0x7de   :  { %v6590_v57 = vadd.f32 %v14131_v11, %v6589_v45 }
 0x7e0   :  { %v14142_v13 = vpop.f32.mrb[132].mxu0  ;;  %v6591_v43 = vadd.f32 %v14135_v40, %v6590_v57 }
 0x7e1   :  { %v14145_v61 = vpop.f32.mrb[133].mxu0 }
 0x7e2   :  { %v6592_v15 = vadd.f32 %v6591_v43, %v14145_v61  ;;  %v14148_v5 = vpop.f32.mrb[134].mxu0 }
 0x7e3   :  { %v14150_v23 = vpop.f32.mrb[135].mxu0 }
 0x7e4   :  { %v6593_v48 = vadd.f32 %v6592_v15, %v14150_v23 }
 0x7e6   :  { %v6594_v47 = vadd.f32 %v14142_v13, %v6593_v48 }
 0x7e8   :  { %v14154_v6 = vpop.f32.mrb[136].mxu0  ;;  %v6595_v32 = vadd.f32 %v14148_v5, %v6594_v47 }
 0x7e9   :  { %v14157_v27 = vpop.f32.mrb[137].mxu0 }
 0x7ea   :  { %v6596_v16 = vadd.f32 %v6595_v32, %v14157_v27  ;;  %v14160_v37 = vpop.f32.mrb[138].mxu0 }
 0x7eb   :  { %v14162_v39 = vpop.f32.mrb[139].mxu0 }
 0x7ec   :  { %v6597_v56 = vadd.f32 %v6596_v16, %v14162_v39 }
 0x7ee   :  { %v6598_v49 = vadd.f32 %v14154_v6, %v6597_v56 }
 0x7f0   :  { %v14166_v18 = vpop.f32.mrb[140].mxu0  ;;  %v6599_v55 = vadd.f32 %v14160_v37, %v6598_v49 }
 0x7f1   :  { %v14169_v54 = vpop.f32.mrb[141].mxu0 }
 0x7f2   :  { %v6600_v0 = vadd.f32 %v6599_v55, %v14169_v54  ;;  %v14172_v8 = vpop.f32.mrb[142].mxu0 }
 0x7f3   :  { %v14174_v42 = vpop.f32.mrb[143].mxu0 }
 0x7f4   :  { %v6601_v17 = vadd.f32 %v6600_v0, %v14174_v42 }
 0x7f6   :  { %v6602_v19 = vadd.f32 %v14166_v18, %v6601_v17 }
 0x7f8   :  { %v14178_v7 = vpop.f32.mrb[144].mxu0  ;;  %v6603_v46 = vadd.f32 %v14172_v8, %v6602_v19 }
 0x7f9   :  { %v14181_v41 = vpop.f32.mrb[145].mxu0 }
 0x7fa   :  { %v6604_v25 = vadd.f32 %v6603_v46, %v14181_v41  ;;  %v14184_v26 = vpop.f32.mrb[146].mxu0 }
 0x7fb   :  { %v14186_v24 = vpop.f32.mrb[147].mxu0 }
 0x7fc   :  { %v6605_v10 = vadd.f32 %v6604_v25, %v14186_v24 }
 0x7fe   :  { %v6606_v38 = vadd.f32 %v14178_v7, %v6605_v10 }
 0x800   :  { %v14190_v58 = vpop.f32.mrb[148].mxu0  ;;  %v6607_v2 = vadd.f32 %v14184_v26, %v6606_v38 }
 0x801   :  { %v14193_v34 = vpop.f32.mrb[149].mxu0 }
 0x802   :  { %v6608_v12 = vadd.f32 %v6607_v2, %v14193_v34  ;;  %v14196_v1 = vpop.f32.mrb[150].mxu0 }
 0x803   :  { %v14198_v59 = vpop.f32.mrb[151].mxu0 }
 0x804   :  { %v6609_v22 = vadd.f32 %v6608_v12, %v14198_v59 }
 0x806   :  { %v6610_v30 = vadd.f32 %v14190_v58, %v6609_v22 }
 0x808   :  { %v14202_v4 = vpop.f32.mrb[152].mxu0  ;;  %v6611_v14 = vadd.f32 %v14196_v1, %v6610_v30 }
 0x809   :  { %v14205_v60 = vpop.f32.mrb[153].mxu0 }
 0x80a   :  { %v6612_v28 = vadd.f32 %v6611_v14, %v14205_v60  ;;  %v14208_v53 = vpop.f32.mrb[154].mxu0 }
 0x80b   :  { %v14210_v50 = vpop.f32.mrb[155].mxu0 }
 0x80c   :  { %v6613_v33 = vadd.f32 %v6612_v28, %v14210_v50 }
 0x80e   :  { %v6614_v63 = vadd.f32 %v14202_v4, %v6613_v33 }
 0x810   :  { %v14214_v31 = vpop.f32.mrb[156].mxu0  ;;  %v6615_v29 = vadd.f32 %v14208_v53, %v6614_v63 }
 0x811   :  { %v14217_v36 = vpop.f32.mrb[157].mxu0 }
 0x812   :  { %v6616_v9 = vadd.f32 %v6615_v29, %v14217_v36  ;;  %v14220_v52 = vpop.f32.mrb[158].mxu0 }
 0x813   :  { %v14222_v51 = vpop.f32.mrb[159].mxu0 }
 0x814   :  { %v6617_v21 = vadd.f32 %v6616_v9, %v14222_v51 }
 0x816   :  { %v6618_v62 = vadd.f32 %v14214_v31, %v6617_v21 }
 0x818   :  { %v14226_v20 = vpop.f32.mrb[160].mxu0  ;;  %v6619_v44 = vadd.f32 %v14220_v52, %v6618_v62 }
 0x819   :  { %v14229_v45 = vpop.f32.mrb[161].mxu0 }
 0x81a   :  { %v6620_v57 = vadd.f32 %v6619_v44, %v14229_v45  ;;  %v14232_v43 = vpop.f32.mrb[162].mxu0 }
 0x81b   :  { %v14234_v15 = vpop.f32.mrb[163].mxu0 }
 0x81c   :  { %v6621_v48 = vadd.f32 %v6620_v57, %v14234_v15 }
 0x81e   :  { %v6622_v47 = vadd.f32 %v14226_v20, %v6621_v48 }
 0x820   :  { %v14238_v32 = vpop.f32.mrb[164].mxu0  ;;  %v6623_v16 = vadd.f32 %v14232_v43, %v6622_v47 }
 0x821   :  { %v14241_v56 = vpop.f32.mrb[165].mxu0 }
 0x822   :  { %v6624_v49 = vadd.f32 %v6623_v16, %v14241_v56  ;;  %v14244_v55 = vpop.f32.mrb[166].mxu0 }
 0x823   :  { %v14246_v0 = vpop.f32.mrb[167].mxu0 }
 0x824   :  { %v6625_v17 = vadd.f32 %v6624_v49, %v14246_v0 }
 0x826   :  { %v6626_v19 = vadd.f32 %v14238_v32, %v6625_v17 }
 0x828   :  { %v14250_v46 = vpop.f32.mrb[168].mxu0  ;;  %v6627_v25 = vadd.f32 %v14244_v55, %v6626_v19 }
 0x829   :  { %v14253_v10 = vpop.f32.mrb[169].mxu0 }
 0x82a   :  { %v6628_v38 = vadd.f32 %v6627_v25, %v14253_v10  ;;  %v14256_v2 = vpop.f32.mrb[170].mxu0 }
 0x82b   :  { %v14258_v12 = vpop.f32.mrb[171].mxu0 }
 0x82c   :  { %v6629_v22 = vadd.f32 %v6628_v38, %v14258_v12 }
 0x82e   :  { %v6630_v30 = vadd.f32 %v14250_v46, %v6629_v22 }
 0x830   :  { %v14262_v14 = vpop.f32.mrb[172].mxu0  ;;  %v6631_v28 = vadd.f32 %v14256_v2, %v6630_v30 }
 0x831   :  { %v14265_v33 = vpop.f32.mrb[173].mxu0 }
 0x832   :  { %v6632_v63 = vadd.f32 %v6631_v28, %v14265_v33  ;;  %v14268_v29 = vpop.f32.mrb[174].mxu0 }
 0x833   :  { %v14270_v9 = vpop.f32.mrb[175].mxu0 }
 0x834   :  { %v6633_v21 = vadd.f32 %v6632_v63, %v14270_v9 }
 0x836   :  { %v6634_v62 = vadd.f32 %v14262_v14, %v6633_v21 }
 0x838   :  { %v14274_v44 = vpop.f32.mrb[176].mxu0  ;;  %v6635_v57 = vadd.f32 %v14268_v29, %v6634_v62 }
 0x839   :  { %17234 = vst [vmem:[#allocation117_spill] sm:$0xff] %v14274_v44  ;;  %v14277_v48 = vpop.f32.mrb[177].mxu0 }
 0x83a   :  { %17235 = vst [vmem:[#allocation119_spill] sm:$0xff] %v14277_v48  ;;  %v6636_v47 = vadd.f32 %v6635_v57, %v14277_v48  ;;  %v14280_v16 = vpop.f32.mrb[178].mxu0 }
 0x83b   :  { %17236 = vst [vmem:[#allocation21_spill] sm:$0xff] %v14280_v16  ;;  %v14282_v49 = vpop.f32.mrb[179].mxu0 }
 0x83c   :  { %17237 = vst [vmem:[#allocation7_spill] sm:$0xff] %v14282_v49  ;;  %v6637_v17 = vadd.f32 %v6636_v47, %v14282_v49 }
 0x83e   :  { %v6638_v19 = vadd.f32 %v14274_v44, %v6637_v17 }
 0x840   :  { %v14286_v25 = vpop.f32.mrb[180].mxu0  ;;  %v6639_v38 = vadd.f32 %v14280_v16, %v6638_v19 }
 0x841   :  { %17238 = vst [vmem:[#allocation19_spill] sm:$0xff] %v14286_v25  ;;  %v14289_v22 = vpop.f32.mrb[181].mxu0 }
 0x842   :  { %17239 = vst [vmem:[#allocation14_spill] sm:$0xff] %v14289_v22  ;;  %v6640_v30 = vadd.f32 %v6639_v38, %v14289_v22  ;;  %v14292_v28 = vpop.f32.mrb[182].mxu0 }
 0x843   :  { %17240 = vst [vmem:[#allocation11_spill] sm:$0xff] %v14292_v28  ;;  %v14294_v63 = vpop.f32.mrb[183].mxu0 }
 0x844   :  { %17241 = vst [vmem:[#allocation28_spill] sm:$0xff] %v14294_v63  ;;  %v6641_v21 = vadd.f32 %v6640_v30, %v14294_v63 }
 0x846   :  { %v6642_v62 = vadd.f32 %v14286_v25, %v6641_v21 }
 0x848   :  { %v14298_v57 = vpop.f32.mrb[184].mxu0  ;;  %v6643_v47 = vadd.f32 %v14292_v28, %v6642_v62 }
 0x849   :  { %17242 = vst [vmem:[#allocation29_spill] sm:$0xff] %v14298_v57  ;;  %v14301_v17 = vpop.f32.mrb[185].mxu0 }
 0x84a   :  { %17243 = vst [vmem:[#allocation32_spill] sm:$0xff] %v14301_v17  ;;  %v6644_v19 = vadd.f32 %v6643_v47, %v14301_v17  ;;  %v14304_v16 = vpop.f32.mrb[186].mxu0 }
 0x84b   :  { %17244 = vst [vmem:[#allocation34_spill] sm:$0xff] %v14304_v16  ;;  %v14306_v44 = vpop.f32.mrb[187].mxu0 }
 0x84c   :  { %17245 = vst [vmem:[#allocation44_spill] sm:$0xff] %v14306_v44  ;;  %v6645_v38 = vadd.f32 %v6644_v19, %v14306_v44 }
 0x84e   :  { %v6646_v22 = vadd.f32 %v14298_v57, %v6645_v38 }
 0x850   :  { %v14310_v49 = vpop.f32.mrb[188].mxu0  ;;  %v6647_v30 = vadd.f32 %v14304_v16, %v6646_v22 }
 0x851   :  { %v14313_v21 = vpop.f32.mrb[189].mxu0 }
 0x852   :  { %17246 = vst [vmem:[#allocation47_spill] sm:$0xff] %v14313_v21  ;;  %v6648_v62 = vadd.f32 %v6647_v30, %v14313_v21  ;;  %v14316_v28 = vpop.f32.mrb[190].mxu0 }
 0x853   :  { %v14318_v25 = vpop.f32.mrb[191].mxu0 }
 0x854   :  { %v6649_v47 = vadd.f32 %v6648_v62, %v14318_v25 }
 0x856   :  { %v6650_v17 = vadd.f32 %v14310_v49, %v6649_v47  ;;  %v17260_v47 = vld [vmem:[#allocation21_spill] sm:$0xff] }
 0x858   :  { %v6651_v19 = vadd.f32 %v14316_v28, %v6650_v17  ;;  %v17258_v17 = vld [vmem:[#allocation117_spill] sm:$0xff] }
 0x85a   :  { %v6652_v44 = vrot.slane %v6651_v19, 4 }
 0x85c   :  { %v6653_v38 = vadd.f32 %v6652_v44, %v6651_v19  ;;  %v17262_v19 = vld [vmem:[#allocation14_spill] sm:$0xff] }
 0x85e   :  { %v6654_v57 = vrot.slane %v6653_v38, 2 }
 0x860   :  { %v6655_v63 = vadd.f32 %v6654_v57, %v6653_v38  ;;  %v17256_v57 = vld [vmem:[#allocation7_spill] sm:$0xff]  ;;  %v17264_v38 = vld [vmem:[#allocation28_spill] sm:$0xff] }
 0x862   :  { %v6656_v48 = vrot.slane %v6655_v63, 1 }
 0x864   :  { %v6657_v22 = vadd.f32 %v6656_v48, %v6655_v63  ;;  %v17254_v63 = vld [vmem:[#allocation119_spill] sm:$0xff] }
 0x866   :  { %v14323_v16 = vmul.f32 0.001953125, %v6657_v22 }
 0x868   :  { %v14327_v30 = vsub.f32 %v14133_v35, %v14323_v16  ;;  %v14331_v21 = vsub.f32 %v14137_v3, %v14323_v16  ;;  %v14335_v62 = vsub.f32 %v14131_v11, %v14323_v16  ;;  %v14339_v44 = vsub.f32 %v14135_v40, %v14323_v16 }
 0x869   :  { %v14343_v48 = vsub.f32 %v14145_v61, %v14323_v16  ;;  %v14347_v35 = vsub.f32 %v14150_v23, %v14323_v16  ;;  %v14351_v3 = vsub.f32 %v14142_v13, %v14323_v16  ;;  %v14355_v11 = vsub.f32 %v14148_v5, %v14323_v16 }
 0x86a   :  { %17247 = vst [vmem:[#allocation49_spill] sm:$0xff] %v14327_v30  ;;  %17248 = vst [vmem:[#allocation16_spill] sm:$0xff] %v14331_v21  ;;  %v14359_v40 = vsub.f32 %v14157_v27, %v14323_v16  ;;  %v14363_v61 = vsub.f32 %v14162_v39, %v14323_v16  ;;  %v14367_v23 = vsub.f32 %v14154_v6, %v14323_v16 }
 0x86b   :  { %17249 = vst [vmem:[#allocation17_spill] sm:$0xff] %v14335_v62  ;;  %v14371_v13 = vsub.f32 %v14160_v37, %v14323_v16  ;;  %v14375_v5 = vsub.f32 %v14169_v54, %v14323_v16  ;;  %v14379_v27 = vsub.f32 %v14174_v42, %v14323_v16  ;;  %v14383_v39 = vsub.f32 %v14166_v18, %v14323_v16 }
 0x86c   :  { %v14387_v6 = vsub.f32 %v14172_v8, %v14323_v16  ;;  %v14391_v37 = vsub.f32 %v14181_v41, %v14323_v16  ;;  %v14395_v54 = vsub.f32 %v14186_v24, %v14323_v16  ;;  %v14399_v42 = vsub.f32 %v14178_v7, %v14323_v16 }
 0x86d   :  { %v14403_v18 = vsub.f32 %v14184_v26, %v14323_v16  ;;  %v14407_v8 = vsub.f32 %v14193_v34, %v14323_v16  ;;  %v14411_v41 = vsub.f32 %v14198_v59, %v14323_v16  ;;  %v14415_v24 = vsub.f32 %v14190_v58, %v14323_v16 }
 0x86e   :  { %v14419_v7 = vsub.f32 %v14196_v1, %v14323_v16  ;;  %v14423_v26 = vsub.f32 %v14205_v60, %v14323_v16  ;;  %v14427_v34 = vsub.f32 %v14210_v50, %v14323_v16  ;;  %v14431_v59 = vsub.f32 %v14202_v4, %v14323_v16 }
 0x86f   :  { %v14435_v58 = vsub.f32 %v14208_v53, %v14323_v16  ;;  %v14439_v1 = vsub.f32 %v14217_v36, %v14323_v16  ;;  %v14443_v60 = vsub.f32 %v14222_v51, %v14323_v16  ;;  %v14447_v50 = vsub.f32 %v14214_v31, %v14323_v16 }
 0x870   :  { %v14451_v4 = vsub.f32 %v14220_v52, %v14323_v16  ;;  %v14455_v53 = vsub.f32 %v14229_v45, %v14323_v16  ;;  %v14459_v36 = vsub.f32 %v14234_v15, %v14323_v16  ;;  %v14463_v51 = vsub.f32 %v14226_v20, %v14323_v16 }
 0x871   :  { %v14467_v31 = vsub.f32 %v14232_v43, %v14323_v16  ;;  %v14471_v52 = vsub.f32 %v14241_v56, %v14323_v16  ;;  %v14475_v45 = vsub.f32 %v14246_v0, %v14323_v16  ;;  %v14479_v15 = vsub.f32 %v14238_v32, %v14323_v16 }
 0x872   :  { %v14483_v20 = vsub.f32 %v14244_v55, %v14323_v16  ;;  %v14487_v43 = vsub.f32 %v14253_v10, %v14323_v16  ;;  %v14491_v56 = vsub.f32 %v14258_v12, %v14323_v16  ;;  %v14495_v0 = vsub.f32 %v14250_v46, %v14323_v16 }
 0x873   :  { %v14499_v32 = vsub.f32 %v14256_v2, %v14323_v16  ;;  %v14503_v55 = vsub.f32 %v14265_v33, %v14323_v16  ;;  %v14507_v10 = vsub.f32 %v14270_v9, %v14323_v16  ;;  %v14511_v12 = vsub.f32 %v14262_v14, %v14323_v16 }
 0x874   :  { %v14515_v46 = vsub.f32 %v14268_v29, %v14323_v16  ;;  %v14519_v2 = vsub.f32 %v17254_v63, %v14323_v16  ;;  %v14523_v33 = vsub.f32 %v17256_v57, %v14323_v16  ;;  %v14527_v9 = vsub.f32 %v17258_v17, %v14323_v16  ;;  %v17266_v63 = vld [vmem:[#allocation19_spill] sm:$0xff] }
 0x875   :  { %17250 = vst [vmem:[#allocation5_spill] sm:$0xff] %v14503_v55  ;;  %17251 = vst [vmem:[#allocation6_spill] sm:$0xff] %v14507_v10  ;;  %v14531_v14 = vsub.f32 %v17260_v47, %v14323_v16  ;;  %v14535_v29 = vsub.f32 %v17262_v19, %v14323_v16  ;;  %v14539_v22 = vsub.f32 %v17264_v38, %v14323_v16 }
 0x876   :  { %17252 = vst [vmem:[#allocation3_spill] sm:$0xff] %v14511_v12  ;;  %17253 = vst [vmem:[#allocation30_spill] sm:$0xff] %v14515_v46  ;;  %v14543_v57 = vsub.f32 %v17266_v63, %v14323_v16 }
 0x877   :  { %17255 = vst [vmem:[#allocation75_spill] sm:$0xff] %v14519_v2  ;;  %17257 = vst [vmem:[#allocation82_spill] sm:$0xff] %v14523_v33  ;;  %v17268_v33 = vld [vmem:[#allocation11_spill] sm:$0xff] }
 0x878   :  { %17259 = vst [vmem:[#allocation87_spill] sm:$0xff] %v14527_v9  ;;  %17261 = vst [vmem:[#allocation55_spill] sm:$0xff] %v14531_v14  ;;  %v14547_v17 = vsub.f32 %v17268_v33, %v14323_v16  ;;  %v17270_v9 = vld [vmem:[#allocation32_spill] sm:$0xff] }
 0x879   :  { %17263 = vst [vmem:[#allocation33_spill] sm:$0xff] %v14535_v29  ;;  %17265 = vst [vmem:[#allocation41_spill] sm:$0xff] %v14539_v22  ;;  %v14551_v47 = vsub.f32 %v17270_v9, %v14323_v16  ;;  %v17272_v14 = vld [vmem:[#allocation44_spill] sm:$0xff]  ;;  %v17274_v29 = vld [vmem:[#allocation29_spill] sm:$0xff]  ;;  %v14571_v9 = vsub.f32 %v14318_v25, %v14323_v16  ;;  %v6726_v25 = vmul.f32 %v14339_v44, %v14339_v44 }
 0x87a   :  { %17267 = vst [vmem:[#allocation46_spill] sm:$0xff] %v14543_v57  ;;  %17269 = vst [vmem:[#allocation52_spill] sm:$0xff] %v14547_v17  ;;  %v14555_v19 = vsub.f32 %v17272_v14, %v14323_v16  ;;  %v14559_v38 = vsub.f32 %v17274_v29, %v14323_v16  ;;  %v17276_v22 = vld [vmem:[#allocation34_spill] sm:$0xff]  ;;  %v17278_v57 = vld [vmem:[#allocation47_spill] sm:$0xff]  ;;  %v14575_v14 = vsub.f32 %v14310_v49, %v14323_v16 }
 0x87b   :  { %17271 = vst [vmem:[#allocation61_spill] sm:$0xff] %v14551_v47  ;;  %v14563_v63 = vsub.f32 %v17276_v22, %v14323_v16  ;;  %v14567_v33 = vsub.f32 %v17278_v57, %v14323_v16  ;;  %17280 = vst [vmem:[#allocation26_spill] sm:$0xff] %v14571_v9  ;;  %v14579_v29 = vsub.f32 %v14316_v28, %v14323_v16 }
 0x87c   :  { %17273 = vst [vmem:[#allocation69_spill] sm:$0xff] %v14555_v19  ;;  %17275 = vst [vmem:[#allocation114_spill] sm:$0xff] %v14559_v38  ;;  %v6723_v22 = vmul.f32 %v14327_v30, %v14327_v30  ;;  %v6725_v57 = vmul.f32 %v14335_v62, %v14335_v62  ;;  %v6727_v49 = vmul.f32 %v14343_v48, %v14343_v48 }
 0x87d   :  { %17277 = vst [vmem:[#allocation20_spill] sm:$0xff] %v14563_v63  ;;  %17279 = vst [vmem:[#allocation15_spill] sm:$0xff] %v14567_v33  ;;  %v6724_v63 = vmul.f32 %v14331_v21, %v14331_v21  ;;  %v6728_v16 = vmul.f32 %v14347_v35, %v14347_v35  ;;  %v6729_v30 = vmul.f32 %v14351_v3, %v14351_v3 }
 0x87e   :  { %17281 = vst [vmem:[#allocation40_spill] sm:$0xff] %v14575_v14  ;;  %v6730_v62 = vmul.f32 %v14355_v11, %v14355_v11 }
 0x87f   :  { %v6787_v33 = vadd.f32 %v6724_v63, %v6723_v22  ;;  %v6731_v22 = vmul.f32 %v14359_v40, %v14359_v40 }
 0x881   :  { %v6788_v9 = vadd.f32 %v6787_v33, %v6725_v57  ;;  %v6732_v57 = vmul.f32 %v14363_v61, %v14363_v61 }
 0x883   :  { %v6789_v14 = vadd.f32 %v6788_v9, %v6726_v25  ;;  %v6733_v25 = vmul.f32 %v14367_v23, %v14367_v23 }
 0x885   :  { %v6790_v28 = vadd.f32 %v6789_v14, %v6727_v49  ;;  %v6734_v49 = vmul.f32 %v14371_v13, %v14371_v13 }
 0x887   :  { %v6791_v21 = vadd.f32 %v6790_v28, %v6728_v16  ;;  %v6735_v28 = vmul.f32 %v14375_v5, %v14375_v5 }
 0x889   :  { %v6792_v63 = vadd.f32 %v6791_v21, %v6729_v30  ;;  %v6736_v30 = vmul.f32 %v14379_v27, %v14379_v27 }
 0x88b   :  { %v6793_v33 = vadd.f32 %v6792_v63, %v6730_v62  ;;  %v6737_v63 = vmul.f32 %v14383_v39, %v14383_v39 }
 0x88d   :  { %v6794_v9 = vadd.f32 %v6793_v33, %v6731_v22  ;;  %v6738_v33 = vmul.f32 %v14387_v6, %v14387_v6 }
 0x88f   :  { %v6795_v14 = vadd.f32 %v6794_v9, %v6732_v57  ;;  %v6739_v9 = vmul.f32 %v14391_v37, %v14391_v37 }
 0x891   :  { %v6796_v16 = vadd.f32 %v6795_v14, %v6733_v25  ;;  %v6740_v14 = vmul.f32 %v14395_v54, %v14395_v54 }
 0x893   :  { %v6797_v21 = vadd.f32 %v6796_v16, %v6734_v49  ;;  %v6741_v16 = vmul.f32 %v14399_v42, %v14399_v42 }
 0x895   :  { %v6798_v62 = vadd.f32 %v6797_v21, %v6735_v28  ;;  %v6742_v21 = vmul.f32 %v14403_v18, %v14403_v18 }
 0x897   :  { %v6799_v22 = vadd.f32 %v6798_v62, %v6736_v30  ;;  %v6743_v62 = vmul.f32 %v14407_v8, %v14407_v8 }
 0x899   :  { %v6800_v57 = vadd.f32 %v6799_v22, %v6737_v63  ;;  %v6744_v22 = vmul.f32 %v14411_v41, %v14411_v41 }
 0x89b   :  { %v6801_v25 = vadd.f32 %v6800_v57, %v6738_v33  ;;  %v6745_v57 = vmul.f32 %v14415_v24, %v14415_v24 }
 0x89d   :  { %v6802_v49 = vadd.f32 %v6801_v25, %v6739_v9  ;;  %v6746_v25 = vmul.f32 %v14419_v7, %v14419_v7 }
 0x89f   :  { %v6803_v28 = vadd.f32 %v6802_v49, %v6740_v14  ;;  %v6747_v49 = vmul.f32 %v14423_v26, %v14423_v26 }
 0x8a1   :  { %v6804_v30 = vadd.f32 %v6803_v28, %v6741_v16  ;;  %v6748_v28 = vmul.f32 %v14427_v34, %v14427_v34 }
 0x8a3   :  { %v6805_v63 = vadd.f32 %v6804_v30, %v6742_v21  ;;  %v6749_v30 = vmul.f32 %v14431_v59, %v14431_v59 }
 0x8a5   :  { %v6806_v33 = vadd.f32 %v6805_v63, %v6743_v62  ;;  %v6750_v63 = vmul.f32 %v14435_v58, %v14435_v58 }
 0x8a7   :  { %v6807_v9 = vadd.f32 %v6806_v33, %v6744_v22  ;;  %v6751_v33 = vmul.f32 %v14439_v1, %v14439_v1 }
 0x8a9   :  { %v6808_v14 = vadd.f32 %v6807_v9, %v6745_v57  ;;  %v6752_v9 = vmul.f32 %v14443_v60, %v14443_v60 }
 0x8ab   :  { %v6809_v16 = vadd.f32 %v6808_v14, %v6746_v25  ;;  %v6753_v14 = vmul.f32 %v14447_v50, %v14447_v50 }
 0x8ad   :  { %v6810_v21 = vadd.f32 %v6809_v16, %v6747_v49  ;;  %v6754_v16 = vmul.f32 %v14451_v4, %v14451_v4 }
 0x8af   :  { %v6811_v62 = vadd.f32 %v6810_v21, %v6748_v28  ;;  %v6755_v21 = vmul.f32 %v14455_v53, %v14455_v53 }
 0x8b1   :  { %v6812_v22 = vadd.f32 %v6811_v62, %v6749_v30  ;;  %v6756_v62 = vmul.f32 %v14459_v36, %v14459_v36 }
 0x8b3   :  { %v6813_v57 = vadd.f32 %v6812_v22, %v6750_v63  ;;  %v6757_v22 = vmul.f32 %v14463_v51, %v14463_v51 }
 0x8b5   :  { %v6814_v25 = vadd.f32 %v6813_v57, %v6751_v33  ;;  %v6758_v57 = vmul.f32 %v14467_v31, %v14467_v31 }
 0x8b7   :  { %v6815_v49 = vadd.f32 %v6814_v25, %v6752_v9  ;;  %v6759_v25 = vmul.f32 %v14471_v52, %v14471_v52 }
 0x8b9   :  { %v6816_v28 = vadd.f32 %v6815_v49, %v6753_v14  ;;  %v6760_v49 = vmul.f32 %v14475_v45, %v14475_v45 }
 0x8bb   :  { %v6817_v30 = vadd.f32 %v6816_v28, %v6754_v16  ;;  %v6761_v28 = vmul.f32 %v14479_v15, %v14479_v15 }
 0x8bd   :  { %v6818_v63 = vadd.f32 %v6817_v30, %v6755_v21  ;;  %v6762_v30 = vmul.f32 %v14483_v20, %v14483_v20 }
 0x8bf   :  { %v6819_v33 = vadd.f32 %v6818_v63, %v6756_v62  ;;  %v6763_v63 = vmul.f32 %v14487_v43, %v14487_v43 }
 0x8c1   :  { %v6820_v9 = vadd.f32 %v6819_v33, %v6757_v22  ;;  %v6764_v33 = vmul.f32 %v14491_v56, %v14491_v56 }
 0x8c3   :  { %v6821_v14 = vadd.f32 %v6820_v9, %v6758_v57  ;;  %v6765_v9 = vmul.f32 %v14495_v0, %v14495_v0 }
 0x8c5   :  { %v6822_v16 = vadd.f32 %v6821_v14, %v6759_v25  ;;  %v6766_v14 = vmul.f32 %v14499_v32, %v14499_v32 }
 0x8c7   :  { %v6823_v21 = vadd.f32 %v6822_v16, %v6760_v49  ;;  %v6767_v16 = vmul.f32 %v14503_v55, %v14503_v55 }
 0x8c9   :  { %v6824_v62 = vadd.f32 %v6823_v21, %v6761_v28  ;;  %v6768_v21 = vmul.f32 %v14507_v10, %v14507_v10 }
 0x8cb   :  { %v6825_v22 = vadd.f32 %v6824_v62, %v6762_v30  ;;  %v6769_v62 = vmul.f32 %v14511_v12, %v14511_v12 }
 0x8cd   :  { %v6826_v57 = vadd.f32 %v6825_v22, %v6763_v63  ;;  %v6770_v22 = vmul.f32 %v14515_v46, %v14515_v46 }
 0x8cf   :  { %v6827_v25 = vadd.f32 %v6826_v57, %v6764_v33  ;;  %v6771_v57 = vmul.f32 %v14519_v2, %v14519_v2 }
 0x8d1   :  { %v6828_v49 = vadd.f32 %v6827_v25, %v6765_v9  ;;  %v17282_v25 = vld [vmem:[#allocation82_spill] sm:$0xff] }
 0x8d2   :  { %v6772_v55 = vmul.f32 %v17282_v25, %v17282_v25 }
 0x8d3   :  { %v6829_v28 = vadd.f32 %v6828_v49, %v6766_v14  ;;  %v17283_v49 = vld [vmem:[#allocation87_spill] sm:$0xff] }
 0x8d4   :  { %v6773_v10 = vmul.f32 %v17283_v49, %v17283_v49 }
 0x8d5   :  { %v6830_v30 = vadd.f32 %v6829_v28, %v6767_v16  ;;  %v17284_v28 = vld [vmem:[#allocation55_spill] sm:$0xff] }
 0x8d6   :  { %v6774_v12 = vmul.f32 %v17284_v28, %v17284_v28 }
 0x8d7   :  { %v6831_v63 = vadd.f32 %v6830_v30, %v6768_v21  ;;  %v17285_v30 = vld [vmem:[#allocation33_spill] sm:$0xff] }
 0x8d8   :  { %v6775_v46 = vmul.f32 %v17285_v30, %v17285_v30 }
 0x8d9   :  { %v6832_v33 = vadd.f32 %v6831_v63, %v6769_v62  ;;  %v17286_v63 = vld [vmem:[#allocation41_spill] sm:$0xff] }
 0x8da   :  { %v6776_v2 = vmul.f32 %v17286_v63, %v17286_v63 }
 0x8db   :  { %v6833_v9 = vadd.f32 %v6832_v33, %v6770_v22  ;;  %v17287_v33 = vld [vmem:[#allocation46_spill] sm:$0xff] }
 0x8dc   :  { %v6777_v25 = vmul.f32 %v17287_v33, %v17287_v33 }
 0x8dd   :  { %v6834_v14 = vadd.f32 %v6833_v9, %v6771_v57  ;;  %v6778_v9 = vmul.f32 %v14547_v17, %v14547_v17 }
 0x8df   :  { %v6835_v16 = vadd.f32 %v6834_v14, %v6772_v55  ;;  %v6779_v14 = vmul.f32 %v14551_v47, %v14551_v47 }
 0x8e1   :  { %v6836_v21 = vadd.f32 %v6835_v16, %v6773_v10  ;;  %v6780_v16 = vmul.f32 %v14555_v19, %v14555_v19 }
 0x8e3   :  { %v6837_v62 = vadd.f32 %v6836_v21, %v6774_v12  ;;  %v6781_v21 = vmul.f32 %v14559_v38, %v14559_v38 }
 0x8e5   :  { %v6838_v22 = vadd.f32 %v6837_v62, %v6775_v46  ;;  %v17288_v62 = vld [vmem:[#allocation20_spill] sm:$0xff] }
 0x8e6   :  { %v6782_v33 = vmul.f32 %v17288_v62, %v17288_v62 }
 0x8e7   :  { %v6839_v57 = vadd.f32 %v6838_v22, %v6776_v2  ;;  %v17289_v22 = vld [vmem:[#allocation15_spill] sm:$0xff] }
 0x8e8   :  { %v6783_v17 = vmul.f32 %v17289_v22, %v17289_v22 }
 0x8e9   :  { %v6840_v55 = vadd.f32 %v6839_v57, %v6777_v25  ;;  %v17290_v57 = vld [vmem:[#allocation26_spill] sm:$0xff] }
 0x8ea   :  { %v6784_v47 = vmul.f32 %v17290_v57, %v17290_v57 }
 0x8eb   :  { %v6841_v10 = vadd.f32 %v6840_v55, %v6778_v9  ;;  %v17291_v55 = vld [vmem:[#allocation40_spill] sm:$0xff] }
 0x8ec   :  { %v6785_v19 = vmul.f32 %v17291_v55, %v17291_v55 }
 0x8ed   :  { %v6842_v12 = vadd.f32 %v6841_v10, %v6779_v14  ;;  %v6786_v10 = vmul.f32 %v14579_v29, %v14579_v29 }
 0x8ef   :  { %v6843_v46 = vadd.f32 %v6842_v12, %v6780_v16 }
 0x8f1   :  { %v6844_v2 = vadd.f32 %v6843_v46, %v6781_v21 }
 0x8f3   :  { %v6845_v25 = vadd.f32 %v6844_v2, %v6782_v33 }
 0x8f5   :  { %v6846_v9 = vadd.f32 %v6845_v25, %v6783_v17  ;;  %v17292_v17 = vld [vmem:[#allocation49_spill] sm:$0xff] }
 0x8f7   :  { %v6847_v14 = vadd.f32 %v6846_v9, %v6784_v47  ;;  %v17293_v47 = vld [vmem:[#allocation16_spill] sm:$0xff] }
 0x8f9   :  { %v6848_v16 = vadd.f32 %v6847_v14, %v6785_v19  ;;  %v17294_v19 = vld [vmem:[#allocation17_spill] sm:$0xff] }
 0x8fb   :  { %v6849_v12 = vadd.f32 %v6848_v16, %v6786_v10  ;;  %v17295_v16 = vld [vmem:[#allocation5_spill] sm:$0xff] }
 0x8fd   :  { %v6850_v38 = vrot.slane %v6849_v12, 4 }
 0x8ff   :  { %v6851_v62 = vadd.f32 %v6850_v38, %v6849_v12  ;;  %v17296_v12 = vld [vmem:[#allocation6_spill] sm:$0xff] }
 0x901   :  { %v6852_v21 = vrot.slane %v6851_v62, 2 }
 0x903   :  { %v6853_v46 = vadd.f32 %v6852_v21, %v6851_v62  ;;  %v17297_v21 = vld [vmem:[#allocation3_spill] sm:$0xff] }
 0x905   :  { %v6854_v63 = vrot.slane %v6853_v46, 1 }
 0x907   :  { %v6855_v22 = vadd.f32 %v6854_v63, %v6853_v46  ;;  %v17298_v46 = vld [vmem:[#allocation30_spill] sm:$0xff] }
 0x909   :  { %v6856_v33 = vmul.f32 0.001953125, %v6855_v22 }
 0x90b   :  { %v6857_v2 = vadd.f32 1e-05, %v6856_v33  ;;  %v17299_v33 = vld [vmem:[#allocation75_spill] sm:$0xff] }
 0x90d   :  { %9486 = vrsqrt.f32 %v6857_v2  ;;  %v17300_v2 = vld [vmem:[#allocation82_spill] sm:$0xff] }
 0x917   :  { %v14709_v57 = vpop.eup %9486 }
 0x918   :  { %v14713_v25 = vmul.f32 %v14709_v57, %v17292_v17  ;;  %v14717_v9 = vmul.f32 %v14709_v57, %v17293_v47  ;;  %v14721_v38 = vmul.f32 %v14709_v57, %v17294_v19  ;;  %v14725_v63 = vmul.f32 %v14709_v57, %v14339_v44 }
 0x919   :  { %v14729_v62 = vmul.f32 %v14709_v57, %v14343_v48  ;;  %v14733_v22 = vmul.f32 %v14709_v57, %v14347_v35  ;;  %v14737_v14 = vmul.f32 %v14709_v57, %v14351_v3  ;;  %v14741_v10 = vmul.f32 %v14709_v57, %v14355_v11 }
 0x91a   :  { %v14745_v44 = vmul.f32 %v14709_v57, %v14359_v40  ;;  %v14749_v48 = vmul.f32 %v14709_v57, %v14363_v61  ;;  %v14753_v35 = vmul.f32 %v14709_v57, %v14367_v23  ;;  %v14757_v3 = vmul.f32 %v14709_v57, %v14371_v13 }
 0x91b   :  { %v14761_v11 = vmul.f32 %v14709_v57, %v14375_v5  ;;  %v14765_v40 = vmul.f32 %v14709_v57, %v14379_v27  ;;  %v14769_v61 = vmul.f32 %v14709_v57, %v14383_v39  ;;  %v14773_v23 = vmul.f32 %v14709_v57, %v14387_v6 }
 0x91c   :  { %v14777_v13 = vmul.f32 %v14709_v57, %v14391_v37  ;;  %v14781_v5 = vmul.f32 %v14709_v57, %v14395_v54  ;;  %v14785_v27 = vmul.f32 %v14709_v57, %v14399_v42  ;;  %v14789_v39 = vmul.f32 %v14709_v57, %v14403_v18 }
 0x91d   :  { %v14793_v6 = vmul.f32 %v14709_v57, %v14407_v8  ;;  %v14797_v37 = vmul.f32 %v14709_v57, %v14411_v41  ;;  %v14801_v54 = vmul.f32 %v14709_v57, %v14415_v24  ;;  %v14805_v42 = vmul.f32 %v14709_v57, %v14419_v7 }
 0x91e   :  { %v14809_v18 = vmul.f32 %v14709_v57, %v14423_v26  ;;  %v14813_v8 = vmul.f32 %v14709_v57, %v14427_v34  ;;  %v14817_v41 = vmul.f32 %v14709_v57, %v14431_v59  ;;  %v14821_v24 = vmul.f32 %v14709_v57, %v14435_v58 }
 0x91f   :  { %v14825_v7 = vmul.f32 %v14709_v57, %v14439_v1  ;;  %v14829_v26 = vmul.f32 %v14709_v57, %v14443_v60  ;;  %v14833_v34 = vmul.f32 %v14709_v57, %v14447_v50  ;;  %v14837_v59 = vmul.f32 %v14709_v57, %v14451_v4 }
 0x920   :  { %v14841_v58 = vmul.f32 %v14709_v57, %v14455_v53  ;;  %v14845_v1 = vmul.f32 %v14709_v57, %v14459_v36  ;;  %v14849_v60 = vmul.f32 %v14709_v57, %v14463_v51  ;;  %v14853_v50 = vmul.f32 %v14709_v57, %v14467_v31 }
 0x921   :  { %v14857_v4 = vmul.f32 %v14709_v57, %v14471_v52  ;;  %v14861_v53 = vmul.f32 %v14709_v57, %v14475_v45  ;;  %v14865_v36 = vmul.f32 %v14709_v57, %v14479_v15  ;;  %v14869_v51 = vmul.f32 %v14709_v57, %v14483_v20 }
 0x922   :  { %v14873_v31 = vmul.f32 %v14709_v57, %v14487_v43  ;;  %v14877_v52 = vmul.f32 %v14709_v57, %v14491_v56  ;;  %v14881_v45 = vmul.f32 %v14709_v57, %v14495_v0  ;;  %v14885_v15 = vmul.f32 %v14709_v57, %v14499_v32 }
 0x923   :  { %v14889_v20 = vmul.f32 %v14709_v57, %v17295_v16  ;;  %v14893_v43 = vmul.f32 %v14709_v57, %v17296_v12  ;;  %v14897_v56 = vmul.f32 %v14709_v57, %v17297_v21  ;;  %v14901_v0 = vmul.f32 %v14709_v57, %v17298_v46  ;;  %v14922_v16 = vld [vmem:[%s16265_s8] ss:$0 sm:$0xff]  ;;  %v17305_v21 = vld [vmem:[#allocation41_spill] sm:$0xff] }
 0x924   :  { %v14905_v32 = vmul.f32 %v14709_v57, %v17299_v33  ;;  %v14909_v17 = vmul.f32 %v14709_v57, %v17300_v2  ;;  %v14913_v47 = vmul.f32 %v14709_v57, %v17283_v49  ;;  %v14917_v19 = vmul.f32 %v14709_v57, %v17284_v28  ;;  %v17307_v33 = vld [vmem:[#allocation46_spill] sm:$0xff]  ;;  %v17309_v2 = vld [vmem:[#allocation52_spill] sm:$0xff] }
 0x925   :  { %v14926_v12 = vmul.f32 %v14709_v57, %v17285_v30  ;;  %v14930_v46 = vmul.f32 %v14709_v57, %v17305_v21  ;;  %v14934_v49 = vmul.f32 %v14709_v57, %v17307_v33  ;;  %v14938_v28 = vmul.f32 %v14709_v57, %v17309_v2 }
 0x926   :  { %17301 = vst [vmem:[#allocation45_spill] sm:$0xff] %v14909_v17  ;;  %17302 = vst [vmem:[#allocation57_spill] sm:$0xff] %v14913_v47  ;;  %v17312_v17 = vld [vmem:[#allocation69_spill] sm:$0xff] }
 0x927   :  { %17303 = vst [vmem:[#allocation58_spill] sm:$0xff] %v14917_v19  ;;  %17304 = vst [vmem:[#allocation73_spill] sm:$0xff] %v14926_v12  ;;  %v17311_v19 = vld [vmem:[#allocation61_spill] sm:$0xff]  ;;  %v14946_v30 = vmul.f32 %v14709_v57, %v17312_v17  ;;  %v17313_v12 = vld [vmem:[#allocation114_spill] sm:$0xff]  ;;  %v14966_v17 = vmul.f32 %v14709_v57, %v17291_v55  ;;  %v14986_v55 = vmul.f32 %v14922_v16, %v14725_v63 }
 0x928   :  { %17306 = vst [vmem:[#allocation74_spill] sm:$0xff] %v14930_v46  ;;  %17308 = vst [vmem:[#allocation85_spill] sm:$0xff] %v14934_v49  ;;  %v14942_v47 = vmul.f32 %v14709_v57, %v17311_v19  ;;  %v14950_v21 = vmul.f32 %v14709_v57, %v17313_v12  ;;  %v17314_v46 = vld [vmem:[#allocation20_spill] sm:$0xff]  ;;  %v17315_v49 = vld [vmem:[#allocation15_spill] sm:$0xff]  ;;  %v14970_v12 = vmul.f32 %v14709_v57, %v14579_v29 }
 0x929   :  { %17310 = vst [vmem:[#allocation86_spill] sm:$0xff] %v14938_v28  ;;  %v14954_v33 = vmul.f32 %v14709_v57, %v17314_v46  ;;  %v14958_v2 = vmul.f32 %v14709_v57, %v17315_v49  ;;  %v17316_v28 = vld [vmem:[#allocation26_spill] sm:$0xff]  ;;  %v14974_v46 = vmul.f32 %v14922_v16, %v14713_v25  ;;  %v14978_v49 = vmul.f32 %v14922_v16, %v14717_v9 }
 0x92a   :  { %v14962_v19 = vmul.f32 %v14709_v57, %v17316_v28  ;;  %v14982_v28 = vmul.f32 %v14922_v16, %v14721_v38  ;;  %v14990_v29 = vmul.f32 %v14922_v16, %v14729_v62  ;;  %v14994_v57 = vmul.f32 %v14922_v16, %v14733_v22 }
 0x92b   :  { %v14998_v25 = vmul.f32 %v14922_v16, %v14737_v14  ;;  %v15002_v9 = vmul.f32 %v14922_v16, %v14741_v10  ;;  %v15006_v38 = vmul.f32 %v14922_v16, %v14745_v44  ;;  %v15010_v63 = vmul.f32 %v14922_v16, %v14749_v48 }
 0x92c   :  { %v15014_v62 = vmul.f32 %v14922_v16, %v14753_v35  ;;  %v15018_v22 = vmul.f32 %v14922_v16, %v14757_v3  ;;  %v15022_v14 = vmul.f32 %v14922_v16, %v14761_v11  ;;  %v15026_v10 = vmul.f32 %v14922_v16, %v14765_v40 }
 0x92d   :  { %v15030_v44 = vmul.f32 %v14922_v16, %v14769_v61  ;;  %v15034_v48 = vmul.f32 %v14922_v16, %v14773_v23  ;;  %v15038_v35 = vmul.f32 %v14922_v16, %v14777_v13  ;;  %v15042_v3 = vmul.f32 %v14922_v16, %v14781_v5 }
 0x92e   :  { %v15046_v11 = vmul.f32 %v14922_v16, %v14785_v27  ;;  %v15050_v40 = vmul.f32 %v14922_v16, %v14789_v39  ;;  %v15054_v61 = vmul.f32 %v14922_v16, %v14793_v6  ;;  %v15058_v23 = vmul.f32 %v14922_v16, %v14797_v37 }
 0x92f   :  { %v15062_v13 = vmul.f32 %v14922_v16, %v14801_v54  ;;  %v15066_v5 = vmul.f32 %v14922_v16, %v14805_v42  ;;  %v15070_v27 = vmul.f32 %v14922_v16, %v14809_v18  ;;  %v15074_v39 = vmul.f32 %v14922_v16, %v14813_v8 }
 0x930   :  { %v15078_v6 = vmul.f32 %v14922_v16, %v14817_v41  ;;  %v15082_v37 = vmul.f32 %v14922_v16, %v14821_v24  ;;  %v15086_v54 = vmul.f32 %v14922_v16, %v14825_v7  ;;  %v15090_v42 = vmul.f32 %v14922_v16, %v14829_v26 }
 0x931   :  { %v15094_v18 = vmul.f32 %v14922_v16, %v14833_v34  ;;  %v15098_v8 = vmul.f32 %v14922_v16, %v14837_v59  ;;  %v15102_v41 = vmul.f32 %v14922_v16, %v14841_v58  ;;  %v15106_v24 = vmul.f32 %v14922_v16, %v14845_v1 }
 0x932   :  { %v15110_v7 = vmul.f32 %v14922_v16, %v14849_v60  ;;  %v15114_v26 = vmul.f32 %v14922_v16, %v14853_v50  ;;  %v15118_v34 = vmul.f32 %v14922_v16, %v14857_v4  ;;  %v15122_v59 = vmul.f32 %v14922_v16, %v14861_v53 }
 0x933   :  { %v15126_v58 = vmul.f32 %v14922_v16, %v14865_v36  ;;  %v15130_v1 = vmul.f32 %v14922_v16, %v14869_v51  ;;  %v15134_v60 = vmul.f32 %v14922_v16, %v14873_v31  ;;  %v15138_v50 = vmul.f32 %v14922_v16, %v14877_v52 }
 0x934   :  { %v15142_v4 = vmul.f32 %v14922_v16, %v14881_v45  ;;  %v15146_v53 = vmul.f32 %v14922_v16, %v14885_v15  ;;  %v15150_v36 = vmul.f32 %v14922_v16, %v14889_v20  ;;  %v15154_v51 = vmul.f32 %v14922_v16, %v14893_v43  ;;  %v17321_v15 = vld [vmem:[#allocation45_spill] sm:$0xff] }
 0x935   :  { %v15158_v31 = vmul.f32 %v14922_v16, %v14897_v56  ;;  %v15162_v52 = vmul.f32 %v14922_v16, %v14901_v0  ;;  %v15166_v45 = vmul.f32 %v14922_v16, %v14905_v32  ;;  %v15170_v20 = vmul.f32 %v14922_v16, %v17321_v15  ;;  %v15183_v0 = vld [vmem:[%s16266_s9] ss:$0 sm:$0xff] }
 0x936   :  { %17317 = vst [vmem:[#allocation89_spill] sm:$0xff] %v15150_v36  ;;  %17318 = vst [vmem:[#allocation90_spill] sm:$0xff] %v15154_v51  ;;  %v17323_v36 = vld [vmem:[#allocation57_spill] sm:$0xff]  ;;  %v17325_v51 = vld [vmem:[#allocation58_spill] sm:$0xff] }
 0x937   :  { %17319 = vst [vmem:[#allocation27_spill] sm:$0xff] %v15162_v52  ;;  %17320 = vst [vmem:[#allocation56_spill] sm:$0xff] %v15166_v45  ;;  %v15174_v43 = vmul.f32 %v14922_v16, %v17323_v36  ;;  %v15178_v56 = vmul.f32 %v14922_v16, %v17325_v51  ;;  %v17327_v52 = vld [vmem:[#allocation73_spill] sm:$0xff]  ;;  %v17328_v45 = vld [vmem:[#allocation74_spill] sm:$0xff] }
 0x938   :  { %17322 = vst [vmem:[#allocation95_spill] sm:$0xff] %v15170_v20  ;;  %v15187_v32 = vmul.f32 %v14922_v16, %v17327_v52  ;;  %v15191_v15 = vmul.f32 %v14922_v16, %v17328_v45  ;;  %v17329_v20 = vld [vmem:[#allocation85_spill] sm:$0xff]  ;;  %v15207_v52 = vmul.f32 %v14922_v16, %v14946_v30  ;;  %v15211_v45 = vmul.f32 %v14922_v16, %v14950_v21 }
 0x939   :  { %17324 = vst [vmem:[#allocation97_spill] sm:$0xff] %v15174_v43  ;;  %17326 = vst [vmem:[#allocation100_spill] sm:$0xff] %v15178_v56  ;;  %v15195_v36 = vmul.f32 %v14922_v16, %v17329_v20  ;;  %v17330_v43 = vld [vmem:[#allocation86_spill] sm:$0xff]  ;;  %v15203_v56 = vmul.f32 %v14922_v16, %v14942_v47  ;;  %v15215_v20 = vmul.f32 %v14922_v16, %v14954_v33 }
 0x93a   :  { %v15199_v51 = vmul.f32 %v14922_v16, %v17330_v43  ;;  %v15219_v43 = vmul.f32 %v14922_v16, %v14958_v2  ;;  %v15223_v47 = vmul.f32 %v14922_v16, %v14962_v19  ;;  %v15227_v30 = vmul.f32 %v14922_v16, %v14966_v17 }
 0x93b   :  { %v15231_v21 = vmul.f32 %v14922_v16, %v14970_v12  ;;  %v15235_v33 = vadd.f32 %v15183_v0, %v14974_v46  ;;  %v15239_v2 = vadd.f32 %v15183_v0, %v14978_v49  ;;  %v15243_v19 = vadd.f32 %v15183_v0, %v14982_v28 }
 0x93c   :  { %v15247_v17 = vadd.f32 %v15183_v0, %v14986_v55  ;;  %v15251_v16 = vadd.f32 %v15183_v0, %v14990_v29  ;;  %v15255_v12 = vadd.f32 %v15183_v0, %v14994_v57  ;;  %v15259_v46 = vadd.f32 %v15183_v0, %v14998_v25 }
 0x93d   :  { %v15263_v49 = vadd.f32 %v15183_v0, %v15002_v9  ;;  %v15267_v28 = vadd.f32 %v15183_v0, %v15006_v38  ;;  %v15271_v55 = vadd.f32 %v15183_v0, %v15010_v63  ;;  %v15275_v29 = vadd.f32 %v15183_v0, %v15014_v62 }
 0x93e   :  { %v15279_v57 = vadd.f32 %v15183_v0, %v15018_v22  ;;  %v15283_v25 = vadd.f32 %v15183_v0, %v15022_v14  ;;  %v15287_v9 = vadd.f32 %v15183_v0, %v15026_v10  ;;  %v15291_v38 = vadd.f32 %v15183_v0, %v15030_v44 }
 0x93f   :  { %v15295_v63 = vadd.f32 %v15183_v0, %v15034_v48  ;;  %v15299_v62 = vadd.f32 %v15183_v0, %v15038_v35  ;;  %v15303_v22 = vadd.f32 %v15183_v0, %v15042_v3  ;;  %v15307_v14 = vadd.f32 %v15183_v0, %v15046_v11 }
 0x940   :  { %v15311_v10 = vadd.f32 %v15183_v0, %v15050_v40  ;;  %v15315_v44 = vadd.f32 %v15183_v0, %v15054_v61  ;;  %v15319_v48 = vadd.f32 %v15183_v0, %v15058_v23  ;;  %v15323_v35 = vadd.f32 %v15183_v0, %v15062_v13 }
 0x941   :  { %v15327_v3 = vadd.f32 %v15183_v0, %v15066_v5  ;;  %v15331_v11 = vadd.f32 %v15183_v0, %v15070_v27  ;;  %v15335_v40 = vadd.f32 %v15183_v0, %v15074_v39  ;;  %v15339_v61 = vadd.f32 %v15183_v0, %v15078_v6 }
 0x942   :  { %v15343_v23 = vadd.f32 %v15183_v0, %v15082_v37  ;;  %v15347_v13 = vadd.f32 %v15183_v0, %v15086_v54  ;;  %v15351_v5 = vadd.f32 %v15183_v0, %v15090_v42  ;;  %v15355_v27 = vadd.f32 %v15183_v0, %v15094_v18 }
 0x943   :  { %v15359_v39 = vadd.f32 %v15183_v0, %v15098_v8  ;;  %v15363_v6 = vadd.f32 %v15183_v0, %v15102_v41  ;;  %v15367_v37 = vadd.f32 %v15183_v0, %v15106_v24  ;;  %v15371_v54 = vadd.f32 %v15183_v0, %v15110_v7 }
 0x944   :  { %17331 = vst [vmem:[#allocation101_spill] sm:$0xff] %v15355_v27  ;;  %v15375_v42 = vadd.f32 %v15183_v0, %v15114_v26  ;;  %v15379_v18 = vadd.f32 %v15183_v0, %v15118_v34  ;;  %v15383_v8 = vadd.f32 %v15183_v0, %v15122_v59  ;;  %v15387_v41 = vadd.f32 %v15183_v0, %v15126_v58  ;;  %v17340_v58 = vld [vmem:[#allocation89_spill] sm:$0xff] }
 0x945   :  { %17332 = vst [vmem:[#allocation104_spill] sm:$0xff] %v15359_v39  ;;  %17333 = vst [vmem:[#allocation105_spill] sm:$0xff] %v15363_v6  ;;  %v15391_v24 = vadd.f32 %v15183_v0, %v15130_v1  ;;  %v15395_v7 = vadd.f32 %v15183_v0, %v15134_v60  ;;  %v15399_v26 = vadd.f32 %v15183_v0, %v15138_v50 }
 0x946   :  { %17334 = vst [vmem:[#allocation107_spill] sm:$0xff] %v15367_v37  ;;  %17335 = vst [vmem:[#allocation109_spill] sm:$0xff] %v15371_v54  ;;  %v15403_v34 = vadd.f32 %v15183_v0, %v15142_v4  ;;  %v15407_v59 = vadd.f32 %v15183_v0, %v15146_v53  ;;  %v15411_v1 = vadd.f32 %v15183_v0, %v17340_v58 }
 0x947   :  { %17336 = vst [vmem:[#allocation110_spill] sm:$0xff] %v15391_v24  ;;  %17337 = vst [vmem:[#allocation112_spill] sm:$0xff] %v15399_v26  ;;  %v17342_v24 = vld [vmem:[#allocation90_spill] sm:$0xff]  ;;  %v15419_v50 = vadd.f32 %v15183_v0, %v15158_v31  ;;  %v17344_v26 = vld [vmem:[#allocation27_spill] sm:$0xff] }
 0x948   :  { %17338 = vst [vmem:[#allocation113_spill] sm:$0xff] %v15403_v34  ;;  %17339 = vst [vmem:[#allocation115_spill] sm:$0xff] %v15407_v59  ;;  %v15415_v60 = vadd.f32 %v15183_v0, %v17342_v24  ;;  %v15423_v4 = vadd.f32 %v15183_v0, %v17344_v26  ;;  %v17346_v34 = vld [vmem:[#allocation56_spill] sm:$0xff]  ;;  %v17348_v59 = vld [vmem:[#allocation95_spill] sm:$0xff]  ;;  %v15443_v26 = vadd.f32 %v15183_v0, %v15187_v32 }
 0x949   :  { %17341 = vst [vmem:[#allocation116_spill] sm:$0xff] %v15411_v1  ;;  %v15427_v53 = vadd.f32 %v15183_v0, %v17346_v34  ;;  %v15431_v58 = vadd.f32 %v15183_v0, %v17348_v59  ;;  %v17350_v1 = vld [vmem:[#allocation97_spill] sm:$0xff]  ;;  %v15447_v34 = vadd.f32 %v15183_v0, %v15191_v15  ;;  %v15451_v59 = vadd.f32 %v15183_v0, %v15195_v36 }
 0x94a   :  { %17343 = vst [vmem:[#allocation118_spill] sm:$0xff] %v15415_v60  ;;  %17345 = vst [vmem:[#allocation50_spill] sm:$0xff] %v15423_v4  ;;  %v15435_v24 = vadd.f32 %v15183_v0, %v17350_v1  ;;  %v17352_v60 = vld [vmem:[#allocation100_spill] sm:$0xff]  ;;  %v15455_v1 = vadd.f32 %v15183_v0, %v15199_v51  ;;  %v15463_v32 = vadd.f32 %v15183_v0, %v15207_v52 }
 0x94b   :  { %17347 = vst [vmem:[#allocation60_spill] sm:$0xff] %v15427_v53  ;;  %17349 = vst [vmem:[#allocation62_spill] sm:$0xff] %v15431_v58  ;;  %v15439_v31 = vadd.f32 %v15183_v0, %v17352_v60  ;;  %v15459_v60 = vadd.f32 %v15183_v0, %v15203_v56  ;;  %v15467_v15 = vadd.f32 %v15183_v0, %v15211_v45 }
 0x94c   :  { %17351 = vst [vmem:[#allocation71_spill] sm:$0xff] %v15435_v24  ;;  %v15471_v36 = vadd.f32 %v15183_v0, %v15215_v20  ;;  %v15475_v51 = vadd.f32 %v15183_v0, %v15219_v43  ;;  %v15479_v56 = vadd.f32 %v15183_v0, %v15223_v47  ;;  %v15483_v52 = vadd.f32 %v15183_v0, %v15227_v30  ;;  %v9503_v47 = vld [vmem:[%s16258_s0] sm:$0xff]  ;;  %v9505_v43 = vld [vmem:[%s16258_s0 + $0x10] sm:$0xff] }
 0x94d   :  { %17353 = vst [vmem:[#allocation72_spill] sm:$0xff] %v15439_v31  ;;  %17354 = vst [vmem:[#allocation77_spill] sm:$0xff] %v15467_v15  ;;  %v15487_v45 = vadd.f32 %v15183_v0, %v15231_v21  ;;  %v9504_v0 = vld [vmem:[%s16258_s0 + $0x8] sm:$0xff]  ;;  %v17371_v21 = vmax.f32 %v15239_v2, 0.0  ;;  %v9507_v2 = vld [vmem:[%s16258_s0 + $0x20] sm:$0xff] }
 0x94e   :  { %17355 = vst [vmem:[#allocation78_spill] sm:$0xff] %v15471_v36  ;;  %17356 = vst [vmem:[#allocation81_spill] sm:$0xff] %v15475_v51  ;;  %v17359_v15 = vld [vmem:[#allocation110_spill] sm:$0xff]  ;;  %v17360_v27 = vld [vmem:[#allocation112_spill] sm:$0xff]  ;;  %v17366_v53 = vmov %v15471_v36  ;;  %v17367_v58 = vmov %v15475_v51  ;;  %v17368_v24 = vmov %v15479_v56  ;;  %v17369_v31 = vmov %v15483_v52 }
 0x94f   :  { %17357 = vst [vmem:[#allocation83_spill] sm:$0xff] %v15479_v56  ;;  %17358 = vst [vmem:[#allocation10_spill] sm:$0xff] %v15483_v52  ;;  %v17361_v39 = vld [vmem:[#allocation113_spill] sm:$0xff]  ;;  %v17362_v6 = vld [vmem:[#allocation115_spill] sm:$0xff]  ;;  %v17370_v56 = vmax.f32 %v15235_v33, 0.0  ;;  %v15565_v52 = vadd.f32 %v9504_v0, %v17371_v21  ;;  %v17372_v36 = vmax.f32 %v15243_v19, 0.0 }
 0x950   :  { %v17363_v37 = vld [vmem:[#allocation116_spill] sm:$0xff]  ;;  %v9506_v33 = vld [vmem:[%s16258_s0 + $0x18] sm:$0xff]  ;;  %v17374_v0 = vmax.f32 %v15251_v16, 0.0 }
 0x951   :  { %v17364_v54 = vld [vmem:[#allocation118_spill] sm:$0xff]  ;;  %v15558_v51 = vadd.f32 %v9503_v47, %v17370_v56  ;;  %v15572_v20 = vadd.f32 %v9505_v43, %v17372_v36  ;;  %v17373_v56 = vmax.f32 %v15247_v17, 0.0  ;;  %v9508_v19 = vld [vmem:[%s16258_s0 + $0x28] sm:$0xff]  ;;  %v17375_v36 = vmax.f32 %v15255_v12, 0.0  ;;  %v9509_v17 = vld [vmem:[%s16258_s0 + $0x30] sm:$0xff] }
 0x952   :  { %v15586_v21 = vadd.f32 %v9507_v2, %v17374_v0  ;;  %v9510_v16 = vld [vmem:[%s16258_s0 + $0x38] sm:$0xff]  ;;  %v17377_v2 = vmax.f32 %v15263_v49, 0.0  ;;  %v9511_v12 = vld [vmem:[%s16258_s0 + $0x40] sm:$0xff]  ;;  %v9513_v49 = vld [vmem:[%s16258_s0 + $0x50] sm:$0xff] }
 0x953   :  { %v15579_v47 = vadd.f32 %v9506_v33, %v17373_v56  ;;  %v15593_v43 = vadd.f32 %v9508_v19, %v17375_v36  ;;  %v17376_v33 = vmax.f32 %v15259_v46, 0.0  ;;  %v17378_v19 = vmax.f32 %v15267_v28, 0.0  ;;  %v9512_v46 = vld [vmem:[%s16258_s0 + $0x48] sm:$0xff]  ;;  %v9514_v28 = vld [vmem:[%s16258_s0 + $0x58] sm:$0xff] }
 0x954   :  { %v17365_v4 = vld [vmem:[#allocation77_spill] sm:$0xff]  ;;  %v15607_v0 = vadd.f32 %v9510_v16, %v17377_v2  ;;  %v17380_v16 = vmax.f32 %v15275_v29, 0.0  ;;  %v9516_v29 = vld [vmem:[%s16258_s0 + $0x68] sm:$0xff] }
 0x955   :  { %v15600_v56 = vadd.f32 %v9509_v17, %v17376_v33  ;;  %v15614_v36 = vadd.f32 %v9511_v12, %v17378_v19  ;;  %v17379_v17 = vmax.f32 %v15271_v55, 0.0  ;;  %v17381_v12 = vmax.f32 %v15279_v57, 0.0  ;;  %v9515_v55 = vld [vmem:[%s16258_s0 + $0x60] sm:$0xff]  ;;  %v9517_v57 = vld [vmem:[%s16258_s0 + $0x70] sm:$0xff] }
 0x956   :  { %v15628_v2 = vadd.f32 %v9513_v49, %v17380_v16  ;;  %v17383_v49 = vmax.f32 %v15287_v9, 0.0  ;;  %v9519_v9 = vld [vmem:[%s16258_s0 + $0x80] sm:$0xff] }
 0x957   :  { %v15621_v33 = vadd.f32 %v9512_v46, %v17379_v17  ;;  %v15635_v19 = vadd.f32 %v9514_v28, %v17381_v12  ;;  %v17382_v46 = vmax.f32 %v15283_v25, 0.0  ;;  %v17384_v28 = vmax.f32 %v15291_v38, 0.0  ;;  %v9518_v25 = vld [vmem:[%s16258_s0 + $0x78] sm:$0xff]  ;;  %v9520_v38 = vld [vmem:[%s16258_s0 + $0x88] sm:$0xff] }
 0x958   :  { %v15649_v16 = vadd.f32 %v9516_v29, %v17383_v49  ;;  %v17386_v29 = vmax.f32 %v15299_v62, 0.0  ;;  %v9522_v62 = vld [vmem:[%s16258_s0 + $0x98] sm:$0xff] }
 0x959   :  { %v15642_v17 = vadd.f32 %v9515_v55, %v17382_v46  ;;  %v15656_v12 = vadd.f32 %v9517_v57, %v17384_v28  ;;  %v17385_v55 = vmax.f32 %v15295_v63, 0.0  ;;  %v17387_v57 = vmax.f32 %v15303_v22, 0.0  ;;  %v9521_v63 = vld [vmem:[%s16258_s0 + $0x90] sm:$0xff]  ;;  %v9523_v22 = vld [vmem:[%s16258_s0 + $0xa0] sm:$0xff] }
 0x95a   :  { %v15670_v49 = vadd.f32 %v9519_v9, %v17386_v29  ;;  %v17389_v9 = vmax.f32 %v15311_v10, 0.0  ;;  %v9525_v10 = vld [vmem:[%s16258_s0 + $0xb0] sm:$0xff] }
 0x95b   :  { %v15663_v46 = vadd.f32 %v9518_v25, %v17385_v55  ;;  %v15677_v28 = vadd.f32 %v9520_v38, %v17387_v57  ;;  %v17388_v25 = vmax.f32 %v15307_v14, 0.0  ;;  %v17390_v38 = vmax.f32 %v15315_v44, 0.0  ;;  %v9524_v14 = vld [vmem:[%s16258_s0 + $0xa8] sm:$0xff]  ;;  %v9526_v44 = vld [vmem:[%s16258_s0 + $0xb8] sm:$0xff] }
 0x95c   :  { %v15691_v29 = vadd.f32 %v9522_v62, %v17389_v9  ;;  %v17392_v62 = vmax.f32 %v15323_v35, 0.0  ;;  %v9528_v35 = vld [vmem:[%s16258_s0 + $0xc8] sm:$0xff] }
 0x95d   :  { %v15684_v55 = vadd.f32 %v9521_v63, %v17388_v25  ;;  %v15698_v57 = vadd.f32 %v9523_v22, %v17390_v38  ;;  %v17391_v63 = vmax.f32 %v15319_v48, 0.0  ;;  %v17393_v22 = vmax.f32 %v15327_v3, 0.0  ;;  %v9527_v48 = vld [vmem:[%s16258_s0 + $0xc0] sm:$0xff]  ;;  %v9529_v3 = vld [vmem:[%s16258_s0 + $0xd0] sm:$0xff] }
 0x95e   :  { %v15712_v9 = vadd.f32 %v9525_v10, %v17392_v62  ;;  %v17395_v10 = vmax.f32 %v15335_v40, 0.0  ;;  %v9531_v40 = vld [vmem:[%s16258_s0 + $0xe0] sm:$0xff] }
 0x95f   :  { %v15705_v25 = vadd.f32 %v9524_v14, %v17391_v63  ;;  %v15719_v38 = vadd.f32 %v9526_v44, %v17393_v22  ;;  %v17394_v14 = vmax.f32 %v15331_v11, 0.0  ;;  %v17396_v44 = vmax.f32 %v15339_v61, 0.0  ;;  %v9530_v11 = vld [vmem:[%s16258_s0 + $0xd8] sm:$0xff]  ;;  %v9532_v61 = vld [vmem:[%s16258_s0 + $0xe8] sm:$0xff] }
 0x960   :  { %v15733_v62 = vadd.f32 %v9528_v35, %v17395_v10  ;;  %v17398_v35 = vmax.f32 %v15347_v13, 0.0  ;;  %v9534_v13 = vld [vmem:[%s16258_s0 + $0xf8] sm:$0xff] }
 0x961   :  { %v15726_v63 = vadd.f32 %v9527_v48, %v17394_v14  ;;  %v15740_v22 = vadd.f32 %v9529_v3, %v17396_v44  ;;  %v17397_v48 = vmax.f32 %v15343_v23, 0.0  ;;  %v17400_v3 = vmax.f32 %v15351_v5, 0.0  ;;  %v9533_v23 = vld [vmem:[%s16258_s0 + $0xf0] sm:$0xff]  ;;  %v9535_v5 = vld [vmem:[%s16258_s0 + $0x100] sm:$0xff] }
 0x962   :  { %v15754_v10 = vadd.f32 %v9531_v40, %v17398_v35  ;;  %v17405_v40 = vld [vmem:[#allocation104_spill] sm:$0xff] }
 0x963   :  { %v15747_v14 = vadd.f32 %v9530_v11, %v17397_v48  ;;  %v15761_v44 = vadd.f32 %v9532_v61, %v17400_v3  ;;  %v17402_v11 = vld [vmem:[#allocation101_spill] sm:$0xff]  ;;  %v17406_v35 = vmax.f32 %v17405_v40, 0.0 }
 0x964   :  { %17399 = vst [vmem:[#allocation18_spill] sm:$0xff] %v15754_v10  ;;  %v17403_v48 = vmax.f32 %v17402_v11, 0.0  ;;  %v17408_v61 = vld [vmem:[#allocation105_spill] sm:$0xff]  ;;  %v17410_v11 = vld [vmem:[#allocation107_spill] sm:$0xff] }
 0x965   :  { %17401 = vst [vmem:[#allocation22_spill] sm:$0xff] %v15761_v44  ;;  %v15775_v10 = vadd.f32 %v9534_v13, %v17406_v35  ;;  %v17409_v3 = vmax.f32 %v17408_v61, 0.0  ;;  %v9537_v13 = vld [vmem:[%s16258_s0 + $0x110] sm:$0xff]  ;;  %v17414_v61 = vmax.f32 %v15375_v42, 0.0 }
 0x966   :  { %v15768_v30 = vadd.f32 %v9533_v23, %v17403_v48  ;;  %v9536_v23 = vld [vmem:[%s16258_s0 + $0x108] sm:$0xff]  ;;  %v17411_v48 = vmax.f32 %v17410_v11, 0.0  ;;  %v17412_v40 = vld [vmem:[#allocation109_spill] sm:$0xff]  ;;  %v17415_v11 = vmax.f32 %v15379_v18, 0.0  ;;  %v9542_v18 = vld [vmem:[%s16258_s0 + $0x138] sm:$0xff] }
 0x967   :  { %17407 = vst [vmem:[#allocation12_spill] sm:$0xff] %v15775_v10  ;;  %v15782_v44 = vadd.f32 %v9535_v5, %v17409_v3  ;;  %v17413_v35 = vmax.f32 %v17412_v40, 0.0  ;;  %v9538_v5 = vld [vmem:[%s16258_s0 + $0x118] sm:$0xff]  ;;  %v17416_v40 = vmax.f32 %v15383_v8, 0.0  ;;  %v9541_v42 = vld [vmem:[%s16258_s0 + $0x130] sm:$0xff]  ;;  %v9543_v8 = vld [vmem:[%s16258_s0 + $0x140] sm:$0xff] }
 0x968   :  { %17404 = vst [vmem:[#allocation66_spill] sm:$0xff] %v15768_v30  ;;  %v15789_v30 = vadd.f32 %v9536_v23, %v17411_v48  ;;  %v15803_v3 = vadd.f32 %v9538_v5, %v17414_v61  ;;  %v9539_v23 = vld [vmem:[%s16258_s0 + $0x120] sm:$0xff]  ;;  %v17417_v5 = vmax.f32 %v15387_v41, 0.0  ;;  %v9544_v41 = vld [vmem:[%s16258_s0 + $0x148] sm:$0xff] }
 0x969   :  { %v15796_v10 = vadd.f32 %v9537_v13, %v17413_v35  ;;  %v15810_v48 = vadd.f32 %v9539_v23, %v17415_v11  ;;  %v9540_v13 = vld [vmem:[%s16258_s0 + $0x128] sm:$0xff]  ;;  %v17418_v23 = vmax.f32 %v17359_v15, 0.0  ;;  %v9545_v15 = vld [vmem:[%s16258_s0 + $0x150] sm:$0xff] }
 0x96a   :  { %v15817_v35 = vadd.f32 %v9540_v13, %v17416_v40  ;;  %v15824_v61 = vadd.f32 %v9541_v42, %v17417_v5  ;;  %v17419_v13 = vmax.f32 %v15395_v7, 0.0  ;;  %v17420_v42 = vmax.f32 %v17360_v27, 0.0  ;;  %v9546_v7 = vld [vmem:[%s16258_s0 + $0x158] sm:$0xff]  ;;  %v9547_v27 = vld [vmem:[%s16258_s0 + $0x160] sm:$0xff] }
 0x96b   :  { %v15831_v11 = vadd.f32 %v9542_v18, %v17418_v23  ;;  %v17421_v18 = vmax.f32 %v17361_v39, 0.0  ;;  %v9548_v39 = vld [vmem:[%s16258_s0 + $0x168] sm:$0xff] }
 0x96c   :  { %v15838_v40 = vadd.f32 %v9543_v8, %v17419_v13  ;;  %v15845_v5 = vadd.f32 %v9544_v41, %v17420_v42  ;;  %v17422_v8 = vmax.f32 %v17362_v6, 0.0  ;;  %v17423_v41 = vmax.f32 %v17363_v37, 0.0  ;;  %v9549_v6 = vld [vmem:[%s16258_s0 + $0x170] sm:$0xff]  ;;  %v9550_v37 = vld [vmem:[%s16258_s0 + $0x178] sm:$0xff] }
 0x96d   :  { %v15852_v23 = vadd.f32 %v9545_v15, %v17421_v18  ;;  %v17425_v15 = vmax.f32 %v17364_v54, 0.0  ;;  %v9551_v54 = vld [vmem:[%s16258_s0 + $0x180] sm:$0xff] }
 0x96e   :  { %v15859_v13 = vadd.f32 %v9546_v7, %v17422_v8  ;;  %v15866_v42 = vadd.f32 %v9547_v27, %v17423_v41  ;;  %v17427_v7 = vmax.f32 %v15419_v50, 0.0  ;;  %v17429_v27 = vld [vmem:[#allocation50_spill] sm:$0xff]  ;;  %v9552_v50 = vld [vmem:[%s16258_s0 + $0x188] sm:$0xff] }
 0x96f   :  { %v15873_v18 = vadd.f32 %v9548_v39, %v17425_v15  ;;  %v17430_v41 = vmax.f32 %v17429_v27, 0.0  ;;  %v17432_v39 = vld [vmem:[#allocation60_spill] sm:$0xff]  ;;  %v17437_v27 = vld [vmem:[#allocation71_spill] sm:$0xff] }
 0x970   :  { %17424 = vst [vmem:[#allocation13_spill] sm:$0xff] %v15866_v42  ;;  %v15880_v8 = vadd.f32 %v9549_v6, %v17427_v7  ;;  %v17433_v15 = vmax.f32 %v17432_v39, 0.0  ;;  %v17435_v6 = vld [vmem:[#allocation62_spill] sm:$0xff]  ;;  %v17439_v39 = vld [vmem:[#allocation72_spill] sm:$0xff] }
 0x971   :  { %17426 = vst [vmem:[#allocation31_spill] sm:$0xff] %v15873_v18  ;;  %v15887_v42 = vadd.f32 %v9550_v37, %v17430_v41  ;;  %v17436_v7 = vmax.f32 %v17435_v6, 0.0  ;;  %v9553_v37 = vld [vmem:[%s16258_s0 + $0x190] sm:$0xff]  ;;  %v17438_v41 = vmax.f32 %v17437_v27, 0.0  ;;  %v17441_v6 = vmax.f32 %v15443_v26, 0.0  ;;  %v9558_v26 = vld [vmem:[%s16258_s0 + $0x1b8] sm:$0xff] }
 0x972   :  { %17428 = vst [vmem:[#allocation35_spill] sm:$0xff] %v15880_v8  ;;  %v15894_v18 = vadd.f32 %v9551_v54, %v17433_v15  ;;  %v9554_v54 = vld [vmem:[%s16258_s0 + $0x198] sm:$0xff]  ;;  %v17440_v15 = vmax.f32 %v17439_v39, 0.0  ;;  %v17442_v27 = vmax.f32 %v15447_v34, 0.0  ;;  %v17443_v39 = vmax.f32 %v15451_v59, 0.0  ;;  %v9559_v34 = vld [vmem:[%s16258_s0 + $0x1c0] sm:$0xff] }
 0x973   :  { %17431 = vst [vmem:[#allocation51_spill] sm:$0xff] %v15887_v42  ;;  %v15901_v8 = vadd.f32 %v9552_v50, %v17436_v7  ;;  %v15908_v42 = vadd.f32 %v9553_v37, %v17438_v41  ;;  %v9555_v50 = vld [vmem:[%s16258_s0 + $0x1a0] sm:$0xff]  ;;  %v9556_v37 = vld [vmem:[%s16258_s0 + $0x1a8] sm:$0xff] }
 0x974   :  { %17434 = vst [vmem:[#allocation63_spill] sm:$0xff] %v15894_v18  ;;  %v15915_v18 = vadd.f32 %v9554_v54, %v17440_v15  ;;  %v15922_v7 = vadd.f32 %v9555_v50, %v17441_v6  ;;  %v15929_v41 = vadd.f32 %v9556_v37, %v17442_v27  ;;  %v9557_v54 = vld [vmem:[%s16258_s0 + $0x1b0] sm:$0xff]  ;;  %v17444_v50 = vmax.f32 %v15455_v1, 0.0  ;;  %v9560_v59 = vld [vmem:[%s16258_s0 + $0x1c8] sm:$0xff] }
 0x975   :  { %v15936_v15 = vadd.f32 %v9557_v54, %v17443_v39  ;;  %v17445_v37 = vmax.f32 %v15459_v60, 0.0  ;;  %v17446_v54 = vmax.f32 %v15463_v32, 0.0  ;;  %v9561_v1 = vld [vmem:[%s16258_s0 + $0x1d0] sm:$0xff]  ;;  %v9562_v60 = vld [vmem:[%s16258_s0 + $0x1d8] sm:$0xff]  ;;  %v9563_v32 = vld [vmem:[%s16258_s0 + $0x1e0] sm:$0xff] }
 0x976   :  { %v15943_v6 = vadd.f32 %v9558_v26, %v17444_v50  ;;  %v17447_v26 = vmax.f32 %v17365_v4, 0.0  ;;  %v9564_v4 = vld [vmem:[%s16258_s0 + $0x1e8] sm:$0xff] }
 0x977   :  { %v15950_v27 = vadd.f32 %v9559_v34, %v17445_v37  ;;  %v15957_v39 = vadd.f32 %v9560_v59, %v17446_v54  ;;  %v17448_v34 = vmax.f32 %v17366_v53, 0.0  ;;  %v17449_v59 = vmax.f32 %v17367_v58, 0.0  ;;  %v9565_v53 = vld [vmem:[%s16258_s0 + $0x1f0] sm:$0xff]  ;;  %v9566_v58 = vld [vmem:[%s16258_s0 + $0x1f8] sm:$0xff] }
 0x978   :  { %v15964_v50 = vadd.f32 %v9561_v1, %v17447_v26  ;;  %v17450_v1 = vmax.f32 %v17368_v24, 0.0  ;;  %v7191_v24 = vmax.f32 %v15558_v51, 0.0  ;;  %v7201_v51 = vmax.f32 %v15628_v2, 0.0 }
 0x979   :  { %v15971_v37 = vadd.f32 %v9562_v60, %v17448_v34  ;;  %v15978_v54 = vadd.f32 %v9563_v32, %v17449_v59  ;;  %v17452_v60 = vmax.f32 %v17369_v31, 0.0  ;;  %v17454_v32 = vmax.f32 %v15487_v45, 0.0 }
 0x97a   :  { %v15985_v26 = vadd.f32 %v9564_v4, %v17450_v1  ;;  %v7192_v4 = vmax.f32 %v15565_v52, 0.0  ;;  %v7193_v1 = vmax.f32 %v15572_v20, 0.0  ;;  %v7195_v31 = vmax.f32 %v15586_v21, 0.0  ;;  %7255 = vst [vmem:[%s16267_s10] sm:$0xff] %v7191_v24  ;;  %7265 = vst [vmem:[%s16267_s10 + $0x50] sm:$0xff] %v7201_v51 }
 0x97b   :  { %v15992_v34 = vadd.f32 %v9565_v53, %v17452_v60  ;;  %v15999_v59 = vadd.f32 %v9566_v58, %v17454_v32  ;;  %v7196_v53 = vmax.f32 %v15593_v43, 0.0  ;;  %v7197_v60 = vmax.f32 %v15600_v56, 0.0  ;;  %v17461_v32 = vld [vmem:[#allocation35_spill] sm:$0xff] }
 0x97c   :  { %17451 = vst [vmem:[#allocation48_spill] sm:$0xff] %v15985_v26  ;;  %v7194_v26 = vmax.f32 %v15579_v47, 0.0  ;;  %v7199_v45 = vmax.f32 %v15614_v36, 0.0  ;;  %v7200_v58 = vmax.f32 %v15621_v33, 0.0  ;;  %v7202_v52 = vmax.f32 %v15635_v19, 0.0  ;;  %7256 = vst [vmem:[%s16267_s10 + $0x8] sm:$0xff] %v7192_v4 }
 0x97d   :  { %17453 = vst [vmem:[#allocation59_spill] sm:$0xff] %v15992_v34  ;;  %v7198_v34 = vmax.f32 %v15607_v0, 0.0  ;;  %7257 = vst [vmem:[%s16267_s10 + $0x10] sm:$0xff] %v7193_v1  ;;  %v7203_v20 = vmax.f32 %v15642_v17, 0.0  ;;  %v7204_v47 = vmax.f32 %v15649_v16, 0.0  ;;  %v7205_v21 = vmax.f32 %v15656_v12, 0.0 }
 0x97e   :  { %7258 = vst [vmem:[%s16267_s10 + $0x18] sm:$0xff] %v7194_v26  ;;  %v7206_v43 = vmax.f32 %v15663_v46, 0.0  ;;  %7259 = vst [vmem:[%s16267_s10 + $0x20] sm:$0xff] %v7195_v31  ;;  %v7207_v56 = vmax.f32 %v15670_v49, 0.0  ;;  %v7208_v0 = vmax.f32 %v15677_v28, 0.0  ;;  %v7209_v36 = vmax.f32 %v15684_v55, 0.0 }
 0x97f   :  { %7260 = vst [vmem:[%s16267_s10 + $0x28] sm:$0xff] %v7196_v53  ;;  %7261 = vst [vmem:[%s16267_s10 + $0x30] sm:$0xff] %v7197_v60  ;;  %v7210_v33 = vmax.f32 %v15691_v29, 0.0  ;;  %v7211_v2 = vmax.f32 %v15698_v57, 0.0  ;;  %v7212_v19 = vmax.f32 %v15705_v25, 0.0  ;;  %v7213_v17 = vmax.f32 %v15712_v9, 0.0 }
 0x980   :  { %7262 = vst [vmem:[%s16267_s10 + $0x38] sm:$0xff] %v7198_v34  ;;  %7263 = vst [vmem:[%s16267_s10 + $0x40] sm:$0xff] %v7199_v45  ;;  %v7214_v16 = vmax.f32 %v15719_v38, 0.0  ;;  %v7215_v12 = vmax.f32 %v15726_v63, 0.0  ;;  %v7216_v46 = vmax.f32 %v15733_v62, 0.0  ;;  %v7217_v49 = vmax.f32 %v15740_v22, 0.0 }
 0x981   :  { %7264 = vst [vmem:[%s16267_s10 + $0x48] sm:$0xff] %v7200_v58  ;;  %7266 = vst [vmem:[%s16267_s10 + $0x58] sm:$0xff] %v7202_v52  ;;  %v7218_v28 = vmax.f32 %v15747_v14, 0.0  ;;  %v17455_v55 = vld [vmem:[#allocation18_spill] sm:$0xff]  ;;  %v17458_v63 = vld [vmem:[#allocation12_spill] sm:$0xff]  ;;  %v7223_v22 = vmax.f32 %v15782_v44, 0.0 }
 0x982   :  { %7267 = vst [vmem:[%s16267_s10 + $0x60] sm:$0xff] %v7203_v20  ;;  %7268 = vst [vmem:[%s16267_s10 + $0x68] sm:$0xff] %v7204_v47  ;;  %v7219_v29 = vmax.f32 %v17455_v55, 0.0  ;;  %v17456_v57 = vld [vmem:[#allocation22_spill] sm:$0xff]  ;;  %v7222_v62 = vmax.f32 %v17458_v63, 0.0  ;;  %v7224_v14 = vmax.f32 %v15789_v30, 0.0 }
 0x983   :  { %7269 = vst [vmem:[%s16267_s10 + $0x70] sm:$0xff] %v7205_v21  ;;  %7270 = vst [vmem:[%s16267_s10 + $0x78] sm:$0xff] %v7206_v43  ;;  %v7220_v25 = vmax.f32 %v17456_v57, 0.0  ;;  %v17457_v9 = vld [vmem:[#allocation66_spill] sm:$0xff]  ;;  %v7225_v26 = vmax.f32 %v15796_v10, 0.0  ;;  %v7226_v34 = vmax.f32 %v15803_v3, 0.0 }
 0x984   :  { %7271 = vst [vmem:[%s16267_s10 + $0x80] sm:$0xff] %v7207_v56  ;;  %7272 = vst [vmem:[%s16267_s10 + $0x88] sm:$0xff] %v7208_v0  ;;  %v7221_v38 = vmax.f32 %v17457_v9, 0.0  ;;  %v7227_v30 = vmax.f32 %v15810_v48, 0.0  ;;  %v7228_v10 = vmax.f32 %v15817_v35, 0.0  ;;  %v7229_v44 = vmax.f32 %v15824_v61, 0.0 }
 0x985   :  { %7273 = vst [vmem:[%s16267_s10 + $0x90] sm:$0xff] %v7209_v36  ;;  %7274 = vst [vmem:[%s16267_s10 + $0x98] sm:$0xff] %v7210_v33  ;;  %v7230_v3 = vmax.f32 %v15831_v11, 0.0  ;;  %v7231_v48 = vmax.f32 %v15838_v40, 0.0  ;;  %v7232_v35 = vmax.f32 %v15845_v5, 0.0  ;;  %v7233_v61 = vmax.f32 %v15852_v23, 0.0 }
 0x986   :  { %7275 = vst [vmem:[%s16267_s10 + $0xa0] sm:$0xff] %v7211_v2  ;;  %7276 = vst [vmem:[%s16267_s10 + $0xa8] sm:$0xff] %v7212_v19  ;;  %v7234_v11 = vmax.f32 %v15859_v13, 0.0  ;;  %v17459_v40 = vld [vmem:[#allocation13_spill] sm:$0xff]  ;;  %v17460_v23 = vld [vmem:[#allocation31_spill] sm:$0xff]  ;;  %v7237_v24 = vmax.f32 %v17461_v32, 0.0 }
 0x987   :  { %7277 = vst [vmem:[%s16267_s10 + $0xb0] sm:$0xff] %v7213_v17  ;;  %7278 = vst [vmem:[%s16267_s10 + $0xb8] sm:$0xff] %v7214_v16  ;;  %v7235_v5 = vmax.f32 %v17459_v40, 0.0  ;;  %v7236_v13 = vmax.f32 %v17460_v23, 0.0  ;;  %v17462_v4 = vld [vmem:[#allocation51_spill] sm:$0xff]  ;;  %v7240_v60 = vmax.f32 %v15901_v8, 0.0 }
 0x988   :  { %7279 = vst [vmem:[%s16267_s10 + $0xc0] sm:$0xff] %v7215_v12  ;;  %7280 = vst [vmem:[%s16267_s10 + $0xc8] sm:$0xff] %v7216_v46  ;;  %v7238_v1 = vmax.f32 %v17462_v4, 0.0  ;;  %v17463_v31 = vld [vmem:[#allocation63_spill] sm:$0xff]  ;;  %v7241_v45 = vmax.f32 %v15908_v42, 0.0  ;;  %v7242_v58 = vmax.f32 %v15915_v18, 0.0 }
 0x989   :  { %7281 = vst [vmem:[%s16267_s10 + $0xd0] sm:$0xff] %v7217_v49  ;;  %7282 = vst [vmem:[%s16267_s10 + $0xd8] sm:$0xff] %v7218_v28  ;;  %v7239_v53 = vmax.f32 %v17463_v31, 0.0  ;;  %v7243_v42 = vmax.f32 %v15922_v7, 0.0  ;;  %v7244_v18 = vmax.f32 %v15929_v41, 0.0  ;;  %v7245_v8 = vmax.f32 %v15936_v15, 0.0 }
 0x98a   :  { %7283 = vst [vmem:[%s16267_s10 + $0xe0] sm:$0xff] %v7219_v29  ;;  %7284 = vst [vmem:[%s16267_s10 + $0xe8] sm:$0xff] %v7220_v25  ;;  %v7246_v51 = vmax.f32 %v15943_v6, 0.0  ;;  %v7247_v7 = vmax.f32 %v15950_v27, 0.0  ;;  %v7248_v41 = vmax.f32 %v15957_v39, 0.0  ;;  %v7249_v15 = vmax.f32 %v15964_v50, 0.0 }
 0x98b   :  { %7285 = vst [vmem:[%s16267_s10 + $0xf0] sm:$0xff] %v7221_v38  ;;  %7286 = vst [vmem:[%s16267_s10 + $0xf8] sm:$0xff] %v7222_v62  ;;  %v7250_v6 = vmax.f32 %v15971_v37, 0.0  ;;  %v7251_v27 = vmax.f32 %v15978_v54, 0.0  ;;  %v17464_v39 = vld [vmem:[#allocation48_spill] sm:$0xff]  ;;  %v17465_v37 = vld [vmem:[#allocation59_spill] sm:$0xff] }
 0x98c   :  { %7287 = vst [vmem:[%s16267_s10 + $0x100] sm:$0xff] %v7223_v22  ;;  %7288 = vst [vmem:[%s16267_s10 + $0x108] sm:$0xff] %v7224_v14  ;;  %v7252_v50 = vmax.f32 %v17464_v39, 0.0  ;;  %v7253_v52 = vmax.f32 %v17465_v37, 0.0  ;;  %v7254_v20 = vmax.f32 %v15999_v59, 0.0 }
 0x98d   :  { %7289 = vst [vmem:[%s16267_s10 + $0x110] sm:$0xff] %v7225_v26  ;;  %7290 = vst [vmem:[%s16267_s10 + $0x118] sm:$0xff] %v7226_v34 }
 0x98e   :  { %7291 = vst [vmem:[%s16267_s10 + $0x120] sm:$0xff] %v7227_v30  ;;  %7292 = vst [vmem:[%s16267_s10 + $0x128] sm:$0xff] %v7228_v10 }
 0x98f   :  { %7293 = vst [vmem:[%s16267_s10 + $0x130] sm:$0xff] %v7229_v44  ;;  %7294 = vst [vmem:[%s16267_s10 + $0x138] sm:$0xff] %v7230_v3 }
 0x990   :  { %7295 = vst [vmem:[%s16267_s10 + $0x140] sm:$0xff] %v7231_v48  ;;  %7296 = vst [vmem:[%s16267_s10 + $0x148] sm:$0xff] %v7232_v35 }
 0x991   :  { %7297 = vst [vmem:[%s16267_s10 + $0x150] sm:$0xff] %v7233_v61  ;;  %7298 = vst [vmem:[%s16267_s10 + $0x158] sm:$0xff] %v7234_v11 }
 0x992   :  { %7299 = vst [vmem:[%s16267_s10 + $0x160] sm:$0xff] %v7235_v5  ;;  %7300 = vst [vmem:[%s16267_s10 + $0x168] sm:$0xff] %v7236_v13 }
 0x993   :  { %7301 = vst [vmem:[%s16267_s10 + $0x170] sm:$0xff] %v7237_v24  ;;  %7302 = vst [vmem:[%s16267_s10 + $0x178] sm:$0xff] %v7238_v1 }
 0x994   :  { %7303 = vst [vmem:[%s16267_s10 + $0x180] sm:$0xff] %v7239_v53  ;;  %7304 = vst [vmem:[%s16267_s10 + $0x188] sm:$0xff] %v7240_v60 }
 0x995   :  { %7305 = vst [vmem:[%s16267_s10 + $0x190] sm:$0xff] %v7241_v45  ;;  %7306 = vst [vmem:[%s16267_s10 + $0x198] sm:$0xff] %v7242_v58 }
 0x996   :  { %7307 = vst [vmem:[%s16267_s10 + $0x1a0] sm:$0xff] %v7243_v42  ;;  %7308 = vst [vmem:[%s16267_s10 + $0x1a8] sm:$0xff] %v7244_v18 }
 0x997   :  { %7309 = vst [vmem:[%s16267_s10 + $0x1b0] sm:$0xff] %v7245_v8  ;;  %7310 = vst [vmem:[%s16267_s10 + $0x1b8] sm:$0xff] %v7246_v51 }
 0x998   :  { %7311 = vst [vmem:[%s16267_s10 + $0x1c0] sm:$0xff] %v7247_v7  ;;  %7312 = vst [vmem:[%s16267_s10 + $0x1c8] sm:$0xff] %v7248_v41 }
 0x999   :  { %7313 = vst [vmem:[%s16267_s10 + $0x1d0] sm:$0xff] %v7249_v15  ;;  %7314 = vst [vmem:[%s16267_s10 + $0x1d8] sm:$0xff] %v7250_v6 }
 0x99a   :  { %7315 = vst [vmem:[%s16267_s10 + $0x1e0] sm:$0xff] %v7251_v27  ;;  %7316 = vst [vmem:[%s16267_s10 + $0x1e8] sm:$0xff] %v7252_v50 }
 0x99b   :  { %7317 = vst [vmem:[%s16267_s10 + $0x1f0] sm:$0xff] %v7253_v52  ;;  %7318 = vst [vmem:[%s16267_s10 + $0x1f8] sm:$0xff] %v7254_v20 }

</bundles_post_ra>
